<compile_context>
chip_gen: v5e
topology: v5e:2x2
jax: 0.10.0
libtpu: 0.0.40
codegen_flags: <defaults>
</compile_context>

<pallas_src>
import jax
import jax.numpy as jnp
import numpy as np
from jax import lax
from jax.experimental import pallas as pl
from jax.experimental.pallas import tpu as pltpu

D_MODEL = 32
D_STATE = 16
_HP = jax.lax.Precision.HIGHEST   # used only by the pure-JAX reference


def _selective_scan_kernel(x_ref, wg_ref, bg_ref, abd_ref, wb_ref, wc_ref,
                           dv_ref, gamma_ref, beta_ref, out_ref,
                           state_scr, st_scr):
    # x_ref: (TL, D) time-chunk for one batch element (batch dim squeezed).
    TL = x_ref.shape[0]

    # Persistent recurrent state for this batch element; reset on first chunk.
    @pl.when(pl.program_id(1) == 0)
    def _():
        state_scr[...] = jnp.zeros_like(state_scr)

    # ---- hoisted, time-parallel work (default-precision MXU matmuls) --------
    x = x_ref[...].astype(jnp.float32)                                  # (TL, D)
    gate = jax.nn.sigmoid(
        jnp.dot(x, wg_ref[...], preferred_element_type=jnp.float32) + bg_ref[...])
    xg = x * gate                                                       # (TL, D)
    # input injection u[t] = xg[t] @ wb, staged into the lane-dense scratch
    st_scr[...] = jnp.dot(xg, wb_ref[...], preferred_element_type=jnp.float32)

    # ---- serial part: ONE matmul per step ------------------------------------
    # TODO(synk): abd is block-diagonal (31/32 zeros).  On v5e a per-channel VPU
    # transition (state laid out (D, N)) or pre-chunked A^2/A^4 transitions
    # would cut MXU tile pushes 4-32x; kept on the MXU here because at
    # d_state=16 the per-step lane<->sublane relayout costs more than it saves.
    def step(t, state):                                  # state: (1, D*N) f32
        state = (jnp.dot(state, abd_ref[...],
                         preferred_element_type=jnp.float32)
                 + st_scr[pl.ds(t, 1), :])
        st_scr[pl.ds(t, 1), :] = state                   # overwrite u[t] -> state[t]
        return state

    state = lax.fori_loop(0, TL, step, state_scr[...], unroll=True)
    state_scr[...] = state                               # carry into next chunk

    # ---- hoisted readout + residual + LayerNorm (eps = 1e-5) -----------------
    y = (jnp.dot(st_scr[...], wc_ref[...], preferred_element_type=jnp.float32)
         + dv_ref[...] * xg)                                            # (TL, D)
    z = y + xg
    mean = jnp.mean(z, axis=-1, keepdims=True)
    var = jnp.mean(jnp.square(z - mean), axis=-1, keepdims=True)
    zn = (z - mean) * lax.rsqrt(var + 1e-5)                             # EUP rsqrt
    out = zn * gamma_ref[...] + beta_ref[...]
    # TODO(synk): nn.Dropout(0.1) is stochastic; treated as identity (eval mode).
    out_ref[...] = out.astype(out_ref.dtype)


def selective_scan(x, params, *, time_chunk=None):
    """x: (B, L, D) float32 -> (B, L, D) float32."""
    Bsz, L, D = x.shape
    A, Bp, Cp, Dp = params["A"], params["B"], params["C"], params["D"]
    N = A.shape[-1]
    DN = D * N

    # Time-chunk size: multiple of 8 sublanes (or the full length).
    TL = time_chunk if time_chunk is not None else (8 if L % 8 == 0 else L)
    assert L % TL == 0 and (TL % 8 == 0 or TL == L), "bad time chunk"

    # Glue (parameter-only): block-diagonal / expanded matrices in plain JAX.
    eye = jnp.eye(D, dtype=jnp.float32)
    abd = jnp.einsum("dnm,de->dnem", A, eye).reshape(DN, DN)     # (DN, DN)
    wb = jnp.einsum("dn,de->edn", Bp[:, :, 0], eye).reshape(D, DN)   # (D, DN)
    wc = jnp.einsum("dn,de->dne", Cp[:, 0, :], eye).reshape(DN, D)   # (DN, D)
    dv = Dp[:, 0, 0].reshape(1, D)
    wg = params["Wg"]                                   # gate = x @ Wg + bg
    bg = params["bg"].reshape(1, D)
    gamma = params["gamma"].reshape(1, D)
    beta = params["beta"].reshape(1, D)

    rep = lambda b, t: (0, 0)        # parameters: same block at every grid step
    grid_spec = pltpu.PrefetchScalarGridSpec(
        num_scalar_prefetch=0,
        grid=(Bsz, L // TL),                      # (parallel batch, serial time)
        in_specs=[
            pl.BlockSpec((None, TL, D), lambda b, t: (b, t, 0)),   # x
            pl.BlockSpec((D, D), rep),                             # Wg
            pl.BlockSpec((1, D), rep),                             # bg
            pl.BlockSpec((DN, DN), rep),                           # block-diag A
            pl.BlockSpec((D, DN), rep),                            # B injection
            pl.BlockSpec((DN, D), rep),                            # C readout
            pl.BlockSpec((1, D), rep),                             # D skip
            pl.BlockSpec((1, D), rep),                             # LN gamma
            pl.BlockSpec((1, D), rep),                             # LN beta
        ],
        out_specs=pl.BlockSpec((None, TL, D), lambda b, t: (b, t, 0)),
        scratch_shapes=[
            pltpu.VMEM((1, DN), jnp.float32),     # recurrent state (persists)
            pltpu.VMEM((TL, DN), jnp.float32),    # u[t] then state[t] (lane-dense)
        ],
    )
    return pl.pallas_call(
        _selective_scan_kernel,
        out_shape=jax.ShapeDtypeStruct((Bsz, L, D), x.dtype),
        grid_spec=grid_spec,
        compiler_params=pltpu.CompilerParams(
            dimension_semantics=("parallel", "arbitrary"),
            vmem_limit_bytes=32 * 1024 * 1024),
    )(x, wg, bg, abd, wb, wc, dv, gamma, beta)


def reference(x, params):
    """Pure-JAX reference of the intended SelectiveScan forward (f32 HIGHEST)."""
    gate = jax.nn.sigmoid(
        jnp.einsum("bld,de->ble", x, params["Wg"], precision=_HP) + params["bg"])
    xg = x * gate
    Bsz, L, D = x.shape
    A = params["A"]
    Bv = params["B"][:, :, 0]
    Cv = params["C"][:, 0, :]
    Dv = params["D"][:, 0, 0]
    N = A.shape[-1]
    state = jnp.zeros((Bsz, D, N), jnp.float32)
    ys = []
    for t in range(L):
        xt = xg[:, t, :]
        state = (jnp.einsum("bdn,dnm->bdm", state, A, precision=_HP)
                 + xt[:, :, None] * Bv[None])
        ys.append(jnp.einsum("bdn,dn->bd", state, Cv, precision=_HP)
                  + Dv[None] * xt)
    y = jnp.stack(ys, axis=1)
    z = y + xg
    mean = z.mean(-1, keepdims=True)
    var = jnp.mean((z - mean) ** 2, axis=-1, keepdims=True)
    return (z - mean) / jnp.sqrt(var + 1e-5) * params["gamma"] + params["beta"]


if __name__ == "__main__":
    key = jax.random.PRNGKey(0)
    ks = jax.random.split(key, 7)
    d_model, d_state = D_MODEL, D_STATE
    batch, seq = 2, 16   # seq=16 exercises the persistent state across 2 chunks

    params = {
        # module __init__ shapes; A scaled for a numerically sane recurrence
        "A": 0.2 * jax.random.normal(ks[0], (d_model, d_state, d_state), jnp.float32),
        "B": jax.random.normal(ks[1], (d_model, d_state, 1), jnp.float32),
        "C": jax.random.normal(ks[2], (d_model, 1, d_state), jnp.float32),
        "D": jax.random.normal(ks[3], (d_model, 1, 1), jnp.float32),
        "Wg": jax.random.normal(ks[4], (d_model, d_model), jnp.float32) / jnp.sqrt(d_model),
        "bg": 0.1 * jax.random.normal(ks[5], (d_model,), jnp.float32),
        "gamma": jnp.ones((d_model,), jnp.float32),   # LayerNorm weight
        "beta": jnp.zeros((d_model,), jnp.float32),   # LayerNorm bias
    }
    x = jax.random.normal(ks[6], (batch, seq, d_model), jnp.float32)

    out = jax.block_until_ready(selective_scan(x, params))
    ref = reference(x, params)
    # Kernel matmuls use default (single-pass bf16) MXU precision per the perf
    # review; reference is f32-HIGHEST, so allow ~1e-2 divergence over the
    # 16-step recurrence.
    np.testing.assert_allclose(np.asarray(out), np.asarray(ref), rtol=2e-2, atol=2e-2)
    assert out.shape == x.shape and out.dtype == x.dtype
    print("KERNEL_OK")
</pallas_src>

<mosaic_0001>
module attributes {stable_mosaic.version = 11 : i64} {
  func.func @_selective_scan_kernel(%arg0: i32, %arg1: i32, %arg2: memref<1x8x32xf32, #tpu.memory_space<vmem>>, %arg3: memref<32x32xf32, #tpu.memory_space<vmem>>, %arg4: memref<1x32xf32, #tpu.memory_space<vmem>>, %arg5: memref<512x512xf32, #tpu.memory_space<vmem>>, %arg6: memref<32x512xf32, #tpu.memory_space<vmem>>, %arg7: memref<512x32xf32, #tpu.memory_space<vmem>>, %arg8: memref<1x32xf32, #tpu.memory_space<vmem>>, %arg9: memref<1x32xf32, #tpu.memory_space<vmem>>, %arg10: memref<1x32xf32, #tpu.memory_space<vmem>>, %arg11: memref<1x8x32xf32, #tpu.memory_space<vmem>>, %arg12: memref<1x512xf32, #tpu.memory_space<vmem>>, %arg13: memref<8x512xf32, #tpu.memory_space<vmem>>) attributes {dimension_semantics = [#tpu.dimension_semantics<parallel>, #tpu.dimension_semantics<arbitrary>], iteration_bounds = array<i64: 2, 2>, scalar_prefetch = 0 : i64, scratch_operands = 2 : i64, tpu.core_type = #tpu.core_type<tc>, window_params = [{transform_indices = @transform_0, window_bounds = array<i64: 1, 8, 32>}, {pipeline_mode = #tpu.pipeline_mode<synchronous>, transform_indices = @transform_1, window_bounds = array<i64: 32, 32>}, {pipeline_mode = #tpu.pipeline_mode<synchronous>, transform_indices = @transform_2, window_bounds = array<i64: 1, 32>}, {pipeline_mode = #tpu.pipeline_mode<synchronous>, transform_indices = @transform_3, window_bounds = array<i64: 512, 512>}, {pipeline_mode = #tpu.pipeline_mode<synchronous>, transform_indices = @transform_4, window_bounds = array<i64: 32, 512>}, {pipeline_mode = #tpu.pipeline_mode<synchronous>, transform_indices = @transform_5, window_bounds = array<i64: 512, 32>}, {pipeline_mode = #tpu.pipeline_mode<synchronous>, transform_indices = @transform_6, window_bounds = array<i64: 1, 32>}, {pipeline_mode = #tpu.pipeline_mode<synchronous>, transform_indices = @transform_7, window_bounds = array<i64: 1, 32>}, {pipeline_mode = #tpu.pipeline_mode<synchronous>, transform_indices = @transform_8, window_bounds = array<i64: 1, 32>}, {transform_indices = @transform_9, window_bounds = array<i64: 1, 8, 32>}]} {
    %c0_i32 = arith.constant 0 : i32
    %0 = arith.cmpi eq, %arg1, %c0_i32 : i32
    %1 = arith.extui %0 : i1 to i32
    %c0_i32_0 = arith.constant 0 : i32
    %2 = arith.cmpi ne, %1, %c0_i32_0 : i32
    scf.if %2 {
      %cst_77 = arith.constant 0.000000e+00 : f32
      %112 = vector.broadcast %cst_77 : f32 to vector<1x512xf32>
      %c0_78 = arith.constant 0 : index
      %c0_79 = arith.constant 0 : index
      %113 = vector.load %arg12[%c0_78, %c0_79] : memref<1x512xf32, #tpu.memory_space<vmem>>, vector<1x512xf32>
      tpu.vector_store %arg12[%c0_78, %c0_79], %112 {strides = array<i32>} : memref<1x512xf32, #tpu.memory_space<vmem>>, vector<1x512xf32>,
    } else {
    }
    %c0 = arith.constant 0 : index
    %c0_1 = arith.constant 0 : index
    %c0_2 = arith.constant 0 : index
    %3 = vector.load %arg2[%c0, %c0_1, %c0_2] : memref<1x8x32xf32, #tpu.memory_space<vmem>>, vector<1x8x32xf32>
    %4 = vector.shape_cast %3 : vector<1x8x32xf32> to vector<8x32xf32>
    %c0_3 = arith.constant 0 : index
    %c0_4 = arith.constant 0 : index
    %5 = vector.load %arg3[%c0_3, %c0_4] : memref<32x32xf32, #tpu.memory_space<vmem>>, vector<32x32xf32>
    %cst = arith.constant dense<0.000000e+00> : vector<8x32xf32>
    %6 = tpu.matmul %4, %5, %cst {dimension_numbers = #tpu.dot_dimension_numbers<[1], [0], [0], [1], [0, 0, 1, 1], [], []>} : vector<8x32xf32>, vector<32x32xf32>, vector<8x32xf32> -> vector<8x32xf32>
    %c0_5 = arith.constant 0 : index
    %c0_6 = arith.constant 0 : index
    %7 = vector.load %arg4[%c0_5, %c0_6] : memref<1x32xf32, #tpu.memory_space<vmem>>, vector<1x32xf32>
    %8 = vector.broadcast %7 : vector<1x32xf32> to vector<8x32xf32>
    %9 = arith.addf %6, %8 : vector<8x32xf32>
    %10 = arith.negf %9 : vector<8x32xf32>
    %11 = math.exp %10 : vector<8x32xf32>
    %cst_7 = arith.constant 1.000000e+00 : f32
    %12 = vector.broadcast %cst_7 : f32 to vector<8x32xf32>
    %13 = arith.addf %12, %11 : vector<8x32xf32>
    %14 = arith.divf %12, %13 : vector<8x32xf32>
    %15 = arith.mulf %4, %14 : vector<8x32xf32>
    %c0_8 = arith.constant 0 : index
    %c0_9 = arith.constant 0 : index
    %16 = vector.load %arg6[%c0_8, %c0_9] : memref<32x512xf32, #tpu.memory_space<vmem>>, vector<32x512xf32>
    %cst_10 = arith.constant dense<0.000000e+00> : vector<8x512xf32>
    %17 = tpu.matmul %15, %16, %cst_10 {dimension_numbers = #tpu.dot_dimension_numbers<[1], [0], [0], [1], [0, 0, 1, 1], [], []>} : vector<8x32xf32>, vector<32x512xf32>, vector<8x512xf32> -> vector<8x512xf32>
    %c0_11 = arith.constant 0 : index
    %c0_12 = arith.constant 0 : index
    %18 = vector.load %arg13[%c0_11, %c0_12] : memref<8x512xf32, #tpu.memory_space<vmem>>, vector<8x512xf32>
    tpu.vector_store %arg13[%c0_11, %c0_12], %17 {strides = array<i32>} : memref<8x512xf32, #tpu.memory_space<vmem>>, vector<8x512xf32>,
    %c0_13 = arith.constant 0 : index
    %c0_14 = arith.constant 0 : index
    %19 = vector.load %arg12[%c0_13, %c0_14] : memref<1x512xf32, #tpu.memory_space<vmem>>, vector<1x512xf32>
    %c0_i32_15 = arith.constant 0 : i32
    %c0_16 = arith.constant 0 : index
    %c0_17 = arith.constant 0 : index
    %20 = vector.load %arg5[%c0_16, %c0_17] : memref<512x512xf32, #tpu.memory_space<vmem>>, vector<512x512xf32>
    %cst_18 = arith.constant dense<0.000000e+00> : vector<1x512xf32>
    %21 = tpu.matmul %19, %20, %cst_18 {dimension_numbers = #tpu.dot_dimension_numbers<[1], [0], [0], [1], [0, 0, 1, 1], [], []>} : vector<1x512xf32>, vector<512x512xf32>, vector<1x512xf32> -> vector<1x512xf32>
    %22 = arith.index_cast %c0_i32_15 : i32 to index
    %c0_19 = arith.constant 0 : index
    %23 = vector.load %arg13[%22, %c0_19] : memref<8x512xf32, #tpu.memory_space<vmem>>, vector<1x512xf32>
    %24 = arith.addf %21, %23 : vector<1x512xf32>
    %25 = arith.index_cast %c0_i32_15 : i32 to index
    %c0_20 = arith.constant 0 : index
    %26 = vector.load %arg13[%25, %c0_20] : memref<8x512xf32, #tpu.memory_space<vmem>>, vector<1x512xf32>
    tpu.vector_store %arg13[%25, %c0_20], %24 {strides = array<i32>} : memref<8x512xf32, #tpu.memory_space<vmem>>, vector<1x512xf32>,
    %c1_i32 = arith.constant 1 : i32
    %c0_21 = arith.constant 0 : index
    %c0_22 = arith.constant 0 : index
    %27 = vector.load %arg5[%c0_21, %c0_22] : memref<512x512xf32, #tpu.memory_space<vmem>>, vector<512x512xf32>
    %cst_23 = arith.constant dense<0.000000e+00> : vector<1x512xf32>
    %28 = tpu.matmul %24, %27, %cst_23 {dimension_numbers = #tpu.dot_dimension_numbers<[1], [0], [0], [1], [0, 0, 1, 1], [], []>} : vector<1x512xf32>, vector<512x512xf32>, vector<1x512xf32> -> vector<1x512xf32>
    %29 = arith.index_cast %c1_i32 : i32 to index
    %c0_24 = arith.constant 0 : index
    %30 = vector.load %arg13[%29, %c0_24] : memref<8x512xf32, #tpu.memory_space<vmem>>, vector<1x512xf32>
    %31 = arith.addf %28, %30 : vector<1x512xf32>
    %32 = arith.index_cast %c1_i32 : i32 to index
    %c0_25 = arith.constant 0 : index
    %33 = vector.load %arg13[%32, %c0_25] : memref<8x512xf32, #tpu.memory_space<vmem>>, vector<1x512xf32>
    tpu.vector_store %arg13[%32, %c0_25], %31 {strides = array<i32>} : memref<8x512xf32, #tpu.memory_space<vmem>>, vector<1x512xf32>,
    %c2_i32 = arith.constant 2 : i32
    %c0_26 = arith.constant 0 : index
    %c0_27 = arith.constant 0 : index
    %34 = vector.load %arg5[%c0_26, %c0_27] : memref<512x512xf32, #tpu.memory_space<vmem>>, vector<512x512xf32>
    %cst_28 = arith.constant dense<0.000000e+00> : vector<1x512xf32>
    %35 = tpu.matmul %31, %34, %cst_28 {dimension_numbers = #tpu.dot_dimension_numbers<[1], [0], [0], [1], [0, 0, 1, 1], [], []>} : vector<1x512xf32>, vector<512x512xf32>, vector<1x512xf32> -> vector<1x512xf32>
    %36 = arith.index_cast %c2_i32 : i32 to index
    %c0_29 = arith.constant 0 : index
    %37 = vector.load %arg13[%36, %c0_29] : memref<8x512xf32, #tpu.memory_space<vmem>>, vector<1x512xf32>
    %38 = arith.addf %35, %37 : vector<1x512xf32>
    %39 = arith.index_cast %c2_i32 : i32 to index
    %c0_30 = arith.constant 0 : index
    %40 = vector.load %arg13[%39, %c0_30] : memref<8x512xf32, #tpu.memory_space<vmem>>, vector<1x512xf32>
    tpu.vector_store %arg13[%39, %c0_30], %38 {strides = array<i32>} : memref<8x512xf32, #tpu.memory_space<vmem>>, vector<1x512xf32>,
    %c3_i32 = arith.constant 3 : i32
    %c0_31 = arith.constant 0 : index
    %c0_32 = arith.constant 0 : index
    %41 = vector.load %arg5[%c0_31, %c0_32] : memref<512x512xf32, #tpu.memory_space<vmem>>, vector<512x512xf32>
    %cst_33 = arith.constant dense<0.000000e+00> : vector<1x512xf32>
    %42 = tpu.matmul %38, %41, %cst_33 {dimension_numbers = #tpu.dot_dimension_numbers<[1], [0], [0], [1], [0, 0, 1, 1], [], []>} : vector<1x512xf32>, vector<512x512xf32>, vector<1x512xf32> -> vector<1x512xf32>
    %43 = arith.index_cast %c3_i32 : i32 to index
    %c0_34 = arith.constant 0 : index
    %44 = vector.load %arg13[%43, %c0_34] : memref<8x512xf32, #tpu.memory_space<vmem>>, vector<1x512xf32>
    %45 = arith.addf %42, %44 : vector<1x512xf32>
    %46 = arith.index_cast %c3_i32 : i32 to index
    %c0_35 = arith.constant 0 : index
    %47 = vector.load %arg13[%46, %c0_35] : memref<8x512xf32, #tpu.memory_space<vmem>>, vector<1x512xf32>
    tpu.vector_store %arg13[%46, %c0_35], %45 {strides = array<i32>} : memref<8x512xf32, #tpu.memory_space<vmem>>, vector<1x512xf32>,
    %c4_i32 = arith.constant 4 : i32
    %c0_36 = arith.constant 0 : index
    %c0_37 = arith.constant 0 : index
    %48 = vector.load %arg5[%c0_36, %c0_37] : memref<512x512xf32, #tpu.memory_space<vmem>>, vector<512x512xf32>
    %cst_38 = arith.constant dense<0.000000e+00> : vector<1x512xf32>
    %49 = tpu.matmul %45, %48, %cst_38 {dimension_numbers = #tpu.dot_dimension_numbers<[1], [0], [0], [1], [0, 0, 1, 1], [], []>} : vector<1x512xf32>, vector<512x512xf32>, vector<1x512xf32> -> vector<1x512xf32>
    %50 = arith.index_cast %c4_i32 : i32 to index
    %c0_39 = arith.constant 0 : index
    %51 = vector.load %arg13[%50, %c0_39] : memref<8x512xf32, #tpu.memory_space<vmem>>, vector<1x512xf32>
    %52 = arith.addf %49, %51 : vector<1x512xf32>
    %53 = arith.index_cast %c4_i32 : i32 to index
    %c0_40 = arith.constant 0 : index
    %54 = vector.load %arg13[%53, %c0_40] : memref<8x512xf32, #tpu.memory_space<vmem>>, vector<1x512xf32>
    tpu.vector_store %arg13[%53, %c0_40], %52 {strides = array<i32>} : memref<8x512xf32, #tpu.memory_space<vmem>>, vector<1x512xf32>,
    %c5_i32 = arith.constant 5 : i32
    %c0_41 = arith.constant 0 : index
    %c0_42 = arith.constant 0 : index
    %55 = vector.load %arg5[%c0_41, %c0_42] : memref<512x512xf32, #tpu.memory_space<vmem>>, vector<512x512xf32>
    %cst_43 = arith.constant dense<0.000000e+00> : vector<1x512xf32>
    %56 = tpu.matmul %52, %55, %cst_43 {dimension_numbers = #tpu.dot_dimension_numbers<[1], [0], [0], [1], [0, 0, 1, 1], [], []>} : vector<1x512xf32>, vector<512x512xf32>, vector<1x512xf32> -> vector<1x512xf32>
    %57 = arith.index_cast %c5_i32 : i32 to index
    %c0_44 = arith.constant 0 : index
    %58 = vector.load %arg13[%57, %c0_44] : memref<8x512xf32, #tpu.memory_space<vmem>>, vector<1x512xf32>
    %59 = arith.addf %56, %58 : vector<1x512xf32>
    %60 = arith.index_cast %c5_i32 : i32 to index
    %c0_45 = arith.constant 0 : index
    %61 = vector.load %arg13[%60, %c0_45] : memref<8x512xf32, #tpu.memory_space<vmem>>, vector<1x512xf32>
    tpu.vector_store %arg13[%60, %c0_45], %59 {strides = array<i32>} : memref<8x512xf32, #tpu.memory_space<vmem>>, vector<1x512xf32>,
    %c6_i32 = arith.constant 6 : i32
    %c0_46 = arith.constant 0 : index
    %c0_47 = arith.constant 0 : index
    %62 = vector.load %arg5[%c0_46, %c0_47] : memref<512x512xf32, #tpu.memory_space<vmem>>, vector<512x512xf32>
    %cst_48 = arith.constant dense<0.000000e+00> : vector<1x512xf32>
    %63 = tpu.matmul %59, %62, %cst_48 {dimension_numbers = #tpu.dot_dimension_numbers<[1], [0], [0], [1], [0, 0, 1, 1], [], []>} : vector<1x512xf32>, vector<512x512xf32>, vector<1x512xf32> -> vector<1x512xf32>
    %64 = arith.index_cast %c6_i32 : i32 to index
    %c0_49 = arith.constant 0 : index
    %65 = vector.load %arg13[%64, %c0_49] : memref<8x512xf32, #tpu.memory_space<vmem>>, vector<1x512xf32>
    %66 = arith.addf %63, %65 : vector<1x512xf32>
    %67 = arith.index_cast %c6_i32 : i32 to index
    %c0_50 = arith.constant 0 : index
    %68 = vector.load %arg13[%67, %c0_50] : memref<8x512xf32, #tpu.memory_space<vmem>>, vector<1x512xf32>
    tpu.vector_store %arg13[%67, %c0_50], %66 {strides = array<i32>} : memref<8x512xf32, #tpu.memory_space<vmem>>, vector<1x512xf32>,
    %c7_i32 = arith.constant 7 : i32
    %c0_51 = arith.constant 0 : index
    %c0_52 = arith.constant 0 : index
    %69 = vector.load %arg5[%c0_51, %c0_52] : memref<512x512xf32, #tpu.memory_space<vmem>>, vector<512x512xf32>
    %cst_53 = arith.constant dense<0.000000e+00> : vector<1x512xf32>
    %70 = tpu.matmul %66, %69, %cst_53 {dimension_numbers = #tpu.dot_dimension_numbers<[1], [0], [0], [1], [0, 0, 1, 1], [], []>} : vector<1x512xf32>, vector<512x512xf32>, vector<1x512xf32> -> vector<1x512xf32>
    %71 = arith.index_cast %c7_i32 : i32 to index
    %c0_54 = arith.constant 0 : index
    %72 = vector.load %arg13[%71, %c0_54] : memref<8x512xf32, #tpu.memory_space<vmem>>, vector<1x512xf32>
    %73 = arith.addf %70, %72 : vector<1x512xf32>
    %74 = arith.index_cast %c7_i32 : i32 to index
    %c0_55 = arith.constant 0 : index
    %75 = vector.load %arg13[%74, %c0_55] : memref<8x512xf32, #tpu.memory_space<vmem>>, vector<1x512xf32>
    tpu.vector_store %arg13[%74, %c0_55], %73 {strides = array<i32>} : memref<8x512xf32, #tpu.memory_space<vmem>>, vector<1x512xf32>,
    %c8_i32 = arith.constant 8 : i32
    %c0_56 = arith.constant 0 : index
    %c0_57 = arith.constant 0 : index
    %76 = vector.load %arg12[%c0_56, %c0_57] : memref<1x512xf32, #tpu.memory_space<vmem>>, vector<1x512xf32>
    tpu.vector_store %arg12[%c0_56, %c0_57], %73 {strides = array<i32>} : memref<1x512xf32, #tpu.memory_space<vmem>>, vector<1x512xf32>,
    %c0_58 = arith.constant 0 : index
    %c0_59 = arith.constant 0 : index
    %77 = vector.load %arg13[%c0_58, %c0_59] : memref<8x512xf32, #tpu.memory_space<vmem>>, vector<8x512xf32>
    %c0_60 = arith.constant 0 : index
    %c0_61 = arith.constant 0 : index
    %78 = vector.load %arg7[%c0_60, %c0_61] : memref<512x32xf32, #tpu.memory_space<vmem>>, vector<512x32xf32>
    %cst_62 = arith.constant dense<0.000000e+00> : vector<8x32xf32>
    %79 = tpu.matmul %77, %78, %cst_62 {dimension_numbers = #tpu.dot_dimension_numbers<[1], [0], [0], [1], [0, 0, 1, 1], [], []>} : vector<8x512xf32>, vector<512x32xf32>, vector<8x32xf32> -> vector<8x32xf32>
    %c0_63 = arith.constant 0 : index
    %c0_64 = arith.constant 0 : index
    %80 = vector.load %arg8[%c0_63, %c0_64] : memref<1x32xf32, #tpu.memory_space<vmem>>, vector<1x32xf32>
    %81 = vector.broadcast %80 : vector<1x32xf32> to vector<8x32xf32>
    %82 = arith.mulf %81, %15 : vector<8x32xf32>
    %83 = arith.addf %79, %82 : vector<8x32xf32>
    %84 = arith.addf %83, %15 : vector<8x32xf32>
    %cst_65 = arith.constant dense<0.000000e+00> : vector<8xf32>
    %85 = vector.multi_reduction <add>, %84, %cst_65 [1] : vector<8x32xf32> to vector<8xf32>
    %86 = vector.shape_cast %85 : vector<8xf32> to vector<8x1xf32>
    %cst_66 = arith.constant 3.200000e+01 : f32
    %87 = vector.broadcast %cst_66 : f32 to vector<8x1xf32>
    %88 = arith.divf %86, %87 : vector<8x1xf32>
    %89 = vector.broadcast %88 : vector<8x1xf32> to vector<8x32xf32>
    %90 = arith.subf %84, %89 : vector<8x32xf32>
    %91 = arith.mulf %90, %90 : vector<8x32xf32>
    %cst_67 = arith.constant dense<0.000000e+00> : vector<8xf32>
    %92 = vector.multi_reduction <add>, %91, %cst_67 [1] : vector<8x32xf32> to vector<8xf32>
    %93 = vector.shape_cast %92 : vector<8xf32> to vector<8x1xf32>
    %cst_68 = arith.constant 3.200000e+01 : f32
    %94 = vector.broadcast %cst_68 : f32 to vector<8x1xf32>
    %95 = arith.divf %93, %94 : vector<8x1xf32>
    %96 = vector.broadcast %88 : vector<8x1xf32> to vector<8x32xf32>
    %97 = arith.subf %84, %96 : vector<8x32xf32>
    %cst_69 = arith.constant 9.99999974E-6 : f32
    %98 = vector.broadcast %cst_69 : f32 to vector<8x1xf32>
    %99 = arith.addf %95, %98 : vector<8x1xf32>
    %100 = math.rsqrt %99 : vector<8x1xf32>
    %101 = vector.broadcast %100 : vector<8x1xf32> to vector<8x32xf32>
    %102 = arith.mulf %97, %101 : vector<8x32xf32>
    %c0_70 = arith.constant 0 : index
    %c0_71 = arith.constant 0 : index
    %103 = vector.load %arg9[%c0_70, %c0_71] : memref<1x32xf32, #tpu.memory_space<vmem>>, vector<1x32xf32>
    %104 = vector.broadcast %103 : vector<1x32xf32> to vector<8x32xf32>
    %105 = arith.mulf %102, %104 : vector<8x32xf32>
    %c0_72 = arith.constant 0 : index
    %c0_73 = arith.constant 0 : index
    %106 = vector.load %arg10[%c0_72, %c0_73] : memref<1x32xf32, #tpu.memory_space<vmem>>, vector<1x32xf32>
    %107 = vector.broadcast %106 : vector<1x32xf32> to vector<8x32xf32>
    %108 = arith.addf %105, %107 : vector<8x32xf32>
    %c0_74 = arith.constant 0 : index
    %c0_75 = arith.constant 0 : index
    %c0_76 = arith.constant 0 : index
    %109 = vector.load %arg11[%c0_74, %c0_75, %c0_76] : memref<1x8x32xf32, #tpu.memory_space<vmem>>, vector<1x8x32xf32>
    %110 = vector.shape_cast %109 : vector<1x8x32xf32> to vector<8x32xf32>
    %111 = vector.shape_cast %108 : vector<8x32xf32> to vector<1x8x32xf32>
    tpu.vector_store %arg11[%c0_74, %c0_75, %c0_76], %111 {strides = array<i32>} : memref<1x8x32xf32, #tpu.memory_space<vmem>>, vector<1x8x32xf32>,
    return
  }
  func.func @transform_0(%arg0: i32, %arg1: i32) -> (i32, i32, i32) {
    %c0_i32 = arith.constant 0 : i32
    %c0_i32_0 = arith.constant 0 : i32
    return %arg0, %arg1, %c0_i32 : i32, i32, i32
  }
  func.func @transform_1(%arg0: i32, %arg1: i32) -> (i32, i32) {
    %c0_i32 = arith.constant 0 : i32
    %c0_i32_0 = arith.constant 0 : i32
    %c0_i32_1 = arith.constant 0 : i32
    return %c0_i32, %c0_i32_0 : i32, i32
  }
  func.func @transform_2(%arg0: i32, %arg1: i32) -> (i32, i32) {
    %c0_i32 = arith.constant 0 : i32
    %c0_i32_0 = arith.constant 0 : i32
    %c0_i32_1 = arith.constant 0 : i32
    return %c0_i32, %c0_i32_0 : i32, i32
  }
  func.func @transform_3(%arg0: i32, %arg1: i32) -> (i32, i32) {
    %c0_i32 = arith.constant 0 : i32
    %c0_i32_0 = arith.constant 0 : i32
    %c0_i32_1 = arith.constant 0 : i32
    return %c0_i32, %c0_i32_0 : i32, i32
  }
  func.func @transform_4(%arg0: i32, %arg1: i32) -> (i32, i32) {
    %c0_i32 = arith.constant 0 : i32
    %c0_i32_0 = arith.constant 0 : i32
    %c0_i32_1 = arith.constant 0 : i32
    return %c0_i32, %c0_i32_0 : i32, i32
  }
  func.func @transform_5(%arg0: i32, %arg1: i32) -> (i32, i32) {
    %c0_i32 = arith.constant 0 : i32
    %c0_i32_0 = arith.constant 0 : i32
    %c0_i32_1 = arith.constant 0 : i32
    return %c0_i32, %c0_i32_0 : i32, i32
  }
  func.func @transform_6(%arg0: i32, %arg1: i32) -> (i32, i32) {
    %c0_i32 = arith.constant 0 : i32
    %c0_i32_0 = arith.constant 0 : i32
    %c0_i32_1 = arith.constant 0 : i32
    return %c0_i32, %c0_i32_0 : i32, i32
  }
  func.func @transform_7(%arg0: i32, %arg1: i32) -> (i32, i32) {
    %c0_i32 = arith.constant 0 : i32
    %c0_i32_0 = arith.constant 0 : i32
    %c0_i32_1 = arith.constant 0 : i32
    return %c0_i32, %c0_i32_0 : i32, i32
  }
  func.func @transform_8(%arg0: i32, %arg1: i32) -> (i32, i32) {
    %c0_i32 = arith.constant 0 : i32
    %c0_i32_0 = arith.constant 0 : i32
    %c0_i32_1 = arith.constant 0 : i32
    return %c0_i32, %c0_i32_0 : i32, i32
  }
  func.func @transform_9(%arg0: i32, %arg1: i32) -> (i32, i32, i32) {
    %c0_i32 = arith.constant 0 : i32
    %c0_i32_0 = arith.constant 0 : i32
    return %arg0, %arg1, %c0_i32 : i32, i32, i32
  }
}

</mosaic_0001>

<bundles_post_ra>
// kernel: tpu_custom_call.1
= control target key start
LH: loop header
LB: loop body
LE: loop exit
PB: predicated region body
PF: predicated region fallthrough
CT: control target
= control target key end

     0   :  { %s7114_s0 = inlined_call_operand.vmem [shape: f32[2,16,32], index: 0, kind: input, shape index: {}]   ;;  %s7115_s1 = inlined_call_operand.vmem [shape: f32[32,32], index: 1, kind: input, shape index: {}]   ;;  %s7116_s2 = inlined_call_operand.vmem [shape: f32[1,32], index: 2, kind: input, shape index: {}]   ;;  %s7117_s3 = inlined_call_operand.hbm [shape: f32[512,512], index: 3, kind: input, shape index: {}]   ;;  %s7118_s4 = inlined_call_operand.vmem [shape: f32[32,512], index: 4, kind: input, shape index: {}]   ;;  %s7119_s5 = inlined_call_operand.vmem [shape: f32[512,32], index: 5, kind: input, shape index: {}]   ;;  %s7120_s6 = inlined_call_operand.vmem [shape: f32[1,32], index: 6, kind: input, shape index: {}]   ;;  %s7121_s7 = inlined_call_operand.vmem [shape: f32[1,32], index: 7, kind: input, shape index: {}]   ;;  %s7122_s8 = inlined_call_operand.vmem [shape: f32[1,32], index: 8, kind: input, shape index: {}]   ;;  %s7123_s9 = inlined_call_operand.hbm [shape: f32[2,16,32], index: 9, kind: output, shape index: {}]  }
   0x1   :  { %7178 = sst [smem:[#allocation62_spill]] %s7114_s0 }
   0x2   :  { %7179 = sst [smem:[#allocation63_spill]] %s7117_s3 }
   0x3   :  { %14 = vsyncpa [#allocation5], 0 }
   0x4   :  { %15 = vsyncpa [#allocation6], 0 }
   0x5   :  { %17 = vsyncpa [#allocation6 + $0x1], 0  ;;  %s5971_s30 = smov 0   ;;  %s5973_s10 = smov 0  }
   0x6   :  { %s5975_s11 = smov 0   ;;  %s5977_s12 = smov 0  }
   0x7   :  { %s5979_s13 = smov 0   ;;  %s5981_s14 = smov 0  }
   0x8   :  { %s5983_s15 = smov 0   ;;  %s5985_s16 = smov 0  }
   0x9 LB: > { %7180 = sst [smem:[#allocation10_spill]] %s5906_s14  ;;  %s5657_s17 = sadd.s32 4294967295, %s5914_s16   ;;  %s5914_s16 = sphi %s5985_s16, %s23_s16   ;;  %s5910_s15 = sphi %s5983_s15, %s7300_s15   ;;  %s5906_s14 = sphi %s5981_s14, %s7299_s14   ;;  %s5902_s13 = sphi %s5979_s13, %s7298_s13   ;;  %s5898_s12 = sphi %s5977_s12, %s7292_s12   ;;  %s5894_s11 = sphi %s5975_s11, %s7297_s11   ;;  %s5890_s10 = sphi %s5973_s10, %s7296_s10   ;;  %s5886_s30 = sphi %s5971_s30, %s7295_s30  }
   0xa   : > { %s5658_s18 = sadd.s32 4294967294, %s5914_s16   ;;  %s32_s19 = sadd.s32 1, %s5906_s14 }
   0xb   : > { %s35_s20 = sadd.s32 1, %s5910_s15  ;;  %p33_p0 = scmp.ge.s32.totalorder %s32_s19, 2 }
   0xc   : > { %s240_s21 = sadd.s32 1, %s5894_s11  ;;  %p250_p1 = scmp.ne.s32.totalorder %s5894_s11, %s5890_s10 }
   0xd   : > { %p251_p2 = scmp.eq.s32.totalorder %s5657_s17, 3  ;;  %s7302_s19 = smov (%p33_p0, %s32_s19), 0 }
   0xe   : > { %7181 = sst [smem:[#allocation11_spill]] %s7302_s19  ;;  %s7304_s20 = smov (!%p33_p0, %s35_s20), %s5910_s15 }
   0xf   : > { %s236_s22 = ssub.s32 %s5906_s14, %s7302_s19  ;;  %p6023_p3 = por %p251_p2, %p250_p1 }
  0x10   : > { %p37_p4 = scmp.ge.s32.totalorder %s7304_s20, 2  ;;  %p256_p5 = scmp.ne.s32.totalorder %s5890_s10, %s5886_s30 }
  0x11   : > { %p257_p6 = scmp.eq.s32.totalorder %s5658_s18, 3  ;;  %p5659_p7 = scmp.ge.s32.totalorder %s5914_s16, 1 }
  0x12   : > { %s7306_s20 = smov (%p37_p4, %s7304_s20), 0  ;;  %p264_p9 = scmp.lt.s32.totalorder %s5914_s16, 5 }
  0x13   : > { %7183 = sst [smem:[#allocation12_spill]] %s7306_s20  ;;  %p6032_p8 = por %p257_p6, %p256_p5 }
  0x14   : > { %s235_s25 = ssub.s32 %s5910_s15, %s7306_s20  ;;  %p6039_p10 = pnand %p5659_p7, %p264_p9 }
  0x15   : > { %s237_s26 = sor.u32 %s236_s22, %s235_s25  ;;  %p6043_p12 = scmp.eq.s32.totalorder %s5657_s17, 0 }
  0x16   : > { %p238_p11 = scmp.eq.s32.totalorder %s237_s26, 0  ;;  %p5685_p13 = pneg %p6039_p10 }
  0x17   : > { %s7187_s3 = sld [smem:[#allocation63_spill]]  ;;  %s5916_s22 = smov [#allocation4]  }
  0x18   : > { %s6053_s14 = scalar_select %p238_p11, %s5894_s11, %s240_s21  }
  0x19   : > { %s283_s25 = sshll.u32 %s5916_s22, 4  ;;  %p5686_p0 = pnand %p6043_p12, %p5685_p13  ;;  %s284_s25 = int_to_ptr.vmem [resolvable:$true] %s283_s25 }
  0x1a   : > { %s5917_s26 = smov 512   ;;  %s5918_s17 = smov 32  }
  0x1b   : > { %325 = sbr.rel (%p6039_p10) target bundleno = 2248 (0x8c8), region = 56 }
  0x1d   : > { %s281_s19 = sshll.u32 %s7187_s3, 4  ;;  %s282_s19 = int_to_ptr.hbm [resolvable:$true] %s281_s19 }
  0x1e   : > { %5688 = dma.hbm_to_vmem [thread:$0]  (!%p5686_p0), %s282_s19, 32768, %s284_s25, [#allocation5], %s5917_s26, %s5917_s26, %s5918_s17  }
  0x20   : > { %5877 = dma.done.wait (%p6043_p12), [#allocation5], 32768  }
  0x21   : > { %5879 = vsyncadd (%p6043_p12), [#allocation5], 4294934528  ;;  %s7126_s21 = sand.u32 1, %s5890_s10   ;;  %p365_p1 = scmp.lt.s32.totalorder %s5902_s13, 1 }
  0x22   : > { %s6067_s29 = sshll.u32 %s7126_s21, 3  ;;  %p367_p2 = scmp.lt.s32.totalorder %s5898_s12, 1 }
  0x23   : > { %s366_s19 = scalar_select %p365_p1, %s5902_s13, 1 }
  0x24   : > { %s368_s27 = scalar_select %p367_p2, %s5898_s12, 1 }
  0x25   : > { %s5665_s18 = sshll.u32 %s366_s19, 1  ;;  %s7188_s0 = sld [smem:[#allocation62_spill]] }
  0x26   : > { %s370_s22 = sadd.s32 %s5665_s18, %s368_s27  ;;  %p5667_p4 = scmp.ne.s32.totalorder %s5898_s12, 0 }
  0x27   : > { %s5666_s25 = sshll.u32 %s370_s22, 3 }
  0x28   : > { %376 = sbr.rel (%p5667_p4) target bundleno = 49 (0x31), region = 64 }
  0x2b   : > { %s372_s17 = scalar_lea.vmem %s7188_s0, %s5666_s25 }
  0x2d   : > { %v377_v0 = vlaneseq  ;;  %v5919_v1 = vmov 0.0  }
  0x2f   : > { %vm379_vm0 = vcmp.lt.s32.totalorder %v377_v0, 512 }
  0x30   : > { %381 = vst.msk [vmem:[#allocation2] sm:$0xf] %vm379_vm0, %v5919_v1 }
  0x31 PF: > { %v386_v2 = vld [vmem:[%s7115_s1 + $0x18] sm:$0xff]  ;;  %v385_v3 = vld [vmem:[%s7115_s1 + $0x10] sm:$0xff]  ;;  %v384_v4 = vld [vmem:[%s7115_s1 + $0x8] sm:$0xff]  ;;  %vm391_vm1 = vcmask 261120   ;;  %vm1141_vm6 = vcmask 1040384   ;;  %vm1143_vm7 = vcmask 1042434  }
  0x32   : > { %407 = vmatpush.msra.mxu0 %v386_v2  ;;  %v447_v5 = vld [vmem:[%s7118_s4 + $0x60] sm:$0xff]  ;;  %v448_v7 = vld [vmem:[%s7118_s4 + $0x68] sm:$0xff]  ;;  %v449_v11 = vld [vmem:[%s7118_s4 + $0x70] sm:$0xff]  ;;  %vm1145_vm8 = vcmask 1041408   ;;  %s5675_s22 = sshll.u32 %s5902_s13, 1  ;;  %s5836_s0 = scalar_lea.hbm %s7123_s9, 32 }
  0x33   : > { %v383_v6 = vld [vmem:[%s7115_s1] sm:$0xff]  ;;  %466 = vmatpush.msra.mxu1 %v447_v5  ;;  %v444_v9 = vld [vmem:[%s7118_s4 + $0x48] sm:$0xff]  ;;  %486 = vmatpush.msra.mxu2 %v448_v7  ;;  %v445_v14 = vld [vmem:[%s7118_s4 + $0x50] sm:$0xff]  ;;  %s5560_s3 = sadd.s32 %s5898_s12, %s5675_s22  ;;  %s7291_s22 = sand.u32 1, %s5890_s10  }
  0x34   : > { %v443_v8 = vld [vmem:[%s7118_s4 + $0x40] sm:$0xff]  ;;  %408 = vmatpush.msra.mxu0 %v385_v3  ;;  %506 = vmatpush.msra.mxu3 %v449_v11  ;;  %v440_v13 = vld [vmem:[%s7118_s4 + $0x28] sm:$0xff]  ;;  %v441_v17 = vld [vmem:[%s7118_s4 + $0x30] sm:$0xff]  ;;  %s5676_s25 = sshll.u32 %s5560_s3, 3  ;;  %s5550_s3 = scalar_lea.sflag [#allocation6], %s7291_s22 }
  0x35   : > { %v6101_v10 = vld [vmem:[%s372_s17] sm:$0xff]  ;;  %467 = vmatpush.msra.mxu1 %v443_v8  ;;  %487 = vmatpush.msra.mxu2 %v444_v9  ;;  %v436_v16 = vld [vmem:[%s7118_s4 + $0x8] sm:$0xff]  ;;  %v437_v20 = vld [vmem:[%s7118_s4 + $0x10] sm:$0xff]  ;;  %s5562_s21 = scalar_lea.hbm %s7123_s9, %s5676_s25  ;;  %s7289_s17 = scalar_lea.vmem [#allocation7], %s6067_s29 }
  0x36   : > { %v439_v12 = vld [vmem:[%s7118_s4 + $0x20] sm:$0xff]  ;;  %409 = vmatpush.msra.mxu0 %v384_v4  ;;  %507 = vmatpush.msra.mxu3 %v445_v14  ;;  %v450_v24 = vld [vmem:[%s7118_s4 + $0x78] sm:$0xff]  ;;  %s5564_s19 = sshll.u32 %s7289_s17, 4  ;;  %s5566_s27 = sshll.u32 %s5562_s21, 4  ;;  %s5565_s19 = int_to_ptr.vmem [resolvable:$true] %s5564_s19  ;;  %s5567_s27 = int_to_ptr.hbm [resolvable:$true] %s5566_s27 }
  0x37   : > { %468 = vmatpush.msra.mxu1 %v439_v12  ;;  %488 = vmatpush.msra.mxu2 %v440_v13  ;;  %v435_v15 = vld [vmem:[%s7118_s4] sm:$0xff]  ;;  %v446_v28 = vld [vmem:[%s7118_s4 + $0x58] sm:$0xff]  ;;  %s7290_s18 = smov %s7289_s17  ;;  %s5830_s25 = sshra.s32 %s5567_s27, 4  ;;  %s5831_s25 = int_to_ptr.hbm [resolvable:$true] %s5830_s25 }
  0x38   : > { %410 = vmatpush.msra.mxu0 %v383_v6  ;;  %v599_v18 = vld [vmem:[#allocation4 + $0x1e0] sm:$0xff]  ;;  %508 = vmatpush.msra.mxu3 %v441_v17  ;;  %v442_v32 = vld [vmem:[%s7118_s4 + $0x38] sm:$0xff]  ;;  %v5765_v8 = vld [vmem:[%s7116_s2] ss:$0 sm:$0xff]  ;;  %s5832_s28 = scalar_lea.hbm %s5831_s25, 8  ;;  %p5837_p9 = scmp.lt.s32.totalorder %s5831_s25, %s7123_s9 }
  0x39   : > { %5668 = vmatmul.msk.f32.vlgmr.msra.gmra.mxu0 %vm391_vm1, %v6101_v10  ;;  %469 = vmatpush.msra.mxu1 %v435_v15  ;;  %v663_v19 = vld [vmem:[#allocation4 + $0x3e0] sm:$0xff]  ;;  %v438_v36 = vld [vmem:[%s7118_s4 + $0x18] sm:$0xff]  ;;  %p5833_p5 = scmp.ne.s32.totalorder %s5831_s25, %s5832_s28  ;;  %p5838_p10 = scmp.lt.s32.totalorder %s5836_s0, %s5832_s28 }
  0x3a   : > { %489 = vmatpush.msra.mxu2 %v436_v16  ;;  %v595_v21 = vld [vmem:[#allocation4 + $0x1c0] sm:$0xff]  ;;  %509 = vmatpush.msra.mxu3 %v437_v20 }
  0x3b   : > { %814 = vmatpush.msrb.mxu1 %v599_v18  ;;  %v659_v22 = vld [vmem:[#allocation4 + $0x3c0] sm:$0xff]  ;;  %526 = vmatpush.msrb.mxu0 %v450_v24  ;;  %p5834_p6 = pnand %p5833_p5, %p6023_p3  ;;  %p5839_p11 = por %p5838_p10, %p5837_p9 }
  0x3c   : > { %834 = vmatpush.msrb.mxu2 %v663_v19  ;;  %v727_v23 = vld [vmem:[#allocation4 + $0x5e0] sm:$0xff] }
  0x3d   : > { %815 = vmatpush.msrb.mxu1 %v595_v21  ;;  %854 = vmatpush.msrb.mxu3 %v727_v23  ;;  %v591_v25 = vld [vmem:[#allocation4 + $0x1a0] sm:$0xff]  ;;  %p5835_p7 = pneg %p5834_p6 }
  0x3e   : > { %835 = vmatpush.msrb.mxu2 %v659_v22  ;;  %v655_v26 = vld [vmem:[#allocation4 + $0x3a0] sm:$0xff]  ;;  %527 = vmatpush.msrb.mxu0 %v446_v28 }
  0x3f   : > { %v723_v27 = vld [vmem:[#allocation4 + $0x5c0] sm:$0xff]  ;;  %816 = vmatpush.msrb.mxu1 %v591_v25  ;;  %p5840_p12 = pnand %p5839_p11, %p5835_p7 }
  0x40   : > { %836 = vmatpush.msrb.mxu2 %v655_v26  ;;  %855 = vmatpush.msrb.mxu3 %v723_v27  ;;  %v587_v29 = vld [vmem:[#allocation4 + $0x180] sm:$0xff] }
  0x41   : > { %v651_v30 = vld [vmem:[#allocation4 + $0x380] sm:$0xff]  ;;  %817 = vmatpush.msrb.mxu1 %v587_v29  ;;  %528 = vmatpush.msrb.mxu0 %v442_v32 }
  0x42   : > { %v719_v31 = vld [vmem:[#allocation4 + $0x5a0] sm:$0xff]  ;;  %837 = vmatpush.msrb.mxu2 %v651_v30 }
  0x43   : > { %856 = vmatpush.msrb.mxu3 %v719_v31  ;;  %v583_v33 = vld [vmem:[#allocation4 + $0x160] sm:$0xff]  ;;  %529 = vmatpush.msrb.mxu0 %v438_v36 }
  0x44   : > { %v647_v34 = vld [vmem:[#allocation4 + $0x360] sm:$0xff]  ;;  %818 = vmatpush.msrb.mxu1 %v583_v33 }
  0x45   : > { %v715_v35 = vld [vmem:[#allocation4 + $0x580] sm:$0xff]  ;;  %838 = vmatpush.msrb.mxu2 %v647_v34 }
  0x46   : > { %857 = vmatpush.msrb.mxu3 %v715_v35  ;;  %v579_v37 = vld [vmem:[#allocation4 + $0x140] sm:$0xff] }
  0x47   : > { %v643_v38 = vld [vmem:[#allocation4 + $0x340] sm:$0xff]  ;;  %819 = vmatpush.msrb.mxu1 %v579_v37 }
  0x48   : > { %v711_v39 = vld [vmem:[#allocation4 + $0x560] sm:$0xff]  ;;  %839 = vmatpush.msrb.mxu2 %v643_v38 }
  0x49   : > { %v791_v40 = vld [vmem:[#allocation4 + $0x7e0] sm:$0xff]  ;;  %858 = vmatpush.msrb.mxu3 %v711_v39 }
  0x4a   : > { %v575_v41 = vld [vmem:[#allocation4 + $0x120] sm:$0xff]  ;;  %874 = vmatpush.msra.mxu0 %v791_v40 }
  0x4b   : > { %v639_v42 = vld [vmem:[#allocation4 + $0x320] sm:$0xff]  ;;  %820 = vmatpush.msrb.mxu1 %v575_v41  ;;  %v6147_v41 = vld [vmem:[#allocation4 + $0x1e8] sm:$0xff] }
  0x4c   : > { %v707_v43 = vld [vmem:[#allocation4 + $0x540] sm:$0xff]  ;;  %840 = vmatpush.msrb.mxu2 %v639_v42  ;;  %v6149_v42 = vld [vmem:[#allocation4 + $0x3e8] sm:$0xff] }
  0x4d   : > { %v787_v44 = vld [vmem:[#allocation4 + $0x7c0] sm:$0xff]  ;;  %859 = vmatpush.msrb.mxu3 %v707_v43  ;;  %v728_v43 = vld [vmem:[#allocation4 + $0x5e8] sm:$0xff] }
  0x4e   : > { %v571_v45 = vld [vmem:[#allocation4 + $0x100] sm:$0xff]  ;;  %875 = vmatpush.msra.mxu0 %v787_v44  ;;  %v792_v44 = vld [vmem:[#allocation4 + $0x7e8] sm:$0xff] }
  0x4f   : > { %v635_v46 = vld [vmem:[#allocation4 + $0x300] sm:$0xff]  ;;  %821 = vmatpush.msrb.mxu1 %v571_v45  ;;  %v6161_v45 = vld [vmem:[#allocation4 + $0x3c8] sm:$0xff] }
  0x50   : > { %v703_v47 = vld [vmem:[#allocation4 + $0x520] sm:$0xff]  ;;  %841 = vmatpush.msrb.mxu2 %v635_v46  ;;  %v724_v46 = vld [vmem:[#allocation4 + $0x5c8] sm:$0xff] }
  0x51   : > { %v783_v48 = vld [vmem:[#allocation4 + $0x7a0] sm:$0xff]  ;;  %860 = vmatpush.msrb.mxu3 %v703_v47  ;;  %v538_v47 = vld [vmem:[#allocation2] sm:$0xf] }
  0x52   : > { %v567_v49 = vld [vmem:[#allocation4 + $0xe0] sm:$0xff]  ;;  %876 = vmatpush.msra.mxu0 %v783_v48  ;;  %v788_v48 = vld [vmem:[#allocation4 + $0x7c8] sm:$0xff] }
  0x53   : > { %v631_v50 = vld [vmem:[#allocation4 + $0x2e0] sm:$0xff]  ;;  %822 = vmatpush.msrb.mxu1 %v567_v49  ;;  %v6165_v49 = vld [vmem:[#allocation4 + $0x1a8] sm:$0xff] }
  0x54   : > { %v699_v51 = vld [vmem:[#allocation4 + $0x500] sm:$0xff]  ;;  %842 = vmatpush.msrb.mxu2 %v631_v50  ;;  %v6167_v50 = vld [vmem:[#allocation4 + $0x3a8] sm:$0xff] }
  0x55   : > { %v779_v52 = vld [vmem:[#allocation4 + $0x780] sm:$0xff]  ;;  %861 = vmatpush.msrb.mxu3 %v699_v51  ;;  %v720_v51 = vld [vmem:[#allocation4 + $0x5a8] sm:$0xff] }
  0x56   : > { %v563_v53 = vld [vmem:[#allocation4 + $0xc0] sm:$0xff]  ;;  %877 = vmatpush.msra.mxu0 %v779_v52  ;;  %v784_v52 = vld [vmem:[#allocation4 + $0x7a8] sm:$0xff] }
  0x57   : > { %v627_v54 = vld [vmem:[#allocation4 + $0x2c0] sm:$0xff]  ;;  %823 = vmatpush.msrb.mxu1 %v563_v53  ;;  %v6171_v53 = vld [vmem:[#allocation4 + $0x188] sm:$0xff] }
  0x58   : > { %v695_v55 = vld [vmem:[#allocation4 + $0x4e0] sm:$0xff]  ;;  %843 = vmatpush.msrb.mxu2 %v627_v54  ;;  %v6173_v54 = vld [vmem:[#allocation4 + $0x388] sm:$0xff] }
  0x59   : > { %v775_v56 = vld [vmem:[#allocation4 + $0x760] sm:$0xff]  ;;  %862 = vmatpush.msrb.mxu3 %v695_v55  ;;  %v6175_v55 = vperm.slane %v538_v47, 1 }
  0x5a   : > { %v559_v57 = vld [vmem:[#allocation4 + $0xa0] sm:$0xff]  ;;  %878 = vmatpush.msra.mxu0 %v775_v56  ;;  %v716_v56 = vld [vmem:[#allocation4 + $0x588] sm:$0xff] }
  0x5b   : > { %v623_v58 = vld [vmem:[#allocation4 + $0x2a0] sm:$0xff]  ;;  %824 = vmatpush.msrb.mxu1 %v559_v57  ;;  %v6179_v57 = vld [vmem:[#allocation4 + $0x168] sm:$0xff] }
  0x5c   : > { %v691_v59 = vld [vmem:[#allocation4 + $0x4c0] sm:$0xff]  ;;  %844 = vmatpush.msrb.mxu2 %v623_v58  ;;  %v6181_v58 = vld [vmem:[#allocation4 + $0x368] sm:$0xff] }
  0x5d   : > { %v771_v60 = vld [vmem:[#allocation4 + $0x740] sm:$0xff]  ;;  %863 = vmatpush.msrb.mxu3 %v691_v59  ;;  %v6183_v59 = vperm.slane %v538_v47, 0 }
  0x5e   : > { %v555_v61 = vld [vmem:[#allocation4 + $0x80] sm:$0xff]  ;;  %879 = vmatpush.msra.mxu0 %v771_v60  ;;  %v712_v60 = vld [vmem:[#allocation4 + $0x568] sm:$0xff] }
  0x5f   : > { %v619_v62 = vld [vmem:[#allocation4 + $0x280] sm:$0xff]  ;;  %825 = vmatpush.msrb.mxu1 %v555_v61  ;;  %v6187_v61 = vld [vmem:[#allocation4 + $0x148] sm:$0xff] }
  0x60   : > { %v687_v63 = vld [vmem:[#allocation4 + $0x4a0] sm:$0xff]  ;;  %845 = vmatpush.msrb.mxu2 %v619_v62  ;;  %v6189_v62 = vld [vmem:[#allocation4 + $0x348] sm:$0xff] }
  0x61   : > { %v767_v0 = vld [vmem:[#allocation4 + $0x720] sm:$0xff]  ;;  %864 = vmatpush.msrb.mxu3 %v687_v63  ;;  %v708_v63 = vld [vmem:[#allocation4 + $0x548] sm:$0xff] }
  0x62   : > { %v551_v1 = vld [vmem:[#allocation4 + $0x60] sm:$0xff]  ;;  %880 = vmatpush.msra.mxu0 %v767_v0  ;;  %v780_v0 = vld [vmem:[#allocation4 + $0x788] sm:$0xff] }
  0x63   : > { %v615_v2 = vld [vmem:[#allocation4 + $0x260] sm:$0xff]  ;;  %826 = vmatpush.msrb.mxu1 %v551_v1  ;;  %v6194_v1 = vld [vmem:[#allocation4 + $0x128] sm:$0xff] }
  0x64   : > { %v683_v3 = vld [vmem:[#allocation4 + $0x480] sm:$0xff]  ;;  %846 = vmatpush.msrb.mxu2 %v615_v2  ;;  %v6196_v2 = vld [vmem:[#allocation4 + $0x328] sm:$0xff] }
  0x65   : > { %v763_v4 = vld [vmem:[#allocation4 + $0x700] sm:$0xff]  ;;  %865 = vmatpush.msrb.mxu3 %v683_v3  ;;  %v6198_v3 = vperm.slane %v538_v47, 2 }
  0x66   : > { %v547_v5 = vld [vmem:[#allocation4 + $0x40] sm:$0xff]  ;;  %881 = vmatpush.msra.mxu0 %v763_v4  ;;  %v776_v4 = vld [vmem:[#allocation4 + $0x768] sm:$0xff] }
  0x67   : > { %v611_v6 = vld [vmem:[#allocation4 + $0x240] sm:$0xff]  ;;  %827 = vmatpush.msrb.mxu1 %v547_v5  ;;  %v6203_v5 = vld [vmem:[#allocation4 + $0x108] sm:$0xff] }
  0x68   : > { %v679_v7 = vld [vmem:[#allocation4 + $0x460] sm:$0xff]  ;;  %847 = vmatpush.msrb.mxu2 %v611_v6  ;;  %v6205_v6 = vld [vmem:[#allocation4 + $0x308] sm:$0xff] }
  0x69   : > { %v759_v9 = vld [vmem:[#allocation4 + $0x6e0] sm:$0xff]  ;;  %866 = vmatpush.msrb.mxu3 %v679_v7  ;;  %v704_v7 = vld [vmem:[#allocation4 + $0x528] sm:$0xff] }
  0x6a   : > { %v543_v11 = vld [vmem:[#allocation4 + $0x20] sm:$0xff]  ;;  %882 = vmatpush.msra.mxu0 %v759_v9  ;;  %v6210_v9 = vld [vmem:[#allocation4 + $0xe8] sm:$0xff] }
  0x6b   : > { %v607_v12 = vld [vmem:[#allocation4 + $0x220] sm:$0xff]  ;;  %828 = vmatpush.msrb.mxu1 %v543_v11  ;;  %v6212_v11 = vld [vmem:[#allocation4 + $0x2e8] sm:$0xff] }
  0x6c   : > { %v675_v13 = vld [vmem:[#allocation4 + $0x440] sm:$0xff]  ;;  %848 = vmatpush.msrb.mxu2 %v607_v12  ;;  %v6214_v12 = vperm.slane %v538_v47, 3  ;;  %v668_v47 = vld [vmem:[#allocation4 + $0x408] sm:$0xff] }
  0x6d   : > { %v755_v14 = vld [vmem:[#allocation4 + $0x6c0] sm:$0xff]  ;;  %867 = vmatpush.msrb.mxu3 %v675_v13  ;;  %v700_v13 = vld [vmem:[#allocation4 + $0x508] sm:$0xff] }
  0x6e   : > { %v539_v15 = vld [vmem:[#allocation4] sm:$0xff]  ;;  %883 = vmatpush.msra.mxu0 %v755_v14  ;;  %v6218_v14 = vld [vmem:[#allocation4 + $0xc8] sm:$0xff] }
  0x6f   : > { %v603_v16 = vld [vmem:[#allocation4 + $0x200] sm:$0xff]  ;;  %829 = vmatpush.msrb.mxu1 %v539_v15  ;;  %v6220_v15 = vld [vmem:[#allocation4 + $0x2c8] sm:$0xff] }
  0x70   : > { %v671_v17 = vld [vmem:[#allocation4 + $0x420] sm:$0xff]  ;;  %849 = vmatpush.msrb.mxu2 %v603_v16  ;;  %v696_v16 = vld [vmem:[#allocation4 + $0x4e8] sm:$0xff] }
  0x71   : > { %v751_v18 = vld [vmem:[#allocation4 + $0x6a0] sm:$0xff]  ;;  %868 = vmatpush.msrb.mxu3 %v671_v17  ;;  %v768_v17 = vld [vmem:[#allocation4 + $0x728] sm:$0xff] }
  0x72   : > { %884 = vmatpush.msra.mxu0 %v751_v18  ;;  %v667_v22 = vld [vmem:[#allocation4 + $0x400] sm:$0xff]  ;;  %v6224_v18 = vld [vmem:[#allocation4 + $0xa8] sm:$0xff] }
  0x73   : > { %v747_v23 = vld [vmem:[#allocation4 + $0x680] sm:$0xff]  ;;  %869 = vmatpush.msrb.mxu3 %v667_v22  ;;  %v6231_v22 = vld [vmem:[#allocation4 + $0x88] sm:$0xff] }
  0x74   : > { %885 = vmatpush.msra.mxu0 %v747_v23  ;;  %v743_v24 = vld [vmem:[#allocation4 + $0x660] sm:$0xff]  ;;  %v6233_v23 = vld [vmem:[#allocation4 + $0x288] sm:$0xff] }
  0x75   : > { %v739_v25 = vld [vmem:[#allocation4 + $0x640] sm:$0xff] }
  0x76   : > { %886 = vmatpush.msra.mxu0 %v743_v24  ;;  %v735_v26 = vld [vmem:[#allocation4 + $0x620] sm:$0xff]  ;;  %v688_v24 = vld [vmem:[#allocation4 + $0x4a8] sm:$0xff] }
  0x77   : > { %v731_v28 = vld [vmem:[#allocation4 + $0x600] sm:$0xff] }
  0x78   : > { %887 = vmatpush.msra.mxu0 %v739_v25  ;;  %v760_v25 = vld [vmem:[#allocation4 + $0x6e8] sm:$0xff] }
  0x7a   : > { %888 = vmatpush.msra.mxu0 %v735_v26  ;;  %v6237_v26 = vld [vmem:[#allocation4 + $0x68] sm:$0xff] }
  0x7c   : > { %889 = vmatpush.msra.mxu0 %v731_v28  ;;  %v684_v28 = vld [vmem:[#allocation4 + $0x488] sm:$0xff] }
  0xb6   : > { %v412_v19 = vpop.f32.mrf.mxu0 }
  0xb7   : > { %v413_v20 = vadd.f32 %v5765_v8, %v412_v19  ;;  %v772_v8 = vld [vmem:[#allocation4 + $0x748] sm:$0xff] }
  0xb8   : > { %v6226_v19 = vld [vmem:[#allocation4 + $0x2a8] sm:$0xff] }
  0xb9   : > { %v5669_v21 = vmul.f32 -1.442695, %v413_v20  ;;  %v692_v20 = vld [vmem:[#allocation4 + $0x4c8] sm:$0xff] }
  0xbb   : > { %5769 = vpow2.f32 %v5669_v21  ;;  %v764_v21 = vld [vmem:[#allocation4 + $0x708] sm:$0xff] }
  0xc1   : > { %v5770_v27 = vpop.eup %5769 }
  0xc2   : > { %v418_v29 = vadd.f32 1.0, %v5770_v27  ;;  %v6239_v27 = vld [vmem:[#allocation4 + $0x268] sm:$0xff] }
  0xc4   : > { %5771 = vrcp.f32 %v418_v29  ;;  %v430_v33 = vand.u32 2147483648, %v418_v29  ;;  %v428_v35 = vand.u32 2147483647, %v418_v29  ;;  %vm424_vm3 = vweird.f32 %v418_v29 }
  0xc6   : > { %v431_v37 = vor.u32 1.1754944e-38, %v430_v33  ;;  %vm429_vm5 = vcmp.eq.f32.partialorder %v428_v35, 8.507059e+37  ;;  %v752_v33 = vld [vmem:[#allocation4 + $0x6a8] sm:$0xff] }
  0xc7   : > { %v6251_v35 = vld [vmem:[#allocation4 + $0x228] sm:$0xff] }
  0xca   : > { %v5772_v30 = vpop.eup %5771 }
  0xcb   : > { %v420_v31 = vmul.f32 %v5772_v30, %v418_v29  ;;  %vm425_vm2 = vweird.f32 %v5772_v30  ;;  %v756_v29 = vld [vmem:[#allocation4 + $0x6c8] sm:$0xff] }
  0xcc   : > { %vm426_vm4 = vmor %vm424_vm3, %vm425_vm2 }
  0xcd   : > { %v421_v32 = vsub.f32 1.0, %v420_v31  ;;  %v6245_v31 = vld [vmem:[#allocation4 + $0x248] sm:$0xff] }
  0xcf   : > { %v422_v34 = vmul.f32 %v5772_v30, %v421_v32  ;;  %v680_v32 = vld [vmem:[#allocation4 + $0x468] sm:$0xff] }
  0xd1   : > { %v423_v36 = vadd.f32 %v5772_v30, %v422_v34  ;;  %v6249_v34 = vld [vmem:[#allocation4 + $0x28] sm:$0xff] }
  0xd3   : > { %v427_v38 = vsel %vm426_vm4, %v5772_v30, %v423_v36  ;;  %v6243_v30 = vld [vmem:[#allocation4 + $0x48] sm:$0xff] }
  0xd4   : > { %v432_v39 = vsel %vm429_vm5, %v431_v37, %v427_v38  ;;  %v676_v36 = vld [vmem:[#allocation4 + $0x448] sm:$0xff] }
  0xd5   : > { %v6145_v40 = vmul.f32 %v432_v39, %v6101_v10  ;;  %v6159_v10 = vld [vmem:[#allocation4 + $0x1c8] sm:$0xff] }
  0xd6   : > { %v748_v37 = vld [vmem:[#allocation4 + $0x688] sm:$0xff] }
  0xd7   : > { %7189 = vst [vmem:[#allocation13_spill] sm:$0xff] %v6145_v40  ;;  %5670 = vmatmul.msk.f32.vlgmr.msra.gmra.mxu1 %vm391_vm1, %v6145_v40  ;;  %5671 = vmatmul.msk.f32.vlgmr.msra.gmra.mxu2 %vm391_vm1, %v6145_v40  ;;  %v6255_v38 = vld [vmem:[#allocation4 + $0x8] sm:$0xff] }
  0xd8   : > { %5672 = vmatmul.msk.f32.vlgmr.msra.gmra.mxu3 %vm391_vm1, %v6145_v40  ;;  %5673 = vmatmul.msk.f32.vlgmr.msrb.gmra.mxu0 %vm391_vm1, %v6145_v40  ;;  %v6257_v39 = vld [vmem:[#allocation4 + $0x208] sm:$0xff]  ;;  %v6327_v40 = vld [vmem:[#allocation4 + $0x2b0] sm:$0xff] }
  0xd9   : > { %894 = vmatpush.msra.mxu1 %v6147_v41  ;;  %914 = vmatpush.msra.mxu2 %v6149_v42  ;;  %7196 = vst [vmem:[#allocation20_spill] sm:$0xff] %v6327_v40 }
  0xda   : > { %934 = vmatpush.msra.mxu3 %v728_v43  ;;  %954 = vmatpush.msrb.mxu0 %v792_v44  ;;  %v672_v43 = vld [vmem:[#allocation4 + $0x428] sm:$0xff]  ;;  %v6261_v44 = vld [vmem:[#allocation4 + $0x1f0] sm:$0xff] }
  0xdb   : > { %895 = vmatpush.msra.mxu1 %v6159_v10  ;;  %915 = vmatpush.msra.mxu2 %v6161_v45 }
  0xdc   : > { %935 = vmatpush.msra.mxu3 %v724_v46  ;;  %955 = vmatpush.msrb.mxu0 %v788_v48  ;;  %v6265_v46 = vld [vmem:[#allocation4 + $0x3f0] sm:$0xff] }
  0xdd   : > { %896 = vmatpush.msra.mxu1 %v6165_v49  ;;  %916 = vmatpush.msra.mxu2 %v6167_v50  ;;  %v6268_v48 = vld [vmem:[#allocation4 + $0x1d0] sm:$0xff] }
  0xde   : > { %936 = vmatpush.msra.mxu3 %v720_v51  ;;  %956 = vmatpush.msrb.mxu0 %v784_v52  ;;  %v6272_v51 = vld [vmem:[#allocation4 + $0x3d0] sm:$0xff] }
  0xdf   : > { %897 = vmatpush.msra.mxu1 %v6171_v53  ;;  %917 = vmatpush.msra.mxu2 %v6173_v54  ;;  %v729_v52 = vld [vmem:[#allocation4 + $0x5f0] sm:$0xff] }
  0xe0   : > { %937 = vmatpush.msra.mxu3 %v716_v56  ;;  %850 = vmatmul.f32.vlgmr.msrb.gmra.mxu2 %v6175_v55  ;;  %v744_v56 = vld [vmem:[#allocation4 + $0x668] sm:$0xff] }
  0xe1   : > { %898 = vmatpush.msra.mxu1 %v6179_v57  ;;  %918 = vmatpush.msra.mxu2 %v6181_v58 }
  0xe2   : > { %938 = vmatpush.msra.mxu3 %v712_v60  ;;  %830 = vmatmul.f32.vlgmr.msrb.gmra.mxu1 %v6183_v59  ;;  %v6275_v60 = vld [vmem:[#allocation4 + $0x1b0] sm:$0xff] }
  0xe3   : > { %899 = vmatpush.msra.mxu1 %v6187_v61  ;;  %919 = vmatpush.msra.mxu2 %v6189_v62 }
  0xe4   : > { %939 = vmatpush.msra.mxu3 %v708_v63  ;;  %957 = vmatpush.msrb.mxu0 %v780_v0  ;;  %v6279_v63 = vld [vmem:[#allocation4 + $0x3b0] sm:$0xff] }
  0xe5   : > { %900 = vmatpush.msra.mxu1 %v6194_v1  ;;  %920 = vmatpush.msra.mxu2 %v6196_v2  ;;  %v725_v0 = vld [vmem:[#allocation4 + $0x5d0] sm:$0xff] }
  0xe6   : > { %870 = vmatmul.f32.vlgmr.msrb.gmra.mxu3 %v6198_v3  ;;  %958 = vmatpush.msrb.mxu0 %v776_v4  ;;  %v740_v4 = vld [vmem:[#allocation4 + $0x648] sm:$0xff] }
  0xe7   : > { %901 = vmatpush.msra.mxu1 %v6203_v5  ;;  %921 = vmatpush.msra.mxu2 %v6205_v6 }
  0xe8   : > { %940 = vmatpush.msra.mxu3 %v704_v7  ;;  %959 = vmatpush.msrb.mxu0 %v772_v8  ;;  %v6282_v7 = vld [vmem:[#allocation4 + $0x190] sm:$0xff] }
  0xe9   : > { %902 = vmatpush.msra.mxu1 %v6210_v9  ;;  %922 = vmatpush.msra.mxu2 %v6212_v11  ;;  %v6285_v8 = vld [vmem:[#allocation4 + $0x390] sm:$0xff] }
  0xea   : > { %941 = vmatpush.msra.mxu3 %v700_v13  ;;  %890 = vmatmul.f32.vlgmr.msra.gmra.mxu0 %v6214_v12  ;;  %v721_v13 = vld [vmem:[#allocation4 + $0x5b0] sm:$0xff] }
  0xeb   : > { %903 = vmatpush.msra.mxu1 %v6218_v14  ;;  %923 = vmatpush.msra.mxu2 %v6220_v15 }
  0xec   : > { %942 = vmatpush.msra.mxu3 %v696_v16  ;;  %960 = vmatpush.msrb.mxu0 %v768_v17  ;;  %v736_v16 = vld [vmem:[#allocation4 + $0x628] sm:$0xff]  ;;  %v6288_v17 = vld [vmem:[#allocation4 + $0x170] sm:$0xff] }
  0xed   : > { %904 = vmatpush.msra.mxu1 %v6224_v18  ;;  %924 = vmatpush.msra.mxu2 %v6226_v19 }
  0xee   : > { %943 = vmatpush.msra.mxu3 %v692_v20  ;;  %961 = vmatpush.msrb.mxu0 %v764_v21  ;;  %v6291_v20 = vld [vmem:[#allocation4 + $0x370] sm:$0xff] }
  0xef   : > { %905 = vmatpush.msra.mxu1 %v6231_v22  ;;  %925 = vmatpush.msra.mxu2 %v6233_v23  ;;  %v717_v21 = vld [vmem:[#allocation4 + $0x590] sm:$0xff] }
  0xf0   : > { %944 = vmatpush.msra.mxu3 %v688_v24  ;;  %962 = vmatpush.msrb.mxu0 %v760_v25  ;;  %v732_v24 = vld [vmem:[#allocation4 + $0x608] sm:$0xff]  ;;  %v6294_v25 = vld [vmem:[#allocation4 + $0x150] sm:$0xff] }
  0xf1   : > { %906 = vmatpush.msra.mxu1 %v6237_v26  ;;  %926 = vmatpush.msra.mxu2 %v6239_v27 }
  0xf2   : > { %945 = vmatpush.msra.mxu3 %v684_v28  ;;  %963 = vmatpush.msrb.mxu0 %v756_v29  ;;  %v6297_v28 = vld [vmem:[#allocation4 + $0x350] sm:$0xff] }
  0xf3   : > { %907 = vmatpush.msra.mxu1 %v6243_v30  ;;  %927 = vmatpush.msra.mxu2 %v6245_v31  ;;  %7190 = vst [vmem:[#allocation14_spill] sm:$0xff] %v6297_v28  ;;  %v713_v29 = vld [vmem:[#allocation4 + $0x570] sm:$0xff] }
  0xf4   : > { %946 = vmatpush.msra.mxu3 %v680_v32  ;;  %964 = vmatpush.msrb.mxu0 %v752_v33  ;;  %v793_v32 = vld [vmem:[#allocation4 + $0x7f0] sm:$0xff] }
  0xf5   : > { %908 = vmatpush.msra.mxu1 %v6249_v34  ;;  %928 = vmatpush.msra.mxu2 %v6251_v35  ;;  %v6301_v33 = vld [vmem:[#allocation4 + $0x130] sm:$0xff] }
  0xf6   : > { %947 = vmatpush.msra.mxu3 %v676_v36  ;;  %965 = vmatpush.msrb.mxu0 %v748_v37  ;;  %v6303_v36 = vld [vmem:[#allocation4 + $0x330] sm:$0xff] }
  0xf7   : > { %909 = vmatpush.msra.mxu1 %v6255_v38  ;;  %929 = vmatpush.msra.mxu2 %v6257_v39  ;;  %7191 = vst [vmem:[#allocation15_spill] sm:$0xff] %v6303_v36  ;;  %v709_v37 = vld [vmem:[#allocation4 + $0x550] sm:$0xff] }
  0xf8   : > { %948 = vmatpush.msra.mxu3 %v672_v43  ;;  %910 = vmatmul.f32.vlgmr.msra.gmra.mxu1 %v6183_v59  ;;  %v789_v43 = vld [vmem:[#allocation4 + $0x7d0] sm:$0xff] }
  0xf9   : > { %930 = vmatmul.f32.vlgmr.msra.gmra.mxu2 %v6175_v55  ;;  %974 = vmatpush.msrb.mxu1 %v6261_v44 }
  0xfa   : > { %994 = vmatpush.msrb.mxu2 %v6265_v46  ;;  %949 = vmatpush.msra.mxu3 %v668_v47  ;;  %v6307_v47 = vld [vmem:[#allocation4 + $0x110] sm:$0xff] }
  0xfb   : > { %950 = vmatmul.f32.vlgmr.msra.gmra.mxu3 %v6198_v3  ;;  %975 = vmatpush.msrb.mxu1 %v6268_v48 }
  0xfc   : > { %995 = vmatpush.msrb.mxu2 %v6272_v51  ;;  %1014 = vmatpush.msrb.mxu3 %v729_v52  ;;  %v6309_v52 = vld [vmem:[#allocation4 + $0x310] sm:$0xff] }
  0xfd   : > { %966 = vmatpush.msrb.mxu0 %v744_v56  ;;  %976 = vmatpush.msrb.mxu1 %v6275_v60  ;;  %7192 = vst [vmem:[#allocation16_spill] sm:$0xff] %v6309_v52  ;;  %v705_v56 = vld [vmem:[#allocation4 + $0x530] sm:$0xff] }
  0xfe   : > { %996 = vmatpush.msrb.mxu2 %v6279_v63  ;;  %1015 = vmatpush.msrb.mxu3 %v725_v0  ;;  %v785_v0 = vld [vmem:[#allocation4 + $0x7b0] sm:$0xff] }
  0xff   : > { %967 = vmatpush.msrb.mxu0 %v740_v4  ;;  %977 = vmatpush.msrb.mxu1 %v6282_v7  ;;  %v6313_v4 = vld [vmem:[#allocation4 + $0xf0] sm:$0xff] }
 0x100   : > { %997 = vmatpush.msrb.mxu2 %v6285_v8  ;;  %1016 = vmatpush.msrb.mxu3 %v721_v13  ;;  %v6315_v13 = vld [vmem:[#allocation4 + $0x2f0] sm:$0xff] }
 0x101   : > { %968 = vmatpush.msrb.mxu0 %v736_v16  ;;  %978 = vmatpush.msrb.mxu1 %v6288_v17  ;;  %7193 = vst [vmem:[#allocation17_spill] sm:$0xff] %v6315_v13  ;;  %v701_v16 = vld [vmem:[#allocation4 + $0x510] sm:$0xff] }
 0x102   : > { %998 = vmatpush.msrb.mxu2 %v6291_v20  ;;  %1017 = vmatpush.msrb.mxu3 %v717_v21  ;;  %v781_v21 = vld [vmem:[#allocation4 + $0x790] sm:$0xff] }
 0x103   : > { %969 = vmatpush.msrb.mxu0 %v732_v24  ;;  %979 = vmatpush.msrb.mxu1 %v6294_v25  ;;  %v6319_v24 = vld [vmem:[#allocation4 + $0xd0] sm:$0xff] }
 0x104   : > { %970 = vmatmul.f32.vlgmr.msrb.gmra.mxu0 %v6214_v12  ;;  %999 = vmatpush.msrb.mxu2 %v6297_v28  ;;  %v6339_v28 = vld [vmem:[#allocation4 + $0x270] sm:$0xff] }
 0x105   : > { %1018 = vmatpush.msrb.mxu3 %v713_v29  ;;  %1034 = vmatpush.msra.mxu0 %v793_v32  ;;  %v6321_v29 = vld [vmem:[#allocation4 + $0x2d0] sm:$0xff]  ;;  %7200 = vst [vmem:[#allocation24_spill] sm:$0xff] %v6339_v28 }
 0x106   : > { %980 = vmatpush.msrb.mxu1 %v6301_v33  ;;  %1000 = vmatpush.msrb.mxu2 %v6303_v36  ;;  %7194 = vst [vmem:[#allocation18_spill] sm:$0xff] %v6321_v29  ;;  %v697_v32 = vld [vmem:[#allocation4 + $0x4f0] sm:$0xff] }
 0x107   : > { %1019 = vmatpush.msrb.mxu3 %v709_v37  ;;  %1035 = vmatpush.msra.mxu0 %v789_v43  ;;  %v777_v37 = vld [vmem:[#allocation4 + $0x770] sm:$0xff] }
 0x108   : > { %981 = vmatpush.msrb.mxu1 %v6307_v47  ;;  %1001 = vmatpush.msrb.mxu2 %v6309_v52  ;;  %v6325_v43 = vld [vmem:[#allocation4 + $0xb0] sm:$0xff] }
 0x109   : > { %1020 = vmatpush.msrb.mxu3 %v705_v56  ;;  %1036 = vmatpush.msra.mxu0 %v785_v0  ;;  %7195 = vst [vmem:[#allocation19_spill] sm:$0xff] %v6325_v43  ;;  %v693_v56 = vld [vmem:[#allocation4 + $0x4d0] sm:$0xff] }
 0x10a   : > { %982 = vmatpush.msrb.mxu1 %v6313_v4  ;;  %1002 = vmatpush.msrb.mxu2 %v6315_v13  ;;  %v773_v0 = vld [vmem:[#allocation4 + $0x750] sm:$0xff] }
 0x10b   : > { %1021 = vmatpush.msrb.mxu3 %v701_v16  ;;  %1037 = vmatpush.msra.mxu0 %v781_v21  ;;  %v6331_v52 = vld [vmem:[#allocation4 + $0x90] sm:$0xff] }
 0x10c   : > { %983 = vmatpush.msrb.mxu1 %v6319_v24  ;;  %1003 = vmatpush.msrb.mxu2 %v6321_v29  ;;  %7197 = vst [vmem:[#allocation21_spill] sm:$0xff] %v6331_v52  ;;  %v6333_v36 = vld [vmem:[#allocation4 + $0x290] sm:$0xff] }
 0x10d   : > { %1022 = vmatpush.msrb.mxu3 %v697_v32  ;;  %1038 = vmatpush.msra.mxu0 %v777_v37  ;;  %7198 = vst [vmem:[#allocation22_spill] sm:$0xff] %v6333_v36  ;;  %v689_v16 = vld [vmem:[#allocation4 + $0x4b0] sm:$0xff] }
 0x10e   : > { %984 = vmatpush.msrb.mxu1 %v6325_v43  ;;  %1004 = vmatpush.msrb.mxu2 %v6327_v40  ;;  %v769_v21 = vld [vmem:[#allocation4 + $0x730] sm:$0xff] }
 0x10f   : > { %1023 = vmatpush.msrb.mxu3 %v693_v56  ;;  %1039 = vmatpush.msra.mxu0 %v773_v0  ;;  %v6337_v13 = vld [vmem:[#allocation4 + $0x70] sm:$0xff] }
 0x110   : > { %7199 = vst [vmem:[#allocation23_spill] sm:$0xff] %v6337_v13  ;;  %985 = vmatpush.msrb.mxu1 %v6331_v52  ;;  %1005 = vmatpush.msrb.mxu2 %v6333_v36  ;;  %v685_v32 = vld [vmem:[#allocation4 + $0x490] sm:$0xff] }
 0x111   : > { %v765_v37 = vld [vmem:[#allocation4 + $0x710] sm:$0xff]  ;;  %1024 = vmatpush.msrb.mxu3 %v689_v16  ;;  %1040 = vmatpush.msra.mxu0 %v769_v21 }
 0x112   : > { %v6343_v29 = vld [vmem:[#allocation4 + $0x50] sm:$0xff]  ;;  %986 = vmatpush.msrb.mxu1 %v6337_v13  ;;  %1006 = vmatpush.msrb.mxu2 %v6339_v28 }
 0x113   : > { %7201 = vst [vmem:[#allocation25_spill] sm:$0xff] %v6343_v29  ;;  %v6345_v43 = vld [vmem:[#allocation4 + $0x250] sm:$0xff]  ;;  %1025 = vmatpush.msrb.mxu3 %v685_v32  ;;  %1041 = vmatpush.msra.mxu0 %v765_v37 }
 0x114   : > { %7202 = vst [vmem:[#allocation26_spill] sm:$0xff] %v6345_v43  ;;  %v681_v56 = vld [vmem:[#allocation4 + $0x470] sm:$0xff]  ;;  %987 = vmatpush.msrb.mxu1 %v6343_v29  ;;  %1007 = vmatpush.msrb.mxu2 %v6345_v43  ;;  %v6363_v43 = vld [vmem:[#allocation4 + $0x1f8] sm:$0xff] }
 0x115   : > { %v761_v0 = vld [vmem:[#allocation4 + $0x6f0] sm:$0xff]  ;;  %1026 = vmatpush.msrb.mxu3 %v681_v56  ;;  %7207 = vst [vmem:[#allocation31_spill] sm:$0xff] %v6363_v43  ;;  %v6365_v56 = vld [vmem:[#allocation4 + $0x3f8] sm:$0xff] }
 0x116   : > { %v6349_v40 = vld [vmem:[#allocation4 + $0x30] sm:$0xff]  ;;  %1042 = vmatpush.msra.mxu0 %v761_v0  ;;  %7208 = vst [vmem:[#allocation32_spill] sm:$0xff] %v6365_v56  ;;  %v6415_v29 = vld [vmem:[#allocation4 + $0x2f8] sm:$0xff] }
 0x117   : > { %7203 = vst [vmem:[#allocation27_spill] sm:$0xff] %v6349_v40  ;;  %v6351_v52 = vld [vmem:[#allocation4 + $0x230] sm:$0xff]  ;;  %988 = vmatpush.msrb.mxu1 %v6349_v40 }
 0x118   : > { %7204 = vst [vmem:[#allocation28_spill] sm:$0xff] %v6351_v52  ;;  %v677_v16 = vld [vmem:[#allocation4 + $0x450] sm:$0xff]  ;;  %1008 = vmatpush.msrb.mxu2 %v6351_v52  ;;  %v6369_v52 = vld [vmem:[#allocation4 + $0x1d8] sm:$0xff] }
 0x119   : > { %v757_v21 = vld [vmem:[#allocation4 + $0x6d0] sm:$0xff]  ;;  %1027 = vmatpush.msrb.mxu3 %v677_v16  ;;  %7209 = vst [vmem:[#allocation33_spill] sm:$0xff] %v6369_v52  ;;  %v6373_v16 = vld [vmem:[#allocation4 + $0x3d8] sm:$0xff] }
 0x11a   : > { %v6355_v36 = vld [vmem:[#allocation4 + $0x10] sm:$0xff]  ;;  %1043 = vmatpush.msra.mxu0 %v757_v21  ;;  %7210 = vst [vmem:[#allocation34_spill] sm:$0xff] %v6373_v16  ;;  %v730_v21 = vld [vmem:[#allocation4 + $0x5f8] sm:$0xff] }
 0x11b   : > { %7205 = vst [vmem:[#allocation29_spill] sm:$0xff] %v6355_v36  ;;  %v6357_v13 = vld [vmem:[#allocation4 + $0x210] sm:$0xff]  ;;  %989 = vmatpush.msrb.mxu1 %v6355_v36  ;;  %v726_v36 = vld [vmem:[#allocation4 + $0x5d8] sm:$0xff] }
 0x11c   : > { %7206 = vst [vmem:[#allocation30_spill] sm:$0xff] %v6357_v13  ;;  %v673_v32 = vld [vmem:[#allocation4 + $0x430] sm:$0xff]  ;;  %1009 = vmatpush.msrb.mxu2 %v6357_v13  ;;  %990 = vmatmul.f32.vlgmr.msrb.gmra.mxu1 %v6183_v59 }
 0x11d   : > { %v753_v37 = vld [vmem:[#allocation4 + $0x6b0] sm:$0xff]  ;;  %1028 = vmatpush.msrb.mxu3 %v673_v32  ;;  %1010 = vmatmul.f32.vlgmr.msrb.gmra.mxu2 %v6175_v55  ;;  %v6375_v32 = vld [vmem:[#allocation4 + $0x1b8] sm:$0xff]  ;;  %7224 = vst [vmem:[#allocation48_spill] sm:$0xff] %v6415_v29 }
 0x11e   : > { %1044 = vmatpush.msra.mxu0 %v753_v37  ;;  %v669_v0 = vld [vmem:[#allocation4 + $0x410] sm:$0xff]  ;;  %1054 = vmatpush.msra.mxu1 %v6363_v43  ;;  %7211 = vst [vmem:[#allocation35_spill] sm:$0xff] %v6375_v32  ;;  %v6379_v37 = vld [vmem:[#allocation4 + $0x3b8] sm:$0xff] }
 0x11f   : > { %v749_v28 = vld [vmem:[#allocation4 + $0x690] sm:$0xff]  ;;  %1074 = vmatpush.msra.mxu2 %v6365_v56  ;;  %1029 = vmatpush.msrb.mxu3 %v669_v0  ;;  %7212 = vst [vmem:[#allocation36_spill] sm:$0xff] %v6379_v37  ;;  %v6382_v56 = vld [vmem:[#allocation4 + $0x198] sm:$0xff] }
 0x120   : > { %1045 = vmatpush.msra.mxu0 %v749_v28  ;;  %v745_v13 = vld [vmem:[#allocation4 + $0x670] sm:$0xff]  ;;  %1030 = vmatmul.f32.vlgmr.msrb.gmra.mxu3 %v6198_v3  ;;  %7213 = vst [vmem:[#allocation37_spill] sm:$0xff] %v6382_v56  ;;  %v6385_v28 = vld [vmem:[#allocation4 + $0x398] sm:$0xff] }
 0x121   : > { %1055 = vmatpush.msra.mxu1 %v6369_v52  ;;  %1075 = vmatpush.msra.mxu2 %v6373_v16  ;;  %v741_v43 = vld [vmem:[#allocation4 + $0x650] sm:$0xff]  ;;  %7214 = vst [vmem:[#allocation38_spill] sm:$0xff] %v6385_v28  ;;  %v722_v0 = vld [vmem:[#allocation4 + $0x5b8] sm:$0xff] }
 0x122   : > { %1094 = vmatpush.msra.mxu3 %v730_v21  ;;  %1046 = vmatpush.msra.mxu0 %v745_v13  ;;  %v737_v40 = vld [vmem:[#allocation4 + $0x630] sm:$0xff]  ;;  %v6388_v52 = vld [vmem:[#allocation4 + $0x178] sm:$0xff] }
 0x123   : > { %1056 = vmatpush.msra.mxu1 %v6375_v32  ;;  %1076 = vmatpush.msra.mxu2 %v6379_v37  ;;  %7215 = vst [vmem:[#allocation39_spill] sm:$0xff] %v6388_v52  ;;  %v6391_v16 = vld [vmem:[#allocation4 + $0x378] sm:$0xff]  ;;  %v733_v13 = vld [vmem:[#allocation4 + $0x610] sm:$0xff] }
 0x124   : > { %1095 = vmatpush.msra.mxu3 %v726_v36  ;;  %1047 = vmatpush.msra.mxu0 %v741_v43  ;;  %7216 = vst [vmem:[#allocation40_spill] sm:$0xff] %v6391_v16  ;;  %v718_v21 = vld [vmem:[#allocation4 + $0x598] sm:$0xff] }
 0x125   : > { %1057 = vmatpush.msra.mxu1 %v6382_v56  ;;  %1077 = vmatpush.msra.mxu2 %v6385_v28  ;;  %v6394_v32 = vld [vmem:[#allocation4 + $0x158] sm:$0xff] }
 0x126   : > { %1096 = vmatpush.msra.mxu3 %v722_v0  ;;  %7217 = vst [vmem:[#allocation41_spill] sm:$0xff] %v6394_v32  ;;  %1048 = vmatpush.msra.mxu0 %v737_v40  ;;  %v6397_v37 = vld [vmem:[#allocation4 + $0x358] sm:$0xff] }
 0x127   : > { %1058 = vmatpush.msra.mxu1 %v6388_v52  ;;  %7218 = vst [vmem:[#allocation42_spill] sm:$0xff] %v6397_v37  ;;  %1078 = vmatpush.msra.mxu2 %v6391_v16  ;;  %v714_v36 = vld [vmem:[#allocation4 + $0x578] sm:$0xff] }
 0x128   : > { %1097 = vmatpush.msra.mxu3 %v718_v21  ;;  %v794_v43 = vld [vmem:[#allocation4 + $0x7f8] sm:$0xff]  ;;  %1049 = vmatpush.msra.mxu0 %v733_v13 }
 0x129   : > { %1059 = vmatpush.msra.mxu1 %v6394_v32  ;;  %v6401_v56 = vld [vmem:[#allocation4 + $0x138] sm:$0xff]  ;;  %1050 = vmatmul.f32.vlgmr.msra.gmra.mxu0 %v6214_v12 }
 0x12a   : > { %7219 = vst [vmem:[#allocation43_spill] sm:$0xff] %v6401_v56  ;;  %v6403_v28 = vld [vmem:[#allocation4 + $0x338] sm:$0xff]  ;;  %1079 = vmatpush.msra.mxu2 %v6397_v37  ;;  %1098 = vmatpush.msra.mxu3 %v714_v36 }
 0x12b   : > { %7220 = vst [vmem:[#allocation44_spill] sm:$0xff] %v6403_v28  ;;  %v710_v40 = vld [vmem:[#allocation4 + $0x558] sm:$0xff]  ;;  %1114 = vmatpush.msrb.mxu0 %v794_v43  ;;  %1060 = vmatpush.msra.mxu1 %v6401_v56 }
 0x12c   : > { %v790_v0 = vld [vmem:[#allocation4 + $0x7d8] sm:$0xff]  ;;  %1080 = vmatpush.msra.mxu2 %v6403_v28  ;;  %1099 = vmatpush.msra.mxu3 %v710_v40 }
 0x12d   : > { %v6407_v52 = vld [vmem:[#allocation4 + $0x118] sm:$0xff]  ;;  %1115 = vmatpush.msrb.mxu0 %v790_v0 }
 0x12e   : > { %7221 = vst [vmem:[#allocation45_spill] sm:$0xff] %v6407_v52  ;;  %v6409_v21 = vld [vmem:[#allocation4 + $0x318] sm:$0xff]  ;;  %1061 = vmatpush.msra.mxu1 %v6407_v52 }
 0x12f   : > { %7222 = vst [vmem:[#allocation46_spill] sm:$0xff] %v6409_v21  ;;  %v706_v13 = vld [vmem:[#allocation4 + $0x538] sm:$0xff]  ;;  %1081 = vmatpush.msra.mxu2 %v6409_v21 }
 0x130   : > { %v786_v16 = vld [vmem:[#allocation4 + $0x7b8] sm:$0xff]  ;;  %1100 = vmatpush.msra.mxu3 %v706_v13 }
 0x131   : > { %v6413_v32 = vld [vmem:[#allocation4 + $0xf8] sm:$0xff]  ;;  %1116 = vmatpush.msrb.mxu0 %v786_v16  ;;  %1082 = vmatpush.msra.mxu2 %v6415_v29 }
 0x132   : > { %7223 = vst [vmem:[#allocation47_spill] sm:$0xff] %v6413_v32  ;;  %v702_v36 = vld [vmem:[#allocation4 + $0x518] sm:$0xff]  ;;  %1062 = vmatpush.msra.mxu1 %v6413_v32 }
 0x133   : > { %v782_v43 = vld [vmem:[#allocation4 + $0x798] sm:$0xff]  ;;  %1101 = vmatpush.msra.mxu3 %v702_v36 }
 0x134   : > { %v6419_v37 = vld [vmem:[#allocation4 + $0xd8] sm:$0xff]  ;;  %1117 = vmatpush.msrb.mxu0 %v782_v43 }
 0x135   : > { %7225 = vst [vmem:[#allocation49_spill] sm:$0xff] %v6419_v37  ;;  %v6421_v56 = vld [vmem:[#allocation4 + $0x2d8] sm:$0xff]  ;;  %1063 = vmatpush.msra.mxu1 %v6419_v37 }
 0x136   : > { %7226 = vst [vmem:[#allocation50_spill] sm:$0xff] %v6421_v56  ;;  %v698_v40 = vld [vmem:[#allocation4 + $0x4f8] sm:$0xff]  ;;  %1083 = vmatpush.msra.mxu2 %v6421_v56 }
 0x137   : > { %v778_v0 = vld [vmem:[#allocation4 + $0x778] sm:$0xff]  ;;  %1102 = vmatpush.msra.mxu3 %v698_v40 }
 0x138   : > { %v6425_v28 = vld [vmem:[#allocation4 + $0xb8] sm:$0xff]  ;;  %1118 = vmatpush.msrb.mxu0 %v778_v0 }
 0x139   : > { %7227 = vst [vmem:[#allocation51_spill] sm:$0xff] %v6425_v28  ;;  %v6427_v52 = vld [vmem:[#allocation4 + $0x2b8] sm:$0xff]  ;;  %1064 = vmatpush.msra.mxu1 %v6425_v28 }
 0x13a   : > { %7228 = vst [vmem:[#allocation52_spill] sm:$0xff] %v6427_v52  ;;  %v694_v16 = vld [vmem:[#allocation4 + $0x4d8] sm:$0xff]  ;;  %1084 = vmatpush.msra.mxu2 %v6427_v52 }
 0x13b   : > { %v774_v13 = vld [vmem:[#allocation4 + $0x758] sm:$0xff]  ;;  %1103 = vmatpush.msra.mxu3 %v694_v16 }
 0x13c   : > { %v6431_v21 = vld [vmem:[#allocation4 + $0x98] sm:$0xff]  ;;  %1119 = vmatpush.msrb.mxu0 %v774_v13 }
 0x13d   : > { %7229 = vst [vmem:[#allocation53_spill] sm:$0xff] %v6431_v21  ;;  %v6433_v32 = vld [vmem:[#allocation4 + $0x298] sm:$0xff]  ;;  %1065 = vmatpush.msra.mxu1 %v6431_v21 }
 0x13e   : > { %7230 = vst [vmem:[#allocation54_spill] sm:$0xff] %v6433_v32  ;;  %v690_v36 = vld [vmem:[#allocation4 + $0x4b8] sm:$0xff]  ;;  %1085 = vmatpush.msra.mxu2 %v6433_v32 }
 0x13f   : > { %v770_v43 = vld [vmem:[#allocation4 + $0x738] sm:$0xff]  ;;  %1104 = vmatpush.msra.mxu3 %v690_v36 }
 0x140   : > { %v6437_v29 = vld [vmem:[#allocation4 + $0x78] sm:$0xff]  ;;  %1120 = vmatpush.msrb.mxu0 %v770_v43 }
 0x141   : > { %7231 = vst [vmem:[#allocation55_spill] sm:$0xff] %v6437_v29  ;;  %v6439_v37 = vld [vmem:[#allocation4 + $0x278] sm:$0xff]  ;;  %1066 = vmatpush.msra.mxu1 %v6437_v29 }
 0x142   : > { %7232 = vst [vmem:[#allocation56_spill] sm:$0xff] %v6439_v37  ;;  %v686_v40 = vld [vmem:[#allocation4 + $0x498] sm:$0xff]  ;;  %1086 = vmatpush.msra.mxu2 %v6439_v37 }
 0x143   : > { %v766_v0 = vld [vmem:[#allocation4 + $0x718] sm:$0xff]  ;;  %1105 = vmatpush.msra.mxu3 %v686_v40 }
 0x144   : > { %v6443_v56 = vld [vmem:[#allocation4 + $0x58] sm:$0xff]  ;;  %1121 = vmatpush.msrb.mxu0 %v766_v0 }
 0x145   : > { %v6445_v28 = vld [vmem:[#allocation4 + $0x258] sm:$0xff]  ;;  %1067 = vmatpush.msra.mxu1 %v6443_v56 }
 0x146   : > { %7233 = vst [vmem:[#allocation57_spill] sm:$0xff] %v6445_v28  ;;  %v682_v16 = vld [vmem:[#allocation4 + $0x478] sm:$0xff]  ;;  %1087 = vmatpush.msra.mxu2 %v6445_v28  ;;  %v1214_v28 = vld [vmem:[#allocation4 + $0x1e0] sm:$0xff] }
 0x147   : > { %v762_v13 = vld [vmem:[#allocation4 + $0x6f8] sm:$0xff]  ;;  %1106 = vmatpush.msra.mxu3 %v682_v16 }
 0x148   : > { %v6449_v52 = vld [vmem:[#allocation4 + $0x38] sm:$0xff]  ;;  %1122 = vmatpush.msrb.mxu0 %v762_v13  ;;  %v1210_v13 = vld [vmem:[#allocation4 + $0x1c0] sm:$0xff] }
 0x149   : > { %7234 = vst [vmem:[#allocation58_spill] sm:$0xff] %v6449_v52  ;;  %v6451_v21 = vld [vmem:[#allocation4 + $0x238] sm:$0xff]  ;;  %1068 = vmatpush.msra.mxu1 %v6449_v52  ;;  %v1278_v52 = vld [vmem:[#allocation4 + $0x3e0] sm:$0xff] }
 0x14a   : > { %7235 = vst [vmem:[#allocation59_spill] sm:$0xff] %v6451_v21  ;;  %v678_v36 = vld [vmem:[#allocation4 + $0x458] sm:$0xff]  ;;  %1088 = vmatpush.msra.mxu2 %v6451_v21 }
 0x14b   : > { %v758_v43 = vld [vmem:[#allocation4 + $0x6d8] sm:$0xff]  ;;  %1107 = vmatpush.msra.mxu3 %v678_v36  ;;  %v1206_v36 = vld [vmem:[#allocation4 + $0x1a0] sm:$0xff] }
 0x14c   : > { %v6455_v32 = vld [vmem:[#allocation4 + $0x18] sm:$0xff]  ;;  %1123 = vmatpush.msrb.mxu0 %v758_v43  ;;  %v1274_v43 = vld [vmem:[#allocation4 + $0x3c0] sm:$0xff] }
 0x14d   : > { %7236 = vst [vmem:[#allocation60_spill] sm:$0xff] %v6455_v32  ;;  %v6457_v29 = vld [vmem:[#allocation4 + $0x218] sm:$0xff]  ;;  %1069 = vmatpush.msra.mxu1 %v6455_v32  ;;  %v1266_v32 = vld [vmem:[#allocation4 + $0x380] sm:$0xff] }
 0x14e   : > { %7237 = vst [vmem:[#allocation61_spill] sm:$0xff] %v6457_v29  ;;  %v674_v40 = vld [vmem:[#allocation4 + $0x438] sm:$0xff]  ;;  %1089 = vmatpush.msra.mxu2 %v6457_v29  ;;  %1070 = vmatmul.f32.vlgmr.msra.gmra.mxu1 %v6183_v59 }
 0x14f   : > { %v754_v0 = vld [vmem:[#allocation4 + $0x6b8] sm:$0xff]  ;;  %1108 = vmatpush.msra.mxu3 %v674_v40  ;;  %1090 = vmatmul.f32.vlgmr.msra.gmra.mxu2 %v6175_v55  ;;  %v1202_v40 = vld [vmem:[#allocation4 + $0x180] sm:$0xff] }
 0x150   : > { %v670_v37 = vld [vmem:[#allocation4 + $0x418] sm:$0xff]  ;;  %1124 = vmatpush.msrb.mxu0 %v754_v0  ;;  %1421 = vmatpush.msrb.mxu1 %v1214_v28  ;;  %v1270_v0 = vld [vmem:[#allocation4 + $0x3a0] sm:$0xff] }
 0x151   : > { %v750_v16 = vld [vmem:[#allocation4 + $0x698] sm:$0xff]  ;;  %1109 = vmatpush.msra.mxu3 %v670_v37  ;;  %1441 = vmatpush.msrb.mxu2 %v1278_v52  ;;  %v1198_v55 = vld [vmem:[#allocation4 + $0x160] sm:$0xff] }
 0x152   : > { %v746_v21 = vld [vmem:[#allocation4 + $0x678] sm:$0xff]  ;;  %1125 = vmatpush.msrb.mxu0 %v750_v16  ;;  %1110 = vmatmul.f32.vlgmr.msra.gmra.mxu3 %v6198_v3  ;;  %v1194_v28 = vld [vmem:[#allocation4 + $0x140] sm:$0xff] }
 0x153   : > { %1422 = vmatpush.msrb.mxu1 %v1210_v13  ;;  %v742_v29 = vld [vmem:[#allocation4 + $0x658] sm:$0xff]  ;;  %1442 = vmatpush.msrb.mxu2 %v1274_v43  ;;  %v1262_v3 = vld [vmem:[#allocation4 + $0x360] sm:$0xff] }
 0x154   : > { %1126 = vmatpush.msrb.mxu0 %v746_v21  ;;  %v738_v59 = vld [vmem:[#allocation4 + $0x638] sm:$0xff]  ;;  %v1190_v16 = vld [vmem:[#allocation4 + $0x120] sm:$0xff] }
 0x155   : > { %1423 = vmatpush.msrb.mxu1 %v1206_v36  ;;  %v734_v37 = vld [vmem:[#allocation4 + $0x618] sm:$0xff]  ;;  %1443 = vmatpush.msrb.mxu2 %v1270_v0  ;;  %v1258_v52 = vld [vmem:[#allocation4 + $0x340] sm:$0xff] }
 0x156   : > { %1127 = vmatpush.msrb.mxu0 %v742_v29  ;;  %v1342_v21 = vld [vmem:[#allocation4 + $0x5e0] sm:$0xff] }
 0x157   : > { %1424 = vmatpush.msrb.mxu1 %v1202_v40  ;;  %1444 = vmatpush.msrb.mxu2 %v1266_v32  ;;  %v1254_v29 = vld [vmem:[#allocation4 + $0x320] sm:$0xff] }
 0x158   : > { %1128 = vmatpush.msrb.mxu0 %v738_v59  ;;  %1461 = vmatpush.msrb.mxu3 %v1342_v21  ;;  %v1338_v13 = vld [vmem:[#allocation4 + $0x5c0] sm:$0xff] }
 0x159   : > { %1425 = vmatpush.msrb.mxu1 %v1198_v55  ;;  %1445 = vmatpush.msrb.mxu2 %v1262_v3  ;;  %v5777_v36 = vld [vmem:[#allocation4 + $0x100] sm:$0xff] }
 0x15a   : > { %1129 = vmatpush.msrb.mxu0 %v734_v37  ;;  %v1250_v43 = vld [vmem:[#allocation4 + $0x300] sm:$0xff]  ;;  %1462 = vmatpush.msrb.mxu3 %v1338_v13 }
 0x15b   : > { %1130 = vmatmul.f32.vlgmr.msrb.gmra.mxu0 %v6214_v12  ;;  %1426 = vmatpush.msrb.mxu1 %v1194_v28  ;;  %v1334_v32 = vld [vmem:[#allocation4 + $0x5a0] sm:$0xff] }
 0x15c   : > { %1446 = vmatpush.msrb.mxu2 %v1258_v52  ;;  %v5778_v40 = vld [vmem:[#allocation4 + $0xe0] sm:$0xff]  ;;  %1463 = vmatpush.msrb.mxu3 %v1334_v32 }
 0x15d   : > { %1427 = vmatpush.msrb.mxu1 %v1190_v16  ;;  %v1246_v0 = vld [vmem:[#allocation4 + $0x2e0] sm:$0xff] }
 0x15e   : > { %1447 = vmatpush.msrb.mxu2 %v1254_v29  ;;  %v1330_v12 = vld [vmem:[#allocation4 + $0x580] sm:$0xff]  ;;  %v471_v29 = vpop.f32.mrf.mxu1 }
 0x15f   : > { %1428 = vmatpush.msrb.mxu1 %v5777_v36  ;;  %v5779_v59 = vld [vmem:[#allocation4 + $0xc0] sm:$0xff]  ;;  %1464 = vmatpush.msrb.mxu3 %v1330_v12  ;;  %534 = vst [vmem:[#allocation3] sm:$0xff] %v471_v29 }
 0x160   : > { %1448 = vmatpush.msrb.mxu2 %v1250_v43  ;;  %v1242_v55 = vld [vmem:[#allocation4 + $0x2c0] sm:$0xff]  ;;  %v531_v43 = vpop.f32.mrf.mxu0 }
 0x161   : > { %1429 = vmatpush.msrb.mxu1 %v5778_v40  ;;  %v1326_v37 = vld [vmem:[#allocation4 + $0x560] sm:$0xff]  ;;  %537 = vst [vmem:[#allocation3 + $0x18] sm:$0xff] %v531_v43 }
 0x162   : > { %1449 = vmatpush.msrb.mxu2 %v1246_v0  ;;  %v5780_v28 = vld [vmem:[#allocation4 + $0xa0] sm:$0xff]  ;;  %1465 = vmatpush.msrb.mxu3 %v1326_v37 }
 0x163   : > { %1430 = vmatpush.msrb.mxu1 %v5779_v59  ;;  %v1238_v3 = vld [vmem:[#allocation4 + $0x2a0] sm:$0xff] }
 0x164   : > { %1450 = vmatpush.msrb.mxu2 %v1242_v55  ;;  %v1322_v16 = vld [vmem:[#allocation4 + $0x540] sm:$0xff] }
 0x165   : > { %1431 = vmatpush.msrb.mxu1 %v5780_v28  ;;  %v5781_v52 = vld [vmem:[#allocation4 + $0x80] sm:$0xff]  ;;  %1466 = vmatpush.msrb.mxu3 %v1322_v16  ;;  %v491_v28 = vpop.f32.mrf.mxu2  ;;  %v511_v16 = vpop.f32.mrf.mxu3 }
 0x166   : > { %v1234_v21 = vld [vmem:[#allocation4 + $0x280] sm:$0xff]  ;;  %1451 = vmatpush.msrb.mxu2 %v1238_v3  ;;  %535 = vst [vmem:[#allocation3 + $0x8] sm:$0xff] %v491_v28  ;;  %v831_v43 = vpop.f32.mrf.mxu1  ;;  %v1307_v28 = vld [vmem:[#allocation4 + $0x4c8] sm:$0xff] }
 0x167   : > { %1432 = vmatpush.msrb.mxu1 %v5781_v52  ;;  %v1318_v13 = vld [vmem:[#allocation4 + $0x520] sm:$0xff]  ;;  %536 = vst [vmem:[#allocation3 + $0x10] sm:$0xff] %v511_v16  ;;  %v1303_v16 = vld [vmem:[#allocation4 + $0x4a8] sm:$0xff] }
 0x168   : > { %v5782_v36 = vld [vmem:[#allocation4 + $0x60] sm:$0xff]  ;;  %1467 = vmatpush.msrb.mxu3 %v1318_v13  ;;  %1452 = vmatpush.msrb.mxu2 %v1234_v21 }
 0x169   : > { %1433 = vmatpush.msrb.mxu1 %v5782_v36  ;;  %v1230_v32 = vld [vmem:[#allocation4 + $0x260] sm:$0xff] }
 0x16a   : > { %v1314_v40 = vld [vmem:[#allocation4 + $0x500] sm:$0xff]  ;;  %1453 = vmatpush.msrb.mxu2 %v1230_v32 }
 0x16b   : > { %v5783_v0 = vld [vmem:[#allocation4 + $0x40] sm:$0xff]  ;;  %1468 = vmatpush.msrb.mxu3 %v1314_v40 }
 0x16c   : > { %1434 = vmatpush.msrb.mxu1 %v5783_v0  ;;  %v1226_v12 = vld [vmem:[#allocation4 + $0x240] sm:$0xff] }
 0x16d   : > { %v1310_v59 = vld [vmem:[#allocation4 + $0x4e0] sm:$0xff]  ;;  %1454 = vmatpush.msrb.mxu2 %v1226_v12  ;;  %v851_v32 = vpop.f32.mrf.mxu2  ;;  %v891_v12 = vpop.f32.mrf.mxu0 }
 0x16e   : > { %v5784_v55 = vld [vmem:[#allocation4 + $0x20] sm:$0xff]  ;;  %1469 = vmatpush.msrb.mxu3 %v1310_v59  ;;  %v1339_v59 = vld [vmem:[#allocation4 + $0x5c8] sm:$0xff] }
 0x16f   : > { %1435 = vmatpush.msrb.mxu1 %v5784_v55  ;;  %v1222_v37 = vld [vmem:[#allocation4 + $0x220] sm:$0xff]  ;;  %v1335_v55 = vld [vmem:[#allocation4 + $0x5a8] sm:$0xff] }
 0x170   : > { %v5785_v3 = vld [vmem:[#allocation4] sm:$0xff]  ;;  %1455 = vmatpush.msrb.mxu2 %v1222_v37 }
 0x171   : > { %1436 = vmatpush.msrb.mxu1 %v5785_v3  ;;  %v1218_v52 = vld [vmem:[#allocation4 + $0x200] sm:$0xff] }
 0x172   : > { %v1306_v29 = vld [vmem:[#allocation4 + $0x4c0] sm:$0xff]  ;;  %1456 = vmatpush.msrb.mxu2 %v1218_v52  ;;  %v1299_v52 = vld [vmem:[#allocation4 + $0x488] sm:$0xff] }
 0x173   : > { %1501 = vmatpush.msra.mxu1 %v6147_v41  ;;  %1470 = vmatpush.msrb.mxu3 %v1306_v29  ;;  %v1302_v21 = vld [vmem:[#allocation4 + $0x4a0] sm:$0xff] }
 0x174   : > { %1521 = vmatpush.msra.mxu2 %v6149_v42  ;;  %v1298_v13 = vld [vmem:[#allocation4 + $0x480] sm:$0xff] }
 0x175   : > { %1502 = vmatpush.msra.mxu1 %v6159_v10  ;;  %1471 = vmatpush.msrb.mxu3 %v1302_v21  ;;  %v1294_v36 = vld [vmem:[#allocation4 + $0x460] sm:$0xff] }
 0x176   : > { %1522 = vmatpush.msra.mxu2 %v6161_v45  ;;  %v6473_v41 = vld [vmem:[#allocation3] ss:$8 sm:$0xf] }
 0x177   : > { %1503 = vmatpush.msra.mxu1 %v6165_v49  ;;  %1472 = vmatpush.msrb.mxu3 %v1298_v13  ;;  %v1290_v10 = vld [vmem:[#allocation4 + $0x440] sm:$0xff]  ;;  %v806_v42 = vperm.slane %v6473_v41, 0 }
 0x178   : > { %1523 = vmatpush.msra.mxu2 %v6167_v50  ;;  %v1286_v45 = vld [vmem:[#allocation4 + $0x420] sm:$0xff]  ;;  %v1343_v50 = vld [vmem:[#allocation4 + $0x5e8] sm:$0xff] }
 0x179   : > { %1504 = vmatpush.msra.mxu1 %v6171_v53  ;;  %1473 = vmatpush.msrb.mxu3 %v1294_v36  ;;  %v832_v49 = vadd.f32 %v831_v43, %v806_v42  ;;  %v1282_v53 = vld [vmem:[#allocation4 + $0x400] sm:$0xff]  ;;  %v7243_v42 = vld [vmem:[#allocation16_spill] sm:$0xff] }
 0x17a   : > { %1524 = vmatpush.msra.mxu2 %v6173_v54  ;;  %v1406_v40 = vld [vmem:[#allocation4 + $0x7e0] sm:$0xff] }
 0x17b   : > { %1505 = vmatpush.msra.mxu1 %v6179_v57  ;;  %1474 = vmatpush.msrb.mxu3 %v1290_v10  ;;  %v852_v0 = vadd.f32 %v851_v32, %v832_v49  ;;  %v871_v57 = vpop.f32.mrf.mxu3  ;;  %v1402_v54 = vld [vmem:[#allocation4 + $0x7c0] sm:$0xff]  ;;  %v7245_v32 = vld [vmem:[#allocation17_spill] sm:$0xff] }
 0x17c   : > { %1525 = vmatpush.msra.mxu2 %v6181_v58  ;;  %1481 = vmatpush.msra.mxu0 %v1406_v40  ;;  %v1398_v58 = vld [vmem:[#allocation4 + $0x7a0] sm:$0xff]  ;;  %v1383_v40 = vld [vmem:[#allocation4 + $0x728] sm:$0xff] }
 0x17d   : > { %1506 = vmatpush.msra.mxu1 %v6187_v61  ;;  %1475 = vmatpush.msrb.mxu3 %v1286_v45  ;;  %v872_v61 = vadd.f32 %v871_v57, %v852_v0  ;;  %v1386_v37 = vld [vmem:[#allocation4 + $0x740] sm:$0xff]  ;;  %v1387_v45 = vld [vmem:[#allocation4 + $0x748] sm:$0xff] }
 0x17e   : > { %1526 = vmatpush.msra.mxu2 %v6189_v62  ;;  %1482 = vmatpush.msra.mxu0 %v1402_v54  ;;  %v1394_v62 = vld [vmem:[#allocation4 + $0x780] sm:$0xff]  ;;  %v7249_v57 = vld [vmem:[#allocation20_spill] sm:$0xff]  ;;  %v808_v54 = vperm.slane %v6473_v41, 2 }
 0x17f   : > { %1507 = vmatpush.msra.mxu1 %v6194_v1  ;;  %1476 = vmatpush.msrb.mxu3 %v1282_v53  ;;  %v6486_v1 = vadd.f32 %v891_v12, %v872_v61  ;;  %v1358_v21 = vld [vmem:[#allocation4 + $0x660] sm:$0xff]  ;;  %v7247_v53 = vld [vmem:[#allocation18_spill] sm:$0xff]  ;;  %v1379_v12 = vld [vmem:[#allocation4 + $0x708] sm:$0xff] }
 0x180   : > { %1527 = vmatpush.msra.mxu2 %v6196_v2  ;;  %1483 = vmatpush.msra.mxu0 %v1398_v58  ;;  %v1390_v2 = vld [vmem:[#allocation4 + $0x760] sm:$0xff]  ;;  %v7251_v61 = vld [vmem:[#allocation22_spill] sm:$0xff]  ;;  %v1375_v58 = vld [vmem:[#allocation4 + $0x6e8] sm:$0xff] }
 0x181   : > { %1508 = vmatpush.msra.mxu1 %v6203_v5  ;;  %1541 = vmatpush.msra.mxu3 %v1343_v50  ;;  %v1331_v5 = vld [vmem:[#allocation4 + $0x588] sm:$0xff]  ;;  %v971_v29 = vpop.f32.mrf.mxu0  ;;  %v1354_v13 = vld [vmem:[#allocation4 + $0x640] sm:$0xff]  ;;  %v7248_v50 = vld [vmem:[#allocation29_spill] sm:$0xff] }
 0x182   : > { %1528 = vmatpush.msra.mxu2 %v6205_v6  ;;  %1437 = vmatmul.f32.vlgmr.msrb.gmra.mxu1 %v6486_v1  ;;  %v1323_v6 = vld [vmem:[#allocation4 + $0x548] sm:$0xff]  ;;  %v1350_v36 = vld [vmem:[#allocation4 + $0x620] sm:$0xff] }
 0x183   : > { %1509 = vmatpush.msra.mxu1 %v6210_v9  ;;  %1542 = vmatpush.msra.mxu3 %v1339_v59  ;;  %v1327_v9 = vld [vmem:[#allocation4 + $0x568] sm:$0xff]  ;;  %v1346_v43 = vld [vmem:[#allocation4 + $0x600] sm:$0xff] }
 0x184   : > { %1529 = vmatpush.msra.mxu2 %v6212_v11  ;;  %1484 = vmatpush.msra.mxu0 %v1394_v62  ;;  %v1319_v11 = vld [vmem:[#allocation4 + $0x528] sm:$0xff]  ;;  %v7242_v10 = vld [vmem:[#allocation23_spill] sm:$0xff]  ;;  %v7252_v62 = vld [vmem:[#allocation33_spill] sm:$0xff] }
 0x185   : > { %1510 = vmatpush.msra.mxu1 %v6218_v14  ;;  %1543 = vmatpush.msra.mxu3 %v1335_v55  ;;  %v1382_v14 = vld [vmem:[#allocation4 + $0x720] sm:$0xff] }
 0x186   : > { %1530 = vmatpush.msra.mxu2 %v6220_v15  ;;  %1485 = vmatpush.msra.mxu0 %v1390_v2  ;;  %v1315_v15 = vld [vmem:[#allocation4 + $0x508] sm:$0xff]  ;;  %v7246_v49 = vld [vmem:[#allocation27_spill] sm:$0xff] }
 0x187   : > { %1511 = vmatpush.msra.mxu1 %v6224_v18  ;;  %1544 = vmatpush.msra.mxu3 %v1331_v5  ;;  %v1378_v18 = vld [vmem:[#allocation4 + $0x700] sm:$0xff]  ;;  %v7253_v2 = vld [vmem:[#allocation24_spill] sm:$0xff] }
 0x188   : > { %1531 = vmatpush.msra.mxu2 %v6226_v19  ;;  %1486 = vmatpush.msra.mxu0 %v1386_v37  ;;  %v911_v19 = vpop.f32.mrf.mxu1  ;;  %v7250_v59 = vld [vmem:[#allocation31_spill] sm:$0xff] }
 0x189   : > { %1512 = vmatpush.msra.mxu1 %v6231_v22  ;;  %1545 = vmatpush.msra.mxu3 %v1327_v9  ;;  %v1374_v22 = vld [vmem:[#allocation4 + $0x6e0] sm:$0xff]  ;;  %v1371_v9 = vld [vmem:[#allocation4 + $0x6c8] sm:$0xff] }
 0x18a   : > { %1532 = vmatpush.msra.mxu2 %v6233_v23  ;;  %1487 = vmatpush.msra.mxu0 %v1382_v14  ;;  %v1311_v23 = vld [vmem:[#allocation4 + $0x4e8] sm:$0xff]  ;;  %v7255_v14 = vld [vmem:[#allocation26_spill] sm:$0xff] }
 0x18b   : > { %1513 = vmatpush.msra.mxu1 %v6237_v26  ;;  %1546 = vmatpush.msra.mxu3 %v1323_v6  ;;  %v807_v26 = vperm.slane %v6473_v41, 1  ;;  %v7254_v6 = vld [vmem:[#allocation35_spill] sm:$0xff] }
 0x18c   : > { %1533 = vmatpush.msra.mxu2 %v6239_v27  ;;  %1488 = vmatpush.msra.mxu0 %v1378_v18  ;;  %v1370_v27 = vld [vmem:[#allocation4 + $0x6c0] sm:$0xff] }
 0x18d   : > { %1514 = vmatpush.msra.mxu1 %v6243_v30  ;;  %1547 = vmatpush.msra.mxu3 %v1319_v11  ;;  %v912_v30 = vadd.f32 %v911_v19, %v807_v26  ;;  %v1367_v11 = vld [vmem:[#allocation4 + $0x6a8] sm:$0xff] }
 0x18e   : > { %1534 = vmatpush.msra.mxu2 %v6245_v31  ;;  %1489 = vmatpush.msra.mxu0 %v1374_v22  ;;  %v1366_v31 = vld [vmem:[#allocation4 + $0x6a0] sm:$0xff]  ;;  %v7257_v19 = vld [vmem:[#allocation28_spill] sm:$0xff] }
 0x18f   : > { %1515 = vmatpush.msra.mxu1 %v6249_v34  ;;  %1548 = vmatpush.msra.mxu3 %v1315_v15  ;;  %v931_v34 = vpop.f32.mrf.mxu2  ;;  %v7256_v15 = vld [vmem:[#allocation37_spill] sm:$0xff]  ;;  %v1363_v26 = vld [vmem:[#allocation4 + $0x688] sm:$0xff] }
 0x190   : > { %1535 = vmatpush.msra.mxu2 %v6251_v35  ;;  %v932_v3 = vadd.f32 %v931_v34, %v912_v30  ;;  %1490 = vmatpush.msra.mxu0 %v1370_v27  ;;  %v1362_v35 = vld [vmem:[#allocation4 + $0x680] sm:$0xff]  ;;  %v7259_v27 = vld [vmem:[#allocation30_spill] sm:$0xff] }
 0x191   : > { %1516 = vmatpush.msra.mxu1 %v6255_v38  ;;  %1549 = vmatpush.msra.mxu3 %v1311_v23  ;;  %v951_v38 = vpop.f32.mrf.mxu3  ;;  %v7258_v23 = vld [vmem:[#allocation39_spill] sm:$0xff] }
 0x192   : > { %1517 = vmatmul.f32.vlgmr.msra.gmra.mxu1 %v6486_v1  ;;  %1536 = vmatpush.msra.mxu2 %v6257_v39  ;;  %v1295_v39 = vld [vmem:[#allocation4 + $0x468] sm:$0xff] }
 0x193   : > { %1581 = vmatpush.msrb.mxu1 %v6261_v44  ;;  %1550 = vmatpush.msra.mxu3 %v1307_v28  ;;  %v952_v44 = vadd.f32 %v951_v38, %v932_v3  ;;  %v1359_v28 = vld [vmem:[#allocation4 + $0x668] sm:$0xff]  ;;  %v1344_v3 = vld [vmem:[#allocation4 + $0x5f0] sm:$0xff] }
 0x194   : > { %1491 = vmatpush.msra.mxu0 %v1366_v31  ;;  %v7260_v31 = vld [vmem:[#allocation41_spill] sm:$0xff]  ;;  %v1355_v38 = vld [vmem:[#allocation4 + $0x648] sm:$0xff] }
 0x195   : > { %1582 = vmatpush.msrb.mxu1 %v6268_v48  ;;  %1551 = vmatpush.msra.mxu3 %v1303_v16  ;;  %v6511_v48 = vadd.f32 %v971_v29, %v952_v44  ;;  %v7261_v16 = vld [vmem:[#allocation32_spill] sm:$0xff]  ;;  %v1340_v44 = vld [vmem:[#allocation4 + $0x5d0] sm:$0xff]  ;;  %v7263_v29 = vld [vmem:[#allocation34_spill] sm:$0xff] }
 0x196   : > { %1492 = vmatpush.msra.mxu0 %v1362_v35  ;;  %v7262_v35 = vld [vmem:[#allocation43_spill] sm:$0xff] }
 0x197   : > { %1583 = vmatpush.msrb.mxu1 %v6275_v60  ;;  %1552 = vmatpush.msra.mxu3 %v1299_v52  ;;  %v1291_v60 = vld [vmem:[#allocation4 + $0x448] sm:$0xff] }
 0x198   : > { %1457 = vmatmul.f32.vlgmr.msrb.gmra.mxu2 %v6511_v48  ;;  %1493 = vmatpush.msra.mxu0 %v1358_v21  ;;  %v1351_v52 = vld [vmem:[#allocation4 + $0x628] sm:$0xff]  ;;  %v1336_v21 = vld [vmem:[#allocation4 + $0x5b0] sm:$0xff] }
 0x199   : > { %1584 = vmatpush.msrb.mxu1 %v6282_v7  ;;  %1601 = vmatpush.msrb.mxu2 %v6265_v46  ;;  %v1287_v7 = vld [vmem:[#allocation4 + $0x428] sm:$0xff]  ;;  %v991_v0 = vpop.f32.mrf.mxu1 }
 0x19a   : > { %1553 = vmatpush.msra.mxu3 %v1295_v39  ;;  %1494 = vmatpush.msra.mxu0 %v1354_v13  ;;  %v1407_v46 = vld [vmem:[#allocation4 + $0x7e8] sm:$0xff]  ;;  %v992_v55 = vadd.f32 %v991_v0, %v808_v54  ;;  %v7264_v39 = vld [vmem:[#allocation45_spill] sm:$0xff]  ;;  %v7281_v54 = vld [vmem:[#allocation54_spill] sm:$0xff] }
 0x19b   : > { %1585 = vmatpush.msrb.mxu1 %v6288_v17  ;;  %1602 = vmatpush.msrb.mxu2 %v6272_v51  ;;  %v1283_v17 = vld [vmem:[#allocation4 + $0x408] sm:$0xff] }
 0x19c   : > { %1554 = vmatpush.msra.mxu3 %v1291_v60  ;;  %1495 = vmatpush.msra.mxu0 %v1350_v36  ;;  %v1403_v51 = vld [vmem:[#allocation4 + $0x7c8] sm:$0xff]  ;;  %v1332_v36 = vld [vmem:[#allocation4 + $0x590] sm:$0xff] }
 0x19d   : > { %1586 = vmatpush.msrb.mxu1 %v6294_v25  ;;  %1603 = vmatpush.msrb.mxu2 %v6279_v63  ;;  %v7238_v25 = vld [vmem:[#allocation19_spill] sm:$0xff]  ;;  %v7239_v63 = vld [vmem:[#allocation14_spill] sm:$0xff]  ;;  %v1347_v13 = vld [vmem:[#allocation4 + $0x608] sm:$0xff] }
 0x19e   : > { %1555 = vmatpush.msra.mxu3 %v1287_v7  ;;  %1496 = vmatpush.msra.mxu0 %v1346_v43  ;;  %v7265_v60 = vld [vmem:[#allocation36_spill] sm:$0xff]  ;;  %v7266_v7 = vld [vmem:[#allocation47_spill] sm:$0xff]  ;;  %v7267_v43 = vld [vmem:[#allocation38_spill] sm:$0xff] }
 0x19f   : > { %1587 = vmatpush.msrb.mxu1 %v6301_v33  ;;  %1604 = vmatpush.msrb.mxu2 %v6285_v8  ;;  %v1399_v33 = vld [vmem:[#allocation4 + $0x7a8] sm:$0xff] }
 0x1a0   : > { %1537 = vmatmul.f32.vlgmr.msra.gmra.mxu2 %v6511_v48  ;;  %1556 = vmatpush.msra.mxu3 %v1283_v17  ;;  %v1395_v8 = vld [vmem:[#allocation4 + $0x788] sm:$0xff]  ;;  %v1011_v5 = vpop.f32.mrf.mxu2  ;;  %v1328_v17 = vld [vmem:[#allocation4 + $0x570] sm:$0xff] }
 0x1a1   : > { %1588 = vmatpush.msrb.mxu1 %v6307_v47  ;;  %1605 = vmatpush.msrb.mxu2 %v6291_v20  ;;  %v7240_v47 = vld [vmem:[#allocation21_spill] sm:$0xff]  ;;  %v1012_v37 = vadd.f32 %v1011_v5, %v992_v55  ;;  %v7280_v0 = vld [vmem:[#allocation52_spill] sm:$0xff] }
 0x1a2   : > { %1561 = vmatpush.msrb.mxu0 %v1407_v46  ;;  %v7244_v20 = vld [vmem:[#allocation25_spill] sm:$0xff] }
 0x1a3   : > { %1589 = vmatpush.msrb.mxu1 %v6313_v4  ;;  %1606 = vmatpush.msrb.mxu2 %v7239_v63  ;;  %v7241_v4 = vld [vmem:[#allocation15_spill] sm:$0xff]  ;;  %v1031_v18 = vpop.f32.mrf.mxu3  ;;  %v7268_v46 = vld [vmem:[#allocation49_spill] sm:$0xff] }
 0x1a4   : > { %1562 = vmatpush.msrb.mxu0 %v1403_v51  ;;  %v1032_v22 = vadd.f32 %v1031_v18, %v1012_v37  ;;  %v7269_v51 = vld [vmem:[#allocation40_spill] sm:$0xff]  ;;  %v7270_v63 = vld [vmem:[#allocation51_spill] sm:$0xff]  ;;  %v1292_v55 = vld [vmem:[#allocation4 + $0x450] sm:$0xff] }
 0x1a5   : > { %1590 = vmatpush.msrb.mxu1 %v6319_v24  ;;  %1607 = vmatpush.msrb.mxu2 %v7241_v4  ;;  %v1391_v24 = vld [vmem:[#allocation4 + $0x768] sm:$0xff]  ;;  %v7272_v4 = vld [vmem:[#allocation53_spill] sm:$0xff] }
 0x1a6   : > { %1563 = vmatpush.msrb.mxu0 %v1399_v33  ;;  %v1051_v30 = vpop.f32.mrf.mxu0  ;;  %v7271_v33 = vld [vmem:[#allocation42_spill] sm:$0xff]  ;;  %v7285_v18 = vld [vmem:[#allocation61_spill] sm:$0xff] }
 0x1a7   : > { %1591 = vmatpush.msrb.mxu1 %v7238_v25  ;;  %1608 = vmatpush.msrb.mxu2 %v7243_v42  ;;  %v6550_v34 = vadd.f32 %v1051_v30, %v1032_v22  ;;  %v1324_v25 = vld [vmem:[#allocation4 + $0x550] sm:$0xff]  ;;  %v7274_v42 = vld [vmem:[#allocation55_spill] sm:$0xff]  ;;  %v1148_v22 = vlaneseq  ;;  %v1341_v30 = vld [vmem:[#allocation4 + $0x5d8] sm:$0xff] }
 0x1a8   : > { %1564 = vmatpush.msrb.mxu0 %v1395_v8  ;;  %v7273_v8 = vld [vmem:[#allocation44_spill] sm:$0xff] }
 0x1a9   : > { %1592 = vmatpush.msrb.mxu1 %v7240_v47  ;;  %1609 = vmatpush.msrb.mxu2 %v7245_v32  ;;  %v1320_v47 = vld [vmem:[#allocation4 + $0x530] sm:$0xff]  ;;  %v7276_v32 = vld [vmem:[#allocation48_spill] sm:$0xff]  ;;  %vm6592_vm9 = vcmp.lt.s32.totalorder %v1148_v22, 512  ;;  %v1862_v22 = vld [vmem:[#allocation4 + $0x360] sm:$0xff] }
 0x1aa   : > { %1565 = vmatpush.msrb.mxu0 %v1391_v24  ;;  %1477 = vmatmul.f32.vlgmr.msrb.gmra.mxu3 %v6550_v34  ;;  %v7275_v24 = vld [vmem:[#allocation46_spill] sm:$0xff] }
 0x1ab   : > { %1593 = vmatpush.msrb.mxu1 %v7242_v10  ;;  %1610 = vmatpush.msrb.mxu2 %v7247_v53  ;;  %v1316_v10 = vld [vmem:[#allocation4 + $0x510] sm:$0xff]  ;;  %v7278_v53 = vld [vmem:[#allocation50_spill] sm:$0xff] }
 0x1ac   : > { %1566 = vmatpush.msrb.mxu0 %v1387_v45  ;;  %1621 = vmatpush.msrb.mxu3 %v1344_v3  ;;  %v1308_v45 = vld [vmem:[#allocation4 + $0x4d0] sm:$0xff] }
 0x1ad   : > { %1594 = vmatpush.msrb.mxu1 %v7244_v20  ;;  %1611 = vmatpush.msrb.mxu2 %v7249_v57  ;;  %v1312_v20 = vld [vmem:[#allocation4 + $0x4f0] sm:$0xff] }
 0x1ae   : > { %1567 = vmatpush.msrb.mxu0 %v1383_v40  ;;  %1622 = vmatpush.msrb.mxu3 %v1340_v44  ;;  %v1304_v40 = vld [vmem:[#allocation4 + $0x4b0] sm:$0xff] }
 0x1af   : > { %1595 = vmatpush.msrb.mxu1 %v7246_v49  ;;  %1612 = vmatpush.msrb.mxu2 %v7251_v61  ;;  %v7277_v49 = vld [vmem:[#allocation58_spill] sm:$0xff]  ;;  %v1300_v57 = vld [vmem:[#allocation4 + $0x490] sm:$0xff] }
 0x1b0   : > { %1568 = vmatpush.msrb.mxu0 %v1379_v12  ;;  %1623 = vmatpush.msrb.mxu3 %v1336_v21  ;;  %v1404_v3 = vld [vmem:[#allocation4 + $0x7d0] sm:$0xff]  ;;  %v1329_v21 = vld [vmem:[#allocation4 + $0x578] sm:$0xff] }
 0x1b1   : > { %1596 = vmatpush.msrb.mxu1 %v7248_v50  ;;  %1613 = vmatpush.msrb.mxu2 %v7253_v2  ;;  %v7279_v50 = vld [vmem:[#allocation60_spill] sm:$0xff]  ;;  %v7283_v2 = vld [vmem:[#allocation57_spill] sm:$0xff] }
 0x1b2   : > { %1597 = vmatmul.f32.vlgmr.msrb.gmra.mxu1 %v6486_v1  ;;  %1569 = vmatpush.msrb.mxu0 %v1375_v58  ;;  %v7282_v58 = vld [vmem:[#allocation56_spill] sm:$0xff]  ;;  %v1400_v44 = vld [vmem:[#allocation4 + $0x7b0] sm:$0xff] }
 0x1b3   : > { %1661 = vmatpush.msra.mxu1 %v7250_v59  ;;  %1614 = vmatpush.msrb.mxu2 %v7255_v14  ;;  %v1296_v59 = vld [vmem:[#allocation4 + $0x470] sm:$0xff]  ;;  %v7284_v14 = vld [vmem:[#allocation59_spill] sm:$0xff] }
 0x1b4   : > { %1570 = vmatpush.msrb.mxu0 %v1371_v9  ;;  %1624 = vmatpush.msrb.mxu3 %v1332_v36  ;;  %v1288_v9 = vld [vmem:[#allocation4 + $0x430] sm:$0xff] }
 0x1b5   : > { %1662 = vmatpush.msra.mxu1 %v7252_v62  ;;  %1615 = vmatpush.msrb.mxu2 %v7257_v19  ;;  %v1138_v19 = vrot.slane %v6511_v48, 7  ;;  %v1384_v36 = vld [vmem:[#allocation4 + $0x730] sm:$0xff] }
 0x1b6   : > { %1571 = vmatpush.msrb.mxu0 %v1367_v11  ;;  %1557 = vmatmul.f32.vlgmr.msra.gmra.mxu3 %v6550_v34 }
 0x1b7   : > { %1663 = vmatpush.msra.mxu1 %v7254_v6  ;;  %1616 = vmatpush.msrb.mxu2 %v7259_v27  ;;  %v1139_v27 = vrot.slane %v6550_v34, 6 }
 0x1b8   : > { %1617 = vmatmul.f32.vlgmr.msrb.gmra.mxu2 %v6511_v48  ;;  %1572 = vmatpush.msrb.mxu0 %v1363_v26 }
 0x1b9   : > { %1664 = vmatpush.msra.mxu1 %v7256_v15  ;;  %1681 = vmatpush.msra.mxu2 %v7261_v16  ;;  %v1345_v15 = vld [vmem:[#allocation4 + $0x5f8] sm:$0xff] }
 0x1ba   : > { %1573 = vmatpush.msrb.mxu0 %v1359_v28  ;;  %1625 = vmatpush.msrb.mxu3 %v1328_v17  ;;  %v1313_v17 = vld [vmem:[#allocation4 + $0x4f8] sm:$0xff] }
 0x1bb   : > { %1665 = vmatpush.msra.mxu1 %v7258_v23  ;;  %1682 = vmatpush.msra.mxu2 %v7263_v29  ;;  %v1408_v23 = vld [vmem:[#allocation4 + $0x7f0] sm:$0xff] }
 0x1bc   : > { %1574 = vmatpush.msrb.mxu0 %v1355_v38  ;;  %1626 = vmatpush.msrb.mxu3 %v1324_v25  ;;  %v1396_v29 = vld [vmem:[#allocation4 + $0x790] sm:$0xff] }
 0x1bd   : > { %1666 = vmatpush.msra.mxu1 %v7260_v31  ;;  %1683 = vmatpush.msra.mxu2 %v7265_v60  ;;  %v1337_v31 = vld [vmem:[#allocation4 + $0x5b8] sm:$0xff]  ;;  %v1372_v25 = vld [vmem:[#allocation4 + $0x6d0] sm:$0xff] }
 0x1be   : > { %1575 = vmatpush.msrb.mxu0 %v1351_v52  ;;  %1627 = vmatpush.msrb.mxu3 %v1320_v47  ;;  %v1333_v52 = vld [vmem:[#allocation4 + $0x598] sm:$0xff] }
 0x1bf   : > { %1667 = vmatpush.msra.mxu1 %v7262_v35  ;;  %1684 = vmatpush.msra.mxu2 %v7267_v43  ;;  %v1321_v60 = vld [vmem:[#allocation4 + $0x538] sm:$0xff]  ;;  %v1380_v43 = vld [vmem:[#allocation4 + $0x710] sm:$0xff] }
 0x1c0   : > { %1576 = vmatpush.msrb.mxu0 %v1347_v13  ;;  %1628 = vmatpush.msrb.mxu3 %v1316_v10  ;;  %v1325_v13 = vld [vmem:[#allocation4 + $0x558] sm:$0xff]  ;;  %v1360_v10 = vld [vmem:[#allocation4 + $0x670] sm:$0xff] }
 0x1c1   : > { %1668 = vmatpush.msra.mxu1 %v7264_v39  ;;  %1685 = vmatpush.msra.mxu2 %v7269_v51  ;;  %v1392_v39 = vld [vmem:[#allocation4 + $0x770] sm:$0xff]  ;;  %v1309_v51 = vld [vmem:[#allocation4 + $0x4d8] sm:$0xff] }
 0x1c2   : > { %1629 = vmatpush.msrb.mxu3 %v1312_v20  ;;  %v1301_v47 = vld [vmem:[#allocation4 + $0x498] sm:$0xff] }
 0x1c3   : > { %1669 = vmatpush.msra.mxu1 %v7266_v7  ;;  %1686 = vmatpush.msra.mxu2 %v7271_v33  ;;  %v1317_v7 = vld [vmem:[#allocation4 + $0x518] sm:$0xff]  ;;  %v1368_v33 = vld [vmem:[#allocation4 + $0x6b0] sm:$0xff] }
 0x1c4   : > { %1630 = vmatpush.msrb.mxu3 %v1308_v45  ;;  %v1289_v20 = vld [vmem:[#allocation4 + $0x438] sm:$0xff] }
 0x1c5   : > { %1670 = vmatpush.msra.mxu1 %v7268_v46  ;;  %1687 = vmatpush.msra.mxu2 %v7273_v8  ;;  %v1376_v46 = vld [vmem:[#allocation4 + $0x6f0] sm:$0xff]  ;;  %v1297_v8 = vld [vmem:[#allocation4 + $0x478] sm:$0xff] }
 0x1c6   : > { %1631 = vmatpush.msrb.mxu3 %v1304_v40  ;;  %v1285_v45 = vld [vmem:[#allocation4 + $0x418] sm:$0xff] }
 0x1c7   : > { %1671 = vmatpush.msra.mxu1 %v7270_v63  ;;  %1688 = vmatpush.msra.mxu2 %v7275_v24  ;;  %v1305_v63 = vld [vmem:[#allocation4 + $0x4b8] sm:$0xff]  ;;  %v1356_v24 = vld [vmem:[#allocation4 + $0x650] sm:$0xff] }
 0x1c8   : > { %1632 = vmatpush.msrb.mxu3 %v1300_v57  ;;  %v1405_v40 = vld [vmem:[#allocation4 + $0x7d8] sm:$0xff] }
 0x1c9   : > { %1672 = vmatpush.msra.mxu1 %v7272_v4  ;;  %1689 = vmatpush.msra.mxu2 %v7276_v32  ;;  %v1364_v4 = vld [vmem:[#allocation4 + $0x690] sm:$0xff]  ;;  %v1401_v57 = vld [vmem:[#allocation4 + $0x7b8] sm:$0xff] }
 0x1ca   : > { %1633 = vmatpush.msrb.mxu3 %v1296_v59  ;;  %v1352_v32 = vld [vmem:[#allocation4 + $0x630] sm:$0xff]  ;;  %v1397_v59 = vld [vmem:[#allocation4 + $0x798] sm:$0xff] }
 0x1cb   : > { %1673 = vmatpush.msra.mxu1 %v7274_v42  ;;  %1690 = vmatpush.msra.mxu2 %v7278_v53  ;;  %v1071_v12 = vpop.f32.mrf.mxu1  ;;  %v1293_v42 = vld [vmem:[#allocation4 + $0x458] sm:$0xff] }
 0x1cc   : > { %1634 = vmatpush.msrb.mxu3 %v1292_v55  ;;  %v1409_v53 = vld [vmem:[#allocation4 + $0x7f8] sm:$0xff] }
 0x1cd   : > { %1674 = vmatpush.msra.mxu1 %v6443_v56  ;;  %1691 = vmatpush.msra.mxu2 %v7280_v0  ;;  %v809_v56 = vperm.slane %v6473_v41, 3  ;;  %v1284_v41 = vld [vmem:[#allocation4 + $0x410] sm:$0xff]  ;;  %v1810_v0 = vld [vmem:[#allocation4 + $0x1c0] sm:$0xff]  ;;  %v1389_v55 = vld [vmem:[#allocation4 + $0x758] sm:$0xff] }
 0x1ce   : > { %1635 = vmatpush.msrb.mxu3 %v1288_v9  ;;  %v1790_v9 = vld [vmem:[#allocation4 + $0x120] sm:$0xff] }
 0x1cf   : > { %1675 = vmatpush.msra.mxu1 %v7277_v49  ;;  %1692 = vmatpush.msra.mxu2 %v7281_v54  ;;  %v1072_v61 = vadd.f32 %v1071_v12, %v809_v56  ;;  %v1348_v49 = vld [vmem:[#allocation4 + $0x610] sm:$0xff]  ;;  %v1806_v12 = vld [vmem:[#allocation4 + $0x1a0] sm:$0xff] }
 0x1d0   : > { %1636 = vmatpush.msrb.mxu3 %v1284_v41  ;;  %v1878_v56 = vld [vmem:[#allocation4 + $0x3e0] sm:$0xff] }
 0x1d1   : > { %1676 = vmatpush.msra.mxu1 %v7279_v50  ;;  %1693 = vmatpush.msra.mxu2 %v7282_v58  ;;  %v1814_v50 = vld [vmem:[#allocation4 + $0x1e0] sm:$0xff]  ;;  %v1393_v58 = vld [vmem:[#allocation4 + $0x778] sm:$0xff] }
 0x1d2   : > { %1677 = vmatmul.f32.vlgmr.msra.gmra.mxu1 %v6486_v1  ;;  %v1091_v62 = vpop.f32.mrf.mxu2  ;;  %1637 = vmatmul.f32.vlgmr.msrb.gmra.mxu3 %v6550_v34  ;;  %v1874_v54 = vld [vmem:[#allocation4 + $0x3c0] sm:$0xff] }
 0x1d3   : > { %v1092_v5 = vadd.f32 %v1091_v62, %v1072_v61  ;;  %1694 = vmatpush.msra.mxu2 %v7283_v2  ;;  %1701 = vmatpush.msra.mxu3 %v1345_v15  ;;  %v1802_v61 = vld [vmem:[#allocation4 + $0x180] sm:$0xff]  ;;  %v1385_v2 = vld [vmem:[#allocation4 + $0x738] sm:$0xff] }
 0x1d4   : > { %2021 = vmatpush.msrb.mxu1 %v1814_v50  ;;  %v1794_v62 = vld [vmem:[#allocation4 + $0x140] sm:$0xff]  ;;  %v1369_v15 = vld [vmem:[#allocation4 + $0x6b8] sm:$0xff] }
 0x1d5   : > { %v1111_v37 = vpop.f32.mrf.mxu3  ;;  %1695 = vmatpush.msra.mxu2 %v7284_v14  ;;  %1702 = vmatpush.msra.mxu3 %v1341_v30  ;;  %v1373_v14 = vld [vmem:[#allocation4 + $0x6d8] sm:$0xff]  ;;  %v1786_v41 = vld [vmem:[#allocation4 + $0x100] sm:$0xff] }
 0x1d6   : > { %v1112_v6 = vadd.f32 %v1111_v37, %v1092_v5  ;;  %2022 = vmatpush.msrb.mxu1 %v1810_v0  ;;  %v1870_v5 = vld [vmem:[#allocation4 + $0x3a0] sm:$0xff]  ;;  %v1381_v37 = vld [vmem:[#allocation4 + $0x718] sm:$0xff]  ;;  %v1787_v0 = vld [vmem:[#allocation4 + $0x108] sm:$0xff] }
 0x1d7   : > { %1696 = vmatpush.msra.mxu2 %v7285_v18  ;;  %1703 = vmatpush.msra.mxu3 %v1337_v31  ;;  %v1782_v18 = vld [vmem:[#allocation4 + $0xe0] sm:$0xff]  ;;  %v1365_v30 = vld [vmem:[#allocation4 + $0x698] sm:$0xff] }
 0x1d8   : > { %v1131_v11 = vpop.f32.mrf.mxu0  ;;  %1697 = vmatmul.f32.vlgmr.msra.gmra.mxu2 %v6511_v48  ;;  %v1142_v48 = vsel %vm1141_vm6, %v6486_v1, %v1138_v19  ;;  %v1388_v1 = vld [vmem:[#allocation4 + $0x750] sm:$0xff]  ;;  %2023 = vmatpush.msrb.mxu1 %v1806_v12  ;;  %v1778_v19 = vld [vmem:[#allocation4 + $0xc0] sm:$0xff] }
 0x1d9   : > { %v6585_v26 = vadd.f32 %v1131_v11, %v1112_v6  ;;  %1704 = vmatpush.msra.mxu3 %v1333_v52  ;;  %2041 = vmatpush.msrb.mxu2 %v1878_v56  ;;  %v1377_v6 = vld [vmem:[#allocation4 + $0x6f8] sm:$0xff]  ;;  %v1866_v11 = vld [vmem:[#allocation4 + $0x380] sm:$0xff]  ;;  %v1783_v56 = vld [vmem:[#allocation4 + $0xe8] sm:$0xff] }
 0x1da   : > { %2024 = vmatpush.msrb.mxu1 %v1802_v61  ;;  %v1770_v31 = vld [vmem:[#allocation4 + $0x80] sm:$0xff]  ;;  %v1779_v61 = vld [vmem:[#allocation4 + $0xc8] sm:$0xff] }
 0x1db   : > { %v1140_v28 = vrot.slane %v6585_v26, 5  ;;  %1497 = vmatmul.f32.vlgmr.msra.gmra.mxu0 %v6585_v26  ;;  %1705 = vmatpush.msra.mxu3 %v1329_v21  ;;  %v1766_v52 = vld [vmem:[#allocation4 + $0x60] sm:$0xff]  ;;  %v1353_v21 = vld [vmem:[#allocation4 + $0x638] sm:$0xff] }
 0x1dc   : > { %1641 = vmatpush.msra.mxu0 %v1408_v23  ;;  %2042 = vmatpush.msrb.mxu2 %v1874_v54  ;;  %v1858_v23 = vld [vmem:[#allocation4 + $0x340] sm:$0xff]  ;;  %v1863_v54 = vld [vmem:[#allocation4 + $0x368] sm:$0xff] }
 0x1dd   : > { %v1144_v38 = vsel %vm1143_vm7, %v1139_v27, %v1140_v28  ;;  %1706 = vmatpush.msra.mxu3 %v1325_v13  ;;  %v1774_v27 = vld [vmem:[#allocation4 + $0xa0] sm:$0xff] }
 0x1de   : > { %v1146_v35 = vsel %vm1145_vm8, %v1142_v48, %v1144_v38  ;;  %1642 = vmatpush.msra.mxu0 %v1404_v3  ;;  %2043 = vmatpush.msrb.mxu2 %v1870_v5  ;;  %v1854_v28 = vld [vmem:[#allocation4 + $0x320] sm:$0xff]  ;;  %v1361_v3 = vld [vmem:[#allocation4 + $0x678] sm:$0xff] }
 0x1df   : > { %1152 = vst.msk [vmem:[#allocation3] ss:$8 sm:$0xf] %vm6592_vm9, %v1146_v35  ;;  %1707 = vmatpush.msra.mxu3 %v1321_v60  ;;  %v1850_v48 = vld [vmem:[#allocation4 + $0x300] sm:$0xff] }
 0x1e0   : > { %1643 = vmatpush.msra.mxu0 %v1400_v44  ;;  %2044 = vmatpush.msrb.mxu2 %v1866_v11  ;;  %v1942_v38 = vld [vmem:[#allocation4 + $0x5e0] sm:$0xff]  ;;  %v1357_v44 = vld [vmem:[#allocation4 + $0x658] sm:$0xff]  ;;  %v1763_v11 = vld [vmem:[#allocation4 + $0x48] sm:$0xff] }
 0x1e1   : > { %1708 = vmatpush.msra.mxu3 %v1317_v7  ;;  %v1938_v35 = vld [vmem:[#allocation4 + $0x5c0] sm:$0xff] }
 0x1e2   : > { %1644 = vmatpush.msra.mxu0 %v1396_v29  ;;  %2045 = vmatpush.msrb.mxu2 %v1862_v22  ;;  %v1846_v29 = vld [vmem:[#allocation4 + $0x2e0] sm:$0xff]  ;;  %v1759_v22 = vld [vmem:[#allocation4 + $0x28] sm:$0xff] }
 0x1e3   : > { %1577 = vmatmul.f32.vlgmr.msrb.gmra.mxu0 %v6585_v26  ;;  %1709 = vmatpush.msra.mxu3 %v1313_v17  ;;  %v1842_v13 = vld [vmem:[#allocation4 + $0x2c0] sm:$0xff]  ;;  %v1815_v17 = vld [vmem:[#allocation4 + $0x1e8] sm:$0xff] }
 0x1e4   : > { %1645 = vmatpush.msra.mxu0 %v1392_v39  ;;  %2046 = vmatpush.msrb.mxu2 %v1858_v23  ;;  %v1762_v39 = vld [vmem:[#allocation4 + $0x40] sm:$0xff] }
 0x1e5   : > { %1710 = vmatpush.msra.mxu3 %v1309_v51  ;;  %v1758_v60 = vld [vmem:[#allocation4 + $0x20] sm:$0xff]  ;;  %v1811_v51 = vld [vmem:[#allocation4 + $0x1c8] sm:$0xff] }
 0x1e6   : > { %1646 = vmatpush.msra.mxu0 %v1388_v1  ;;  %2047 = vmatpush.msrb.mxu2 %v1854_v28  ;;  %v1349_v1 = vld [vmem:[#allocation4 + $0x618] sm:$0xff]  ;;  %v1754_v7 = vld [vmem:[#allocation4] sm:$0xff] }
 0x1e7   : > { %1711 = vmatpush.msra.mxu3 %v1305_v63  ;;  %v1826_v63 = vld [vmem:[#allocation4 + $0x240] sm:$0xff] }
 0x1e8   : > { %1647 = vmatpush.msra.mxu0 %v1384_v36  ;;  %2048 = vmatpush.msrb.mxu2 %v1850_v48  ;;  %v1838_v36 = vld [vmem:[#allocation4 + $0x2a0] sm:$0xff] }
 0x1e9   : > { %1712 = vmatpush.msra.mxu3 %v1301_v47  ;;  %v1930_v47 = vld [vmem:[#allocation4 + $0x580] sm:$0xff] }
 0x1ea   : > { %1648 = vmatpush.msra.mxu0 %v1380_v43  ;;  %2049 = vmatpush.msrb.mxu2 %v1846_v29  ;;  %v1834_v43 = vld [vmem:[#allocation4 + $0x280] sm:$0xff]  ;;  %v1823_v29 = vld [vmem:[#allocation4 + $0x228] sm:$0xff] }
 0x1eb   : > { %1713 = vmatpush.msra.mxu3 %v1297_v8  ;;  %v1822_v8 = vld [vmem:[#allocation4 + $0x220] sm:$0xff] }
 0x1ec   : > { %1649 = vmatpush.msra.mxu0 %v1376_v46  ;;  %2050 = vmatpush.msrb.mxu2 %v1842_v13  ;;  %v1830_v46 = vld [vmem:[#allocation4 + $0x260] sm:$0xff]  ;;  %v1819_v13 = vld [vmem:[#allocation4 + $0x208] sm:$0xff] }
 0x1ed   : > { %1714 = vmatpush.msra.mxu3 %v1293_v42  ;;  %v1818_v42 = vld [vmem:[#allocation4 + $0x200] sm:$0xff] }
 0x1ee   : > { %1650 = vmatpush.msra.mxu0 %v1372_v25  ;;  %2051 = vmatpush.msrb.mxu2 %v1838_v36  ;;  %v1934_v25 = vld [vmem:[#allocation4 + $0x5a0] sm:$0xff] }
 0x1ef   : > { %1715 = vmatpush.msra.mxu3 %v1289_v20  ;;  %v1879_v20 = vld [vmem:[#allocation4 + $0x3e8] sm:$0xff]  ;;  %v1914_v50 = vld [vmem:[#allocation4 + $0x500] sm:$0xff] }
 0x1f0   : > { %1651 = vmatpush.msra.mxu0 %v1368_v33  ;;  %2052 = vmatpush.msrb.mxu2 %v1834_v43  ;;  %v1807_v33 = vld [vmem:[#allocation4 + $0x1a8] sm:$0xff]  ;;  %v1910_v12 = vld [vmem:[#allocation4 + $0x4e0] sm:$0xff] }
 0x1f1   : > { %1716 = vmatpush.msra.mxu3 %v1285_v45  ;;  %v1875_v45 = vld [vmem:[#allocation4 + $0x3c8] sm:$0xff]  ;;  %v1898_v5 = vld [vmem:[#allocation4 + $0x480] sm:$0xff] }
 0x1f2   : > { %1652 = vmatpush.msra.mxu0 %v1364_v4  ;;  %1717 = vmatmul.f32.vlgmr.msra.gmra.mxu3 %v6550_v34  ;;  %v1798_v34 = vld [vmem:[#allocation4 + $0x160] sm:$0xff] }
 0x1f3   : > { %2025 = vmatpush.msrb.mxu1 %v1798_v34  ;;  %2061 = vmatpush.msrb.mxu3 %v1942_v38  ;;  %v1926_v4 = vld [vmem:[#allocation4 + $0x560] sm:$0xff]  ;;  %v1939_v38 = vld [vmem:[#allocation4 + $0x5c8] sm:$0xff] }
 0x1f4   : > { %1653 = vmatpush.msra.mxu0 %v1360_v10  ;;  %2053 = vmatpush.msrb.mxu2 %v1830_v46  ;;  %v1922_v10 = vld [vmem:[#allocation4 + $0x540] sm:$0xff] }
 0x1f5   : > { %2026 = vmatpush.msrb.mxu1 %v1794_v62  ;;  %2062 = vmatpush.msrb.mxu3 %v1938_v35  ;;  %v1902_v34 = vld [vmem:[#allocation4 + $0x4a0] sm:$0xff]  ;;  %v1855_v62 = vld [vmem:[#allocation4 + $0x328] sm:$0xff] }
 0x1f6   : > { %1654 = vmatpush.msra.mxu0 %v1356_v24  ;;  %2054 = vmatpush.msrb.mxu2 %v1826_v63  ;;  %v1799_v24 = vld [vmem:[#allocation4 + $0x168] sm:$0xff]  ;;  %v1882_v23 = vld [vmem:[#allocation4 + $0x400] sm:$0xff] }
 0x1f7   : > { %2027 = vmatpush.msrb.mxu1 %v1790_v9  ;;  %2063 = vmatpush.msrb.mxu3 %v1934_v25  ;;  %v1851_v9 = vld [vmem:[#allocation4 + $0x308] sm:$0xff]  ;;  %v2006_v28 = vld [vmem:[#allocation4 + $0x7e0] sm:$0xff] }
 0x1f8   : > { %1655 = vmatpush.msra.mxu0 %v1352_v32  ;;  %2055 = vmatpush.msrb.mxu2 %v1822_v8  ;;  %v1795_v32 = vld [vmem:[#allocation4 + $0x148] sm:$0xff]  ;;  %v2002_v48 = vld [vmem:[#allocation4 + $0x7c0] sm:$0xff] }
 0x1f9   : > { %2028 = vmatpush.msrb.mxu1 %v1786_v41  ;;  %2064 = vmatpush.msrb.mxu3 %v1930_v47  ;;  %v1890_v41 = vld [vmem:[#allocation4 + $0x440] sm:$0xff]  ;;  %v1911_v63 = vld [vmem:[#allocation4 + $0x4e8] sm:$0xff] }
 0x1fa   : > { %1656 = vmatpush.msra.mxu0 %v1348_v49  ;;  %2056 = vmatpush.msrb.mxu2 %v1818_v42  ;;  %v1918_v49 = vld [vmem:[#allocation4 + $0x520] sm:$0xff]  ;;  %v1907_v47 = vld [vmem:[#allocation4 + $0x4c8] sm:$0xff] }
 0x1fb   : > { %1657 = vmatmul.f32.vlgmr.msra.gmra.mxu0 %v6585_v26  ;;  %2029 = vmatpush.msrb.mxu1 %v1782_v18  ;;  %v1843_v18 = vld [vmem:[#allocation4 + $0x2c8] sm:$0xff]  ;;  %v1998_v35 = vld [vmem:[#allocation4 + $0x7a0] sm:$0xff] }
 0x1fc   : > { %1721 = vmatpush.msrb.mxu0 %v1409_v53  ;;  %2065 = vmatpush.msrb.mxu3 %v1926_v4  ;;  %v1791_v53 = vld [vmem:[#allocation4 + $0x128] sm:$0xff]  ;;  %v1986_v36 = vld [vmem:[#allocation4 + $0x740] sm:$0xff] }
 0x1fd   : > { %2030 = vmatpush.msrb.mxu1 %v1778_v19  ;;  %2121 = vmatpush.msra.mxu2 %v1879_v20  ;;  %v1839_v19 = vld [vmem:[#allocation4 + $0x2a8] sm:$0xff]  ;;  %v1982_v43 = vld [vmem:[#allocation4 + $0x720] sm:$0xff] }
 0x1fe   : > { %1722 = vmatpush.msrb.mxu0 %v1405_v40  ;;  %2066 = vmatpush.msrb.mxu3 %v1922_v10  ;;  %v1871_v40 = vld [vmem:[#allocation4 + $0x3a8] sm:$0xff]  ;;  %v1978_v46 = vld [vmem:[#allocation4 + $0x700] sm:$0xff] }
 0x1ff   : > { %2031 = vmatpush.msrb.mxu1 %v1774_v27  ;;  %2122 = vmatpush.msra.mxu2 %v1875_v45  ;;  %v1835_v27 = vld [vmem:[#allocation4 + $0x288] sm:$0xff]  ;;  %v1974_v25 = vld [vmem:[#allocation4 + $0x6e0] sm:$0xff]  ;;  %v1438_v8 = vpop.f32.mrf.mxu1 }
 0x200   : > { %1723 = vmatpush.msrb.mxu0 %v1401_v57  ;;  %2067 = vmatpush.msrb.mxu3 %v1918_v49  ;;  %v1867_v57 = vld [vmem:[#allocation4 + $0x388] sm:$0xff]  ;;  %v1958_v49 = vld [vmem:[#allocation4 + $0x660] sm:$0xff] }
 0x201   : > { %2032 = vmatpush.msrb.mxu1 %v1770_v31  ;;  %2123 = vmatpush.msra.mxu2 %v1871_v40  ;;  %v1831_v31 = vld [vmem:[#allocation4 + $0x268] sm:$0xff] }
 0x202   : > { %1724 = vmatpush.msrb.mxu0 %v1397_v59  ;;  %2068 = vmatpush.msrb.mxu3 %v1914_v50  ;;  %v1906_v59 = vld [vmem:[#allocation4 + $0x4c0] sm:$0xff]  ;;  %v1903_v10 = vld [vmem:[#allocation4 + $0x4a8] sm:$0xff] }
 0x203   : > { %2033 = vmatpush.msrb.mxu1 %v1766_v52  ;;  %2124 = vmatpush.msra.mxu2 %v1867_v57  ;;  %v1935_v52 = vld [vmem:[#allocation4 + $0x5a8] sm:$0xff]  ;;  %v1954_v50 = vld [vmem:[#allocation4 + $0x640] sm:$0xff] }
 0x204   : > { %1725 = vmatpush.msrb.mxu0 %v1393_v58  ;;  %2069 = vmatpush.msrb.mxu3 %v1910_v12  ;;  %v1859_v58 = vld [vmem:[#allocation4 + $0x348] sm:$0xff] }
 0x205   : > { %2034 = vmatpush.msrb.mxu1 %v1762_v39  ;;  %2125 = vmatpush.msra.mxu2 %v1863_v54  ;;  %v1931_v39 = vld [vmem:[#allocation4 + $0x588] sm:$0xff] }
 0x206   : > { %1726 = vmatpush.msrb.mxu0 %v1389_v55  ;;  %v1775_v55 = vld [vmem:[#allocation4 + $0xa8] sm:$0xff]  ;;  %2070 = vmatpush.msrb.mxu3 %v1906_v59  ;;  %v1950_v59 = vld [vmem:[#allocation4 + $0x620] sm:$0xff] }
 0x207   : > { %2035 = vmatpush.msrb.mxu1 %v1758_v60  ;;  %2126 = vmatpush.msra.mxu2 %v1859_v58  ;;  %v1927_v60 = vld [vmem:[#allocation4 + $0x568] sm:$0xff] }
 0x208   : > { %1727 = vmatpush.msrb.mxu0 %v1385_v2  ;;  %v1771_v2 = vld [vmem:[#allocation4 + $0x88] sm:$0xff]  ;;  %2071 = vmatpush.msrb.mxu3 %v1902_v34 }
 0x209   : > { %2036 = vmatpush.msrb.mxu1 %v1754_v7  ;;  %2127 = vmatpush.msra.mxu2 %v1855_v62  ;;  %v1923_v7 = vld [vmem:[#allocation4 + $0x548] sm:$0xff] }
 0x20a   : > { %1728 = vmatpush.msrb.mxu0 %v1381_v37  ;;  %v1894_v37 = vld [vmem:[#allocation4 + $0x460] sm:$0xff]  ;;  %2072 = vmatpush.msrb.mxu3 %v1898_v5  ;;  %v1895_v40 = vld [vmem:[#allocation4 + $0x468] sm:$0xff] }
 0x20b   : > { %2101 = vmatpush.msra.mxu1 %v1815_v17  ;;  %2128 = vmatpush.msra.mxu2 %v1851_v9  ;;  %v1919_v17 = vld [vmem:[#allocation4 + $0x528] sm:$0xff]  ;;  %v1946_v5 = vld [vmem:[#allocation4 + $0x600] sm:$0xff] }
 0x20c   : > { %1729 = vmatpush.msrb.mxu0 %v1377_v6  ;;  %v1767_v6 = vld [vmem:[#allocation4 + $0x68] sm:$0xff]  ;;  %2073 = vmatpush.msrb.mxu3 %v1894_v37  ;;  %v1812_v37 = vld [vmem:[#allocation4 + $0x1d0] sm:$0xff] }
 0x20d   : > { %2102 = vmatpush.msra.mxu1 %v1811_v51  ;;  %v1915_v51 = vld [vmem:[#allocation4 + $0x508] sm:$0xff] }
 0x20e   : > { %1730 = vmatpush.msrb.mxu0 %v1373_v14  ;;  %v1847_v14 = vld [vmem:[#allocation4 + $0x2e8] sm:$0xff]  ;;  %2074 = vmatpush.msrb.mxu3 %v1890_v41 }
 0x20f   : > { %2103 = vmatpush.msra.mxu1 %v1807_v33  ;;  %2129 = vmatpush.msra.mxu2 %v1847_v14  ;;  %v1970_v33 = vld [vmem:[#allocation4 + $0x6c0] sm:$0xff]  ;;  %v1891_v57 = vld [vmem:[#allocation4 + $0x448] sm:$0xff] }
 0x210   : > { %1731 = vmatpush.msrb.mxu0 %v1369_v15  ;;  %v1886_v15 = vld [vmem:[#allocation4 + $0x420] sm:$0xff] }
 0x211   : > { %2130 = vmatpush.msra.mxu2 %v1843_v18  ;;  %2075 = vmatpush.msrb.mxu3 %v1886_v15  ;;  %v6606_v4 = vld [vmem:[#allocation3 + $0x1] ss:$8 sm:$0xf] }
 0x212   : > { %1732 = vmatpush.msrb.mxu0 %v1365_v30  ;;  %v1755_v30 = vld [vmem:[#allocation4 + $0x8] sm:$0xff]  ;;  %v1413_v20 = vperm.slane %v6606_v4, 0  ;;  %v1414_v58 = vperm.slane %v6606_v4, 1 }
 0x213   : > { %2131 = vmatpush.msra.mxu2 %v1839_v19  ;;  %2076 = vmatpush.msrb.mxu3 %v1882_v23  ;;  %v2003_v18 = vld [vmem:[#allocation4 + $0x7c8] sm:$0xff] }
 0x214   : > { %1733 = vmatpush.msrb.mxu0 %v1361_v3  ;;  %v1943_v3 = vld [vmem:[#allocation4 + $0x5e8] sm:$0xff] }
 0x215   : > { %2132 = vmatpush.msra.mxu2 %v1835_v27  ;;  %2141 = vmatpush.msra.mxu3 %v1943_v3  ;;  %v1999_v19 = vld [vmem:[#allocation4 + $0x7a8] sm:$0xff]  ;;  %v1800_v27 = vld [vmem:[#allocation4 + $0x170] sm:$0xff] }
 0x216   : > { %1734 = vmatpush.msrb.mxu0 %v1357_v44  ;;  %v1827_v44 = vld [vmem:[#allocation4 + $0x248] sm:$0xff] }
 0x217   : > { %2133 = vmatpush.msra.mxu2 %v1831_v31  ;;  %2142 = vmatpush.msra.mxu3 %v1939_v38  ;;  %v1995_v3 = vld [vmem:[#allocation4 + $0x788] sm:$0xff]  ;;  %v1796_v31 = vld [vmem:[#allocation4 + $0x150] sm:$0xff] }
 0x218   : > { %1735 = vmatpush.msrb.mxu0 %v1353_v21  ;;  %v1994_v21 = vld [vmem:[#allocation4 + $0x780] sm:$0xff]  ;;  %v1991_v38 = vld [vmem:[#allocation4 + $0x768] sm:$0xff] }
 0x219   : > { %2134 = vmatpush.msra.mxu2 %v1827_v44  ;;  %2143 = vmatpush.msra.mxu3 %v1935_v52  ;;  %v1792_v44 = vld [vmem:[#allocation4 + $0x130] sm:$0xff]  ;;  %v1987_v52 = vld [vmem:[#allocation4 + $0x748] sm:$0xff] }
 0x21a   : > { %1736 = vmatpush.msrb.mxu0 %v1349_v1  ;;  %v1990_v1 = vld [vmem:[#allocation4 + $0x760] sm:$0xff] }
 0x21b   : > { %1737 = vmatmul.f32.vlgmr.msrb.gmra.mxu0 %v6585_v26  ;;  %v1803_v26 = vld [vmem:[#allocation4 + $0x188] sm:$0xff]  ;;  %2135 = vmatpush.msra.mxu2 %v1823_v29  ;;  %v1458_v42 = vpop.f32.mrf.mxu2  ;;  %v1788_v29 = vld [vmem:[#allocation4 + $0x110] sm:$0xff] }
 0x21c   : > { %2104 = vmatpush.msra.mxu1 %v1803_v26  ;;  %2081 = vmatpush.msra.mxu0 %v2006_v28  ;;  %v1966_v26 = vld [vmem:[#allocation4 + $0x6a0] sm:$0xff]  ;;  %v1880_v28 = vld [vmem:[#allocation4 + $0x3f0] sm:$0xff] }
 0x21d   : > { %2144 = vmatpush.msra.mxu3 %v1931_v39  ;;  %2136 = vmatpush.msra.mxu2 %v1819_v13  ;;  %v1983_v39 = vld [vmem:[#allocation4 + $0x728] sm:$0xff]  ;;  %v1784_v13 = vld [vmem:[#allocation4 + $0xf0] sm:$0xff] }
 0x21e   : > { %2105 = vmatpush.msra.mxu1 %v1799_v24  ;;  %2082 = vmatpush.msra.mxu0 %v2002_v48  ;;  %v1962_v24 = vld [vmem:[#allocation4 + $0x680] sm:$0xff]  ;;  %v1876_v48 = vld [vmem:[#allocation4 + $0x3d0] sm:$0xff] }
 0x21f   : > { %2145 = vmatpush.msra.mxu3 %v1927_v60  ;;  %v1979_v60 = vld [vmem:[#allocation4 + $0x708] sm:$0xff] }
 0x220   : > { %2106 = vmatpush.msra.mxu1 %v1795_v32  ;;  %2083 = vmatpush.msra.mxu0 %v1998_v35  ;;  %v1899_v32 = vld [vmem:[#allocation4 + $0x488] sm:$0xff]  ;;  %v1872_v35 = vld [vmem:[#allocation4 + $0x3b0] sm:$0xff] }
 0x221   : > { %2146 = vmatpush.msra.mxu3 %v1923_v7  ;;  %v1860_v7 = vld [vmem:[#allocation4 + $0x350] sm:$0xff] }
 0x222   : > { %2107 = vmatpush.msra.mxu1 %v1791_v53  ;;  %2084 = vmatpush.msra.mxu0 %v1994_v21  ;;  %v1439_v53 = vadd.f32 %v1438_v8, %v1413_v20  ;;  %v1868_v21 = vld [vmem:[#allocation4 + $0x390] sm:$0xff]  ;;  %v1415_v8 = vperm.slane %v6606_v4, 2 }
 0x223   : > { %2147 = vmatpush.msra.mxu3 %v1919_v17  ;;  %v1538_v62 = vpop.f32.mrf.mxu2  ;;  %v1776_v17 = vld [vmem:[#allocation4 + $0xb0] sm:$0xff] }
 0x224   : > { %2108 = vmatpush.msra.mxu1 %v1787_v0  ;;  %2085 = vmatpush.msra.mxu0 %v1990_v1  ;;  %v1459_v0 = vadd.f32 %v1458_v42, %v1439_v53  ;;  %v1864_v1 = vld [vmem:[#allocation4 + $0x370] sm:$0xff]  ;;  %v1959_v53 = vld [vmem:[#allocation4 + $0x668] sm:$0xff] }
 0x225   : > { %2148 = vmatpush.msra.mxu3 %v1915_v51  ;;  %v1971_v51 = vld [vmem:[#allocation4 + $0x6c8] sm:$0xff] }
 0x226   : > { %2109 = vmatpush.msra.mxu1 %v1783_v56  ;;  %2086 = vmatpush.msra.mxu0 %v1986_v36  ;;  %v1518_v56 = vpop.f32.mrf.mxu1  ;;  %v1780_v36 = vld [vmem:[#allocation4 + $0xd0] sm:$0xff] }
 0x227   : > { %2149 = vmatpush.msra.mxu3 %v1911_v63  ;;  %v1519_v9 = vadd.f32 %v1518_v56, %v1414_v58  ;;  %v1852_v63 = vld [vmem:[#allocation4 + $0x310] sm:$0xff] }
 0x228   : > { %2110 = vmatpush.msra.mxu1 %v1779_v61  ;;  %2087 = vmatpush.msra.mxu0 %v1982_v43  ;;  %v1887_v61 = vld [vmem:[#allocation4 + $0x428] sm:$0xff]  ;;  %v1756_v56 = vld [vmem:[#allocation4 + $0x10] sm:$0xff] }
 0x229   : > { %2150 = vmatpush.msra.mxu3 %v1907_v47  ;;  %v1539_v41 = vadd.f32 %v1538_v62, %v1519_v9  ;;  %v1975_v43 = vld [vmem:[#allocation4 + $0x6e8] sm:$0xff]  ;;  %v1944_v58 = vld [vmem:[#allocation4 + $0x5f0] sm:$0xff]  ;;  %v1813_v9 = vld [vmem:[#allocation4 + $0x1d8] sm:$0xff] }
 0x22a   : > { %2111 = vmatpush.msra.mxu1 %v1775_v55  ;;  %2088 = vmatpush.msra.mxu0 %v1978_v46  ;;  %v1816_v55 = vld [vmem:[#allocation4 + $0x1f0] sm:$0xff]  ;;  %v1967_v47 = vld [vmem:[#allocation4 + $0x6a8] sm:$0xff] }
 0x22b   : > { %2151 = vmatpush.msra.mxu3 %v1903_v10  ;;  %v1856_v46 = vld [vmem:[#allocation4 + $0x330] sm:$0xff] }
 0x22c   : > { %2112 = vmatpush.msra.mxu1 %v1771_v2  ;;  %2089 = vmatpush.msra.mxu0 %v1974_v25  ;;  %v1883_v2 = vld [vmem:[#allocation4 + $0x408] sm:$0xff]  ;;  %v1772_v25 = vld [vmem:[#allocation4 + $0x90] sm:$0xff] }
 0x22d   : > { %v1478_v45 = vpop.f32.mrf.mxu3  ;;  %2152 = vmatpush.msra.mxu3 %v1899_v32  ;;  %v1848_v10 = vld [vmem:[#allocation4 + $0x2f0] sm:$0xff] }
 0x22e   : > { %2113 = vmatpush.msra.mxu1 %v1767_v6  ;;  %2090 = vmatpush.msra.mxu0 %v1970_v33  ;;  %v1479_v12 = vadd.f32 %v1478_v45, %v1459_v0  ;;  %v2007_v6 = vld [vmem:[#allocation4 + $0x7e8] sm:$0xff]  ;;  %v1764_v32 = vld [vmem:[#allocation4 + $0x50] sm:$0xff] }
 0x22f   : > { %2153 = vmatpush.msra.mxu3 %v1895_v40  ;;  %v1598_v33 = vpop.f32.mrf.mxu1  ;;  %v1844_v45 = vld [vmem:[#allocation4 + $0x2d0] sm:$0xff] }
 0x230   : > { %2114 = vmatpush.msra.mxu1 %v1763_v11  ;;  %2091 = vmatpush.msra.mxu0 %v1966_v26  ;;  %v1808_v11 = vld [vmem:[#allocation4 + $0x1b0] sm:$0xff]  ;;  %v1599_v20 = vadd.f32 %v1598_v33, %v1415_v8  ;;  %v1416_v33 = vperm.slane %v6606_v4, 3  ;;  %v1761_v4 = vld [vmem:[#allocation4 + $0x38] sm:$0xff] }
 0x231   : > { %2154 = vmatpush.msra.mxu3 %v1891_v57  ;;  %v1768_v26 = vld [vmem:[#allocation4 + $0x70] sm:$0xff]  ;;  %v1955_v57 = vld [vmem:[#allocation4 + $0x648] sm:$0xff] }
 0x232   : > { %2115 = vmatpush.msra.mxu1 %v1759_v22  ;;  %2092 = vmatpush.msra.mxu0 %v1962_v24  ;;  %v1804_v22 = vld [vmem:[#allocation4 + $0x190] sm:$0xff]  ;;  %v1963_v24 = vld [vmem:[#allocation4 + $0x688] sm:$0xff] }
 0x233   : > { %2155 = vmatpush.msra.mxu3 %v1887_v61  ;;  %v1840_v0 = vld [vmem:[#allocation4 + $0x2b0] sm:$0xff] }
 0x234   : > { %2116 = vmatpush.msra.mxu1 %v1755_v30  ;;  %2093 = vmatpush.msra.mxu0 %v1958_v49  ;;  %v1832_v62 = vld [vmem:[#allocation4 + $0x270] sm:$0xff] }
 0x235   : > { %2156 = vmatpush.msra.mxu3 %v1883_v2  ;;  %v1940_v2 = vld [vmem:[#allocation4 + $0x5d0] sm:$0xff] }
 0x236   : > { %2094 = vmatpush.msra.mxu0 %v1954_v50  ;;  %v1760_v50 = vld [vmem:[#allocation4 + $0x30] sm:$0xff] }
 0x238   : > { %2095 = vmatpush.msra.mxu0 %v1950_v59 }
 0x239   : > { %v1558_v14 = vpop.f32.mrf.mxu3 }
 0x23a   : > { %2096 = vmatpush.msra.mxu0 %v1946_v5  ;;  %v1559_v15 = vadd.f32 %v1558_v14, %v1539_v41  ;;  %v1951_v5 = vld [vmem:[#allocation4 + $0x628] sm:$0xff]  ;;  %v1936_v14 = vld [vmem:[#allocation4 + $0x5b0] sm:$0xff]  ;;  %v1809_v41 = vld [vmem:[#allocation4 + $0x1b8] sm:$0xff] }
 0x23b   : > { %v1618_v42 = vpop.f32.mrf.mxu2 }
 0x23c   : > { %2161 = vmatpush.msrb.mxu0 %v2007_v6  ;;  %v1619_v40 = vadd.f32 %v1618_v42, %v1599_v20  ;;  %v1947_v6 = vld [vmem:[#allocation4 + $0x608] sm:$0xff] }
 0x23e   : > { %2162 = vmatpush.msrb.mxu0 %v2003_v18  ;;  %v1932_v18 = vld [vmem:[#allocation4 + $0x590] sm:$0xff] }
 0x240   : > { %2163 = vmatpush.msrb.mxu0 %v1999_v19  ;;  %v1928_v19 = vld [vmem:[#allocation4 + $0x570] sm:$0xff] }
 0x242   : > { %2164 = vmatpush.msrb.mxu0 %v1995_v3  ;;  %v1797_v3 = vld [vmem:[#allocation4 + $0x158] sm:$0xff] }
 0x244   : > { %2165 = vmatpush.msrb.mxu0 %v1991_v38  ;;  %v1793_v38 = vld [vmem:[#allocation4 + $0x138] sm:$0xff] }
 0x246   : > { %2166 = vmatpush.msrb.mxu0 %v1987_v52  ;;  %v1789_v52 = vld [vmem:[#allocation4 + $0x118] sm:$0xff] }
 0x248   : > { %2167 = vmatpush.msrb.mxu0 %v1983_v39  ;;  %v1785_v39 = vld [vmem:[#allocation4 + $0xf8] sm:$0xff] }
 0x24a   : > { %2168 = vmatpush.msrb.mxu0 %v1979_v60  ;;  %v1781_v60 = vld [vmem:[#allocation4 + $0xd8] sm:$0xff] }
 0x24c   : > { %2169 = vmatpush.msrb.mxu0 %v1975_v43  ;;  %v1777_v43 = vld [vmem:[#allocation4 + $0xb8] sm:$0xff] }
 0x24e   : > { %2170 = vmatpush.msrb.mxu0 %v1971_v51 }
 0x24f   : > { %v1678_v51 = vpop.f32.mrf.mxu1 }
 0x250   : > { %2171 = vmatpush.msrb.mxu0 %v1967_v47  ;;  %v1896_v47 = vld [vmem:[#allocation4 + $0x470] sm:$0xff]  ;;  %v1679_v42 = vadd.f32 %v1678_v51, %v1416_v33  ;;  %v1889_v51 = vld [vmem:[#allocation4 + $0x438] sm:$0xff] }
 0x251   : > { %v2009_v33 = vld [vmem:[#allocation4 + $0x7f8] sm:$0xff] }
 0x252   : > { %2172 = vmatpush.msrb.mxu0 %v1963_v24  ;;  %v1892_v24 = vld [vmem:[#allocation4 + $0x450] sm:$0xff] }
 0x254   : > { %2173 = vmatpush.msrb.mxu0 %v1959_v53  ;;  %v1888_v53 = vld [vmem:[#allocation4 + $0x430] sm:$0xff] }
 0x255   : > { %v1638_v49 = vpop.f32.mrf.mxu3 }
 0x256   : > { %2174 = vmatpush.msrb.mxu0 %v1955_v57 }
 0x258   : > { %v1498_v54 = vpop.f32.mrf.mxu0  ;;  %2175 = vmatpush.msrb.mxu0 %v1951_v5  ;;  %v1945_v5 = vld [vmem:[#allocation4 + $0x5f8] sm:$0xff] }
 0x259   : > { %v6610_v34 = vadd.f32 %v1498_v54, %v1479_v12  ;;  %v1639_v12 = vadd.f32 %v1638_v49, %v1619_v40  ;;  %v1836_v54 = vld [vmem:[#allocation4 + $0x290] sm:$0xff]  ;;  %v1841_v40 = vld [vmem:[#allocation4 + $0x2b8] sm:$0xff] }
 0x25a   : > { %2176 = vmatpush.msrb.mxu0 %v1947_v6 }
 0x25b   : > { %2037 = vmatmul.f32.vlgmr.msrb.gmra.mxu1 %v6610_v34  ;;  %v1698_v8 = vpop.f32.mrf.mxu2 }
 0x25c   : > { %2181 = vmatpush.msrb.mxu1 %v1816_v55  ;;  %v1817_v55 = vld [vmem:[#allocation4 + $0x1f8] sm:$0xff]  ;;  %v1699_v49 = vadd.f32 %v1698_v8, %v1679_v42  ;;  %v2414_v8 = vld [vmem:[#allocation4 + $0x1e0] sm:$0xff] }
 0x25d   : > { %v2406_v42 = vld [vmem:[#allocation4 + $0x1a0] sm:$0xff] }
 0x25e   : > { %2182 = vmatpush.msrb.mxu1 %v1812_v37  ;;  %v1828_v37 = vld [vmem:[#allocation4 + $0x250] sm:$0xff] }
 0x260   : > { %2183 = vmatpush.msrb.mxu1 %v1808_v11  ;;  %v1578_v23 = vpop.f32.mrf.mxu0  ;;  %v1824_v11 = vld [vmem:[#allocation4 + $0x230] sm:$0xff] }
 0x261   : > { %v6613_v30 = vadd.f32 %v1578_v23, %v1559_v15  ;;  %v1805_v15 = vld [vmem:[#allocation4 + $0x198] sm:$0xff] }
 0x262   : > { %2184 = vmatpush.msrb.mxu1 %v1804_v22  ;;  %v1820_v22 = vld [vmem:[#allocation4 + $0x210] sm:$0xff]  ;;  %v1801_v23 = vld [vmem:[#allocation4 + $0x178] sm:$0xff] }
 0x263   : > { %2057 = vmatmul.f32.vlgmr.msrb.gmra.mxu2 %v6613_v30  ;;  %2117 = vmatmul.f32.vlgmr.msra.gmra.mxu1 %v6610_v34 }
 0x264   : > { %2185 = vmatpush.msrb.mxu1 %v1800_v27  ;;  %2201 = vmatpush.msrb.mxu2 %v1880_v28  ;;  %v1881_v27 = vld [vmem:[#allocation4 + $0x3f8] sm:$0xff]  ;;  %v1924_v28 = vld [vmem:[#allocation4 + $0x550] sm:$0xff] }
 0x266   : > { %2186 = vmatpush.msrb.mxu1 %v1796_v31  ;;  %2202 = vmatpush.msrb.mxu2 %v1876_v48  ;;  %v1877_v31 = vld [vmem:[#allocation4 + $0x3d8] sm:$0xff]  ;;  %v1920_v48 = vld [vmem:[#allocation4 + $0x530] sm:$0xff] }
 0x268   : > { %2187 = vmatpush.msrb.mxu1 %v1792_v44  ;;  %2203 = vmatpush.msrb.mxu2 %v1872_v35  ;;  %v1873_v44 = vld [vmem:[#allocation4 + $0x3b8] sm:$0xff]  ;;  %v1916_v35 = vld [vmem:[#allocation4 + $0x510] sm:$0xff] }
 0x26a   : > { %2188 = vmatpush.msrb.mxu1 %v1788_v29  ;;  %2204 = vmatpush.msrb.mxu2 %v1868_v21  ;;  %v1869_v29 = vld [vmem:[#allocation4 + $0x398] sm:$0xff]  ;;  %v1912_v21 = vld [vmem:[#allocation4 + $0x4f0] sm:$0xff] }
 0x26b   : > { %2137 = vmatmul.f32.vlgmr.msra.gmra.mxu2 %v6613_v30 }
 0x26c   : > { %2189 = vmatpush.msrb.mxu1 %v1784_v13  ;;  %2205 = vmatpush.msrb.mxu2 %v1864_v1  ;;  %v1865_v13 = vld [vmem:[#allocation4 + $0x378] sm:$0xff]  ;;  %v1908_v1 = vld [vmem:[#allocation4 + $0x4d0] sm:$0xff] }
 0x26e   : > { %2190 = vmatpush.msrb.mxu1 %v1780_v36  ;;  %2206 = vmatpush.msrb.mxu2 %v1860_v7  ;;  %v1861_v36 = vld [vmem:[#allocation4 + $0x358] sm:$0xff]  ;;  %v1904_v7 = vld [vmem:[#allocation4 + $0x4b0] sm:$0xff] }
 0x270   : > { %2191 = vmatpush.msrb.mxu1 %v1776_v17  ;;  %2207 = vmatpush.msrb.mxu2 %v1856_v46  ;;  %v1857_v17 = vld [vmem:[#allocation4 + $0x338] sm:$0xff]  ;;  %v1900_v46 = vld [vmem:[#allocation4 + $0x490] sm:$0xff] }
 0x272   : > { %2192 = vmatpush.msrb.mxu1 %v1772_v25  ;;  %2208 = vmatpush.msrb.mxu2 %v1852_v63  ;;  %v1773_v25 = vld [vmem:[#allocation4 + $0x98] sm:$0xff] }
 0x273   : > { %v1853_v63 = vld [vmem:[#allocation4 + $0x318] sm:$0xff] }
 0x274   : > { %2193 = vmatpush.msrb.mxu1 %v1768_v26  ;;  %2209 = vmatpush.msrb.mxu2 %v1848_v10  ;;  %v1769_v26 = vld [vmem:[#allocation4 + $0x78] sm:$0xff] }
 0x275   : > { %v1849_v10 = vld [vmem:[#allocation4 + $0x2f8] sm:$0xff]  ;;  %v1718_v20 = vpop.f32.mrf.mxu3 }
 0x276   : > { %2194 = vmatpush.msrb.mxu1 %v1764_v32  ;;  %2210 = vmatpush.msrb.mxu2 %v1844_v45  ;;  %v1765_v32 = vld [vmem:[#allocation4 + $0x58] sm:$0xff] }
 0x277   : > { %v1845_v45 = vld [vmem:[#allocation4 + $0x2d8] sm:$0xff] }
 0x278   : > { %v1658_v59 = vpop.f32.mrf.mxu0  ;;  %2195 = vmatpush.msrb.mxu1 %v1760_v50  ;;  %2211 = vmatpush.msrb.mxu2 %v1840_v0  ;;  %v1719_v50 = vadd.f32 %v1718_v20, %v1699_v49  ;;  %v1884_v0 = vld [vmem:[#allocation4 + $0x410] sm:$0xff]  ;;  %v2402_v20 = vld [vmem:[#allocation4 + $0x180] sm:$0xff]  ;;  %v1993_v49 = vld [vmem:[#allocation4 + $0x778] sm:$0xff] }
 0x279   : > { %v6619_v61 = vadd.f32 %v1658_v59, %v1639_v12  ;;  %v1757_v12 = vld [vmem:[#allocation4 + $0x18] sm:$0xff] }
 0x27a   : > { %2196 = vmatpush.msrb.mxu1 %v1756_v56  ;;  %2212 = vmatpush.msrb.mxu2 %v1836_v54  ;;  %v1837_v56 = vld [vmem:[#allocation4 + $0x298] sm:$0xff]  ;;  %v1745_v54 = vrot.slane %v6613_v30, 7 }
 0x27b   : > { %2077 = vmatmul.f32.vlgmr.msrb.gmra.mxu3 %v6619_v61  ;;  %2197 = vmatmul.f32.vlgmr.msrb.gmra.mxu1 %v6610_v34 }
 0x27c   : > { %2221 = vmatpush.msrb.mxu3 %v1944_v58  ;;  %2261 = vmatpush.msra.mxu1 %v1817_v55  ;;  %v2008_v58 = vld [vmem:[#allocation4 + $0x7f0] sm:$0xff]  ;;  %v1746_v55 = vrot.slane %v6619_v61, 6 }
 0x27d   : > { %2213 = vmatpush.msrb.mxu2 %v1832_v62 }
 0x27e   : > { %2222 = vmatpush.msrb.mxu3 %v1940_v2  ;;  %2262 = vmatpush.msra.mxu1 %v1813_v9  ;;  %v1833_v2 = vld [vmem:[#allocation4 + $0x278] sm:$0xff]  ;;  %v2004_v9 = vld [vmem:[#allocation4 + $0x7d0] sm:$0xff] }
 0x27f   : > { %2214 = vmatpush.msrb.mxu2 %v1828_v37  ;;  %v1748_v37 = vsel %vm1141_vm6, %v6610_v34, %v1745_v54  ;;  %v2462_v54 = vld [vmem:[#allocation4 + $0x360] sm:$0xff] }
 0x280   : > { %2223 = vmatpush.msrb.mxu3 %v1936_v14  ;;  %2263 = vmatpush.msra.mxu1 %v1809_v41  ;;  %v1941_v14 = vld [vmem:[#allocation4 + $0x5d8] sm:$0xff] }
 0x281   : > { %2215 = vmatpush.msrb.mxu2 %v1824_v11  ;;  %v1829_v41 = vld [vmem:[#allocation4 + $0x258] sm:$0xff] }
 0x282   : > { %2224 = vmatpush.msrb.mxu3 %v1932_v18  ;;  %2264 = vmatpush.msra.mxu1 %v1805_v15  ;;  %v2000_v18 = vld [vmem:[#allocation4 + $0x7b0] sm:$0xff]  ;;  %v1937_v15 = vld [vmem:[#allocation4 + $0x5b8] sm:$0xff] }
 0x283   : > { %2216 = vmatpush.msrb.mxu2 %v1820_v22  ;;  %2157 = vmatmul.f32.vlgmr.msra.gmra.mxu3 %v6619_v61  ;;  %v1825_v22 = vld [vmem:[#allocation4 + $0x238] sm:$0xff] }
 0x284   : > { %2217 = vmatmul.f32.vlgmr.msrb.gmra.mxu2 %v6613_v30  ;;  %2225 = vmatpush.msrb.mxu3 %v1928_v19  ;;  %v1996_v19 = vld [vmem:[#allocation4 + $0x790] sm:$0xff] }
 0x285   : > { %2265 = vmatpush.msra.mxu1 %v1801_v23  ;;  %2281 = vmatpush.msra.mxu2 %v1881_v27  ;;  %v1933_v23 = vld [vmem:[#allocation4 + $0x598] sm:$0xff] }
 0x286   : > { %2226 = vmatpush.msrb.mxu3 %v1924_v28  ;;  %v1821_v27 = vld [vmem:[#allocation4 + $0x218] sm:$0xff] }
 0x287   : > { %2266 = vmatpush.msra.mxu1 %v1797_v3  ;;  %2282 = vmatpush.msra.mxu2 %v1877_v31  ;;  %v1929_v28 = vld [vmem:[#allocation4 + $0x578] sm:$0xff]  ;;  %v1988_v3 = vld [vmem:[#allocation4 + $0x750] sm:$0xff] }
 0x288   : > { %2227 = vmatpush.msrb.mxu3 %v1920_v48  ;;  %v1925_v31 = vld [vmem:[#allocation4 + $0x558] sm:$0xff]  ;;  %v1984_v48 = vld [vmem:[#allocation4 + $0x730] sm:$0xff] }
 0x289   : > { %2267 = vmatpush.msra.mxu1 %v1793_v38  ;;  %2283 = vmatpush.msra.mxu2 %v1873_v44  ;;  %v1921_v38 = vld [vmem:[#allocation4 + $0x538] sm:$0xff]  ;;  %v1980_v44 = vld [vmem:[#allocation4 + $0x710] sm:$0xff] }
 0x28a   : > { %2228 = vmatpush.msrb.mxu3 %v1916_v35  ;;  %v1917_v35 = vld [vmem:[#allocation4 + $0x518] sm:$0xff] }
 0x28b   : > { %2268 = vmatpush.msra.mxu1 %v1789_v52  ;;  %2284 = vmatpush.msra.mxu2 %v1869_v29  ;;  %v1976_v52 = vld [vmem:[#allocation4 + $0x6f0] sm:$0xff]  ;;  %v1913_v29 = vld [vmem:[#allocation4 + $0x4f8] sm:$0xff] }
 0x28c   : > { %2229 = vmatpush.msrb.mxu3 %v1912_v21  ;;  %v1972_v21 = vld [vmem:[#allocation4 + $0x6d0] sm:$0xff] }
 0x28d   : > { %2269 = vmatpush.msra.mxu1 %v1785_v39  ;;  %2285 = vmatpush.msra.mxu2 %v1865_v13  ;;  %v1909_v39 = vld [vmem:[#allocation4 + $0x4d8] sm:$0xff] }
 0x28e   : > { %2230 = vmatpush.msrb.mxu3 %v1908_v1  ;;  %v1905_v13 = vld [vmem:[#allocation4 + $0x4b8] sm:$0xff]  ;;  %v1964_v1 = vld [vmem:[#allocation4 + $0x690] sm:$0xff] }
 0x28f   : > { %2270 = vmatpush.msra.mxu1 %v1781_v60  ;;  %2286 = vmatpush.msra.mxu2 %v1861_v36  ;;  %v1901_v60 = vld [vmem:[#allocation4 + $0x498] sm:$0xff]  ;;  %v1960_v36 = vld [vmem:[#allocation4 + $0x670] sm:$0xff] }
 0x290   : > { %2231 = vmatpush.msrb.mxu3 %v1904_v7  ;;  %v1897_v7 = vld [vmem:[#allocation4 + $0x478] sm:$0xff] }
 0x291   : > { %2271 = vmatpush.msra.mxu1 %v1777_v43  ;;  %2287 = vmatpush.msra.mxu2 %v1857_v17  ;;  %v1956_v43 = vld [vmem:[#allocation4 + $0x650] sm:$0xff]  ;;  %v1893_v17 = vld [vmem:[#allocation4 + $0x458] sm:$0xff] }
 0x292   : > { %2232 = vmatpush.msrb.mxu3 %v1900_v46  ;;  %v1952_v46 = vld [vmem:[#allocation4 + $0x630] sm:$0xff] }
 0x293   : > { %2272 = vmatpush.msra.mxu1 %v1773_v25  ;;  %2288 = vmatpush.msra.mxu2 %v1853_v63  ;;  %v1948_v25 = vld [vmem:[#allocation4 + $0x610] sm:$0xff]  ;;  %v1885_v63 = vld [vmem:[#allocation4 + $0x418] sm:$0xff] }
 0x294   : > { %2233 = vmatpush.msrb.mxu3 %v1896_v47  ;;  %v2005_v47 = vld [vmem:[#allocation4 + $0x7d8] sm:$0xff] }
 0x295   : > { %2273 = vmatpush.msra.mxu1 %v1769_v26  ;;  %2289 = vmatpush.msra.mxu2 %v1849_v10  ;;  %v2410_v26 = vld [vmem:[#allocation4 + $0x1c0] sm:$0xff]  ;;  %v2001_v10 = vld [vmem:[#allocation4 + $0x7b8] sm:$0xff] }
 0x296   : > { %2234 = vmatpush.msrb.mxu3 %v1892_v24  ;;  %v1997_v24 = vld [vmem:[#allocation4 + $0x798] sm:$0xff] }
 0x297   : > { %2274 = vmatpush.msra.mxu1 %v1765_v32  ;;  %2290 = vmatpush.msra.mxu2 %v1845_v45  ;;  %v2478_v32 = vld [vmem:[#allocation4 + $0x3e0] sm:$0xff] }
 0x298   : > { %v1738_v57 = vpop.f32.mrf.mxu0  ;;  %2235 = vmatpush.msrb.mxu3 %v1888_v53  ;;  %v2474_v45 = vld [vmem:[#allocation4 + $0x3c0] sm:$0xff] }
 0x299   : > { %v6627_v59 = vadd.f32 %v1738_v57, %v1719_v50  ;;  %2275 = vmatpush.msra.mxu1 %v1761_v4  ;;  %2291 = vmatpush.msra.mxu2 %v1841_v40  ;;  %v2398_v53 = vld [vmem:[#allocation4 + $0x160] sm:$0xff]  ;;  %v1985_v40 = vld [vmem:[#allocation4 + $0x738] sm:$0xff] }
 0x29a   : > { %2236 = vmatpush.msrb.mxu3 %v1884_v0  ;;  %v2394_v4 = vld [vmem:[#allocation4 + $0x140] sm:$0xff] }
 0x29b   : > { %v1747_v62 = vrot.slane %v6627_v59, 5  ;;  %2276 = vmatpush.msra.mxu1 %v1757_v12  ;;  %2292 = vmatpush.msra.mxu2 %v1837_v56  ;;  %v2390_v50 = vld [vmem:[#allocation4 + $0x120] sm:$0xff]  ;;  %v1981_v12 = vld [vmem:[#allocation4 + $0x718] sm:$0xff] }
 0x29c   : > { %2097 = vmatmul.f32.vlgmr.msra.gmra.mxu0 %v6627_v59  ;;  %2237 = vmatmul.f32.vlgmr.msrb.gmra.mxu3 %v6619_v61  ;;  %v2470_v0 = vld [vmem:[#allocation4 + $0x3a0] sm:$0xff] }
 0x29d   : > { %v1749_v6 = vsel %vm1143_vm7, %v1746_v55, %v1747_v62  ;;  %2241 = vmatpush.msra.mxu0 %v2008_v58  ;;  %2277 = vmatmul.f32.vlgmr.msra.gmra.mxu1 %v6610_v34  ;;  %v1992_v34 = vld [vmem:[#allocation4 + $0x770] sm:$0xff]  ;;  %v2466_v57 = vld [vmem:[#allocation4 + $0x380] sm:$0xff]  ;;  %v1977_v58 = vld [vmem:[#allocation4 + $0x6f8] sm:$0xff] }
 0x29e   : > { %v1750_v11 = vsel %vm1145_vm8, %v1748_v37, %v1749_v6  ;;  %2301 = vmatpush.msra.mxu3 %v1945_v5  ;;  %2293 = vmatpush.msra.mxu2 %v1833_v2  ;;  %v2386_v56 = vld [vmem:[#allocation4 + $0x100] sm:$0xff]  ;;  %v1973_v5 = vld [vmem:[#allocation4 + $0x6d8] sm:$0xff] }
 0x29f   : > { %2242 = vmatpush.msra.mxu0 %v2004_v9  ;;  %1752 = vst.msk [vmem:[#allocation3 + $0x1] ss:$8 sm:$0xf] %vm6592_vm9, %v1750_v11  ;;  %2621 = vmatpush.msrb.mxu1 %v2414_v8  ;;  %v2382_v55 = vld [vmem:[#allocation4 + $0xe0] sm:$0xff]  ;;  %v1969_v9 = vld [vmem:[#allocation4 + $0x6b8] sm:$0xff] }
 0x2a0   : > { %2302 = vmatpush.msra.mxu3 %v1941_v14  ;;  %2294 = vmatpush.msra.mxu2 %v1829_v41  ;;  %v2458_v62 = vld [vmem:[#allocation4 + $0x340] sm:$0xff]  ;;  %v1965_v41 = vld [vmem:[#allocation4 + $0x698] sm:$0xff] }
 0x2a1   : > { %2243 = vmatpush.msra.mxu0 %v2000_v18  ;;  %2622 = vmatpush.msrb.mxu1 %v2410_v26  ;;  %v2378_v2 = vld [vmem:[#allocation4 + $0xc0] sm:$0xff]  ;;  %v2387_v26 = vld [vmem:[#allocation4 + $0x108] sm:$0xff] }
 0x2a2   : > { %2303 = vmatpush.msra.mxu3 %v1937_v15  ;;  %2295 = vmatpush.msra.mxu2 %v1825_v22  ;;  %v2374_v37 = vld [vmem:[#allocation4 + $0xa0] sm:$0xff]  ;;  %v1961_v15 = vld [vmem:[#allocation4 + $0x678] sm:$0xff] }
 0x2a3   : > { %2244 = vmatpush.msra.mxu0 %v1996_v19  ;;  %2623 = vmatpush.msrb.mxu1 %v2406_v42  ;;  %v2454_v6 = vld [vmem:[#allocation4 + $0x320] sm:$0xff] }
 0x2a4   : > { %2304 = vmatpush.msra.mxu3 %v1933_v23  ;;  %2296 = vmatpush.msra.mxu2 %v1821_v27  ;;  %v2450_v14 = vld [vmem:[#allocation4 + $0x300] sm:$0xff]  ;;  %v1957_v23 = vld [vmem:[#allocation4 + $0x658] sm:$0xff] }
 0x2a5   : > { %2177 = vmatmul.f32.vlgmr.msrb.gmra.mxu0 %v6627_v59  ;;  %2297 = vmatmul.f32.vlgmr.msra.gmra.mxu2 %v6613_v30  ;;  %v1968_v30 = vld [vmem:[#allocation4 + $0x6b0] sm:$0xff]  ;;  %v2370_v11 = vld [vmem:[#allocation4 + $0x80] sm:$0xff] }
 0x2a6   : > { %2245 = vmatpush.msra.mxu0 %v1992_v34  ;;  %2305 = vmatpush.msra.mxu3 %v1929_v28  ;;  %v2446_v18 = vld [vmem:[#allocation4 + $0x2e0] sm:$0xff]  ;;  %v1953_v34 = vld [vmem:[#allocation4 + $0x638] sm:$0xff] }
 0x2a7   : > { %2641 = vmatpush.msrb.mxu2 %v2478_v32  ;;  %2624 = vmatpush.msrb.mxu1 %v2402_v20  ;;  %v2366_v22 = vld [vmem:[#allocation4 + $0x60] sm:$0xff]  ;;  %v1949_v28 = vld [vmem:[#allocation4 + $0x618] sm:$0xff]  ;;  %v2463_v20 = vld [vmem:[#allocation4 + $0x368] sm:$0xff] }
 0x2a8   : > { %2246 = vmatpush.msra.mxu0 %v1988_v3  ;;  %2306 = vmatpush.msra.mxu3 %v1925_v31  ;;  %v2442_v19 = vld [vmem:[#allocation4 + $0x2c0] sm:$0xff] }
 0x2a9   : > { %2642 = vmatpush.msrb.mxu2 %v2474_v45  ;;  %2625 = vmatpush.msrb.mxu1 %v2398_v53  ;;  %v2362_v27 = vld [vmem:[#allocation4 + $0x40] sm:$0xff]  ;;  %v2379_v45 = vld [vmem:[#allocation4 + $0xc8] sm:$0xff] }
 0x2aa   : > { %2247 = vmatpush.msra.mxu0 %v1984_v48  ;;  %2307 = vmatpush.msra.mxu3 %v1921_v38  ;;  %v2358_v3 = vld [vmem:[#allocation4 + $0x20] sm:$0xff] }
 0x2ab   : > { %2626 = vmatpush.msrb.mxu1 %v2394_v4  ;;  %2643 = vmatpush.msrb.mxu2 %v2470_v0  ;;  %v2438_v31 = vld [vmem:[#allocation4 + $0x2a0] sm:$0xff]  ;;  %v2455_v4 = vld [vmem:[#allocation4 + $0x328] sm:$0xff] }
 0x2ac   : > { %2248 = vmatpush.msra.mxu0 %v1980_v44  ;;  %2308 = vmatpush.msra.mxu3 %v1917_v35  ;;  %v2354_v48 = vld [vmem:[#allocation4] sm:$0xff]  ;;  %v2415_v35 = vld [vmem:[#allocation4 + $0x1e8] sm:$0xff] }
 0x2ad   : > { %2627 = vmatpush.msrb.mxu1 %v2390_v50  ;;  %2644 = vmatpush.msrb.mxu2 %v2466_v57  ;;  %v2434_v38 = vld [vmem:[#allocation4 + $0x280] sm:$0xff]  ;;  %v2371_v50 = vld [vmem:[#allocation4 + $0x88] sm:$0xff] }
 0x2ae   : > { %2249 = vmatpush.msra.mxu0 %v1976_v52  ;;  %2309 = vmatpush.msra.mxu3 %v1913_v29  ;;  %v2542_v44 = vld [vmem:[#allocation4 + $0x5e0] sm:$0xff]  ;;  %v2451_v0 = vld [vmem:[#allocation4 + $0x308] sm:$0xff] }
 0x2af   : > { %2628 = vmatpush.msrb.mxu1 %v2386_v56  ;;  %2645 = vmatpush.msrb.mxu2 %v2462_v54  ;;  %v2538_v52 = vld [vmem:[#allocation4 + $0x5c0] sm:$0xff]  ;;  %v2447_v56 = vld [vmem:[#allocation4 + $0x2e8] sm:$0xff] }
 0x2b0   : > { %2250 = vmatpush.msra.mxu0 %v1972_v21  ;;  %2310 = vmatpush.msra.mxu3 %v1909_v39  ;;  %v2430_v29 = vld [vmem:[#allocation4 + $0x260] sm:$0xff]  ;;  %v2411_v21 = vld [vmem:[#allocation4 + $0x1c8] sm:$0xff] }
 0x2b1   : > { %2629 = vmatpush.msrb.mxu1 %v2382_v55  ;;  %2646 = vmatpush.msrb.mxu2 %v2458_v62  ;;  %v2426_v39 = vld [vmem:[#allocation4 + $0x240] sm:$0xff]  ;;  %v2443_v55 = vld [vmem:[#allocation4 + $0x2c8] sm:$0xff] }
 0x2b2   : > { %2251 = vmatpush.msra.mxu0 %v1968_v30  ;;  %2311 = vmatpush.msra.mxu3 %v1905_v13  ;;  %v2534_v30 = vld [vmem:[#allocation4 + $0x5a0] sm:$0xff]  ;;  %v2407_v13 = vld [vmem:[#allocation4 + $0x1a8] sm:$0xff] }
 0x2b3   : > { %2630 = vmatpush.msrb.mxu1 %v2378_v2  ;;  %2647 = vmatpush.msrb.mxu2 %v2454_v6  ;;  %v2514_v8 = vld [vmem:[#allocation4 + $0x500] sm:$0xff]  ;;  %v2439_v2 = vld [vmem:[#allocation4 + $0x2a8] sm:$0xff] }
 0x2b4   : > { %2252 = vmatpush.msra.mxu0 %v1964_v1  ;;  %2312 = vmatpush.msra.mxu3 %v1901_v60  ;;  %v2422_v1 = vld [vmem:[#allocation4 + $0x220] sm:$0xff]  ;;  %v2435_v6 = vld [vmem:[#allocation4 + $0x288] sm:$0xff] }
 0x2b5   : > { %2631 = vmatpush.msrb.mxu1 %v2374_v37  ;;  %2648 = vmatpush.msrb.mxu2 %v2450_v14  ;;  %v2530_v60 = vld [vmem:[#allocation4 + $0x580] sm:$0xff]  ;;  %v2355_v37 = vld [vmem:[#allocation4 + $0x8] sm:$0xff] }
 0x2b6   : > { %2253 = vmatpush.msra.mxu0 %v1960_v36  ;;  %2313 = vmatpush.msra.mxu3 %v1897_v7  ;;  %v2403_v36 = vld [vmem:[#allocation4 + $0x188] sm:$0xff]  ;;  %v2526_v7 = vld [vmem:[#allocation4 + $0x560] sm:$0xff] }
 0x2b7   : > { %2632 = vmatpush.msrb.mxu1 %v2370_v11  ;;  %2649 = vmatpush.msrb.mxu2 %v2446_v18  ;;  %v2510_v42 = vld [vmem:[#allocation4 + $0x4e0] sm:$0xff]  ;;  %v2431_v11 = vld [vmem:[#allocation4 + $0x268] sm:$0xff] }
 0x2b8   : > { %2254 = vmatpush.msra.mxu0 %v1956_v43  ;;  %2314 = vmatpush.msra.mxu3 %v1893_v17  ;;  %v2418_v43 = vld [vmem:[#allocation4 + $0x200] sm:$0xff]  ;;  %v2479_v17 = vld [vmem:[#allocation4 + $0x3e8] sm:$0xff] }
 0x2b9   : > { %2633 = vmatpush.msrb.mxu1 %v2366_v22  ;;  %2650 = vmatpush.msrb.mxu2 %v2442_v19  ;;  %v2506_v32 = vld [vmem:[#allocation4 + $0x4c0] sm:$0xff]  ;;  %v2427_v22 = vld [vmem:[#allocation4 + $0x248] sm:$0xff] }
 0x2ba   : > { %2255 = vmatpush.msra.mxu0 %v1952_v46  ;;  %2315 = vmatpush.msra.mxu3 %v1889_v51  ;;  %v2522_v46 = vld [vmem:[#allocation4 + $0x540] sm:$0xff]  ;;  %v2395_v51 = vld [vmem:[#allocation4 + $0x148] sm:$0xff] }
 0x2bb   : > { %2634 = vmatpush.msrb.mxu1 %v2362_v27  ;;  %2651 = vmatpush.msrb.mxu2 %v2438_v31  ;;  %v2502_v53 = vld [vmem:[#allocation4 + $0x4a0] sm:$0xff]  ;;  %v2423_v27 = vld [vmem:[#allocation4 + $0x228] sm:$0xff] }
 0x2bc   : > { %2256 = vmatpush.msra.mxu0 %v1948_v25  ;;  %2316 = vmatpush.msra.mxu3 %v1885_v63  ;;  %v2475_v25 = vld [vmem:[#allocation4 + $0x3c8] sm:$0xff]  ;;  %v2518_v63 = vld [vmem:[#allocation4 + $0x520] sm:$0xff] }
 0x2bd   : > { %2257 = vmatmul.f32.vlgmr.msra.gmra.mxu0 %v6627_v59  ;;  %2317 = vmatmul.f32.vlgmr.msra.gmra.mxu3 %v6619_v61  ;;  %v1989_v61 = vld [vmem:[#allocation4 + $0x758] sm:$0xff]  ;;  %v2494_v57 = vld [vmem:[#allocation4 + $0x460] sm:$0xff] }
 0x2be   : > { %2321 = vmatpush.msrb.mxu0 %v2009_v33  ;;  %2635 = vmatpush.msrb.mxu1 %v2358_v3  ;;  %v2391_v33 = vld [vmem:[#allocation4 + $0x128] sm:$0xff]  ;;  %v2490_v54 = vld [vmem:[#allocation4 + $0x440] sm:$0xff] }
 0x2bf   : > { %2661 = vmatpush.msrb.mxu3 %v2542_v44  ;;  %2652 = vmatpush.msrb.mxu2 %v2434_v38  ;;  %v2486_v62 = vld [vmem:[#allocation4 + $0x420] sm:$0xff]  ;;  %v2419_v3 = vld [vmem:[#allocation4 + $0x208] sm:$0xff] }
 0x2c0   : > { %2322 = vmatpush.msrb.mxu0 %v2005_v47  ;;  %2636 = vmatpush.msrb.mxu1 %v2354_v48  ;;  %v2471_v47 = vld [vmem:[#allocation4 + $0x3a8] sm:$0xff]  ;;  %v2606_v14 = vld [vmem:[#allocation4 + $0x7e0] sm:$0xff] }
 0x2c1   : > { %2662 = vmatpush.msrb.mxu3 %v2538_v52  ;;  %2653 = vmatpush.msrb.mxu2 %v2430_v29  ;;  %v2602_v18 = vld [vmem:[#allocation4 + $0x7c0] sm:$0xff]  ;;  %v2527_v48 = vld [vmem:[#allocation4 + $0x568] sm:$0xff] }
 0x2c2   : > { %2323 = vmatpush.msrb.mxu0 %v2001_v10  ;;  %2701 = vmatpush.msra.mxu1 %v2415_v35  ;;  %v2467_v10 = vld [vmem:[#allocation4 + $0x388] sm:$0xff]  ;;  %v2598_v19 = vld [vmem:[#allocation4 + $0x7a0] sm:$0xff] }
 0x2c3   : > { %2663 = vmatpush.msrb.mxu3 %v2534_v30  ;;  %2654 = vmatpush.msrb.mxu2 %v2426_v39  ;;  %v2590_v31 = vld [vmem:[#allocation4 + $0x760] sm:$0xff]  ;;  %v2523_v44 = vld [vmem:[#allocation4 + $0x548] sm:$0xff] }
 0x2c4   : > { %2324 = vmatpush.msrb.mxu0 %v1997_v24  ;;  %2702 = vmatpush.msra.mxu1 %v2411_v21  ;;  %v2383_v24 = vld [vmem:[#allocation4 + $0xe8] sm:$0xff]  ;;  %v2586_v38 = vld [vmem:[#allocation4 + $0x740] sm:$0xff] }
 0x2c5   : > { %2664 = vmatpush.msrb.mxu3 %v2530_v60  ;;  %2655 = vmatpush.msrb.mxu2 %v2422_v1  ;;  %v2582_v35 = vld [vmem:[#allocation4 + $0x720] sm:$0xff]  ;;  %v2519_v52 = vld [vmem:[#allocation4 + $0x528] sm:$0xff] }
 0x2c6   : > { %2325 = vmatpush.msrb.mxu0 %v1993_v49  ;;  %2703 = vmatpush.msra.mxu1 %v2407_v13  ;;  %v2459_v49 = vld [vmem:[#allocation4 + $0x348] sm:$0xff]  ;;  %v2578_v29 = vld [vmem:[#allocation4 + $0x700] sm:$0xff] }
 0x2c7   : > { %2665 = vmatpush.msrb.mxu3 %v2526_v7  ;;  %2656 = vmatpush.msrb.mxu2 %v2418_v43  ;;  %v2515_v21 = vld [vmem:[#allocation4 + $0x508] sm:$0xff]  ;;  %v2574_v39 = vld [vmem:[#allocation4 + $0x6e0] sm:$0xff] }
 0x2c8   : > { %2326 = vmatpush.msrb.mxu0 %v1989_v61  ;;  %2704 = vmatpush.msra.mxu1 %v2403_v36  ;;  %v2375_v61 = vld [vmem:[#allocation4 + $0xa8] sm:$0xff]  ;;  %v2570_v13 = vld [vmem:[#allocation4 + $0x6c0] sm:$0xff] }
 0x2c9   : > { %2721 = vmatpush.msra.mxu2 %v2479_v17  ;;  %2666 = vmatpush.msrb.mxu3 %v2522_v46  ;;  %v2511_v30 = vld [vmem:[#allocation4 + $0x4e8] sm:$0xff]  ;;  %v2566_v7 = vld [vmem:[#allocation4 + $0x6a0] sm:$0xff] }
 0x2ca   : > { %2327 = vmatpush.msrb.mxu0 %v1985_v40  ;;  %v2498_v40 = vld [vmem:[#allocation4 + $0x480] sm:$0xff]  ;;  %v2507_v60 = vld [vmem:[#allocation4 + $0x4c8] sm:$0xff] }
 0x2cb   : > { %2722 = vmatpush.msra.mxu2 %v2475_v25  ;;  %2667 = vmatpush.msrb.mxu3 %v2518_v63  ;;  %v6645_v1 = vld [vmem:[#allocation3 + $0x2] ss:$8 sm:$0xf] }
 0x2cc   : > { %2328 = vmatpush.msrb.mxu0 %v1981_v12  ;;  %v2367_v12 = vld [vmem:[#allocation4 + $0x68] sm:$0xff]  ;;  %v2562_v46 = vld [vmem:[#allocation4 + $0x680] sm:$0xff] }
 0x2cd   : > { %2723 = vmatpush.msra.mxu2 %v2471_v47  ;;  %2668 = vmatpush.msrb.mxu3 %v2514_v8  ;;  %v2503_v43 = vld [vmem:[#allocation4 + $0x4a8] sm:$0xff] }
 0x2ce   : > { %2329 = vmatpush.msrb.mxu0 %v1977_v58  ;;  %v2363_v58 = vld [vmem:[#allocation4 + $0x48] sm:$0xff] }
 0x2cf   : > { %2724 = vmatpush.msra.mxu2 %v2467_v10  ;;  %2669 = vmatpush.msrb.mxu3 %v2510_v42  ;;  %v2495_v47 = vld [vmem:[#allocation4 + $0x468] sm:$0xff] }
 0x2d0   : > { %2330 = vmatpush.msrb.mxu0 %v1973_v5  ;;  %v2359_v5 = vld [vmem:[#allocation4 + $0x28] sm:$0xff] }
 0x2d1   : > { %2725 = vmatpush.msra.mxu2 %v2463_v20  ;;  %2670 = vmatpush.msrb.mxu3 %v2506_v32  ;;  %v2491_v10 = vld [vmem:[#allocation4 + $0x448] sm:$0xff] }
 0x2d2   : > { %2331 = vmatpush.msrb.mxu0 %v1969_v9  ;;  %v2482_v9 = vld [vmem:[#allocation4 + $0x400] sm:$0xff] }
 0x2d3   : > { %2726 = vmatpush.msra.mxu2 %v2459_v49  ;;  %2671 = vmatpush.msrb.mxu3 %v2502_v53  ;;  %v2550_v49 = vld [vmem:[#allocation4 + $0x620] sm:$0xff]  ;;  %v2487_v53 = vld [vmem:[#allocation4 + $0x428] sm:$0xff] }
 0x2d4   : > { %2332 = vmatpush.msrb.mxu0 %v1965_v41  ;;  %v2543_v41 = vld [vmem:[#allocation4 + $0x5e8] sm:$0xff] }
 0x2d5   : > { %2727 = vmatpush.msra.mxu2 %v2455_v4  ;;  %2672 = vmatpush.msrb.mxu3 %v2498_v40  ;;  %v2412_v40 = vld [vmem:[#allocation4 + $0x1d0] sm:$0xff] }
 0x2d6   : > { %2333 = vmatpush.msrb.mxu0 %v1961_v15  ;;  %v2539_v15 = vld [vmem:[#allocation4 + $0x5c8] sm:$0xff] }
 0x2d7   : > { %2728 = vmatpush.msra.mxu2 %v2451_v0  ;;  %2673 = vmatpush.msrb.mxu3 %v2494_v57  ;;  %v2483_v0 = vld [vmem:[#allocation4 + $0x408] sm:$0xff] }
 0x2d8   : > { %2334 = vmatpush.msrb.mxu0 %v1957_v23  ;;  %v2535_v23 = vld [vmem:[#allocation4 + $0x5a8] sm:$0xff]  ;;  %v2038_v36 = vpop.f32.mrf.mxu1 }
 0x2d9   : > { %2729 = vmatpush.msra.mxu2 %v2447_v56  ;;  %2674 = vmatpush.msrb.mxu3 %v2490_v54  ;;  %v2408_v54 = vld [vmem:[#allocation4 + $0x1b0] sm:$0xff] }
 0x2da   : > { %2335 = vmatpush.msrb.mxu0 %v1953_v34  ;;  %v2594_v34 = vld [vmem:[#allocation4 + $0x780] sm:$0xff] }
 0x2db   : > { %2730 = vmatpush.msra.mxu2 %v2443_v55  ;;  %2675 = vmatpush.msrb.mxu3 %v2486_v62  ;;  %v2404_v62 = vld [vmem:[#allocation4 + $0x190] sm:$0xff] }
 0x2dc   : > { %2336 = vmatpush.msrb.mxu0 %v1949_v28  ;;  %v2531_v28 = vld [vmem:[#allocation4 + $0x588] sm:$0xff] }
 0x2dd   : > { %2337 = vmatmul.f32.vlgmr.msrb.gmra.mxu0 %v6627_v59  ;;  %v2399_v59 = vld [vmem:[#allocation4 + $0x168] sm:$0xff]  ;;  %2731 = vmatpush.msra.mxu2 %v2439_v2 }
 0x2de   : > { %2705 = vmatpush.msra.mxu1 %v2399_v59  ;;  %2676 = vmatpush.msrb.mxu3 %v2482_v9  ;;  %v2013_v59 = vperm.slane %v6645_v1, 0  ;;  %v2599_v2 = vld [vmem:[#allocation4 + $0x7a8] sm:$0xff] }
 0x2df   : > { %2732 = vmatpush.msra.mxu2 %v2435_v6  ;;  %2681 = vmatpush.msra.mxu0 %v2606_v14  ;;  %v2595_v6 = vld [vmem:[#allocation4 + $0x788] sm:$0xff] }
 0x2e0   : > { %2706 = vmatpush.msra.mxu1 %v2395_v51  ;;  %2741 = vmatpush.msra.mxu3 %v2543_v41  ;;  %v2499_v51 = vld [vmem:[#allocation4 + $0x488] sm:$0xff]  ;;  %v2039_v25 = vadd.f32 %v2038_v36, %v2013_v59  ;;  %v2118_v20 = vpop.f32.mrf.mxu1  ;;  %v2480_v41 = vld [vmem:[#allocation4 + $0x3f0] sm:$0xff] }
 0x2e1   : > { %2733 = vmatpush.msra.mxu2 %v2431_v11  ;;  %2682 = vmatpush.msra.mxu0 %v2602_v18  ;;  %v2396_v11 = vld [vmem:[#allocation4 + $0x150] sm:$0xff]  ;;  %v2563_v59 = vld [vmem:[#allocation4 + $0x688] sm:$0xff] }
 0x2e2   : > { %2707 = vmatpush.msra.mxu1 %v2391_v33  ;;  %2742 = vmatpush.msra.mxu3 %v2539_v15  ;;  %v2558_v33 = vld [vmem:[#allocation4 + $0x660] sm:$0xff]  ;;  %v2476_v18 = vld [vmem:[#allocation4 + $0x3d0] sm:$0xff]  ;;  %v2591_v15 = vld [vmem:[#allocation4 + $0x768] sm:$0xff] }
 0x2e3   : > { %2734 = vmatpush.msra.mxu2 %v2427_v22  ;;  %2683 = vmatpush.msra.mxu0 %v2598_v19  ;;  %v2392_v22 = vld [vmem:[#allocation4 + $0x130] sm:$0xff] }
 0x2e4   : > { %2708 = vmatpush.msra.mxu1 %v2387_v26  ;;  %2743 = vmatpush.msra.mxu3 %v2535_v23  ;;  %v2554_v26 = vld [vmem:[#allocation4 + $0x640] sm:$0xff]  ;;  %v2472_v19 = vld [vmem:[#allocation4 + $0x3b0] sm:$0xff]  ;;  %v2587_v23 = vld [vmem:[#allocation4 + $0x748] sm:$0xff] }
 0x2e5   : > { %2735 = vmatpush.msra.mxu2 %v2423_v27  ;;  %2684 = vmatpush.msra.mxu0 %v2594_v34  ;;  %v2388_v27 = vld [vmem:[#allocation4 + $0x110] sm:$0xff] }
 0x2e6   : > { %2709 = vmatpush.msra.mxu1 %v2383_v24  ;;  %2744 = vmatpush.msra.mxu3 %v2531_v28  ;;  %v2058_v17 = vpop.f32.mrf.mxu2  ;;  %v2468_v34 = vld [vmem:[#allocation4 + $0x390] sm:$0xff]  ;;  %v2583_v28 = vld [vmem:[#allocation4 + $0x728] sm:$0xff] }
 0x2e7   : > { %2736 = vmatpush.msra.mxu2 %v2419_v3  ;;  %2685 = vmatpush.msra.mxu0 %v2590_v31  ;;  %v2059_v8 = vadd.f32 %v2058_v17, %v2039_v25  ;;  %v2384_v3 = vld [vmem:[#allocation4 + $0xf0] sm:$0xff] }
 0x2e8   : > { %2710 = vmatpush.msra.mxu1 %v2379_v45  ;;  %2745 = vmatpush.msra.mxu3 %v2527_v48  ;;  %v2416_v45 = vld [vmem:[#allocation4 + $0x1f0] sm:$0xff]  ;;  %v2579_v48 = vld [vmem:[#allocation4 + $0x708] sm:$0xff] }
 0x2e9   : > { %2686 = vmatpush.msra.mxu0 %v2586_v38  ;;  %v2464_v31 = vld [vmem:[#allocation4 + $0x370] sm:$0xff] }
 0x2ea   : > { %2711 = vmatpush.msra.mxu1 %v2375_v61  ;;  %2746 = vmatpush.msra.mxu3 %v2523_v44  ;;  %v2014_v61 = vperm.slane %v6645_v1, 1  ;;  %v2380_v38 = vld [vmem:[#allocation4 + $0xd0] sm:$0xff] }
 0x2eb   : > { %2687 = vmatpush.msra.mxu0 %v2582_v35  ;;  %v2460_v44 = vld [vmem:[#allocation4 + $0x350] sm:$0xff]  ;;  %v2575_v35 = vld [vmem:[#allocation4 + $0x6e8] sm:$0xff] }
 0x2ec   : > { %2712 = vmatpush.msra.mxu1 %v2371_v50  ;;  %2747 = vmatpush.msra.mxu3 %v2519_v52  ;;  %v2546_v50 = vld [vmem:[#allocation4 + $0x600] sm:$0xff]  ;;  %v2119_v57 = vadd.f32 %v2118_v20, %v2014_v61  ;;  %v2376_v52 = vld [vmem:[#allocation4 + $0xb0] sm:$0xff] }
 0x2ed   : > { %2688 = vmatpush.msra.mxu0 %v2578_v29  ;;  %v2456_v29 = vld [vmem:[#allocation4 + $0x330] sm:$0xff] }
 0x2ee   : > { %2713 = vmatpush.msra.mxu1 %v2367_v12  ;;  %2748 = vmatpush.msra.mxu3 %v2515_v21  ;;  %v2138_v4 = vpop.f32.mrf.mxu2  ;;  %v2607_v12 = vld [vmem:[#allocation4 + $0x7e8] sm:$0xff]  ;;  %v2368_v36 = vld [vmem:[#allocation4 + $0x70] sm:$0xff] }
 0x2ef   : > { %2689 = vmatpush.msra.mxu0 %v2574_v39  ;;  %v2139_v55 = vadd.f32 %v2138_v4, %v2119_v57  ;;  %v2571_v21 = vld [vmem:[#allocation4 + $0x6c8] sm:$0xff]  ;;  %v2372_v39 = vld [vmem:[#allocation4 + $0x90] sm:$0xff] }
 0x2f0   : > { %2714 = vmatpush.msra.mxu1 %v2363_v58  ;;  %2749 = vmatpush.msra.mxu3 %v2511_v30  ;;  %v2603_v58 = vld [vmem:[#allocation4 + $0x7c8] sm:$0xff]  ;;  %v2452_v30 = vld [vmem:[#allocation4 + $0x310] sm:$0xff] }
 0x2f1   : > { %2690 = vmatpush.msra.mxu0 %v2570_v13  ;;  %v2567_v13 = vld [vmem:[#allocation4 + $0x6a8] sm:$0xff]  ;;  %v2444_v25 = vld [vmem:[#allocation4 + $0x2d0] sm:$0xff] }
 0x2f2   : > { %2715 = vmatpush.msra.mxu1 %v2359_v5  ;;  %2750 = vmatpush.msra.mxu3 %v2507_v60  ;;  %v2436_v20 = vld [vmem:[#allocation4 + $0x290] sm:$0xff] }
 0x2f3   : > { %2691 = vmatpush.msra.mxu0 %v2566_v7  ;;  %v2015_v7 = vperm.slane %v6645_v1, 2  ;;  %v2544_v4 = vld [vmem:[#allocation4 + $0x5f0] sm:$0xff] }
 0x2f4   : > { %2716 = vmatpush.msra.mxu1 %v2355_v37  ;;  %2751 = vmatpush.msra.mxu3 %v2503_v43  ;;  %v2400_v37 = vld [vmem:[#allocation4 + $0x170] sm:$0xff] }
 0x2f5   : > { %2692 = vmatpush.msra.mxu0 %v2562_v46  ;;  %v2448_v43 = vld [vmem:[#allocation4 + $0x2f0] sm:$0xff] }
 0x2f6   : > { %2752 = vmatpush.msra.mxu3 %v2499_v51  ;;  %v2364_v46 = vld [vmem:[#allocation4 + $0x50] sm:$0xff] }
 0x2f7   : > { %2693 = vmatpush.msra.mxu0 %v2558_v33  ;;  %v2540_v57 = vld [vmem:[#allocation4 + $0x5d0] sm:$0xff] }
 0x2f8   : > { %2753 = vmatpush.msra.mxu3 %v2495_v47  ;;  %v2198_v60 = vpop.f32.mrf.mxu1  ;;  %v2360_v47 = vld [vmem:[#allocation4 + $0x30] sm:$0xff] }
 0x2f9   : > { %2694 = vmatpush.msra.mxu0 %v2554_v26  ;;  %v2199_v51 = vadd.f32 %v2198_v60, %v2015_v7  ;;  %v2440_v26 = vld [vmem:[#allocation4 + $0x2b0] sm:$0xff] }
 0x2fa   : > { %2754 = vmatpush.msra.mxu3 %v2491_v10  ;;  %v2555_v10 = vld [vmem:[#allocation4 + $0x648] sm:$0xff]  ;;  %v2496_v60 = vld [vmem:[#allocation4 + $0x470] sm:$0xff] }
 0x2fb   : > { %2695 = vmatpush.msra.mxu0 %v2550_v49  ;;  %v2417_v49 = vld [vmem:[#allocation4 + $0x1f8] sm:$0xff] }
 0x2fc   : > { %2755 = vmatpush.msra.mxu3 %v2487_v53  ;;  %v2551_v53 = vld [vmem:[#allocation4 + $0x628] sm:$0xff] }
 0x2fd   : > { %2696 = vmatpush.msra.mxu0 %v2546_v50  ;;  %v2413_v50 = vld [vmem:[#allocation4 + $0x1d8] sm:$0xff] }
 0x2fe   : > { %v2078_v63 = vpop.f32.mrf.mxu3  ;;  %2756 = vmatpush.msra.mxu3 %v2483_v0  ;;  %v2547_v0 = vld [vmem:[#allocation4 + $0x608] sm:$0xff] }
 0x2ff   : > { %v2079_v42 = vadd.f32 %v2078_v63, %v2059_v8  ;;  %2761 = vmatpush.msrb.mxu0 %v2607_v12  ;;  %v2559_v63 = vld [vmem:[#allocation4 + $0x668] sm:$0xff]  ;;  %v2428_v12 = vld [vmem:[#allocation4 + $0x250] sm:$0xff] }
 0x301   : > { %2762 = vmatpush.msrb.mxu0 %v2603_v58  ;;  %v2424_v58 = vld [vmem:[#allocation4 + $0x230] sm:$0xff] }
 0x303   : > { %2763 = vmatpush.msrb.mxu0 %v2599_v2  ;;  %v2528_v2 = vld [vmem:[#allocation4 + $0x570] sm:$0xff] }
 0x305   : > { %2764 = vmatpush.msrb.mxu0 %v2595_v6  ;;  %v2524_v6 = vld [vmem:[#allocation4 + $0x550] sm:$0xff] }
 0x306   : > { %v2158_v56 = vpop.f32.mrf.mxu3 }
 0x307   : > { %v2159_v5 = vadd.f32 %v2158_v56, %v2139_v55  ;;  %2765 = vmatpush.msrb.mxu0 %v2591_v15  ;;  %v2218_v17 = vpop.f32.mrf.mxu2  ;;  %v2409_v56 = vld [vmem:[#allocation4 + $0x1b8] sm:$0xff] }
 0x308   : > { %v2219_v8 = vadd.f32 %v2218_v17, %v2199_v51  ;;  %v2405_v55 = vld [vmem:[#allocation4 + $0x198] sm:$0xff]  ;;  %v2492_v17 = vld [vmem:[#allocation4 + $0x450] sm:$0xff] }
 0x309   : > { %2766 = vmatpush.msrb.mxu0 %v2587_v23  ;;  %v2393_v15 = vld [vmem:[#allocation4 + $0x138] sm:$0xff] }
 0x30a   : > { %v2389_v23 = vld [vmem:[#allocation4 + $0x118] sm:$0xff] }
 0x30b   : > { %2767 = vmatpush.msrb.mxu0 %v2583_v28  ;;  %v2385_v28 = vld [vmem:[#allocation4 + $0xf8] sm:$0xff] }
 0x30d   : > { %2768 = vmatpush.msrb.mxu0 %v2579_v48  ;;  %v2381_v48 = vld [vmem:[#allocation4 + $0xd8] sm:$0xff] }
 0x30f   : > { %2769 = vmatpush.msrb.mxu0 %v2575_v35  ;;  %v2377_v35 = vld [vmem:[#allocation4 + $0xb8] sm:$0xff] }
 0x311   : > { %2770 = vmatpush.msrb.mxu0 %v2571_v21  ;;  %v2373_v21 = vld [vmem:[#allocation4 + $0x98] sm:$0xff] }
 0x313   : > { %2771 = vmatpush.msrb.mxu0 %v2567_v13  ;;  %v2016_v13 = vperm.slane %v6645_v1, 3  ;;  %v2441_v1 = vld [vmem:[#allocation4 + $0x2b8] sm:$0xff] }
 0x315   : > { %2772 = vmatpush.msrb.mxu0 %v2563_v59 }
 0x317   : > { %2773 = vmatpush.msrb.mxu0 %v2559_v63 }
 0x319   : > { %v2098_v24 = vpop.f32.mrf.mxu0  ;;  %2774 = vmatpush.msrb.mxu0 %v2555_v10  ;;  %v2357_v10 = vld [vmem:[#allocation4 + $0x18] sm:$0xff] }
 0x31a   : > { %v6648_v32 = vadd.f32 %v2098_v24, %v2079_v42  ;;  %v2356_v42 = vld [vmem:[#allocation4 + $0x10] sm:$0xff] }
 0x31b   : > { %2775 = vmatpush.msrb.mxu0 %v2551_v53  ;;  %v2545_v53 = vld [vmem:[#allocation4 + $0x5f8] sm:$0xff] }
 0x31c   : > { %2637 = vmatmul.f32.vlgmr.msrb.gmra.mxu1 %v6648_v32 }
 0x31d   : > { %2781 = vmatpush.msrb.mxu1 %v2416_v45  ;;  %2776 = vmatpush.msrb.mxu0 %v2547_v0  ;;  %v2604_v0 = vld [vmem:[#allocation4 + $0x7d0] sm:$0xff] }
 0x31f   : > { %2782 = vmatpush.msrb.mxu1 %v2412_v40  ;;  %v2238_v33 = vpop.f32.mrf.mxu3  ;;  %v2432_v40 = vld [vmem:[#allocation4 + $0x270] sm:$0xff] }
 0x320   : > { %v2239_v24 = vadd.f32 %v2238_v33, %v2219_v8  ;;  %v2488_v33 = vld [vmem:[#allocation4 + $0x430] sm:$0xff] }
 0x321   : > { %2783 = vmatpush.msrb.mxu1 %v2408_v54  ;;  %v2536_v54 = vld [vmem:[#allocation4 + $0x5b0] sm:$0xff] }
 0x322   : > { %v2178_v9 = vpop.f32.mrf.mxu0 }
 0x323   : > { %v6652_v14 = vadd.f32 %v2178_v9, %v2159_v5  ;;  %2784 = vmatpush.msrb.mxu1 %v2404_v62  ;;  %v2532_v62 = vld [vmem:[#allocation4 + $0x590] sm:$0xff]  ;;  %v2401_v9 = vld [vmem:[#allocation4 + $0x178] sm:$0xff] }
 0x324   : > { %2717 = vmatmul.f32.vlgmr.msra.gmra.mxu1 %v6648_v32  ;;  %v2420_v5 = vld [vmem:[#allocation4 + $0x210] sm:$0xff] }
 0x325   : > { %2657 = vmatmul.f32.vlgmr.msrb.gmra.mxu2 %v6652_v14  ;;  %2785 = vmatpush.msrb.mxu1 %v2400_v37  ;;  %v2481_v37 = vld [vmem:[#allocation4 + $0x3f8] sm:$0xff] }
 0x326   : > { %2801 = vmatpush.msrb.mxu2 %v2480_v41  ;;  %v2397_v41 = vld [vmem:[#allocation4 + $0x158] sm:$0xff] }
 0x327   : > { %2786 = vmatpush.msrb.mxu1 %v2396_v11  ;;  %v2477_v11 = vld [vmem:[#allocation4 + $0x3d8] sm:$0xff] }
 0x328   : > { %2802 = vmatpush.msrb.mxu2 %v2476_v18  ;;  %v2520_v18 = vld [vmem:[#allocation4 + $0x530] sm:$0xff]  ;;  %v2298_v7 = vpop.f32.mrf.mxu2 }
 0x329   : > { %2787 = vmatpush.msrb.mxu1 %v2392_v22  ;;  %v2473_v22 = vld [vmem:[#allocation4 + $0x3b8] sm:$0xff] }
 0x32a   : > { %2803 = vmatpush.msrb.mxu2 %v2472_v19  ;;  %v2516_v19 = vld [vmem:[#allocation4 + $0x510] sm:$0xff] }
 0x32b   : > { %2788 = vmatpush.msrb.mxu1 %v2388_v27  ;;  %v2469_v27 = vld [vmem:[#allocation4 + $0x398] sm:$0xff] }
 0x32c   : > { %2804 = vmatpush.msrb.mxu2 %v2468_v34  ;;  %v2512_v34 = vld [vmem:[#allocation4 + $0x4f0] sm:$0xff] }
 0x32d   : > { %2737 = vmatmul.f32.vlgmr.msra.gmra.mxu2 %v6652_v14  ;;  %2789 = vmatpush.msrb.mxu1 %v2384_v3  ;;  %v2465_v3 = vld [vmem:[#allocation4 + $0x378] sm:$0xff] }
 0x32e   : > { %2805 = vmatpush.msrb.mxu2 %v2464_v31  ;;  %v2508_v31 = vld [vmem:[#allocation4 + $0x4d0] sm:$0xff] }
 0x32f   : > { %2790 = vmatpush.msrb.mxu1 %v2380_v38  ;;  %v2461_v38 = vld [vmem:[#allocation4 + $0x358] sm:$0xff] }
 0x330   : > { %2806 = vmatpush.msrb.mxu2 %v2460_v44  ;;  %v2504_v44 = vld [vmem:[#allocation4 + $0x4b0] sm:$0xff] }
 0x331   : > { %2791 = vmatpush.msrb.mxu1 %v2376_v52  ;;  %v2457_v52 = vld [vmem:[#allocation4 + $0x338] sm:$0xff] }
 0x332   : > { %2807 = vmatpush.msrb.mxu2 %v2456_v29  ;;  %v2500_v29 = vld [vmem:[#allocation4 + $0x490] sm:$0xff] }
 0x333   : > { %2792 = vmatpush.msrb.mxu1 %v2372_v39  ;;  %v2278_v39 = vpop.f32.mrf.mxu1 }
 0x334   : > { %2808 = vmatpush.msrb.mxu2 %v2452_v30  ;;  %v2453_v30 = vld [vmem:[#allocation4 + $0x318] sm:$0xff]  ;;  %v2279_v59 = vadd.f32 %v2278_v39, %v2016_v13  ;;  %v2548_v39 = vld [vmem:[#allocation4 + $0x610] sm:$0xff] }
 0x335   : > { %2793 = vmatpush.msrb.mxu1 %v2368_v36  ;;  %v2369_v36 = vld [vmem:[#allocation4 + $0x78] sm:$0xff] }
 0x336   : > { %2809 = vmatpush.msrb.mxu2 %v2448_v43  ;;  %v2449_v43 = vld [vmem:[#allocation4 + $0x2f8] sm:$0xff]  ;;  %v2299_v63 = vadd.f32 %v2298_v7, %v2279_v59  ;;  %v3010_v7 = vld [vmem:[#allocation4 + $0x1c0] sm:$0xff] }
 0x337   : > { %2794 = vmatpush.msrb.mxu1 %v2364_v46  ;;  %v2365_v46 = vld [vmem:[#allocation4 + $0x58] sm:$0xff]  ;;  %v3006_v59 = vld [vmem:[#allocation4 + $0x1a0] sm:$0xff] }
 0x338   : > { %2810 = vmatpush.msrb.mxu2 %v2444_v25  ;;  %v2445_v25 = vld [vmem:[#allocation4 + $0x2d8] sm:$0xff] }
 0x339   : > { %2795 = vmatpush.msrb.mxu1 %v2360_v47  ;;  %v2361_v47 = vld [vmem:[#allocation4 + $0x38] sm:$0xff] }
 0x33a   : > { %v2258_v45 = vpop.f32.mrf.mxu0  ;;  %2811 = vmatpush.msrb.mxu2 %v2440_v26  ;;  %v2484_v26 = vld [vmem:[#allocation4 + $0x410] sm:$0xff]  ;;  %v2609_v13 = vld [vmem:[#allocation4 + $0x7f8] sm:$0xff] }
 0x33b   : > { %v6658_v61 = vadd.f32 %v2258_v45, %v2239_v24  ;;  %2796 = vmatpush.msrb.mxu1 %v2356_v42  ;;  %v2437_v24 = vld [vmem:[#allocation4 + $0x298] sm:$0xff] }
 0x33c   : > { %2812 = vmatpush.msrb.mxu2 %v2436_v20  ;;  %2797 = vmatmul.f32.vlgmr.msrb.gmra.mxu1 %v6648_v32  ;;  %v2345_v20 = vrot.slane %v6652_v14, 7 }
 0x33d   : > { %2677 = vmatmul.f32.vlgmr.msrb.gmra.mxu3 %v6658_v61  ;;  %2861 = vmatpush.msra.mxu1 %v2417_v49  ;;  %v2608_v49 = vld [vmem:[#allocation4 + $0x7f0] sm:$0xff] }
 0x33e   : > { %2821 = vmatpush.msrb.mxu3 %v2544_v4  ;;  %2813 = vmatpush.msrb.mxu2 %v2432_v40  ;;  %v2346_v4 = vrot.slane %v6658_v61, 6 }
 0x33f   : > { %2862 = vmatpush.msra.mxu1 %v2413_v50  ;;  %v2433_v50 = vld [vmem:[#allocation4 + $0x278] sm:$0xff] }
 0x340   : > { %2822 = vmatpush.msrb.mxu3 %v2540_v57  ;;  %2814 = vmatpush.msrb.mxu2 %v2428_v12  ;;  %v2318_v51 = vpop.f32.mrf.mxu3  ;;  %v2541_v57 = vld [vmem:[#allocation4 + $0x5d8] sm:$0xff]  ;;  %v2348_v12 = vsel %vm1141_vm6, %v6648_v32, %v2345_v20 }
 0x341   : > { %2863 = vmatpush.msra.mxu1 %v2409_v56  ;;  %v2319_v8 = vadd.f32 %v2318_v51, %v2299_v63  ;;  %v3078_v51 = vld [vmem:[#allocation4 + $0x3e0] sm:$0xff]  ;;  %v2577_v20 = vld [vmem:[#allocation4 + $0x6f8] sm:$0xff] }
 0x342   : > { %2823 = vmatpush.msrb.mxu3 %v2536_v54  ;;  %2815 = vmatpush.msrb.mxu2 %v2424_v58  ;;  %v2429_v54 = vld [vmem:[#allocation4 + $0x258] sm:$0xff]  ;;  %v2600_v58 = vld [vmem:[#allocation4 + $0x7b0] sm:$0xff]  ;;  %v3074_v63 = vld [vmem:[#allocation4 + $0x3c0] sm:$0xff] }
 0x343   : > { %2864 = vmatpush.msra.mxu1 %v2405_v55 }
 0x344   : > { %2824 = vmatpush.msrb.mxu3 %v2532_v62  ;;  %2816 = vmatpush.msrb.mxu2 %v2420_v5  ;;  %v2537_v62 = vld [vmem:[#allocation4 + $0x5b8] sm:$0xff] }
 0x345   : > { %2757 = vmatmul.f32.vlgmr.msra.gmra.mxu3 %v6658_v61  ;;  %2817 = vmatmul.f32.vlgmr.msrb.gmra.mxu2 %v6652_v14  ;;  %v2425_v5 = vld [vmem:[#allocation4 + $0x238] sm:$0xff] }
 0x346   : > { %2825 = vmatpush.msrb.mxu3 %v2528_v2  ;;  %2865 = vmatpush.msra.mxu1 %v2401_v9  ;;  %v2596_v2 = vld [vmem:[#allocation4 + $0x790] sm:$0xff]  ;;  %v2533_v9 = vld [vmem:[#allocation4 + $0x598] sm:$0xff] }
 0x347   : > { %2881 = vmatpush.msra.mxu2 %v2481_v37  ;;  %v2421_v37 = vld [vmem:[#allocation4 + $0x218] sm:$0xff] }
 0x348   : > { %2826 = vmatpush.msrb.mxu3 %v2524_v6  ;;  %2866 = vmatpush.msra.mxu1 %v2397_v41  ;;  %v2529_v6 = vld [vmem:[#allocation4 + $0x578] sm:$0xff]  ;;  %v2588_v41 = vld [vmem:[#allocation4 + $0x750] sm:$0xff] }
 0x349   : > { %2882 = vmatpush.msra.mxu2 %v2477_v11  ;;  %v2525_v11 = vld [vmem:[#allocation4 + $0x558] sm:$0xff] }
 0x34a   : > { %2827 = vmatpush.msrb.mxu3 %v2520_v18  ;;  %2867 = vmatpush.msra.mxu1 %v2393_v15  ;;  %v2584_v18 = vld [vmem:[#allocation4 + $0x730] sm:$0xff]  ;;  %v2521_v15 = vld [vmem:[#allocation4 + $0x538] sm:$0xff] }
 0x34b   : > { %2883 = vmatpush.msra.mxu2 %v2473_v22  ;;  %v2580_v22 = vld [vmem:[#allocation4 + $0x710] sm:$0xff] }
 0x34c   : > { %2828 = vmatpush.msrb.mxu3 %v2516_v19  ;;  %2868 = vmatpush.msra.mxu1 %v2389_v23  ;;  %v2517_v19 = vld [vmem:[#allocation4 + $0x518] sm:$0xff]  ;;  %v2576_v23 = vld [vmem:[#allocation4 + $0x6f0] sm:$0xff] }
 0x34d   : > { %2884 = vmatpush.msra.mxu2 %v2469_v27  ;;  %v2513_v27 = vld [vmem:[#allocation4 + $0x4f8] sm:$0xff] }
 0x34e   : > { %2829 = vmatpush.msrb.mxu3 %v2512_v34  ;;  %2869 = vmatpush.msra.mxu1 %v2385_v28  ;;  %v2572_v34 = vld [vmem:[#allocation4 + $0x6d0] sm:$0xff]  ;;  %v2509_v28 = vld [vmem:[#allocation4 + $0x4d8] sm:$0xff] }
 0x34f   : > { %2885 = vmatpush.msra.mxu2 %v2465_v3  ;;  %v2568_v3 = vld [vmem:[#allocation4 + $0x6b0] sm:$0xff] }
 0x350   : > { %2830 = vmatpush.msrb.mxu3 %v2508_v31  ;;  %2870 = vmatpush.msra.mxu1 %v2381_v48  ;;  %v2564_v31 = vld [vmem:[#allocation4 + $0x690] sm:$0xff]  ;;  %v2501_v48 = vld [vmem:[#allocation4 + $0x498] sm:$0xff] }
 0x351   : > { %2886 = vmatpush.msra.mxu2 %v2461_v38  ;;  %v2560_v38 = vld [vmem:[#allocation4 + $0x670] sm:$0xff] }
 0x352   : > { %2831 = vmatpush.msrb.mxu3 %v2504_v44  ;;  %2871 = vmatpush.msra.mxu1 %v2377_v35  ;;  %v2497_v44 = vld [vmem:[#allocation4 + $0x478] sm:$0xff]  ;;  %v2556_v35 = vld [vmem:[#allocation4 + $0x650] sm:$0xff] }
 0x353   : > { %2887 = vmatpush.msra.mxu2 %v2457_v52  ;;  %v2493_v52 = vld [vmem:[#allocation4 + $0x458] sm:$0xff] }
 0x354   : > { %2832 = vmatpush.msrb.mxu3 %v2500_v29  ;;  %2872 = vmatpush.msra.mxu1 %v2373_v21  ;;  %v2552_v29 = vld [vmem:[#allocation4 + $0x630] sm:$0xff]  ;;  %v2489_v21 = vld [vmem:[#allocation4 + $0x438] sm:$0xff] }
 0x355   : > { %2888 = vmatpush.msra.mxu2 %v2453_v30  ;;  %v2485_v30 = vld [vmem:[#allocation4 + $0x418] sm:$0xff] }
 0x356   : > { %2833 = vmatpush.msrb.mxu3 %v2496_v60  ;;  %2873 = vmatpush.msra.mxu1 %v2369_v36  ;;  %v2605_v60 = vld [vmem:[#allocation4 + $0x7d8] sm:$0xff]  ;;  %v3014_v36 = vld [vmem:[#allocation4 + $0x1e0] sm:$0xff] }
 0x357   : > { %2889 = vmatpush.msra.mxu2 %v2449_v43  ;;  %v2601_v43 = vld [vmem:[#allocation4 + $0x7b8] sm:$0xff] }
 0x358   : > { %2834 = vmatpush.msrb.mxu3 %v2492_v17  ;;  %2874 = vmatpush.msra.mxu1 %v2365_v46  ;;  %v2597_v17 = vld [vmem:[#allocation4 + $0x798] sm:$0xff]  ;;  %v3002_v46 = vld [vmem:[#allocation4 + $0x180] sm:$0xff] }
 0x359   : > { %2890 = vmatpush.msra.mxu2 %v2445_v25  ;;  %v2593_v25 = vld [vmem:[#allocation4 + $0x778] sm:$0xff] }
 0x35a   : > { %v2338_v42 = vpop.f32.mrf.mxu0  ;;  %2835 = vmatpush.msrb.mxu3 %v2488_v33  ;;  %2875 = vmatpush.msra.mxu1 %v2361_v47  ;;  %v2998_v33 = vld [vmem:[#allocation4 + $0x160] sm:$0xff]  ;;  %v2589_v47 = vld [vmem:[#allocation4 + $0x758] sm:$0xff] }
 0x35b   : > { %v6666_v45 = vadd.f32 %v2338_v42, %v2319_v8  ;;  %2891 = vmatpush.msra.mxu2 %v2441_v1  ;;  %v2585_v1 = vld [vmem:[#allocation4 + $0x738] sm:$0xff]  ;;  %v2986_v42 = vld [vmem:[#allocation4 + $0x100] sm:$0xff] }
 0x35c   : > { %2836 = vmatpush.msrb.mxu3 %v2484_v26  ;;  %2876 = vmatpush.msra.mxu1 %v2357_v10  ;;  %v2581_v8 = vld [vmem:[#allocation4 + $0x718] sm:$0xff]  ;;  %v2990_v26 = vld [vmem:[#allocation4 + $0x120] sm:$0xff] }
 0x35d   : > { %v2347_v40 = vrot.slane %v6666_v45, 5  ;;  %2892 = vmatpush.msra.mxu2 %v2437_v24  ;;  %2697 = vmatmul.f32.vlgmr.msra.gmra.mxu0 %v6666_v45  ;;  %v3070_v10 = vld [vmem:[#allocation4 + $0x3a0] sm:$0xff] }
 0x35e   : > { %2837 = vmatmul.f32.vlgmr.msrb.gmra.mxu3 %v6658_v61  ;;  %2841 = vmatpush.msra.mxu0 %v2608_v49  ;;  %v3066_v24 = vld [vmem:[#allocation4 + $0x380] sm:$0xff] }
 0x35f   : > { %v2349_v56 = vsel %vm1143_vm7, %v2346_v4, %v2347_v40  ;;  %2877 = vmatmul.f32.vlgmr.msra.gmra.mxu1 %v6648_v32  ;;  %2901 = vmatpush.msra.mxu3 %v2545_v53  ;;  %v2592_v32 = vld [vmem:[#allocation4 + $0x770] sm:$0xff]  ;;  %v3062_v49 = vld [vmem:[#allocation4 + $0x360] sm:$0xff]  ;;  %v2573_v4 = vld [vmem:[#allocation4 + $0x6d8] sm:$0xff] }
 0x360   : > { %v2350_v55 = vsel %vm1145_vm8, %v2348_v12, %v2349_v56  ;;  %2893 = vmatpush.msra.mxu2 %v2433_v50  ;;  %2842 = vmatpush.msra.mxu0 %v2604_v0  ;;  %v2982_v53 = vld [vmem:[#allocation4 + $0xe0] sm:$0xff]  ;;  %v2569_v0 = vld [vmem:[#allocation4 + $0x6b8] sm:$0xff] }
 0x361   : > { %2902 = vmatpush.msra.mxu3 %v2541_v57  ;;  %2352 = vst.msk [vmem:[#allocation3 + $0x2] ss:$8 sm:$0xf] %vm6592_vm9, %v2350_v55  ;;  %3221 = vmatpush.msrb.mxu1 %v3014_v36  ;;  %v3058_v40 = vld [vmem:[#allocation4 + $0x340] sm:$0xff]  ;;  %v2565_v57 = vld [vmem:[#allocation4 + $0x698] sm:$0xff] }
 0x362   : > { %2894 = vmatpush.msra.mxu2 %v2429_v54  ;;  %2843 = vmatpush.msra.mxu0 %v2600_v58  ;;  %v2978_v50 = vld [vmem:[#allocation4 + $0xc0] sm:$0xff]  ;;  %v2561_v55 = vld [vmem:[#allocation4 + $0x678] sm:$0xff] }
 0x363   : > { %2903 = vmatpush.msra.mxu3 %v2537_v62  ;;  %3222 = vmatpush.msrb.mxu1 %v3010_v7  ;;  %v2974_v12 = vld [vmem:[#allocation4 + $0xa0] sm:$0xff]  ;;  %v2987_v7 = vld [vmem:[#allocation4 + $0x108] sm:$0xff] }
 0x364   : > { %2895 = vmatpush.msra.mxu2 %v2425_v5  ;;  %2844 = vmatpush.msra.mxu0 %v2596_v2  ;;  %v3054_v56 = vld [vmem:[#allocation4 + $0x320] sm:$0xff]  ;;  %v2557_v2 = vld [vmem:[#allocation4 + $0x658] sm:$0xff] }
 0x365   : > { %2904 = vmatpush.msra.mxu3 %v2533_v9  ;;  %2777 = vmatmul.f32.vlgmr.msrb.gmra.mxu0 %v6666_v45  ;;  %v2970_v54 = vld [vmem:[#allocation4 + $0x80] sm:$0xff] }
 0x366   : > { %2896 = vmatpush.msra.mxu2 %v2421_v37  ;;  %2845 = vmatpush.msra.mxu0 %v2592_v32  ;;  %v3050_v58 = vld [vmem:[#allocation4 + $0x300] sm:$0xff]  ;;  %v2553_v32 = vld [vmem:[#allocation4 + $0x638] sm:$0xff] }
 0x367   : > { %2897 = vmatmul.f32.vlgmr.msra.gmra.mxu2 %v6652_v14  ;;  %2905 = vmatpush.msra.mxu3 %v2529_v6  ;;  %v2505_v14 = vld [vmem:[#allocation4 + $0x4b8] sm:$0xff]  ;;  %v3046_v62 = vld [vmem:[#allocation4 + $0x2e0] sm:$0xff] }
 0x368   : > { %2846 = vmatpush.msra.mxu0 %v2588_v41  ;;  %3223 = vmatpush.msrb.mxu1 %v3006_v59  ;;  %v2966_v5 = vld [vmem:[#allocation4 + $0x60] sm:$0xff]  ;;  %v2549_v6 = vld [vmem:[#allocation4 + $0x618] sm:$0xff] }
 0x369   : > { %2906 = vmatpush.msra.mxu3 %v2525_v11  ;;  %3241 = vmatpush.msrb.mxu2 %v3078_v51  ;;  %v3042_v9 = vld [vmem:[#allocation4 + $0x2c0] sm:$0xff] }
 0x36a   : > { %2847 = vmatpush.msra.mxu0 %v2584_v18  ;;  %3224 = vmatpush.msrb.mxu1 %v3002_v46  ;;  %v2962_v37 = vld [vmem:[#allocation4 + $0x40] sm:$0xff]  ;;  %v3063_v46 = vld [vmem:[#allocation4 + $0x368] sm:$0xff] }
 0x36b   : > { %2907 = vmatpush.msra.mxu3 %v2521_v15  ;;  %3242 = vmatpush.msrb.mxu2 %v3074_v63  ;;  %v2958_v41 = vld [vmem:[#allocation4 + $0x20] sm:$0xff]  ;;  %v3059_v63 = vld [vmem:[#allocation4 + $0x348] sm:$0xff] }
 0x36c   : > { %2848 = vmatpush.msra.mxu0 %v2580_v22  ;;  %3225 = vmatpush.msrb.mxu1 %v2998_v33  ;;  %v3038_v11 = vld [vmem:[#allocation4 + $0x2a0] sm:$0xff] }
 0x36d   : > { %2908 = vmatpush.msra.mxu3 %v2517_v19  ;;  %3243 = vmatpush.msrb.mxu2 %v3070_v10  ;;  %v2954_v18 = vld [vmem:[#allocation4] sm:$0xff]  ;;  %v3015_v19 = vld [vmem:[#allocation4 + $0x1e8] sm:$0xff] }
 0x36e   : > { %2849 = vmatpush.msra.mxu0 %v2576_v23  ;;  %v3034_v15 = vld [vmem:[#allocation4 + $0x280] sm:$0xff] }
 0x36f   : > { %2909 = vmatpush.msra.mxu3 %v2513_v27  ;;  %3244 = vmatpush.msrb.mxu2 %v3066_v24  ;;  %v3142_v22 = vld [vmem:[#allocation4 + $0x5e0] sm:$0xff]  ;;  %v3047_v24 = vld [vmem:[#allocation4 + $0x2e8] sm:$0xff] }
 0x370   : > { %2850 = vmatpush.msra.mxu0 %v2572_v34  ;;  %v3138_v23 = vld [vmem:[#allocation4 + $0x5c0] sm:$0xff]  ;;  %v3011_v34 = vld [vmem:[#allocation4 + $0x1c8] sm:$0xff] }
 0x371   : > { %2910 = vmatpush.msra.mxu3 %v2509_v28  ;;  %3245 = vmatpush.msrb.mxu2 %v3062_v49  ;;  %v3030_v27 = vld [vmem:[#allocation4 + $0x260] sm:$0xff]  ;;  %v2963_v49 = vld [vmem:[#allocation4 + $0x48] sm:$0xff] }
 0x372   : > { %2851 = vmatpush.msra.mxu0 %v2568_v3  ;;  %v3026_v28 = vld [vmem:[#allocation4 + $0x240] sm:$0xff] }
 0x373   : > { %2911 = vmatpush.msra.mxu3 %v2505_v14  ;;  %3246 = vmatpush.msrb.mxu2 %v3058_v40  ;;  %v3134_v3 = vld [vmem:[#allocation4 + $0x5a0] sm:$0xff]  ;;  %v3007_v14 = vld [vmem:[#allocation4 + $0x1a8] sm:$0xff] }
 0x374   : > { %2852 = vmatpush.msra.mxu0 %v2564_v31  ;;  %v3022_v31 = vld [vmem:[#allocation4 + $0x220] sm:$0xff]  ;;  %v2959_v40 = vld [vmem:[#allocation4 + $0x28] sm:$0xff] }
 0x375   : > { %2912 = vmatpush.msra.mxu3 %v2501_v48  ;;  %3247 = vmatpush.msrb.mxu2 %v3054_v56  ;;  %v3130_v48 = vld [vmem:[#allocation4 + $0x580] sm:$0xff] }
 0x376   : > { %2853 = vmatpush.msra.mxu0 %v2560_v38  ;;  %v3003_v38 = vld [vmem:[#allocation4 + $0x188] sm:$0xff]  ;;  %v3114_v36 = vld [vmem:[#allocation4 + $0x500] sm:$0xff] }
 0x377   : > { %2913 = vmatpush.msra.mxu3 %v2497_v44  ;;  %3248 = vmatpush.msrb.mxu2 %v3050_v58  ;;  %v3018_v44 = vld [vmem:[#allocation4 + $0x200] sm:$0xff]  ;;  %v3031_v58 = vld [vmem:[#allocation4 + $0x268] sm:$0xff] }
 0x378   : > { %2854 = vmatpush.msra.mxu0 %v2556_v35  ;;  %v3126_v35 = vld [vmem:[#allocation4 + $0x560] sm:$0xff] }
 0x379   : > { %2914 = vmatpush.msra.mxu3 %v2493_v52  ;;  %3249 = vmatpush.msrb.mxu2 %v3046_v62  ;;  %v3079_v52 = vld [vmem:[#allocation4 + $0x3e8] sm:$0xff]  ;;  %v3110_v59 = vld [vmem:[#allocation4 + $0x4e0] sm:$0xff] }
 0x37a   : > { %2855 = vmatpush.msra.mxu0 %v2552_v29  ;;  %v3122_v29 = vld [vmem:[#allocation4 + $0x540] sm:$0xff]  ;;  %v3139_v62 = vld [vmem:[#allocation4 + $0x5c8] sm:$0xff] }
 0x37b   : > { %2915 = vmatpush.msra.mxu3 %v2489_v21  ;;  %3250 = vmatpush.msrb.mxu2 %v3042_v9  ;;  %v2995_v21 = vld [vmem:[#allocation4 + $0x148] sm:$0xff]  ;;  %v3106_v51 = vld [vmem:[#allocation4 + $0x4c0] sm:$0xff] }
 0x37c   : > { %2856 = vmatpush.msra.mxu0 %v2548_v39  ;;  %v3075_v39 = vld [vmem:[#allocation4 + $0x3c8] sm:$0xff]  ;;  %v3102_v33 = vld [vmem:[#allocation4 + $0x4a0] sm:$0xff] }
 0x37d   : > { %2916 = vmatpush.msra.mxu3 %v2485_v30  ;;  %2857 = vmatmul.f32.vlgmr.msra.gmra.mxu0 %v6666_v45  ;;  %v3118_v30 = vld [vmem:[#allocation4 + $0x520] sm:$0xff]  ;;  %v3135_v9 = vld [vmem:[#allocation4 + $0x5a8] sm:$0xff] }
 0x37e   : > { %2917 = vmatmul.f32.vlgmr.msra.gmra.mxu3 %v6658_v61  ;;  %2921 = vmatpush.msrb.mxu0 %v2609_v13  ;;  %v2994_v61 = vld [vmem:[#allocation4 + $0x140] sm:$0xff]  ;;  %v2991_v13 = vld [vmem:[#allocation4 + $0x128] sm:$0xff] }
 0x37f   : > { %3226 = vmatpush.msrb.mxu1 %v2994_v61  ;;  %3251 = vmatpush.msrb.mxu2 %v3038_v11  ;;  %v3055_v61 = vld [vmem:[#allocation4 + $0x328] sm:$0xff]  ;;  %v3094_v10 = vld [vmem:[#allocation4 + $0x460] sm:$0xff] }
 0x380   : > { %2922 = vmatpush.msrb.mxu0 %v2605_v60  ;;  %3261 = vmatpush.msrb.mxu3 %v3142_v22  ;;  %v3071_v60 = vld [vmem:[#allocation4 + $0x3a8] sm:$0xff]  ;;  %v3206_v56 = vld [vmem:[#allocation4 + $0x7e0] sm:$0xff] }
 0x381   : > { %3227 = vmatpush.msrb.mxu1 %v2990_v26  ;;  %3252 = vmatpush.msrb.mxu2 %v3034_v15  ;;  %v3051_v26 = vld [vmem:[#allocation4 + $0x308] sm:$0xff]  ;;  %v3190_v11 = vld [vmem:[#allocation4 + $0x760] sm:$0xff] }
 0x382   : > { %2923 = vmatpush.msrb.mxu0 %v2601_v43  ;;  %3262 = vmatpush.msrb.mxu3 %v3138_v23  ;;  %v3067_v43 = vld [vmem:[#allocation4 + $0x388] sm:$0xff]  ;;  %v3186_v15 = vld [vmem:[#allocation4 + $0x740] sm:$0xff] }
 0x383   : > { %3228 = vmatpush.msrb.mxu1 %v2986_v42  ;;  %3253 = vmatpush.msrb.mxu2 %v3030_v27  ;;  %v2967_v42 = vld [vmem:[#allocation4 + $0x68] sm:$0xff]  ;;  %v3178_v27 = vld [vmem:[#allocation4 + $0x700] sm:$0xff] }
 0x384   : > { %2924 = vmatpush.msrb.mxu0 %v2597_v17  ;;  %3263 = vmatpush.msrb.mxu3 %v3134_v3  ;;  %v2983_v17 = vld [vmem:[#allocation4 + $0xe8] sm:$0xff] }
 0x385   : > { %3229 = vmatpush.msrb.mxu1 %v2982_v53  ;;  %3254 = vmatpush.msrb.mxu2 %v3026_v28  ;;  %v3043_v53 = vld [vmem:[#allocation4 + $0x2c8] sm:$0xff]  ;;  %v3174_v28 = vld [vmem:[#allocation4 + $0x6e0] sm:$0xff] }
 0x386   : > { %2925 = vmatpush.msrb.mxu0 %v2593_v25  ;;  %3264 = vmatpush.msrb.mxu3 %v3130_v48  ;;  %v2979_v25 = vld [vmem:[#allocation4 + $0xc8] sm:$0xff] }
 0x387   : > { %3230 = vmatpush.msrb.mxu1 %v2978_v50  ;;  %3255 = vmatpush.msrb.mxu2 %v3022_v31  ;;  %v3039_v50 = vld [vmem:[#allocation4 + $0x2a8] sm:$0xff] }
 0x388   : > { %2926 = vmatpush.msrb.mxu0 %v2589_v47  ;;  %3265 = vmatpush.msrb.mxu3 %v3126_v35  ;;  %v2975_v47 = vld [vmem:[#allocation4 + $0xa8] sm:$0xff] }
 0x389   : > { %3231 = vmatpush.msrb.mxu1 %v2974_v12  ;;  %3256 = vmatpush.msrb.mxu2 %v3018_v44  ;;  %v3035_v12 = vld [vmem:[#allocation4 + $0x288] sm:$0xff]  ;;  %v3166_v44 = vld [vmem:[#allocation4 + $0x6a0] sm:$0xff] }
 0x38a   : > { %2927 = vmatpush.msrb.mxu0 %v2585_v1  ;;  %3266 = vmatpush.msrb.mxu3 %v3122_v29  ;;  %v3098_v1 = vld [vmem:[#allocation4 + $0x480] sm:$0xff]  ;;  %v3123_v22 = vld [vmem:[#allocation4 + $0x548] sm:$0xff] }
 0x38b   : > { %3232 = vmatpush.msrb.mxu1 %v2970_v54  ;;  %3321 = vmatpush.msra.mxu2 %v3079_v52  ;;  %v3143_v54 = vld [vmem:[#allocation4 + $0x5e8] sm:$0xff]  ;;  %v3162_v52 = vld [vmem:[#allocation4 + $0x680] sm:$0xff] }
 0x38c   : > { %2928 = vmatpush.msrb.mxu0 %v2581_v8  ;;  %3267 = vmatpush.msrb.mxu3 %v3118_v30  ;;  %v2971_v8 = vld [vmem:[#allocation4 + $0x88] sm:$0xff]  ;;  %v3158_v30 = vld [vmem:[#allocation4 + $0x660] sm:$0xff] }
 0x38d   : > { %3233 = vmatpush.msrb.mxu1 %v2966_v5  ;;  %3322 = vmatpush.msra.mxu2 %v3075_v39  ;;  %v3027_v5 = vld [vmem:[#allocation4 + $0x248] sm:$0xff] }
 0x38e   : > { %2929 = vmatpush.msrb.mxu0 %v2577_v20  ;;  %3268 = vmatpush.msrb.mxu3 %v3114_v36  ;;  %v3090_v20 = vld [vmem:[#allocation4 + $0x440] sm:$0xff]  ;;  %v3119_v23 = vld [vmem:[#allocation4 + $0x528] sm:$0xff] }
 0x38f   : > { %3234 = vmatpush.msrb.mxu1 %v2962_v37  ;;  %3323 = vmatpush.msra.mxu2 %v3071_v60  ;;  %v3023_v37 = vld [vmem:[#allocation4 + $0x228] sm:$0xff]  ;;  %v3154_v36 = vld [vmem:[#allocation4 + $0x640] sm:$0xff] }
 0x390   : > { %2930 = vmatpush.msrb.mxu0 %v2573_v4  ;;  %3269 = vmatpush.msrb.mxu3 %v3110_v59  ;;  %v3086_v4 = vld [vmem:[#allocation4 + $0x420] sm:$0xff]  ;;  %v3111_v3 = vld [vmem:[#allocation4 + $0x4e8] sm:$0xff] }
 0x391   : > { %3235 = vmatpush.msrb.mxu1 %v2958_v41  ;;  %3324 = vmatpush.msra.mxu2 %v3067_v43  ;;  %v3019_v41 = vld [vmem:[#allocation4 + $0x208] sm:$0xff] }
 0x392   : > { %2931 = vmatpush.msrb.mxu0 %v2569_v0  ;;  %3270 = vmatpush.msrb.mxu3 %v3106_v51  ;;  %v3082_v0 = vld [vmem:[#allocation4 + $0x400] sm:$0xff]  ;;  %v3107_v31 = vld [vmem:[#allocation4 + $0x4c8] sm:$0xff] }
 0x393   : > { %3236 = vmatpush.msrb.mxu1 %v2954_v18  ;;  %3325 = vmatpush.msra.mxu2 %v3063_v46  ;;  %v3127_v18 = vld [vmem:[#allocation4 + $0x568] sm:$0xff]  ;;  %v3150_v51 = vld [vmem:[#allocation4 + $0x620] sm:$0xff] }
 0x394   : > { %2932 = vmatpush.msrb.mxu0 %v2565_v57  ;;  %3271 = vmatpush.msrb.mxu3 %v3102_v33  ;;  %v2955_v57 = vld [vmem:[#allocation4 + $0x8] sm:$0xff] }
 0x395   : > { %3301 = vmatpush.msra.mxu1 %v3015_v19  ;;  %3326 = vmatpush.msra.mxu2 %v3059_v63  ;;  %v3182_v19 = vld [vmem:[#allocation4 + $0x720] sm:$0xff]  ;;  %v3103_v35 = vld [vmem:[#allocation4 + $0x4a8] sm:$0xff] }
 0x396   : > { %2933 = vmatpush.msrb.mxu0 %v2561_v55  ;;  %3272 = vmatpush.msrb.mxu3 %v3098_v1  ;;  %v3202_v55 = vld [vmem:[#allocation4 + $0x7c0] sm:$0xff]  ;;  %v3095_v60 = vld [vmem:[#allocation4 + $0x468] sm:$0xff] }
 0x397   : > { %3302 = vmatpush.msra.mxu1 %v3011_v34  ;;  %3327 = vmatpush.msra.mxu2 %v3055_v61  ;;  %v3115_v34 = vld [vmem:[#allocation4 + $0x508] sm:$0xff]  ;;  %v3146_v1 = vld [vmem:[#allocation4 + $0x600] sm:$0xff] }
 0x398   : > { %2934 = vmatpush.msrb.mxu0 %v2557_v2  ;;  %3273 = vmatpush.msrb.mxu3 %v3094_v10  ;;  %v3198_v2 = vld [vmem:[#allocation4 + $0x7a0] sm:$0xff]  ;;  %v3091_v43 = vld [vmem:[#allocation4 + $0x448] sm:$0xff]  ;;  %v3012_v10 = vld [vmem:[#allocation4 + $0x1d0] sm:$0xff] }
 0x399   : > { %3303 = vmatpush.msra.mxu1 %v3007_v14  ;;  %3328 = vmatpush.msra.mxu2 %v3051_v26  ;;  %v3170_v14 = vld [vmem:[#allocation4 + $0x6c0] sm:$0xff] }
 0x39a   : > { %2935 = vmatpush.msrb.mxu0 %v2553_v32  ;;  %3274 = vmatpush.msrb.mxu3 %v3090_v20  ;;  %v3194_v32 = vld [vmem:[#allocation4 + $0x780] sm:$0xff] }
 0x39b   : > { %3304 = vmatpush.msra.mxu1 %v3003_v38  ;;  %3329 = vmatpush.msra.mxu2 %v3047_v24  ;;  %v6684_v48 = vld [vmem:[#allocation3 + $0x3] ss:$8 sm:$0xf]  ;;  %v2638_v38 = vpop.f32.mrf.mxu1 }
 0x39c   : > { %2936 = vmatpush.msrb.mxu0 %v2549_v6  ;;  %3275 = vmatpush.msrb.mxu3 %v3086_v4  ;;  %v3131_v6 = vld [vmem:[#allocation4 + $0x588] sm:$0xff]  ;;  %v2613_v29 = vperm.slane %v6684_v48, 0  ;;  %v2614_v63 = vperm.slane %v6684_v48, 1 }
 0x39d   : > { %2937 = vmatmul.f32.vlgmr.msrb.gmra.mxu0 %v6666_v45  ;;  %v2999_v45 = vld [vmem:[#allocation4 + $0x168] sm:$0xff]  ;;  %3330 = vmatpush.msra.mxu2 %v3043_v53 }
 0x39e   : > { %3305 = vmatpush.msra.mxu1 %v2999_v45  ;;  %3276 = vmatpush.msrb.mxu3 %v3082_v0  ;;  %v3203_v53 = vld [vmem:[#allocation4 + $0x7c8] sm:$0xff] }
 0x39f   : > { %3331 = vmatpush.msra.mxu2 %v3039_v50  ;;  %3281 = vmatpush.msra.mxu0 %v3206_v56  ;;  %v3199_v50 = vld [vmem:[#allocation4 + $0x7a8] sm:$0xff]  ;;  %v3080_v56 = vld [vmem:[#allocation4 + $0x3f0] sm:$0xff] }
 0x3a0   : > { %3306 = vmatpush.msra.mxu1 %v2995_v21  ;;  %3341 = vmatpush.msra.mxu3 %v3143_v54  ;;  %v3099_v21 = vld [vmem:[#allocation4 + $0x488] sm:$0xff] }
 0x3a1   : > { %3332 = vmatpush.msra.mxu2 %v3035_v12  ;;  %3282 = vmatpush.msra.mxu0 %v3202_v55  ;;  %v3000_v12 = vld [vmem:[#allocation4 + $0x170] sm:$0xff]  ;;  %v3195_v54 = vld [vmem:[#allocation4 + $0x788] sm:$0xff] }
 0x3a2   : > { %3307 = vmatpush.msra.mxu1 %v2991_v13  ;;  %3342 = vmatpush.msra.mxu3 %v3139_v62  ;;  %v2639_v13 = vadd.f32 %v2638_v38, %v2613_v29  ;;  %v3076_v55 = vld [vmem:[#allocation4 + $0x3d0] sm:$0xff]  ;;  %v3191_v62 = vld [vmem:[#allocation4 + $0x768] sm:$0xff]  ;;  %v2615_v38 = vperm.slane %v6684_v48, 2 }
 0x3a3   : > { %3333 = vmatpush.msra.mxu2 %v3031_v58  ;;  %3283 = vmatpush.msra.mxu0 %v3198_v2  ;;  %v2996_v58 = vld [vmem:[#allocation4 + $0x150] sm:$0xff] }
 0x3a4   : > { %3308 = vmatpush.msra.mxu1 %v2987_v7  ;;  %3343 = vmatpush.msra.mxu3 %v3135_v9  ;;  %v3072_v2 = vld [vmem:[#allocation4 + $0x3b0] sm:$0xff]  ;;  %v3187_v9 = vld [vmem:[#allocation4 + $0x748] sm:$0xff] }
 0x3a5   : > { %3334 = vmatpush.msra.mxu2 %v3027_v5  ;;  %3284 = vmatpush.msra.mxu0 %v3194_v32  ;;  %v2992_v5 = vld [vmem:[#allocation4 + $0x130] sm:$0xff] }
 0x3a6   : > { %3309 = vmatpush.msra.mxu1 %v2983_v17  ;;  %3344 = vmatpush.msra.mxu3 %v3131_v6  ;;  %v2718_v17 = vpop.f32.mrf.mxu1  ;;  %v3068_v32 = vld [vmem:[#allocation4 + $0x390] sm:$0xff]  ;;  %v3183_v6 = vld [vmem:[#allocation4 + $0x728] sm:$0xff] }
 0x3a7   : > { %3335 = vmatpush.msra.mxu2 %v3023_v37  ;;  %3285 = vmatpush.msra.mxu0 %v3190_v11  ;;  %v2719_v26 = vadd.f32 %v2718_v17, %v2614_v63  ;;  %v2988_v37 = vld [vmem:[#allocation4 + $0x110] sm:$0xff] }
 0x3a8   : > { %3310 = vmatpush.msra.mxu1 %v2979_v25  ;;  %3345 = vmatpush.msra.mxu3 %v3127_v18  ;;  %v2658_v45 = vpop.f32.mrf.mxu2  ;;  %v3087_v25 = vld [vmem:[#allocation4 + $0x428] sm:$0xff]  ;;  %v3064_v11 = vld [vmem:[#allocation4 + $0x370] sm:$0xff] }
 0x3a9   : > { %3336 = vmatpush.msra.mxu2 %v3019_v41  ;;  %3286 = vmatpush.msra.mxu0 %v3186_v15  ;;  %v2659_v7 = vadd.f32 %v2658_v45, %v2639_v13  ;;  %v2984_v41 = vld [vmem:[#allocation4 + $0xf0] sm:$0xff]  ;;  %v3179_v18 = vld [vmem:[#allocation4 + $0x708] sm:$0xff] }
 0x3aa   : > { %3311 = vmatpush.msra.mxu1 %v2975_v47  ;;  %3346 = vmatpush.msra.mxu3 %v3123_v22  ;;  %v3016_v47 = vld [vmem:[#allocation4 + $0x1f0] sm:$0xff]  ;;  %v3159_v13 = vld [vmem:[#allocation4 + $0x668] sm:$0xff] }
 0x3ab   : > { %3287 = vmatpush.msra.mxu0 %v3182_v19  ;;  %v2980_v15 = vld [vmem:[#allocation4 + $0xd0] sm:$0xff]  ;;  %v3175_v19 = vld [vmem:[#allocation4 + $0x6e8] sm:$0xff] }
 0x3ac   : > { %3312 = vmatpush.msra.mxu1 %v2971_v8  ;;  %3347 = vmatpush.msra.mxu3 %v3119_v23  ;;  %v3083_v8 = vld [vmem:[#allocation4 + $0x408] sm:$0xff]  ;;  %v3060_v22 = vld [vmem:[#allocation4 + $0x350] sm:$0xff] }
 0x3ad   : > { %3288 = vmatpush.msra.mxu0 %v3178_v27  ;;  %v2976_v23 = vld [vmem:[#allocation4 + $0xb0] sm:$0xff] }
 0x3ae   : > { %3313 = vmatpush.msra.mxu1 %v2967_v42  ;;  %3348 = vmatpush.msra.mxu3 %v3115_v34  ;;  %v3207_v42 = vld [vmem:[#allocation4 + $0x7e8] sm:$0xff]  ;;  %v3056_v27 = vld [vmem:[#allocation4 + $0x330] sm:$0xff] }
 0x3af   : > { %3289 = vmatpush.msra.mxu0 %v3174_v28  ;;  %v3171_v34 = vld [vmem:[#allocation4 + $0x6c8] sm:$0xff]  ;;  %v2972_v28 = vld [vmem:[#allocation4 + $0x90] sm:$0xff] }
 0x3b0   : > { %3314 = vmatpush.msra.mxu1 %v2963_v49  ;;  %3349 = vmatpush.msra.mxu3 %v3111_v3  ;;  %v2738_v61 = vpop.f32.mrf.mxu2  ;;  %v3008_v49 = vld [vmem:[#allocation4 + $0x1b0] sm:$0xff] }
 0x3b1   : > { %3290 = vmatpush.msra.mxu0 %v3170_v14  ;;  %v2739_v20 = vadd.f32 %v2738_v61, %v2719_v26  ;;  %v3052_v3 = vld [vmem:[#allocation4 + $0x310] sm:$0xff]  ;;  %v3013_v26 = vld [vmem:[#allocation4 + $0x1d8] sm:$0xff] }
 0x3b2   : > { %3315 = vmatpush.msra.mxu1 %v2959_v40  ;;  %3350 = vmatpush.msra.mxu3 %v3107_v31  ;;  %v3004_v40 = vld [vmem:[#allocation4 + $0x190] sm:$0xff]  ;;  %v3167_v31 = vld [vmem:[#allocation4 + $0x6a8] sm:$0xff] }
 0x3b3   : > { %3291 = vmatpush.msra.mxu0 %v3166_v44  ;;  %v2968_v44 = vld [vmem:[#allocation4 + $0x70] sm:$0xff] }
 0x3b4   : > { %3316 = vmatpush.msra.mxu1 %v2955_v57  ;;  %3351 = vmatpush.msra.mxu3 %v3103_v35  ;;  %v3048_v35 = vld [vmem:[#allocation4 + $0x2f0] sm:$0xff] }
 0x3b5   : > { %3292 = vmatpush.msra.mxu0 %v3162_v52  ;;  %v3163_v52 = vld [vmem:[#allocation4 + $0x688] sm:$0xff]  ;;  %v2956_v17 = vld [vmem:[#allocation4 + $0x10] sm:$0xff] }
 0x3b6   : > { %3352 = vmatpush.msra.mxu3 %v3099_v21  ;;  %v2964_v21 = vld [vmem:[#allocation4 + $0x50] sm:$0xff] }
 0x3b7   : > { %3293 = vmatpush.msra.mxu0 %v3158_v30  ;;  %v3144_v63 = vld [vmem:[#allocation4 + $0x5f0] sm:$0xff] }
 0x3b8   : > { %3353 = vmatpush.msra.mxu3 %v3095_v60  ;;  %v3032_v61 = vld [vmem:[#allocation4 + $0x270] sm:$0xff] }
 0x3b9   : > { %3294 = vmatpush.msra.mxu0 %v3154_v36  ;;  %v2798_v14 = vpop.f32.mrf.mxu1  ;;  %v2960_v36 = vld [vmem:[#allocation4 + $0x30] sm:$0xff] }
 0x3ba   : > { %3354 = vmatpush.msra.mxu3 %v3091_v43  ;;  %v2799_v29 = vadd.f32 %v2798_v14, %v2615_v38  ;;  %v3155_v43 = vld [vmem:[#allocation4 + $0x648] sm:$0xff]  ;;  %v2616_v14 = vperm.slane %v6684_v48, 3  ;;  %v2961_v48 = vld [vmem:[#allocation4 + $0x38] sm:$0xff] }
 0x3bb   : > { %3295 = vmatpush.msra.mxu0 %v3150_v51 }
 0x3bc   : > { %3355 = vmatpush.msra.mxu3 %v3087_v25 }
 0x3bd   : > { %3296 = vmatpush.msra.mxu0 %v3146_v1  ;;  %v3151_v1 = vld [vmem:[#allocation4 + $0x628] sm:$0xff] }
 0x3be   : > { %3356 = vmatpush.msra.mxu3 %v3083_v8  ;;  %v3140_v8 = vld [vmem:[#allocation4 + $0x5d0] sm:$0xff] }
 0x3bf   : > { %3361 = vmatpush.msrb.mxu0 %v3207_v42  ;;  %v3147_v42 = vld [vmem:[#allocation4 + $0x608] sm:$0xff] }
 0x3c0   : > { %v2678_v39 = vpop.f32.mrf.mxu3 }
 0x3c1   : > { %v2679_v59 = vadd.f32 %v2678_v39, %v2659_v7  ;;  %3362 = vmatpush.msrb.mxu0 %v3203_v53  ;;  %v3044_v39 = vld [vmem:[#allocation4 + $0x2d0] sm:$0xff] }
 0x3c2   : > { %v3040_v7 = vld [vmem:[#allocation4 + $0x2b0] sm:$0xff] }
 0x3c3   : > { %3363 = vmatpush.msrb.mxu0 %v3199_v50  ;;  %v3132_v53 = vld [vmem:[#allocation4 + $0x590] sm:$0xff] }
 0x3c4   : > { %v3128_v50 = vld [vmem:[#allocation4 + $0x570] sm:$0xff] }
 0x3c5   : > { %3364 = vmatpush.msrb.mxu0 %v3195_v54  ;;  %v2997_v54 = vld [vmem:[#allocation4 + $0x158] sm:$0xff] }
 0x3c7   : > { %3365 = vmatpush.msrb.mxu0 %v3191_v62  ;;  %v2993_v62 = vld [vmem:[#allocation4 + $0x138] sm:$0xff] }
 0x3c8   : > { %v2758_v24 = vpop.f32.mrf.mxu3  ;;  %v2818_v45 = vpop.f32.mrf.mxu2 }
 0x3c9   : > { %v2759_v4 = vadd.f32 %v2758_v24, %v2739_v20  ;;  %3366 = vmatpush.msrb.mxu0 %v3187_v9  ;;  %v2819_v60 = vadd.f32 %v2818_v45, %v2799_v29  ;;  %v3136_v24 = vld [vmem:[#allocation4 + $0x5b0] sm:$0xff]  ;;  %v3009_v20 = vld [vmem:[#allocation4 + $0x1b8] sm:$0xff] }
 0x3ca   : > { %v2989_v9 = vld [vmem:[#allocation4 + $0x118] sm:$0xff] }
 0x3cb   : > { %3367 = vmatpush.msrb.mxu0 %v3183_v6  ;;  %v2985_v6 = vld [vmem:[#allocation4 + $0xf8] sm:$0xff] }
 0x3cd   : > { %3368 = vmatpush.msrb.mxu0 %v3179_v18  ;;  %v2981_v18 = vld [vmem:[#allocation4 + $0xd8] sm:$0xff] }
 0x3cf   : > { %3369 = vmatpush.msrb.mxu0 %v3175_v19  ;;  %v2977_v19 = vld [vmem:[#allocation4 + $0xb8] sm:$0xff] }
 0x3d1   : > { %3370 = vmatpush.msrb.mxu0 %v3171_v34 }
 0x3d3   : > { %3371 = vmatpush.msrb.mxu0 %v3167_v31  ;;  %v3096_v31 = vld [vmem:[#allocation4 + $0x470] sm:$0xff] }
 0x3d5   : > { %3372 = vmatpush.msrb.mxu0 %v3163_v52  ;;  %v3092_v52 = vld [vmem:[#allocation4 + $0x450] sm:$0xff] }
 0x3d7   : > { %3373 = vmatpush.msrb.mxu0 %v3159_v13  ;;  %v3088_v13 = vld [vmem:[#allocation4 + $0x430] sm:$0xff] }
 0x3d9   : > { %3374 = vmatpush.msrb.mxu0 %v3155_v43 }
 0x3da   : > { %v2698_v46 = vpop.f32.mrf.mxu0 }
 0x3db   : > { %v6688_v33 = vadd.f32 %v2698_v46, %v2679_v59  ;;  %v3036_v46 = vld [vmem:[#allocation4 + $0x290] sm:$0xff]  ;;  %3375 = vmatpush.msrb.mxu0 %v3151_v1  ;;  %v3145_v1 = vld [vmem:[#allocation4 + $0x5f8] sm:$0xff] }
 0x3dc   : > { %v2878_v34 = vpop.f32.mrf.mxu1 }
 0x3dd   : > { %3237 = vmatmul.f32.vlgmr.msrb.gmra.mxu1 %v6688_v33  ;;  %3376 = vmatpush.msrb.mxu0 %v3147_v42  ;;  %v2879_v45 = vadd.f32 %v2878_v34, %v2616_v14  ;;  %v3089_v34 = vld [vmem:[#allocation4 + $0x438] sm:$0xff] }
 0x3de   : > { %3381 = vmatpush.msrb.mxu1 %v3016_v47  ;;  %v3017_v47 = vld [vmem:[#allocation4 + $0x1f8] sm:$0xff] }
 0x3df   : > { %v3209_v14 = vld [vmem:[#allocation4 + $0x7f8] sm:$0xff] }
 0x3e0   : > { %3382 = vmatpush.msrb.mxu1 %v3012_v10  ;;  %v3028_v10 = vld [vmem:[#allocation4 + $0x250] sm:$0xff] }
 0x3e1   : > { %v2838_v30 = vpop.f32.mrf.mxu3 }
 0x3e2   : > { %3383 = vmatpush.msrb.mxu1 %v3008_v49  ;;  %v2778_v0 = vpop.f32.mrf.mxu0  ;;  %v2839_v59 = vadd.f32 %v2838_v30, %v2819_v60  ;;  %v3024_v49 = vld [vmem:[#allocation4 + $0x230] sm:$0xff]  ;;  %v3041_v60 = vld [vmem:[#allocation4 + $0x2b8] sm:$0xff] }
 0x3e3   : > { %v6691_v57 = vadd.f32 %v2778_v0, %v2759_v4  ;;  %v3005_v4 = vld [vmem:[#allocation4 + $0x198] sm:$0xff] }
 0x3e4   : > { %3384 = vmatpush.msrb.mxu1 %v3004_v40  ;;  %v3020_v40 = vld [vmem:[#allocation4 + $0x210] sm:$0xff]  ;;  %v3001_v0 = vld [vmem:[#allocation4 + $0x178] sm:$0xff] }
 0x3e5   : > { %3257 = vmatmul.f32.vlgmr.msrb.gmra.mxu2 %v6691_v57  ;;  %3317 = vmatmul.f32.vlgmr.msra.gmra.mxu1 %v6688_v33 }
 0x3e6   : > { %3385 = vmatpush.msrb.mxu1 %v3000_v12  ;;  %3401 = vmatpush.msrb.mxu2 %v3080_v56  ;;  %v3081_v12 = vld [vmem:[#allocation4 + $0x3f8] sm:$0xff]  ;;  %v3124_v56 = vld [vmem:[#allocation4 + $0x550] sm:$0xff] }
 0x3e8   : > { %3386 = vmatpush.msrb.mxu1 %v2996_v58  ;;  %3402 = vmatpush.msrb.mxu2 %v3076_v55  ;;  %v3077_v58 = vld [vmem:[#allocation4 + $0x3d8] sm:$0xff]  ;;  %v3120_v55 = vld [vmem:[#allocation4 + $0x530] sm:$0xff] }
 0x3ea   : > { %3387 = vmatpush.msrb.mxu1 %v2992_v5  ;;  %3403 = vmatpush.msrb.mxu2 %v3072_v2  ;;  %v3073_v5 = vld [vmem:[#allocation4 + $0x3b8] sm:$0xff]  ;;  %v3116_v2 = vld [vmem:[#allocation4 + $0x510] sm:$0xff]  ;;  %v2898_v38 = vpop.f32.mrf.mxu2 }
 0x3eb   : > { %v2899_v30 = vadd.f32 %v2898_v38, %v2879_v45  ;;  %v3614_v38 = vld [vmem:[#allocation4 + $0x1e0] sm:$0xff] }
 0x3ec   : > { %3388 = vmatpush.msrb.mxu1 %v2988_v37  ;;  %3404 = vmatpush.msrb.mxu2 %v3068_v32  ;;  %v3069_v37 = vld [vmem:[#allocation4 + $0x398] sm:$0xff]  ;;  %v3112_v32 = vld [vmem:[#allocation4 + $0x4f0] sm:$0xff]  ;;  %v3606_v45 = vld [vmem:[#allocation4 + $0x1a0] sm:$0xff] }
 0x3ed   : > { %3337 = vmatmul.f32.vlgmr.msra.gmra.mxu2 %v6691_v57 }
 0x3ee   : > { %3389 = vmatpush.msrb.mxu1 %v2984_v41  ;;  %3405 = vmatpush.msrb.mxu2 %v3064_v11  ;;  %v3065_v41 = vld [vmem:[#allocation4 + $0x378] sm:$0xff]  ;;  %v3108_v11 = vld [vmem:[#allocation4 + $0x4d0] sm:$0xff] }
 0x3f0   : > { %3390 = vmatpush.msrb.mxu1 %v2980_v15  ;;  %3406 = vmatpush.msrb.mxu2 %v3060_v22  ;;  %v3061_v15 = vld [vmem:[#allocation4 + $0x358] sm:$0xff]  ;;  %v3104_v22 = vld [vmem:[#allocation4 + $0x4b0] sm:$0xff] }
 0x3f2   : > { %3391 = vmatpush.msrb.mxu1 %v2976_v23  ;;  %3407 = vmatpush.msrb.mxu2 %v3056_v27  ;;  %v3057_v23 = vld [vmem:[#allocation4 + $0x338] sm:$0xff]  ;;  %v3100_v27 = vld [vmem:[#allocation4 + $0x490] sm:$0xff] }
 0x3f4   : > { %3392 = vmatpush.msrb.mxu1 %v2972_v28  ;;  %3408 = vmatpush.msrb.mxu2 %v3052_v3  ;;  %v2973_v28 = vld [vmem:[#allocation4 + $0x98] sm:$0xff] }
 0x3f5   : > { %v3053_v3 = vld [vmem:[#allocation4 + $0x318] sm:$0xff] }
 0x3f6   : > { %3393 = vmatpush.msrb.mxu1 %v2968_v44  ;;  %3409 = vmatpush.msrb.mxu2 %v3048_v35  ;;  %v2969_v44 = vld [vmem:[#allocation4 + $0x78] sm:$0xff] }
 0x3f7   : > { %v3049_v35 = vld [vmem:[#allocation4 + $0x2f8] sm:$0xff] }
 0x3f8   : > { %3394 = vmatpush.msrb.mxu1 %v2964_v21  ;;  %3410 = vmatpush.msrb.mxu2 %v3044_v39  ;;  %v2965_v21 = vld [vmem:[#allocation4 + $0x58] sm:$0xff] }
 0x3f9   : > { %v3045_v39 = vld [vmem:[#allocation4 + $0x2d8] sm:$0xff] }
 0x3fa   : > { %v2858_v51 = vpop.f32.mrf.mxu0  ;;  %3395 = vmatpush.msrb.mxu1 %v2960_v36  ;;  %3411 = vmatpush.msrb.mxu2 %v3040_v7  ;;  %v3084_v7 = vld [vmem:[#allocation4 + $0x410] sm:$0xff] }
 0x3fb   : > { %v6697_v25 = vadd.f32 %v2858_v51, %v2839_v59  ;;  %v2957_v59 = vld [vmem:[#allocation4 + $0x18] sm:$0xff] }
 0x3fc   : > { %3396 = vmatpush.msrb.mxu1 %v2956_v17  ;;  %3412 = vmatpush.msrb.mxu2 %v3036_v46  ;;  %v3037_v17 = vld [vmem:[#allocation4 + $0x298] sm:$0xff]  ;;  %v2945_v46 = vrot.slane %v6691_v57, 7 }
 0x3fd   : > { %3277 = vmatmul.f32.vlgmr.msrb.gmra.mxu3 %v6697_v25  ;;  %3397 = vmatmul.f32.vlgmr.msrb.gmra.mxu1 %v6688_v33 }
 0x3fe   : > { %3421 = vmatpush.msrb.mxu3 %v3144_v63  ;;  %3461 = vmatpush.msra.mxu1 %v3017_v47  ;;  %v3208_v63 = vld [vmem:[#allocation4 + $0x7f0] sm:$0xff]  ;;  %v2946_v47 = vrot.slane %v6697_v25, 6 }
 0x3ff   : > { %3413 = vmatpush.msrb.mxu2 %v3032_v61 }
 0x400   : > { %3422 = vmatpush.msrb.mxu3 %v3140_v8  ;;  %3462 = vmatpush.msra.mxu1 %v3013_v26  ;;  %v3033_v8 = vld [vmem:[#allocation4 + $0x278] sm:$0xff]  ;;  %v3204_v26 = vld [vmem:[#allocation4 + $0x7d0] sm:$0xff] }
 0x401   : > { %3414 = vmatpush.msrb.mxu2 %v3028_v10  ;;  %v2918_v29 = vpop.f32.mrf.mxu3  ;;  %v2948_v10 = vsel %vm1141_vm6, %v6688_v33, %v2945_v46  ;;  %v3662_v46 = vld [vmem:[#allocation4 + $0x360] sm:$0xff] }
 0x402   : > { %3423 = vmatpush.msrb.mxu3 %v3136_v24  ;;  %3463 = vmatpush.msra.mxu1 %v3009_v20  ;;  %v2919_v36 = vadd.f32 %v2918_v29, %v2899_v30  ;;  %v3141_v24 = vld [vmem:[#allocation4 + $0x5d8] sm:$0xff]  ;;  %v3602_v29 = vld [vmem:[#allocation4 + $0x180] sm:$0xff] }
 0x403   : > { %3415 = vmatpush.msrb.mxu2 %v3024_v49  ;;  %v3029_v20 = vld [vmem:[#allocation4 + $0x258] sm:$0xff] }
 0x404   : > { %3424 = vmatpush.msrb.mxu3 %v3132_v53  ;;  %3464 = vmatpush.msra.mxu1 %v3005_v4  ;;  %v3200_v53 = vld [vmem:[#allocation4 + $0x7b0] sm:$0xff]  ;;  %v3137_v4 = vld [vmem:[#allocation4 + $0x5b8] sm:$0xff] }
 0x405   : > { %3416 = vmatpush.msrb.mxu2 %v3020_v40  ;;  %3357 = vmatmul.f32.vlgmr.msra.gmra.mxu3 %v6697_v25  ;;  %v3025_v40 = vld [vmem:[#allocation4 + $0x238] sm:$0xff] }
 0x406   : > { %3417 = vmatmul.f32.vlgmr.msrb.gmra.mxu2 %v6691_v57  ;;  %3425 = vmatpush.msrb.mxu3 %v3128_v50  ;;  %v3196_v50 = vld [vmem:[#allocation4 + $0x790] sm:$0xff]  ;;  %v3193_v30 = vld [vmem:[#allocation4 + $0x778] sm:$0xff] }
 0x407   : > { %3465 = vmatpush.msra.mxu1 %v3001_v0  ;;  %3481 = vmatpush.msra.mxu2 %v3081_v12  ;;  %v3133_v0 = vld [vmem:[#allocation4 + $0x598] sm:$0xff] }
 0x408   : > { %3426 = vmatpush.msrb.mxu3 %v3124_v56  ;;  %v3021_v12 = vld [vmem:[#allocation4 + $0x218] sm:$0xff] }
 0x409   : > { %3466 = vmatpush.msra.mxu1 %v2997_v54  ;;  %3482 = vmatpush.msra.mxu2 %v3077_v58  ;;  %v3129_v56 = vld [vmem:[#allocation4 + $0x578] sm:$0xff]  ;;  %v3188_v54 = vld [vmem:[#allocation4 + $0x750] sm:$0xff] }
 0x40a   : > { %3427 = vmatpush.msrb.mxu3 %v3120_v55  ;;  %v3125_v58 = vld [vmem:[#allocation4 + $0x558] sm:$0xff]  ;;  %v3184_v55 = vld [vmem:[#allocation4 + $0x730] sm:$0xff] }
 0x40b   : > { %3467 = vmatpush.msra.mxu1 %v2993_v62  ;;  %3483 = vmatpush.msra.mxu2 %v3073_v5  ;;  %v3121_v62 = vld [vmem:[#allocation4 + $0x538] sm:$0xff]  ;;  %v3180_v5 = vld [vmem:[#allocation4 + $0x710] sm:$0xff] }
 0x40c   : > { %3428 = vmatpush.msrb.mxu3 %v3116_v2  ;;  %v3117_v2 = vld [vmem:[#allocation4 + $0x518] sm:$0xff] }
 0x40d   : > { %3468 = vmatpush.msra.mxu1 %v2989_v9  ;;  %3484 = vmatpush.msra.mxu2 %v3069_v37  ;;  %v3176_v9 = vld [vmem:[#allocation4 + $0x6f0] sm:$0xff]  ;;  %v3113_v37 = vld [vmem:[#allocation4 + $0x4f8] sm:$0xff] }
 0x40e   : > { %3429 = vmatpush.msrb.mxu3 %v3112_v32  ;;  %v3172_v32 = vld [vmem:[#allocation4 + $0x6d0] sm:$0xff] }
 0x40f   : > { %3469 = vmatpush.msra.mxu1 %v2985_v6  ;;  %3485 = vmatpush.msra.mxu2 %v3065_v41  ;;  %v3109_v6 = vld [vmem:[#allocation4 + $0x4d8] sm:$0xff] }
 0x410   : > { %3430 = vmatpush.msrb.mxu3 %v3108_v11  ;;  %v3105_v41 = vld [vmem:[#allocation4 + $0x4b8] sm:$0xff]  ;;  %v3164_v11 = vld [vmem:[#allocation4 + $0x690] sm:$0xff] }
 0x411   : > { %3470 = vmatpush.msra.mxu1 %v2981_v18  ;;  %3486 = vmatpush.msra.mxu2 %v3061_v15  ;;  %v3101_v18 = vld [vmem:[#allocation4 + $0x498] sm:$0xff]  ;;  %v3160_v15 = vld [vmem:[#allocation4 + $0x670] sm:$0xff] }
 0x412   : > { %3431 = vmatpush.msrb.mxu3 %v3104_v22  ;;  %v3097_v22 = vld [vmem:[#allocation4 + $0x478] sm:$0xff] }
 0x413   : > { %3471 = vmatpush.msra.mxu1 %v2977_v19  ;;  %3487 = vmatpush.msra.mxu2 %v3057_v23  ;;  %v3156_v19 = vld [vmem:[#allocation4 + $0x650] sm:$0xff]  ;;  %v3093_v23 = vld [vmem:[#allocation4 + $0x458] sm:$0xff] }
 0x414   : > { %3432 = vmatpush.msrb.mxu3 %v3100_v27  ;;  %v3152_v27 = vld [vmem:[#allocation4 + $0x630] sm:$0xff] }
 0x415   : > { %3472 = vmatpush.msra.mxu1 %v2973_v28  ;;  %3488 = vmatpush.msra.mxu2 %v3053_v3  ;;  %v3148_v28 = vld [vmem:[#allocation4 + $0x610] sm:$0xff]  ;;  %v3085_v3 = vld [vmem:[#allocation4 + $0x418] sm:$0xff] }
 0x416   : > { %3433 = vmatpush.msrb.mxu3 %v3096_v31  ;;  %v3205_v31 = vld [vmem:[#allocation4 + $0x7d8] sm:$0xff] }
 0x417   : > { %3473 = vmatpush.msra.mxu1 %v2969_v44  ;;  %3489 = vmatpush.msra.mxu2 %v3049_v35  ;;  %v3610_v44 = vld [vmem:[#allocation4 + $0x1c0] sm:$0xff]  ;;  %v3201_v35 = vld [vmem:[#allocation4 + $0x7b8] sm:$0xff] }
 0x418   : > { %3434 = vmatpush.msrb.mxu3 %v3092_v52  ;;  %v3197_v52 = vld [vmem:[#allocation4 + $0x798] sm:$0xff] }
 0x419   : > { %3474 = vmatpush.msra.mxu1 %v2965_v21  ;;  %3490 = vmatpush.msra.mxu2 %v3045_v39  ;;  %v3678_v21 = vld [vmem:[#allocation4 + $0x3e0] sm:$0xff] }
 0x41a   : > { %v2938_v43 = vpop.f32.mrf.mxu0  ;;  %3435 = vmatpush.msrb.mxu3 %v3088_v13  ;;  %v3674_v39 = vld [vmem:[#allocation4 + $0x3c0] sm:$0xff] }
 0x41b   : > { %v6705_v51 = vadd.f32 %v2938_v43, %v2919_v36  ;;  %3475 = vmatpush.msra.mxu1 %v2961_v48  ;;  %3491 = vmatpush.msra.mxu2 %v3041_v60  ;;  %v3598_v13 = vld [vmem:[#allocation4 + $0x160] sm:$0xff]  ;;  %v3185_v60 = vld [vmem:[#allocation4 + $0x738] sm:$0xff] }
 0x41c   : > { %3436 = vmatpush.msrb.mxu3 %v3084_v7  ;;  %v3594_v48 = vld [vmem:[#allocation4 + $0x140] sm:$0xff] }
 0x41d   : > { %v2947_v61 = vrot.slane %v6705_v51, 5  ;;  %3476 = vmatpush.msra.mxu1 %v2957_v59  ;;  %3492 = vmatpush.msra.mxu2 %v3037_v17  ;;  %v3590_v36 = vld [vmem:[#allocation4 + $0x120] sm:$0xff]  ;;  %v3181_v59 = vld [vmem:[#allocation4 + $0x718] sm:$0xff] }
 0x41e   : > { %3297 = vmatmul.f32.vlgmr.msra.gmra.mxu0 %v6705_v51  ;;  %3437 = vmatmul.f32.vlgmr.msrb.gmra.mxu3 %v6697_v25  ;;  %v3670_v7 = vld [vmem:[#allocation4 + $0x3a0] sm:$0xff] }
 0x41f   : > { %v2949_v42 = vsel %vm1143_vm7, %v2946_v47, %v2947_v61  ;;  %3441 = vmatpush.msra.mxu0 %v3208_v63  ;;  %3477 = vmatmul.f32.vlgmr.msra.gmra.mxu1 %v6688_v33  ;;  %v3192_v33 = vld [vmem:[#allocation4 + $0x770] sm:$0xff]  ;;  %v3666_v43 = vld [vmem:[#allocation4 + $0x380] sm:$0xff]  ;;  %v3177_v63 = vld [vmem:[#allocation4 + $0x6f8] sm:$0xff] }
 0x420   : > { %v2950_v49 = vsel %vm1145_vm8, %v2948_v10, %v2949_v42  ;;  %3501 = vmatpush.msra.mxu3 %v3145_v1  ;;  %3493 = vmatpush.msra.mxu2 %v3033_v8  ;;  %v3586_v17 = vld [vmem:[#allocation4 + $0x100] sm:$0xff]  ;;  %v3173_v1 = vld [vmem:[#allocation4 + $0x6d8] sm:$0xff] }
 0x421   : > { %3442 = vmatpush.msra.mxu0 %v3204_v26  ;;  %2952 = vst.msk [vmem:[#allocation3 + $0x3] ss:$8 sm:$0xf] %vm6592_vm9, %v2950_v49  ;;  %3821 = vmatpush.msrb.mxu1 %v3614_v38  ;;  %v3582_v47 = vld [vmem:[#allocation4 + $0xe0] sm:$0xff]  ;;  %v3169_v26 = vld [vmem:[#allocation4 + $0x6b8] sm:$0xff] }
 0x422   : > { %3502 = vmatpush.msra.mxu3 %v3141_v24  ;;  %3494 = vmatpush.msra.mxu2 %v3029_v20  ;;  %v3658_v61 = vld [vmem:[#allocation4 + $0x340] sm:$0xff]  ;;  %v3165_v20 = vld [vmem:[#allocation4 + $0x698] sm:$0xff] }
 0x423   : > { %3443 = vmatpush.msra.mxu0 %v3200_v53  ;;  %3822 = vmatpush.msrb.mxu1 %v3610_v44  ;;  %v3578_v8 = vld [vmem:[#allocation4 + $0xc0] sm:$0xff]  ;;  %v3587_v44 = vld [vmem:[#allocation4 + $0x108] sm:$0xff] }
 0x424   : > { %3503 = vmatpush.msra.mxu3 %v3137_v4  ;;  %3495 = vmatpush.msra.mxu2 %v3025_v40  ;;  %v3574_v10 = vld [vmem:[#allocation4 + $0xa0] sm:$0xff]  ;;  %v3161_v4 = vld [vmem:[#allocation4 + $0x678] sm:$0xff] }
 0x425   : > { %3444 = vmatpush.msra.mxu0 %v3196_v50  ;;  %3823 = vmatpush.msrb.mxu1 %v3606_v45  ;;  %v3654_v42 = vld [vmem:[#allocation4 + $0x320] sm:$0xff] }
 0x426   : > { %3504 = vmatpush.msra.mxu3 %v3133_v0  ;;  %3496 = vmatpush.msra.mxu2 %v3021_v12  ;;  %v3650_v24 = vld [vmem:[#allocation4 + $0x300] sm:$0xff]  ;;  %v3157_v0 = vld [vmem:[#allocation4 + $0x658] sm:$0xff] }
 0x427   : > { %3377 = vmatmul.f32.vlgmr.msrb.gmra.mxu0 %v6705_v51  ;;  %3497 = vmatmul.f32.vlgmr.msra.gmra.mxu2 %v6691_v57  ;;  %v3168_v57 = vld [vmem:[#allocation4 + $0x6b0] sm:$0xff]  ;;  %v3570_v49 = vld [vmem:[#allocation4 + $0x80] sm:$0xff] }
 0x428   : > { %3445 = vmatpush.msra.mxu0 %v3192_v33  ;;  %3505 = vmatpush.msra.mxu3 %v3129_v56  ;;  %v3646_v53 = vld [vmem:[#allocation4 + $0x2e0] sm:$0xff]  ;;  %v3153_v33 = vld [vmem:[#allocation4 + $0x638] sm:$0xff] }
 0x429   : > { %3841 = vmatpush.msrb.mxu2 %v3678_v21  ;;  %3824 = vmatpush.msrb.mxu1 %v3602_v29  ;;  %v3566_v40 = vld [vmem:[#allocation4 + $0x60] sm:$0xff]  ;;  %v3149_v56 = vld [vmem:[#allocation4 + $0x618] sm:$0xff]  ;;  %v3663_v29 = vld [vmem:[#allocation4 + $0x368] sm:$0xff] }
 0x42a   : > { %3446 = vmatpush.msra.mxu0 %v3188_v54  ;;  %3506 = vmatpush.msra.mxu3 %v3125_v58  ;;  %v3642_v50 = vld [vmem:[#allocation4 + $0x2c0] sm:$0xff] }
 0x42b   : > { %3842 = vmatpush.msrb.mxu2 %v3674_v39  ;;  %3825 = vmatpush.msrb.mxu1 %v3598_v13  ;;  %v3562_v12 = vld [vmem:[#allocation4 + $0x40] sm:$0xff]  ;;  %v3579_v39 = vld [vmem:[#allocation4 + $0xc8] sm:$0xff] }
 0x42c   : > { %3447 = vmatpush.msra.mxu0 %v3184_v55  ;;  %3507 = vmatpush.msra.mxu3 %v3121_v62  ;;  %v3558_v54 = vld [vmem:[#allocation4 + $0x20] sm:$0xff] }
 0x42d   : > { %3826 = vmatpush.msrb.mxu1 %v3594_v48  ;;  %3843 = vmatpush.msrb.mxu2 %v3670_v7  ;;  %v3638_v58 = vld [vmem:[#allocation4 + $0x2a0] sm:$0xff]  ;;  %v3655_v48 = vld [vmem:[#allocation4 + $0x328] sm:$0xff] }
 0x42e   : > { %3448 = vmatpush.msra.mxu0 %v3180_v5  ;;  %3508 = vmatpush.msra.mxu3 %v3117_v2  ;;  %v3554_v55 = vld [vmem:[#allocation4] sm:$0xff]  ;;  %v3615_v2 = vld [vmem:[#allocation4 + $0x1e8] sm:$0xff] }
 0x42f   : > { %3827 = vmatpush.msrb.mxu1 %v3590_v36  ;;  %3844 = vmatpush.msrb.mxu2 %v3666_v43  ;;  %v3634_v62 = vld [vmem:[#allocation4 + $0x280] sm:$0xff]  ;;  %v3571_v36 = vld [vmem:[#allocation4 + $0x88] sm:$0xff] }
 0x430   : > { %3449 = vmatpush.msra.mxu0 %v3176_v9  ;;  %3509 = vmatpush.msra.mxu3 %v3113_v37  ;;  %v3742_v5 = vld [vmem:[#allocation4 + $0x5e0] sm:$0xff]  ;;  %v3651_v7 = vld [vmem:[#allocation4 + $0x308] sm:$0xff] }
 0x431   : > { %3828 = vmatpush.msrb.mxu1 %v3586_v17  ;;  %3845 = vmatpush.msrb.mxu2 %v3662_v46  ;;  %v3738_v9 = vld [vmem:[#allocation4 + $0x5c0] sm:$0xff]  ;;  %v3647_v17 = vld [vmem:[#allocation4 + $0x2e8] sm:$0xff] }
 0x432   : > { %3450 = vmatpush.msra.mxu0 %v3172_v32  ;;  %3510 = vmatpush.msra.mxu3 %v3109_v6  ;;  %v3630_v37 = vld [vmem:[#allocation4 + $0x260] sm:$0xff]  ;;  %v3611_v32 = vld [vmem:[#allocation4 + $0x1c8] sm:$0xff] }
 0x433   : > { %3829 = vmatpush.msrb.mxu1 %v3582_v47  ;;  %3846 = vmatpush.msrb.mxu2 %v3658_v61  ;;  %v3626_v6 = vld [vmem:[#allocation4 + $0x240] sm:$0xff]  ;;  %v3643_v47 = vld [vmem:[#allocation4 + $0x2c8] sm:$0xff] }
 0x434   : > { %3451 = vmatpush.msra.mxu0 %v3168_v57  ;;  %3511 = vmatpush.msra.mxu3 %v3105_v41  ;;  %v3734_v57 = vld [vmem:[#allocation4 + $0x5a0] sm:$0xff]  ;;  %v3607_v41 = vld [vmem:[#allocation4 + $0x1a8] sm:$0xff] }
 0x435   : > { %3830 = vmatpush.msrb.mxu1 %v3578_v8  ;;  %3847 = vmatpush.msrb.mxu2 %v3654_v42  ;;  %v3714_v38 = vld [vmem:[#allocation4 + $0x500] sm:$0xff]  ;;  %v3639_v8 = vld [vmem:[#allocation4 + $0x2a8] sm:$0xff] }
 0x436   : > { %3452 = vmatpush.msra.mxu0 %v3164_v11  ;;  %3512 = vmatpush.msra.mxu3 %v3101_v18  ;;  %v3622_v11 = vld [vmem:[#allocation4 + $0x220] sm:$0xff]  ;;  %v3635_v42 = vld [vmem:[#allocation4 + $0x288] sm:$0xff] }
 0x437   : > { %3831 = vmatpush.msrb.mxu1 %v3574_v10  ;;  %3848 = vmatpush.msrb.mxu2 %v3650_v24  ;;  %v3730_v18 = vld [vmem:[#allocation4 + $0x580] sm:$0xff]  ;;  %v3555_v10 = vld [vmem:[#allocation4 + $0x8] sm:$0xff] }
 0x438   : > { %3453 = vmatpush.msra.mxu0 %v3160_v15  ;;  %3513 = vmatpush.msra.mxu3 %v3097_v22  ;;  %v3603_v15 = vld [vmem:[#allocation4 + $0x188] sm:$0xff]  ;;  %v3726_v22 = vld [vmem:[#allocation4 + $0x560] sm:$0xff] }
 0x439   : > { %3832 = vmatpush.msrb.mxu1 %v3570_v49  ;;  %3849 = vmatpush.msrb.mxu2 %v3646_v53  ;;  %v3710_v45 = vld [vmem:[#allocation4 + $0x4e0] sm:$0xff]  ;;  %v3631_v49 = vld [vmem:[#allocation4 + $0x268] sm:$0xff] }
 0x43a   : > { %3454 = vmatpush.msra.mxu0 %v3156_v19  ;;  %3514 = vmatpush.msra.mxu3 %v3093_v23  ;;  %v3618_v19 = vld [vmem:[#allocation4 + $0x200] sm:$0xff]  ;;  %v3679_v23 = vld [vmem:[#allocation4 + $0x3e8] sm:$0xff] }
 0x43b   : > { %3833 = vmatpush.msrb.mxu1 %v3566_v40  ;;  %3850 = vmatpush.msrb.mxu2 %v3642_v50  ;;  %v3706_v21 = vld [vmem:[#allocation4 + $0x4c0] sm:$0xff]  ;;  %v3627_v40 = vld [vmem:[#allocation4 + $0x248] sm:$0xff] }
 0x43c   : > { %3455 = vmatpush.msra.mxu0 %v3152_v27  ;;  %3515 = vmatpush.msra.mxu3 %v3089_v34  ;;  %v3722_v27 = vld [vmem:[#allocation4 + $0x540] sm:$0xff]  ;;  %v3595_v34 = vld [vmem:[#allocation4 + $0x148] sm:$0xff] }
 0x43d   : > { %3834 = vmatpush.msrb.mxu1 %v3562_v12  ;;  %3851 = vmatpush.msrb.mxu2 %v3638_v58  ;;  %v3702_v13 = vld [vmem:[#allocation4 + $0x4a0] sm:$0xff]  ;;  %v3623_v12 = vld [vmem:[#allocation4 + $0x228] sm:$0xff] }
 0x43e   : > { %3456 = vmatpush.msra.mxu0 %v3148_v28  ;;  %3516 = vmatpush.msra.mxu3 %v3085_v3  ;;  %v3675_v28 = vld [vmem:[#allocation4 + $0x3c8] sm:$0xff]  ;;  %v3718_v3 = vld [vmem:[#allocation4 + $0x520] sm:$0xff] }
 0x43f   : > { %3457 = vmatmul.f32.vlgmr.msra.gmra.mxu0 %v6705_v51  ;;  %3517 = vmatmul.f32.vlgmr.msra.gmra.mxu3 %v6697_v25  ;;  %v3189_v25 = vld [vmem:[#allocation4 + $0x758] sm:$0xff]  ;;  %v3694_v43 = vld [vmem:[#allocation4 + $0x460] sm:$0xff] }
 0x440   : > { %3521 = vmatpush.msrb.mxu0 %v3209_v14  ;;  %3835 = vmatpush.msrb.mxu1 %v3558_v54  ;;  %v3591_v14 = vld [vmem:[#allocation4 + $0x128] sm:$0xff]  ;;  %v3690_v46 = vld [vmem:[#allocation4 + $0x440] sm:$0xff] }
 0x441   : > { %3861 = vmatpush.msrb.mxu3 %v3742_v5  ;;  %3852 = vmatpush.msrb.mxu2 %v3634_v62  ;;  %v3686_v61 = vld [vmem:[#allocation4 + $0x420] sm:$0xff]  ;;  %v3619_v54 = vld [vmem:[#allocation4 + $0x208] sm:$0xff] }
 0x442   : > { %3522 = vmatpush.msrb.mxu0 %v3205_v31  ;;  %3836 = vmatpush.msrb.mxu1 %v3554_v55  ;;  %v3671_v31 = vld [vmem:[#allocation4 + $0x3a8] sm:$0xff]  ;;  %v3806_v24 = vld [vmem:[#allocation4 + $0x7e0] sm:$0xff] }
 0x443   : > { %3862 = vmatpush.msrb.mxu3 %v3738_v9  ;;  %3853 = vmatpush.msrb.mxu2 %v3630_v37  ;;  %v3802_v53 = vld [vmem:[#allocation4 + $0x7c0] sm:$0xff]  ;;  %v3727_v55 = vld [vmem:[#allocation4 + $0x568] sm:$0xff] }
 0x444   : > { %3523 = vmatpush.msrb.mxu0 %v3201_v35  ;;  %3901 = vmatpush.msra.mxu1 %v3615_v2  ;;  %v3667_v35 = vld [vmem:[#allocation4 + $0x388] sm:$0xff]  ;;  %v3798_v50 = vld [vmem:[#allocation4 + $0x7a0] sm:$0xff] }
 0x445   : > { %3863 = vmatpush.msrb.mxu3 %v3734_v57  ;;  %3854 = vmatpush.msrb.mxu2 %v3626_v6  ;;  %v3790_v58 = vld [vmem:[#allocation4 + $0x760] sm:$0xff]  ;;  %v3723_v5 = vld [vmem:[#allocation4 + $0x548] sm:$0xff] }
 0x446   : > { %3524 = vmatpush.msrb.mxu0 %v3197_v52  ;;  %3902 = vmatpush.msra.mxu1 %v3611_v32  ;;  %v3583_v52 = vld [vmem:[#allocation4 + $0xe8] sm:$0xff]  ;;  %v3786_v62 = vld [vmem:[#allocation4 + $0x740] sm:$0xff] }
 0x447   : > { %3864 = vmatpush.msrb.mxu3 %v3730_v18  ;;  %3855 = vmatpush.msrb.mxu2 %v3622_v11  ;;  %v3782_v2 = vld [vmem:[#allocation4 + $0x720] sm:$0xff]  ;;  %v3719_v9 = vld [vmem:[#allocation4 + $0x528] sm:$0xff] }
 0x448   : > { %3525 = vmatpush.msrb.mxu0 %v3193_v30  ;;  %3903 = vmatpush.msra.mxu1 %v3607_v41  ;;  %v3659_v30 = vld [vmem:[#allocation4 + $0x348] sm:$0xff]  ;;  %v3778_v37 = vld [vmem:[#allocation4 + $0x700] sm:$0xff] }
 0x449   : > { %3865 = vmatpush.msrb.mxu3 %v3726_v22  ;;  %3856 = vmatpush.msrb.mxu2 %v3618_v19  ;;  %v3715_v32 = vld [vmem:[#allocation4 + $0x508] sm:$0xff]  ;;  %v3774_v6 = vld [vmem:[#allocation4 + $0x6e0] sm:$0xff] }
 0x44a   : > { %3526 = vmatpush.msrb.mxu0 %v3189_v25  ;;  %3904 = vmatpush.msra.mxu1 %v3603_v15  ;;  %v3575_v25 = vld [vmem:[#allocation4 + $0xa8] sm:$0xff]  ;;  %v3770_v41 = vld [vmem:[#allocation4 + $0x6c0] sm:$0xff] }
 0x44b   : > { %3921 = vmatpush.msra.mxu2 %v3679_v23  ;;  %3866 = vmatpush.msrb.mxu3 %v3722_v27  ;;  %v3711_v57 = vld [vmem:[#allocation4 + $0x4e8] sm:$0xff]  ;;  %v3766_v22 = vld [vmem:[#allocation4 + $0x6a0] sm:$0xff] }
 0x44c   : > { %3527 = vmatpush.msrb.mxu0 %v3185_v60  ;;  %v3698_v60 = vld [vmem:[#allocation4 + $0x480] sm:$0xff]  ;;  %v3707_v18 = vld [vmem:[#allocation4 + $0x4c8] sm:$0xff] }
 0x44d   : > { %3922 = vmatpush.msra.mxu2 %v3675_v28  ;;  %3867 = vmatpush.msrb.mxu3 %v3718_v3  ;;  %v6723_v11 = vld [vmem:[#allocation3 + $0x4] ss:$8 sm:$0xf] }
 0x44e   : > { %3528 = vmatpush.msrb.mxu0 %v3181_v59  ;;  %v3567_v59 = vld [vmem:[#allocation4 + $0x68] sm:$0xff]  ;;  %v3762_v27 = vld [vmem:[#allocation4 + $0x680] sm:$0xff] }
 0x44f   : > { %3923 = vmatpush.msra.mxu2 %v3671_v31  ;;  %3868 = vmatpush.msrb.mxu3 %v3714_v38  ;;  %v3703_v19 = vld [vmem:[#allocation4 + $0x4a8] sm:$0xff] }
 0x450   : > { %3529 = vmatpush.msrb.mxu0 %v3177_v63  ;;  %v3563_v63 = vld [vmem:[#allocation4 + $0x48] sm:$0xff] }
 0x451   : > { %3924 = vmatpush.msra.mxu2 %v3667_v35  ;;  %3869 = vmatpush.msrb.mxu3 %v3710_v45  ;;  %v3695_v31 = vld [vmem:[#allocation4 + $0x468] sm:$0xff] }
 0x452   : > { %3530 = vmatpush.msrb.mxu0 %v3173_v1  ;;  %v3559_v1 = vld [vmem:[#allocation4 + $0x28] sm:$0xff] }
 0x453   : > { %3925 = vmatpush.msra.mxu2 %v3663_v29  ;;  %3870 = vmatpush.msrb.mxu3 %v3706_v21  ;;  %v3691_v35 = vld [vmem:[#allocation4 + $0x448] sm:$0xff] }
 0x454   : > { %3531 = vmatpush.msrb.mxu0 %v3169_v26  ;;  %v3682_v26 = vld [vmem:[#allocation4 + $0x400] sm:$0xff] }
 0x455   : > { %3926 = vmatpush.msra.mxu2 %v3659_v30  ;;  %3871 = vmatpush.msrb.mxu3 %v3702_v13  ;;  %v3750_v30 = vld [vmem:[#allocation4 + $0x620] sm:$0xff]  ;;  %v3687_v13 = vld [vmem:[#allocation4 + $0x428] sm:$0xff] }
 0x456   : > { %3532 = vmatpush.msrb.mxu0 %v3165_v20  ;;  %v3743_v20 = vld [vmem:[#allocation4 + $0x5e8] sm:$0xff] }
 0x457   : > { %3927 = vmatpush.msra.mxu2 %v3655_v48  ;;  %3872 = vmatpush.msrb.mxu3 %v3698_v60  ;;  %v3612_v60 = vld [vmem:[#allocation4 + $0x1d0] sm:$0xff] }
 0x458   : > { %3533 = vmatpush.msrb.mxu0 %v3161_v4  ;;  %v3739_v4 = vld [vmem:[#allocation4 + $0x5c8] sm:$0xff] }
 0x459   : > { %3928 = vmatpush.msra.mxu2 %v3651_v7  ;;  %3873 = vmatpush.msrb.mxu3 %v3694_v43  ;;  %v3683_v7 = vld [vmem:[#allocation4 + $0x408] sm:$0xff] }
 0x45a   : > { %3534 = vmatpush.msrb.mxu0 %v3157_v0  ;;  %v3735_v0 = vld [vmem:[#allocation4 + $0x5a8] sm:$0xff]  ;;  %v3238_v15 = vpop.f32.mrf.mxu1 }
 0x45b   : > { %3929 = vmatpush.msra.mxu2 %v3647_v17  ;;  %3874 = vmatpush.msrb.mxu3 %v3690_v46  ;;  %v3608_v46 = vld [vmem:[#allocation4 + $0x1b0] sm:$0xff] }
 0x45c   : > { %3535 = vmatpush.msrb.mxu0 %v3153_v33  ;;  %v3794_v33 = vld [vmem:[#allocation4 + $0x780] sm:$0xff] }
 0x45d   : > { %3930 = vmatpush.msra.mxu2 %v3643_v47  ;;  %3875 = vmatpush.msrb.mxu3 %v3686_v61  ;;  %v3604_v61 = vld [vmem:[#allocation4 + $0x190] sm:$0xff] }
 0x45e   : > { %3536 = vmatpush.msrb.mxu0 %v3149_v56  ;;  %v3731_v56 = vld [vmem:[#allocation4 + $0x588] sm:$0xff] }
 0x45f   : > { %3537 = vmatmul.f32.vlgmr.msrb.gmra.mxu0 %v6705_v51  ;;  %v3599_v51 = vld [vmem:[#allocation4 + $0x168] sm:$0xff]  ;;  %3931 = vmatpush.msra.mxu2 %v3639_v8 }
 0x460   : > { %3905 = vmatpush.msra.mxu1 %v3599_v51  ;;  %3876 = vmatpush.msrb.mxu3 %v3682_v26  ;;  %v3213_v51 = vperm.slane %v6723_v11, 0  ;;  %v3799_v8 = vld [vmem:[#allocation4 + $0x7a8] sm:$0xff] }
 0x461   : > { %3932 = vmatpush.msra.mxu2 %v3635_v42  ;;  %3881 = vmatpush.msra.mxu0 %v3806_v24  ;;  %v3795_v42 = vld [vmem:[#allocation4 + $0x788] sm:$0xff] }
 0x462   : > { %3906 = vmatpush.msra.mxu1 %v3595_v34  ;;  %3941 = vmatpush.msra.mxu3 %v3743_v20  ;;  %v3699_v34 = vld [vmem:[#allocation4 + $0x488] sm:$0xff]  ;;  %v3239_v28 = vadd.f32 %v3238_v15, %v3213_v51  ;;  %v3318_v29 = vpop.f32.mrf.mxu1  ;;  %v3680_v20 = vld [vmem:[#allocation4 + $0x3f0] sm:$0xff] }
 0x463   : > { %3933 = vmatpush.msra.mxu2 %v3631_v49  ;;  %3882 = vmatpush.msra.mxu0 %v3802_v53  ;;  %v3596_v49 = vld [vmem:[#allocation4 + $0x150] sm:$0xff]  ;;  %v3763_v51 = vld [vmem:[#allocation4 + $0x688] sm:$0xff] }
 0x464   : > { %3907 = vmatpush.msra.mxu1 %v3591_v14  ;;  %3942 = vmatpush.msra.mxu3 %v3739_v4  ;;  %v3758_v14 = vld [vmem:[#allocation4 + $0x660] sm:$0xff]  ;;  %v3676_v53 = vld [vmem:[#allocation4 + $0x3d0] sm:$0xff]  ;;  %v3791_v4 = vld [vmem:[#allocation4 + $0x768] sm:$0xff] }
 0x465   : > { %3934 = vmatpush.msra.mxu2 %v3627_v40  ;;  %3883 = vmatpush.msra.mxu0 %v3798_v50  ;;  %v3592_v40 = vld [vmem:[#allocation4 + $0x130] sm:$0xff] }
 0x466   : > { %3908 = vmatpush.msra.mxu1 %v3587_v44  ;;  %3943 = vmatpush.msra.mxu3 %v3735_v0  ;;  %v3754_v44 = vld [vmem:[#allocation4 + $0x640] sm:$0xff]  ;;  %v3672_v50 = vld [vmem:[#allocation4 + $0x3b0] sm:$0xff]  ;;  %v3787_v0 = vld [vmem:[#allocation4 + $0x748] sm:$0xff] }
 0x467   : > { %3935 = vmatpush.msra.mxu2 %v3623_v12  ;;  %3884 = vmatpush.msra.mxu0 %v3794_v33  ;;  %v3588_v12 = vld [vmem:[#allocation4 + $0x110] sm:$0xff] }
 0x468   : > { %3909 = vmatpush.msra.mxu1 %v3583_v52  ;;  %3944 = vmatpush.msra.mxu3 %v3731_v56  ;;  %v3258_v23 = vpop.f32.mrf.mxu2  ;;  %v3668_v33 = vld [vmem:[#allocation4 + $0x390] sm:$0xff]  ;;  %v3783_v56 = vld [vmem:[#allocation4 + $0x728] sm:$0xff] }
 0x469   : > { %3936 = vmatpush.msra.mxu2 %v3619_v54  ;;  %3885 = vmatpush.msra.mxu0 %v3790_v58  ;;  %v3259_v38 = vadd.f32 %v3258_v23, %v3239_v28  ;;  %v3584_v54 = vld [vmem:[#allocation4 + $0xf0] sm:$0xff] }
 0x46a   : > { %3910 = vmatpush.msra.mxu1 %v3579_v39  ;;  %3945 = vmatpush.msra.mxu3 %v3727_v55  ;;  %v3616_v39 = vld [vmem:[#allocation4 + $0x1f0] sm:$0xff]  ;;  %v3779_v55 = vld [vmem:[#allocation4 + $0x708] sm:$0xff] }
 0x46b   : > { %3886 = vmatpush.msra.mxu0 %v3786_v62  ;;  %v3664_v58 = vld [vmem:[#allocation4 + $0x370] sm:$0xff] }
 0x46c   : > { %3911 = vmatpush.msra.mxu1 %v3575_v25  ;;  %3946 = vmatpush.msra.mxu3 %v3723_v5  ;;  %v3214_v25 = vperm.slane %v6723_v11, 1  ;;  %v3580_v62 = vld [vmem:[#allocation4 + $0xd0] sm:$0xff] }
 0x46d   : > { %3887 = vmatpush.msra.mxu0 %v3782_v2  ;;  %v3660_v5 = vld [vmem:[#allocation4 + $0x350] sm:$0xff]  ;;  %v3775_v2 = vld [vmem:[#allocation4 + $0x6e8] sm:$0xff] }
 0x46e   : > { %3912 = vmatpush.msra.mxu1 %v3571_v36  ;;  %3947 = vmatpush.msra.mxu3 %v3719_v9  ;;  %v3746_v36 = vld [vmem:[#allocation4 + $0x600] sm:$0xff]  ;;  %v3319_v43 = vadd.f32 %v3318_v29, %v3214_v25  ;;  %v3576_v9 = vld [vmem:[#allocation4 + $0xb0] sm:$0xff] }
 0x46f   : > { %3888 = vmatpush.msra.mxu0 %v3778_v37  ;;  %v3656_v37 = vld [vmem:[#allocation4 + $0x330] sm:$0xff] }
 0x470   : > { %3913 = vmatpush.msra.mxu1 %v3567_v59  ;;  %3948 = vmatpush.msra.mxu3 %v3715_v32  ;;  %v3338_v48 = vpop.f32.mrf.mxu2  ;;  %v3807_v59 = vld [vmem:[#allocation4 + $0x7e8] sm:$0xff]  ;;  %v3568_v15 = vld [vmem:[#allocation4 + $0x70] sm:$0xff] }
 0x471   : > { %3889 = vmatpush.msra.mxu0 %v3774_v6  ;;  %v3339_v47 = vadd.f32 %v3338_v48, %v3319_v43  ;;  %v3771_v32 = vld [vmem:[#allocation4 + $0x6c8] sm:$0xff]  ;;  %v3572_v6 = vld [vmem:[#allocation4 + $0x90] sm:$0xff] }
 0x472   : > { %3914 = vmatpush.msra.mxu1 %v3563_v63  ;;  %3949 = vmatpush.msra.mxu3 %v3711_v57  ;;  %v3803_v63 = vld [vmem:[#allocation4 + $0x7c8] sm:$0xff]  ;;  %v3652_v57 = vld [vmem:[#allocation4 + $0x310] sm:$0xff] }
 0x473   : > { %3890 = vmatpush.msra.mxu0 %v3770_v41  ;;  %v3767_v41 = vld [vmem:[#allocation4 + $0x6a8] sm:$0xff]  ;;  %v3644_v28 = vld [vmem:[#allocation4 + $0x2d0] sm:$0xff] }
 0x474   : > { %3915 = vmatpush.msra.mxu1 %v3559_v1  ;;  %3950 = vmatpush.msra.mxu3 %v3707_v18  ;;  %v3636_v29 = vld [vmem:[#allocation4 + $0x290] sm:$0xff] }
 0x475   : > { %3891 = vmatpush.msra.mxu0 %v3766_v22  ;;  %v3215_v22 = vperm.slane %v6723_v11, 2  ;;  %v3744_v48 = vld [vmem:[#allocation4 + $0x5f0] sm:$0xff] }
 0x476   : > { %3916 = vmatpush.msra.mxu1 %v3555_v10  ;;  %3951 = vmatpush.msra.mxu3 %v3703_v19  ;;  %v3600_v10 = vld [vmem:[#allocation4 + $0x170] sm:$0xff] }
 0x477   : > { %3892 = vmatpush.msra.mxu0 %v3762_v27  ;;  %v3648_v19 = vld [vmem:[#allocation4 + $0x2f0] sm:$0xff] }
 0x478   : > { %3952 = vmatpush.msra.mxu3 %v3699_v34  ;;  %v3564_v27 = vld [vmem:[#allocation4 + $0x50] sm:$0xff] }
 0x479   : > { %3893 = vmatpush.msra.mxu0 %v3758_v14  ;;  %v3740_v43 = vld [vmem:[#allocation4 + $0x5d0] sm:$0xff] }
 0x47a   : > { %3953 = vmatpush.msra.mxu3 %v3695_v31  ;;  %v3398_v18 = vpop.f32.mrf.mxu1  ;;  %v3560_v31 = vld [vmem:[#allocation4 + $0x30] sm:$0xff] }
 0x47b   : > { %3894 = vmatpush.msra.mxu0 %v3754_v44  ;;  %v3399_v34 = vadd.f32 %v3398_v18, %v3215_v22  ;;  %v3640_v44 = vld [vmem:[#allocation4 + $0x2b0] sm:$0xff] }
 0x47c   : > { %3954 = vmatpush.msra.mxu3 %v3691_v35  ;;  %v3755_v35 = vld [vmem:[#allocation4 + $0x648] sm:$0xff]  ;;  %v3696_v18 = vld [vmem:[#allocation4 + $0x470] sm:$0xff] }
 0x47d   : > { %3895 = vmatpush.msra.mxu0 %v3750_v30  ;;  %v3617_v30 = vld [vmem:[#allocation4 + $0x1f8] sm:$0xff] }
 0x47e   : > { %3955 = vmatpush.msra.mxu3 %v3687_v13  ;;  %v3751_v13 = vld [vmem:[#allocation4 + $0x628] sm:$0xff] }
 0x47f   : > { %3896 = vmatpush.msra.mxu0 %v3746_v36  ;;  %v3613_v36 = vld [vmem:[#allocation4 + $0x1d8] sm:$0xff] }
 0x480   : > { %v3278_v3 = vpop.f32.mrf.mxu3  ;;  %3956 = vmatpush.msra.mxu3 %v3683_v7  ;;  %v3747_v7 = vld [vmem:[#allocation4 + $0x608] sm:$0xff] }
 0x481   : > { %v3279_v45 = vadd.f32 %v3278_v3, %v3259_v38  ;;  %3961 = vmatpush.msrb.mxu0 %v3807_v59  ;;  %v3759_v3 = vld [vmem:[#allocation4 + $0x668] sm:$0xff]  ;;  %v3628_v59 = vld [vmem:[#allocation4 + $0x250] sm:$0xff] }
 0x483   : > { %3962 = vmatpush.msrb.mxu0 %v3803_v63  ;;  %v3624_v63 = vld [vmem:[#allocation4 + $0x230] sm:$0xff] }
 0x485   : > { %3963 = vmatpush.msrb.mxu0 %v3799_v8  ;;  %v3728_v8 = vld [vmem:[#allocation4 + $0x570] sm:$0xff] }
 0x487   : > { %3964 = vmatpush.msrb.mxu0 %v3795_v42  ;;  %v3724_v42 = vld [vmem:[#allocation4 + $0x550] sm:$0xff] }
 0x488   : > { %v3358_v17 = vpop.f32.mrf.mxu3 }
 0x489   : > { %v3359_v1 = vadd.f32 %v3358_v17, %v3339_v47  ;;  %3965 = vmatpush.msrb.mxu0 %v3791_v4  ;;  %v3418_v23 = vpop.f32.mrf.mxu2  ;;  %v3609_v17 = vld [vmem:[#allocation4 + $0x1b8] sm:$0xff] }
 0x48a   : > { %v3419_v38 = vadd.f32 %v3418_v23, %v3399_v34  ;;  %v3605_v47 = vld [vmem:[#allocation4 + $0x198] sm:$0xff]  ;;  %v3692_v23 = vld [vmem:[#allocation4 + $0x450] sm:$0xff] }
 0x48b   : > { %3966 = vmatpush.msrb.mxu0 %v3787_v0  ;;  %v3593_v4 = vld [vmem:[#allocation4 + $0x138] sm:$0xff] }
 0x48c   : > { %v3589_v0 = vld [vmem:[#allocation4 + $0x118] sm:$0xff] }
 0x48d   : > { %3967 = vmatpush.msrb.mxu0 %v3783_v56  ;;  %v3585_v56 = vld [vmem:[#allocation4 + $0xf8] sm:$0xff] }
 0x48f   : > { %3968 = vmatpush.msrb.mxu0 %v3779_v55  ;;  %v3581_v55 = vld [vmem:[#allocation4 + $0xd8] sm:$0xff] }
 0x491   : > { %3969 = vmatpush.msrb.mxu0 %v3775_v2  ;;  %v3577_v2 = vld [vmem:[#allocation4 + $0xb8] sm:$0xff] }
 0x493   : > { %3970 = vmatpush.msrb.mxu0 %v3771_v32  ;;  %v3573_v32 = vld [vmem:[#allocation4 + $0x98] sm:$0xff] }
 0x495   : > { %3971 = vmatpush.msrb.mxu0 %v3767_v41  ;;  %v3216_v41 = vperm.slane %v6723_v11, 3  ;;  %v3641_v11 = vld [vmem:[#allocation4 + $0x2b8] sm:$0xff] }
 0x497   : > { %3972 = vmatpush.msrb.mxu0 %v3763_v51 }
 0x499   : > { %3973 = vmatpush.msrb.mxu0 %v3759_v3 }
 0x49b   : > { %v3298_v52 = vpop.f32.mrf.mxu0  ;;  %3974 = vmatpush.msrb.mxu0 %v3755_v35  ;;  %v3557_v35 = vld [vmem:[#allocation4 + $0x18] sm:$0xff] }
 0x49c   : > { %v6726_v21 = vadd.f32 %v3298_v52, %v3279_v45  ;;  %v3556_v45 = vld [vmem:[#allocation4 + $0x10] sm:$0xff] }
 0x49d   : > { %3975 = vmatpush.msrb.mxu0 %v3751_v13  ;;  %v3745_v13 = vld [vmem:[#allocation4 + $0x5f8] sm:$0xff] }
 0x49e   : > { %3837 = vmatmul.f32.vlgmr.msrb.gmra.mxu1 %v6726_v21 }
 0x49f   : > { %3981 = vmatpush.msrb.mxu1 %v3616_v39  ;;  %3976 = vmatpush.msrb.mxu0 %v3747_v7  ;;  %v3804_v7 = vld [vmem:[#allocation4 + $0x7d0] sm:$0xff] }
 0x4a1   : > { %3982 = vmatpush.msrb.mxu1 %v3612_v60  ;;  %v3438_v14 = vpop.f32.mrf.mxu3  ;;  %v3632_v60 = vld [vmem:[#allocation4 + $0x270] sm:$0xff] }
 0x4a2   : > { %v3439_v52 = vadd.f32 %v3438_v14, %v3419_v38  ;;  %v3688_v14 = vld [vmem:[#allocation4 + $0x430] sm:$0xff] }
 0x4a3   : > { %3983 = vmatpush.msrb.mxu1 %v3608_v46  ;;  %v3736_v46 = vld [vmem:[#allocation4 + $0x5b0] sm:$0xff] }
 0x4a4   : > { %v3378_v26 = vpop.f32.mrf.mxu0 }
 0x4a5   : > { %v6730_v24 = vadd.f32 %v3378_v26, %v3359_v1  ;;  %3984 = vmatpush.msrb.mxu1 %v3604_v61  ;;  %v3732_v61 = vld [vmem:[#allocation4 + $0x590] sm:$0xff]  ;;  %v3601_v26 = vld [vmem:[#allocation4 + $0x178] sm:$0xff] }
 0x4a6   : > { %3917 = vmatmul.f32.vlgmr.msra.gmra.mxu1 %v6726_v21  ;;  %v3620_v1 = vld [vmem:[#allocation4 + $0x210] sm:$0xff] }
 0x4a7   : > { %3857 = vmatmul.f32.vlgmr.msrb.gmra.mxu2 %v6730_v24  ;;  %3985 = vmatpush.msrb.mxu1 %v3600_v10  ;;  %v3681_v10 = vld [vmem:[#allocation4 + $0x3f8] sm:$0xff] }
 0x4a8   : > { %4001 = vmatpush.msrb.mxu2 %v3680_v20  ;;  %v3597_v20 = vld [vmem:[#allocation4 + $0x158] sm:$0xff] }
 0x4a9   : > { %3986 = vmatpush.msrb.mxu1 %v3596_v49  ;;  %v3677_v49 = vld [vmem:[#allocation4 + $0x3d8] sm:$0xff] }
 0x4aa   : > { %4002 = vmatpush.msrb.mxu2 %v3676_v53  ;;  %v3720_v53 = vld [vmem:[#allocation4 + $0x530] sm:$0xff]  ;;  %v3498_v22 = vpop.f32.mrf.mxu2 }
 0x4ab   : > { %3987 = vmatpush.msrb.mxu1 %v3592_v40  ;;  %v3673_v40 = vld [vmem:[#allocation4 + $0x3b8] sm:$0xff] }
 0x4ac   : > { %4003 = vmatpush.msrb.mxu2 %v3672_v50  ;;  %v3716_v50 = vld [vmem:[#allocation4 + $0x510] sm:$0xff] }
 0x4ad   : > { %3988 = vmatpush.msrb.mxu1 %v3588_v12  ;;  %v3669_v12 = vld [vmem:[#allocation4 + $0x398] sm:$0xff] }
 0x4ae   : > { %4004 = vmatpush.msrb.mxu2 %v3668_v33  ;;  %v3712_v33 = vld [vmem:[#allocation4 + $0x4f0] sm:$0xff] }
 0x4af   : > { %3937 = vmatmul.f32.vlgmr.msra.gmra.mxu2 %v6730_v24  ;;  %3989 = vmatpush.msrb.mxu1 %v3584_v54  ;;  %v3665_v54 = vld [vmem:[#allocation4 + $0x378] sm:$0xff] }
 0x4b0   : > { %4005 = vmatpush.msrb.mxu2 %v3664_v58  ;;  %v3708_v58 = vld [vmem:[#allocation4 + $0x4d0] sm:$0xff] }
 0x4b1   : > { %3990 = vmatpush.msrb.mxu1 %v3580_v62  ;;  %v3661_v62 = vld [vmem:[#allocation4 + $0x358] sm:$0xff] }
 0x4b2   : > { %4006 = vmatpush.msrb.mxu2 %v3660_v5  ;;  %v3704_v5 = vld [vmem:[#allocation4 + $0x4b0] sm:$0xff] }
 0x4b3   : > { %3991 = vmatpush.msrb.mxu1 %v3576_v9  ;;  %v3657_v9 = vld [vmem:[#allocation4 + $0x338] sm:$0xff] }
 0x4b4   : > { %4007 = vmatpush.msrb.mxu2 %v3656_v37  ;;  %v3700_v37 = vld [vmem:[#allocation4 + $0x490] sm:$0xff] }
 0x4b5   : > { %3992 = vmatpush.msrb.mxu1 %v3572_v6  ;;  %v3478_v6 = vpop.f32.mrf.mxu1 }
 0x4b6   : > { %4008 = vmatpush.msrb.mxu2 %v3652_v57  ;;  %v3653_v57 = vld [vmem:[#allocation4 + $0x318] sm:$0xff]  ;;  %v3479_v51 = vadd.f32 %v3478_v6, %v3216_v41  ;;  %v3748_v6 = vld [vmem:[#allocation4 + $0x610] sm:$0xff] }
 0x4b7   : > { %3993 = vmatpush.msrb.mxu1 %v3568_v15  ;;  %v3569_v15 = vld [vmem:[#allocation4 + $0x78] sm:$0xff] }
 0x4b8   : > { %4009 = vmatpush.msrb.mxu2 %v3648_v19  ;;  %v3649_v19 = vld [vmem:[#allocation4 + $0x2f8] sm:$0xff]  ;;  %v3499_v3 = vadd.f32 %v3498_v22, %v3479_v51  ;;  %v4210_v22 = vld [vmem:[#allocation4 + $0x1c0] sm:$0xff] }
 0x4b9   : > { %3994 = vmatpush.msrb.mxu1 %v3564_v27  ;;  %v3565_v27 = vld [vmem:[#allocation4 + $0x58] sm:$0xff]  ;;  %v4206_v51 = vld [vmem:[#allocation4 + $0x1a0] sm:$0xff] }
 0x4ba   : > { %4010 = vmatpush.msrb.mxu2 %v3644_v28  ;;  %v3645_v28 = vld [vmem:[#allocation4 + $0x2d8] sm:$0xff] }
 0x4bb   : > { %3995 = vmatpush.msrb.mxu1 %v3560_v31  ;;  %v3561_v31 = vld [vmem:[#allocation4 + $0x38] sm:$0xff] }
 0x4bc   : > { %v3458_v39 = vpop.f32.mrf.mxu0  ;;  %4011 = vmatpush.msrb.mxu2 %v3640_v44  ;;  %v3684_v44 = vld [vmem:[#allocation4 + $0x410] sm:$0xff]  ;;  %v3809_v41 = vld [vmem:[#allocation4 + $0x7f8] sm:$0xff] }
 0x4bd   : > { %v6736_v25 = vadd.f32 %v3458_v39, %v3439_v52  ;;  %3996 = vmatpush.msrb.mxu1 %v3556_v45  ;;  %v3637_v52 = vld [vmem:[#allocation4 + $0x298] sm:$0xff] }
 0x4be   : > { %4012 = vmatpush.msrb.mxu2 %v3636_v29  ;;  %3997 = vmatmul.f32.vlgmr.msrb.gmra.mxu1 %v6726_v21  ;;  %v3545_v29 = vrot.slane %v6730_v24, 7 }
 0x4bf   : > { %3877 = vmatmul.f32.vlgmr.msrb.gmra.mxu3 %v6736_v25  ;;  %4061 = vmatpush.msra.mxu1 %v3617_v30  ;;  %v3808_v30 = vld [vmem:[#allocation4 + $0x7f0] sm:$0xff] }
 0x4c0   : > { %4021 = vmatpush.msrb.mxu3 %v3744_v48  ;;  %4013 = vmatpush.msrb.mxu2 %v3632_v60  ;;  %v3546_v48 = vrot.slane %v6736_v25, 6 }
 0x4c1   : > { %4062 = vmatpush.msra.mxu1 %v3613_v36  ;;  %v3633_v36 = vld [vmem:[#allocation4 + $0x278] sm:$0xff] }
 0x4c2   : > { %4022 = vmatpush.msrb.mxu3 %v3740_v43  ;;  %4014 = vmatpush.msrb.mxu2 %v3628_v59  ;;  %v3518_v34 = vpop.f32.mrf.mxu3  ;;  %v3741_v43 = vld [vmem:[#allocation4 + $0x5d8] sm:$0xff]  ;;  %v3548_v59 = vsel %vm1141_vm6, %v6726_v21, %v3545_v29 }
 0x4c3   : > { %4063 = vmatpush.msra.mxu1 %v3609_v17  ;;  %v3519_v38 = vadd.f32 %v3518_v34, %v3499_v3  ;;  %v4278_v34 = vld [vmem:[#allocation4 + $0x3e0] sm:$0xff]  ;;  %v3777_v29 = vld [vmem:[#allocation4 + $0x6f8] sm:$0xff] }
 0x4c4   : > { %4023 = vmatpush.msrb.mxu3 %v3736_v46  ;;  %4015 = vmatpush.msrb.mxu2 %v3624_v63  ;;  %v3629_v46 = vld [vmem:[#allocation4 + $0x258] sm:$0xff]  ;;  %v3800_v63 = vld [vmem:[#allocation4 + $0x7b0] sm:$0xff]  ;;  %v4274_v3 = vld [vmem:[#allocation4 + $0x3c0] sm:$0xff] }
 0x4c5   : > { %4064 = vmatpush.msra.mxu1 %v3605_v47 }
 0x4c6   : > { %4024 = vmatpush.msrb.mxu3 %v3732_v61  ;;  %4016 = vmatpush.msrb.mxu2 %v3620_v1  ;;  %v3737_v61 = vld [vmem:[#allocation4 + $0x5b8] sm:$0xff] }
 0x4c7   : > { %3957 = vmatmul.f32.vlgmr.msra.gmra.mxu3 %v6736_v25  ;;  %4017 = vmatmul.f32.vlgmr.msrb.gmra.mxu2 %v6730_v24  ;;  %v3625_v1 = vld [vmem:[#allocation4 + $0x238] sm:$0xff] }
 0x4c8   : > { %4025 = vmatpush.msrb.mxu3 %v3728_v8  ;;  %4065 = vmatpush.msra.mxu1 %v3601_v26  ;;  %v3796_v8 = vld [vmem:[#allocation4 + $0x790] sm:$0xff]  ;;  %v3733_v26 = vld [vmem:[#allocation4 + $0x598] sm:$0xff] }
 0x4c9   : > { %4081 = vmatpush.msra.mxu2 %v3681_v10  ;;  %v3621_v10 = vld [vmem:[#allocation4 + $0x218] sm:$0xff] }
 0x4ca   : > { %4026 = vmatpush.msrb.mxu3 %v3724_v42  ;;  %4066 = vmatpush.msra.mxu1 %v3597_v20  ;;  %v3729_v42 = vld [vmem:[#allocation4 + $0x578] sm:$0xff]  ;;  %v3788_v20 = vld [vmem:[#allocation4 + $0x750] sm:$0xff] }
 0x4cb   : > { %4082 = vmatpush.msra.mxu2 %v3677_v49  ;;  %v3725_v49 = vld [vmem:[#allocation4 + $0x558] sm:$0xff] }
 0x4cc   : > { %4027 = vmatpush.msrb.mxu3 %v3720_v53  ;;  %4067 = vmatpush.msra.mxu1 %v3593_v4  ;;  %v3784_v53 = vld [vmem:[#allocation4 + $0x730] sm:$0xff]  ;;  %v3721_v4 = vld [vmem:[#allocation4 + $0x538] sm:$0xff] }
 0x4cd   : > { %4083 = vmatpush.msra.mxu2 %v3673_v40  ;;  %v3780_v40 = vld [vmem:[#allocation4 + $0x710] sm:$0xff] }
 0x4ce   : > { %4028 = vmatpush.msrb.mxu3 %v3716_v50  ;;  %4068 = vmatpush.msra.mxu1 %v3589_v0  ;;  %v3717_v50 = vld [vmem:[#allocation4 + $0x518] sm:$0xff]  ;;  %v3776_v0 = vld [vmem:[#allocation4 + $0x6f0] sm:$0xff] }
 0x4cf   : > { %4084 = vmatpush.msra.mxu2 %v3669_v12  ;;  %v3713_v12 = vld [vmem:[#allocation4 + $0x4f8] sm:$0xff] }
 0x4d0   : > { %4029 = vmatpush.msrb.mxu3 %v3712_v33  ;;  %4069 = vmatpush.msra.mxu1 %v3585_v56  ;;  %v3772_v33 = vld [vmem:[#allocation4 + $0x6d0] sm:$0xff]  ;;  %v3709_v56 = vld [vmem:[#allocation4 + $0x4d8] sm:$0xff] }
 0x4d1   : > { %4085 = vmatpush.msra.mxu2 %v3665_v54  ;;  %v3768_v54 = vld [vmem:[#allocation4 + $0x6b0] sm:$0xff] }
 0x4d2   : > { %4030 = vmatpush.msrb.mxu3 %v3708_v58  ;;  %4070 = vmatpush.msra.mxu1 %v3581_v55  ;;  %v3764_v58 = vld [vmem:[#allocation4 + $0x690] sm:$0xff]  ;;  %v3701_v55 = vld [vmem:[#allocation4 + $0x498] sm:$0xff] }
 0x4d3   : > { %4086 = vmatpush.msra.mxu2 %v3661_v62  ;;  %v3760_v62 = vld [vmem:[#allocation4 + $0x670] sm:$0xff] }
 0x4d4   : > { %4031 = vmatpush.msrb.mxu3 %v3704_v5  ;;  %4071 = vmatpush.msra.mxu1 %v3577_v2  ;;  %v3697_v5 = vld [vmem:[#allocation4 + $0x478] sm:$0xff]  ;;  %v3756_v2 = vld [vmem:[#allocation4 + $0x650] sm:$0xff] }
 0x4d5   : > { %4087 = vmatpush.msra.mxu2 %v3657_v9  ;;  %v3693_v9 = vld [vmem:[#allocation4 + $0x458] sm:$0xff] }
 0x4d6   : > { %4032 = vmatpush.msrb.mxu3 %v3700_v37  ;;  %4072 = vmatpush.msra.mxu1 %v3573_v32  ;;  %v3752_v37 = vld [vmem:[#allocation4 + $0x630] sm:$0xff]  ;;  %v3689_v32 = vld [vmem:[#allocation4 + $0x438] sm:$0xff] }
 0x4d7   : > { %4088 = vmatpush.msra.mxu2 %v3653_v57  ;;  %v3685_v57 = vld [vmem:[#allocation4 + $0x418] sm:$0xff] }
 0x4d8   : > { %4033 = vmatpush.msrb.mxu3 %v3696_v18  ;;  %4073 = vmatpush.msra.mxu1 %v3569_v15  ;;  %v3805_v18 = vld [vmem:[#allocation4 + $0x7d8] sm:$0xff]  ;;  %v4214_v15 = vld [vmem:[#allocation4 + $0x1e0] sm:$0xff] }
 0x4d9   : > { %4089 = vmatpush.msra.mxu2 %v3649_v19  ;;  %v3801_v19 = vld [vmem:[#allocation4 + $0x7b8] sm:$0xff] }
 0x4da   : > { %4034 = vmatpush.msrb.mxu3 %v3692_v23  ;;  %4074 = vmatpush.msra.mxu1 %v3565_v27  ;;  %v3797_v23 = vld [vmem:[#allocation4 + $0x798] sm:$0xff]  ;;  %v4202_v27 = vld [vmem:[#allocation4 + $0x180] sm:$0xff] }
 0x4db   : > { %4090 = vmatpush.msra.mxu2 %v3645_v28  ;;  %v3793_v28 = vld [vmem:[#allocation4 + $0x778] sm:$0xff] }
 0x4dc   : > { %v3538_v45 = vpop.f32.mrf.mxu0  ;;  %4035 = vmatpush.msrb.mxu3 %v3688_v14  ;;  %4075 = vmatpush.msra.mxu1 %v3561_v31  ;;  %v4198_v14 = vld [vmem:[#allocation4 + $0x160] sm:$0xff]  ;;  %v3789_v31 = vld [vmem:[#allocation4 + $0x758] sm:$0xff] }
 0x4dd   : > { %v6744_v39 = vadd.f32 %v3538_v45, %v3519_v38  ;;  %4091 = vmatpush.msra.mxu2 %v3641_v11  ;;  %v3785_v11 = vld [vmem:[#allocation4 + $0x738] sm:$0xff]  ;;  %v4186_v45 = vld [vmem:[#allocation4 + $0x100] sm:$0xff] }
 0x4de   : > { %4036 = vmatpush.msrb.mxu3 %v3684_v44  ;;  %4076 = vmatpush.msra.mxu1 %v3557_v35  ;;  %v3781_v38 = vld [vmem:[#allocation4 + $0x718] sm:$0xff]  ;;  %v4190_v44 = vld [vmem:[#allocation4 + $0x120] sm:$0xff] }
 0x4df   : > { %v3547_v60 = vrot.slane %v6744_v39, 5  ;;  %4092 = vmatpush.msra.mxu2 %v3637_v52  ;;  %3897 = vmatmul.f32.vlgmr.msra.gmra.mxu0 %v6744_v39  ;;  %v4270_v35 = vld [vmem:[#allocation4 + $0x3a0] sm:$0xff] }
 0x4e0   : > { %4037 = vmatmul.f32.vlgmr.msrb.gmra.mxu3 %v6736_v25  ;;  %4041 = vmatpush.msra.mxu0 %v3808_v30  ;;  %v4266_v52 = vld [vmem:[#allocation4 + $0x380] sm:$0xff] }
 0x4e1   : > { %v3549_v17 = vsel %vm1143_vm7, %v3546_v48, %v3547_v60  ;;  %4077 = vmatmul.f32.vlgmr.msra.gmra.mxu1 %v6726_v21  ;;  %4101 = vmatpush.msra.mxu3 %v3745_v13  ;;  %v3792_v21 = vld [vmem:[#allocation4 + $0x770] sm:$0xff]  ;;  %v4262_v30 = vld [vmem:[#allocation4 + $0x360] sm:$0xff]  ;;  %v3773_v48 = vld [vmem:[#allocation4 + $0x6d8] sm:$0xff] }
 0x4e2   : > { %v3550_v47 = vsel %vm1145_vm8, %v3548_v59, %v3549_v17  ;;  %4093 = vmatpush.msra.mxu2 %v3633_v36  ;;  %4042 = vmatpush.msra.mxu0 %v3804_v7  ;;  %v4182_v13 = vld [vmem:[#allocation4 + $0xe0] sm:$0xff]  ;;  %v3769_v7 = vld [vmem:[#allocation4 + $0x6b8] sm:$0xff] }
 0x4e3   : > { %4102 = vmatpush.msra.mxu3 %v3741_v43  ;;  %3552 = vst.msk [vmem:[#allocation3 + $0x4] ss:$8 sm:$0xf] %vm6592_vm9, %v3550_v47  ;;  %4421 = vmatpush.msrb.mxu1 %v4214_v15  ;;  %v4258_v60 = vld [vmem:[#allocation4 + $0x340] sm:$0xff]  ;;  %v3765_v43 = vld [vmem:[#allocation4 + $0x698] sm:$0xff] }
 0x4e4   : > { %4094 = vmatpush.msra.mxu2 %v3629_v46  ;;  %4043 = vmatpush.msra.mxu0 %v3800_v63  ;;  %v4178_v36 = vld [vmem:[#allocation4 + $0xc0] sm:$0xff]  ;;  %v3761_v47 = vld [vmem:[#allocation4 + $0x678] sm:$0xff] }
 0x4e5   : > { %4103 = vmatpush.msra.mxu3 %v3737_v61  ;;  %4422 = vmatpush.msrb.mxu1 %v4210_v22  ;;  %v4174_v59 = vld [vmem:[#allocation4 + $0xa0] sm:$0xff]  ;;  %v4187_v22 = vld [vmem:[#allocation4 + $0x108] sm:$0xff] }
 0x4e6   : > { %4095 = vmatpush.msra.mxu2 %v3625_v1  ;;  %4044 = vmatpush.msra.mxu0 %v3796_v8  ;;  %v4254_v17 = vld [vmem:[#allocation4 + $0x320] sm:$0xff]  ;;  %v3757_v8 = vld [vmem:[#allocation4 + $0x658] sm:$0xff] }
 0x4e7   : > { %4104 = vmatpush.msra.mxu3 %v3733_v26  ;;  %3977 = vmatmul.f32.vlgmr.msrb.gmra.mxu0 %v6744_v39  ;;  %v4170_v46 = vld [vmem:[#allocation4 + $0x80] sm:$0xff] }
 0x4e8   : > { %4096 = vmatpush.msra.mxu2 %v3621_v10  ;;  %4045 = vmatpush.msra.mxu0 %v3792_v21  ;;  %v4250_v63 = vld [vmem:[#allocation4 + $0x300] sm:$0xff]  ;;  %v3753_v21 = vld [vmem:[#allocation4 + $0x638] sm:$0xff] }
 0x4e9   : > { %4097 = vmatmul.f32.vlgmr.msra.gmra.mxu2 %v6730_v24  ;;  %4105 = vmatpush.msra.mxu3 %v3729_v42  ;;  %v3705_v24 = vld [vmem:[#allocation4 + $0x4b8] sm:$0xff]  ;;  %v4246_v61 = vld [vmem:[#allocation4 + $0x2e0] sm:$0xff] }
 0x4ea   : > { %4046 = vmatpush.msra.mxu0 %v3788_v20  ;;  %4423 = vmatpush.msrb.mxu1 %v4206_v51  ;;  %v4166_v1 = vld [vmem:[#allocation4 + $0x60] sm:$0xff]  ;;  %v3749_v42 = vld [vmem:[#allocation4 + $0x618] sm:$0xff] }
 0x4eb   : > { %4106 = vmatpush.msra.mxu3 %v3725_v49  ;;  %4441 = vmatpush.msrb.mxu2 %v4278_v34  ;;  %v4242_v26 = vld [vmem:[#allocation4 + $0x2c0] sm:$0xff] }
 0x4ec   : > { %4047 = vmatpush.msra.mxu0 %v3784_v53  ;;  %4424 = vmatpush.msrb.mxu1 %v4202_v27  ;;  %v4162_v10 = vld [vmem:[#allocation4 + $0x40] sm:$0xff]  ;;  %v4263_v27 = vld [vmem:[#allocation4 + $0x368] sm:$0xff] }
 0x4ed   : > { %4107 = vmatpush.msra.mxu3 %v3721_v4  ;;  %4442 = vmatpush.msrb.mxu2 %v4274_v3  ;;  %v4158_v20 = vld [vmem:[#allocation4 + $0x20] sm:$0xff]  ;;  %v4259_v3 = vld [vmem:[#allocation4 + $0x348] sm:$0xff] }
 0x4ee   : > { %4048 = vmatpush.msra.mxu0 %v3780_v40  ;;  %4425 = vmatpush.msrb.mxu1 %v4198_v14  ;;  %v4238_v49 = vld [vmem:[#allocation4 + $0x2a0] sm:$0xff] }
 0x4ef   : > { %4108 = vmatpush.msra.mxu3 %v3717_v50  ;;  %4443 = vmatpush.msrb.mxu2 %v4270_v35  ;;  %v4154_v53 = vld [vmem:[#allocation4] sm:$0xff]  ;;  %v4215_v50 = vld [vmem:[#allocation4 + $0x1e8] sm:$0xff] }
 0x4f0   : > { %4049 = vmatpush.msra.mxu0 %v3776_v0  ;;  %v4234_v4 = vld [vmem:[#allocation4 + $0x280] sm:$0xff] }
 0x4f1   : > { %4109 = vmatpush.msra.mxu3 %v3713_v12  ;;  %4444 = vmatpush.msrb.mxu2 %v4266_v52  ;;  %v4342_v40 = vld [vmem:[#allocation4 + $0x5e0] sm:$0xff]  ;;  %v4247_v52 = vld [vmem:[#allocation4 + $0x2e8] sm:$0xff] }
 0x4f2   : > { %4050 = vmatpush.msra.mxu0 %v3772_v33  ;;  %v4338_v0 = vld [vmem:[#allocation4 + $0x5c0] sm:$0xff]  ;;  %v4211_v33 = vld [vmem:[#allocation4 + $0x1c8] sm:$0xff] }
 0x4f3   : > { %4110 = vmatpush.msra.mxu3 %v3709_v56  ;;  %4445 = vmatpush.msrb.mxu2 %v4262_v30  ;;  %v4230_v12 = vld [vmem:[#allocation4 + $0x260] sm:$0xff]  ;;  %v4163_v30 = vld [vmem:[#allocation4 + $0x48] sm:$0xff] }
 0x4f4   : > { %4051 = vmatpush.msra.mxu0 %v3768_v54  ;;  %v4226_v56 = vld [vmem:[#allocation4 + $0x240] sm:$0xff] }
 0x4f5   : > { %4111 = vmatpush.msra.mxu3 %v3705_v24  ;;  %4446 = vmatpush.msrb.mxu2 %v4258_v60  ;;  %v4334_v54 = vld [vmem:[#allocation4 + $0x5a0] sm:$0xff]  ;;  %v4207_v24 = vld [vmem:[#allocation4 + $0x1a8] sm:$0xff] }
 0x4f6   : > { %4052 = vmatpush.msra.mxu0 %v3764_v58  ;;  %v4222_v58 = vld [vmem:[#allocation4 + $0x220] sm:$0xff]  ;;  %v4159_v60 = vld [vmem:[#allocation4 + $0x28] sm:$0xff] }
 0x4f7   : > { %4112 = vmatpush.msra.mxu3 %v3701_v55  ;;  %4447 = vmatpush.msrb.mxu2 %v4254_v17  ;;  %v4330_v55 = vld [vmem:[#allocation4 + $0x580] sm:$0xff] }
 0x4f8   : > { %4053 = vmatpush.msra.mxu0 %v3760_v62  ;;  %v4203_v62 = vld [vmem:[#allocation4 + $0x188] sm:$0xff]  ;;  %v4314_v15 = vld [vmem:[#allocation4 + $0x500] sm:$0xff] }
 0x4f9   : > { %4113 = vmatpush.msra.mxu3 %v3697_v5  ;;  %4448 = vmatpush.msrb.mxu2 %v4250_v63  ;;  %v4218_v5 = vld [vmem:[#allocation4 + $0x200] sm:$0xff]  ;;  %v4231_v63 = vld [vmem:[#allocation4 + $0x268] sm:$0xff] }
 0x4fa   : > { %4054 = vmatpush.msra.mxu0 %v3756_v2  ;;  %v4326_v2 = vld [vmem:[#allocation4 + $0x560] sm:$0xff] }
 0x4fb   : > { %4114 = vmatpush.msra.mxu3 %v3693_v9  ;;  %4449 = vmatpush.msrb.mxu2 %v4246_v61  ;;  %v4279_v9 = vld [vmem:[#allocation4 + $0x3e8] sm:$0xff]  ;;  %v4310_v51 = vld [vmem:[#allocation4 + $0x4e0] sm:$0xff] }
 0x4fc   : > { %4055 = vmatpush.msra.mxu0 %v3752_v37  ;;  %v4322_v37 = vld [vmem:[#allocation4 + $0x540] sm:$0xff]  ;;  %v4339_v61 = vld [vmem:[#allocation4 + $0x5c8] sm:$0xff] }
 0x4fd   : > { %4115 = vmatpush.msra.mxu3 %v3689_v32  ;;  %4450 = vmatpush.msrb.mxu2 %v4242_v26  ;;  %v4195_v32 = vld [vmem:[#allocation4 + $0x148] sm:$0xff]  ;;  %v4306_v34 = vld [vmem:[#allocation4 + $0x4c0] sm:$0xff] }
 0x4fe   : > { %4056 = vmatpush.msra.mxu0 %v3748_v6  ;;  %v4275_v6 = vld [vmem:[#allocation4 + $0x3c8] sm:$0xff]  ;;  %v4302_v14 = vld [vmem:[#allocation4 + $0x4a0] sm:$0xff] }
 0x4ff   : > { %4116 = vmatpush.msra.mxu3 %v3685_v57  ;;  %4057 = vmatmul.f32.vlgmr.msra.gmra.mxu0 %v6744_v39  ;;  %v4318_v57 = vld [vmem:[#allocation4 + $0x520] sm:$0xff]  ;;  %v4335_v26 = vld [vmem:[#allocation4 + $0x5a8] sm:$0xff] }
 0x500   : > { %4117 = vmatmul.f32.vlgmr.msra.gmra.mxu3 %v6736_v25  ;;  %4121 = vmatpush.msrb.mxu0 %v3809_v41  ;;  %v4194_v25 = vld [vmem:[#allocation4 + $0x140] sm:$0xff]  ;;  %v4191_v41 = vld [vmem:[#allocation4 + $0x128] sm:$0xff] }
 0x501   : > { %4426 = vmatpush.msrb.mxu1 %v4194_v25  ;;  %4451 = vmatpush.msrb.mxu2 %v4238_v49  ;;  %v4255_v25 = vld [vmem:[#allocation4 + $0x328] sm:$0xff]  ;;  %v4294_v35 = vld [vmem:[#allocation4 + $0x460] sm:$0xff] }
 0x502   : > { %4122 = vmatpush.msrb.mxu0 %v3805_v18  ;;  %4461 = vmatpush.msrb.mxu3 %v4342_v40  ;;  %v4271_v18 = vld [vmem:[#allocation4 + $0x3a8] sm:$0xff]  ;;  %v4406_v17 = vld [vmem:[#allocation4 + $0x7e0] sm:$0xff] }
 0x503   : > { %4427 = vmatpush.msrb.mxu1 %v4190_v44  ;;  %4452 = vmatpush.msrb.mxu2 %v4234_v4  ;;  %v4251_v44 = vld [vmem:[#allocation4 + $0x308] sm:$0xff]  ;;  %v4390_v49 = vld [vmem:[#allocation4 + $0x760] sm:$0xff] }
 0x504   : > { %4123 = vmatpush.msrb.mxu0 %v3801_v19  ;;  %4462 = vmatpush.msrb.mxu3 %v4338_v0  ;;  %v4267_v19 = vld [vmem:[#allocation4 + $0x388] sm:$0xff]  ;;  %v4386_v4 = vld [vmem:[#allocation4 + $0x740] sm:$0xff] }
 0x505   : > { %4428 = vmatpush.msrb.mxu1 %v4186_v45  ;;  %4453 = vmatpush.msrb.mxu2 %v4230_v12  ;;  %v4167_v45 = vld [vmem:[#allocation4 + $0x68] sm:$0xff]  ;;  %v4378_v12 = vld [vmem:[#allocation4 + $0x700] sm:$0xff] }
 0x506   : > { %4124 = vmatpush.msrb.mxu0 %v3797_v23  ;;  %4463 = vmatpush.msrb.mxu3 %v4334_v54  ;;  %v4183_v23 = vld [vmem:[#allocation4 + $0xe8] sm:$0xff] }
 0x507   : > { %4429 = vmatpush.msrb.mxu1 %v4182_v13  ;;  %4454 = vmatpush.msrb.mxu2 %v4226_v56  ;;  %v4243_v13 = vld [vmem:[#allocation4 + $0x2c8] sm:$0xff]  ;;  %v4374_v56 = vld [vmem:[#allocation4 + $0x6e0] sm:$0xff] }
 0x508   : > { %4125 = vmatpush.msrb.mxu0 %v3793_v28  ;;  %4464 = vmatpush.msrb.mxu3 %v4330_v55  ;;  %v4179_v28 = vld [vmem:[#allocation4 + $0xc8] sm:$0xff] }
 0x509   : > { %4430 = vmatpush.msrb.mxu1 %v4178_v36  ;;  %4455 = vmatpush.msrb.mxu2 %v4222_v58  ;;  %v4239_v36 = vld [vmem:[#allocation4 + $0x2a8] sm:$0xff] }
 0x50a   : > { %4126 = vmatpush.msrb.mxu0 %v3789_v31  ;;  %4465 = vmatpush.msrb.mxu3 %v4326_v2  ;;  %v4175_v31 = vld [vmem:[#allocation4 + $0xa8] sm:$0xff] }
 0x50b   : > { %4431 = vmatpush.msrb.mxu1 %v4174_v59  ;;  %4456 = vmatpush.msrb.mxu2 %v4218_v5  ;;  %v4235_v59 = vld [vmem:[#allocation4 + $0x288] sm:$0xff]  ;;  %v4366_v5 = vld [vmem:[#allocation4 + $0x6a0] sm:$0xff] }
 0x50c   : > { %4127 = vmatpush.msrb.mxu0 %v3785_v11  ;;  %4466 = vmatpush.msrb.mxu3 %v4322_v37  ;;  %v4298_v11 = vld [vmem:[#allocation4 + $0x480] sm:$0xff]  ;;  %v4323_v40 = vld [vmem:[#allocation4 + $0x548] sm:$0xff] }
 0x50d   : > { %4432 = vmatpush.msrb.mxu1 %v4170_v46  ;;  %4521 = vmatpush.msra.mxu2 %v4279_v9  ;;  %v4343_v46 = vld [vmem:[#allocation4 + $0x5e8] sm:$0xff]  ;;  %v4362_v9 = vld [vmem:[#allocation4 + $0x680] sm:$0xff] }
 0x50e   : > { %4128 = vmatpush.msrb.mxu0 %v3781_v38  ;;  %4467 = vmatpush.msrb.mxu3 %v4318_v57  ;;  %v4171_v38 = vld [vmem:[#allocation4 + $0x88] sm:$0xff]  ;;  %v4358_v57 = vld [vmem:[#allocation4 + $0x660] sm:$0xff] }
 0x50f   : > { %4433 = vmatpush.msrb.mxu1 %v4166_v1  ;;  %4522 = vmatpush.msra.mxu2 %v4275_v6  ;;  %v4227_v1 = vld [vmem:[#allocation4 + $0x248] sm:$0xff] }
 0x510   : > { %4129 = vmatpush.msrb.mxu0 %v3777_v29  ;;  %4468 = vmatpush.msrb.mxu3 %v4314_v15  ;;  %v4290_v29 = vld [vmem:[#allocation4 + $0x440] sm:$0xff]  ;;  %v4319_v0 = vld [vmem:[#allocation4 + $0x528] sm:$0xff] }
 0x511   : > { %4434 = vmatpush.msrb.mxu1 %v4162_v10  ;;  %4523 = vmatpush.msra.mxu2 %v4271_v18  ;;  %v4223_v10 = vld [vmem:[#allocation4 + $0x228] sm:$0xff]  ;;  %v4354_v15 = vld [vmem:[#allocation4 + $0x640] sm:$0xff] }
 0x512   : > { %4130 = vmatpush.msrb.mxu0 %v3773_v48  ;;  %4469 = vmatpush.msrb.mxu3 %v4310_v51  ;;  %v4286_v48 = vld [vmem:[#allocation4 + $0x420] sm:$0xff]  ;;  %v4311_v54 = vld [vmem:[#allocation4 + $0x4e8] sm:$0xff] }
 0x513   : > { %4435 = vmatpush.msrb.mxu1 %v4158_v20  ;;  %4524 = vmatpush.msra.mxu2 %v4267_v19  ;;  %v4219_v20 = vld [vmem:[#allocation4 + $0x208] sm:$0xff] }
 0x514   : > { %4131 = vmatpush.msrb.mxu0 %v3769_v7  ;;  %4470 = vmatpush.msrb.mxu3 %v4306_v34  ;;  %v4282_v7 = vld [vmem:[#allocation4 + $0x400] sm:$0xff]  ;;  %v4307_v58 = vld [vmem:[#allocation4 + $0x4c8] sm:$0xff] }
 0x515   : > { %4436 = vmatpush.msrb.mxu1 %v4154_v53  ;;  %4525 = vmatpush.msra.mxu2 %v4263_v27  ;;  %v4327_v53 = vld [vmem:[#allocation4 + $0x568] sm:$0xff]  ;;  %v4350_v34 = vld [vmem:[#allocation4 + $0x620] sm:$0xff] }
 0x516   : > { %4132 = vmatpush.msrb.mxu0 %v3765_v43  ;;  %4471 = vmatpush.msrb.mxu3 %v4302_v14  ;;  %v4155_v43 = vld [vmem:[#allocation4 + $0x8] sm:$0xff] }
 0x517   : > { %4501 = vmatpush.msra.mxu1 %v4215_v50  ;;  %4526 = vmatpush.msra.mxu2 %v4259_v3  ;;  %v4382_v50 = vld [vmem:[#allocation4 + $0x720] sm:$0xff]  ;;  %v4303_v2 = vld [vmem:[#allocation4 + $0x4a8] sm:$0xff] }
 0x518   : > { %4133 = vmatpush.msrb.mxu0 %v3761_v47  ;;  %4472 = vmatpush.msrb.mxu3 %v4298_v11  ;;  %v4402_v47 = vld [vmem:[#allocation4 + $0x7c0] sm:$0xff]  ;;  %v4295_v18 = vld [vmem:[#allocation4 + $0x468] sm:$0xff] }
 0x519   : > { %4502 = vmatpush.msra.mxu1 %v4211_v33  ;;  %4527 = vmatpush.msra.mxu2 %v4255_v25  ;;  %v4315_v33 = vld [vmem:[#allocation4 + $0x508] sm:$0xff]  ;;  %v4346_v11 = vld [vmem:[#allocation4 + $0x600] sm:$0xff] }
 0x51a   : > { %4134 = vmatpush.msrb.mxu0 %v3757_v8  ;;  %4473 = vmatpush.msrb.mxu3 %v4294_v35  ;;  %v4398_v8 = vld [vmem:[#allocation4 + $0x7a0] sm:$0xff]  ;;  %v4291_v19 = vld [vmem:[#allocation4 + $0x448] sm:$0xff]  ;;  %v4212_v35 = vld [vmem:[#allocation4 + $0x1d0] sm:$0xff] }
 0x51b   : > { %4503 = vmatpush.msra.mxu1 %v4207_v24  ;;  %4528 = vmatpush.msra.mxu2 %v4251_v44  ;;  %v4370_v24 = vld [vmem:[#allocation4 + $0x6c0] sm:$0xff] }
 0x51c   : > { %4135 = vmatpush.msrb.mxu0 %v3753_v21  ;;  %4474 = vmatpush.msrb.mxu3 %v4290_v29  ;;  %v4394_v21 = vld [vmem:[#allocation4 + $0x780] sm:$0xff] }
 0x51d   : > { %4504 = vmatpush.msra.mxu1 %v4203_v62  ;;  %4529 = vmatpush.msra.mxu2 %v4247_v52  ;;  %v6762_v55 = vld [vmem:[#allocation3 + $0x5] ss:$8 sm:$0xf]  ;;  %v3838_v62 = vpop.f32.mrf.mxu1 }
 0x51e   : > { %4136 = vmatpush.msrb.mxu0 %v3749_v42  ;;  %4475 = vmatpush.msrb.mxu3 %v4286_v48  ;;  %v4331_v42 = vld [vmem:[#allocation4 + $0x588] sm:$0xff]  ;;  %v3813_v37 = vperm.slane %v6762_v55, 0  ;;  %v3814_v3 = vperm.slane %v6762_v55, 1 }
 0x51f   : > { %4137 = vmatmul.f32.vlgmr.msrb.gmra.mxu0 %v6744_v39  ;;  %v4199_v39 = vld [vmem:[#allocation4 + $0x168] sm:$0xff]  ;;  %4530 = vmatpush.msra.mxu2 %v4243_v13 }
 0x520   : > { %4505 = vmatpush.msra.mxu1 %v4199_v39  ;;  %4476 = vmatpush.msrb.mxu3 %v4282_v7  ;;  %v4403_v13 = vld [vmem:[#allocation4 + $0x7c8] sm:$0xff] }
 0x521   : > { %4531 = vmatpush.msra.mxu2 %v4239_v36  ;;  %4481 = vmatpush.msra.mxu0 %v4406_v17  ;;  %v4399_v36 = vld [vmem:[#allocation4 + $0x7a8] sm:$0xff]  ;;  %v4280_v17 = vld [vmem:[#allocation4 + $0x3f0] sm:$0xff] }
 0x522   : > { %4506 = vmatpush.msra.mxu1 %v4195_v32  ;;  %4541 = vmatpush.msra.mxu3 %v4343_v46  ;;  %v4299_v32 = vld [vmem:[#allocation4 + $0x488] sm:$0xff] }
 0x523   : > { %4532 = vmatpush.msra.mxu2 %v4235_v59  ;;  %4482 = vmatpush.msra.mxu0 %v4402_v47  ;;  %v4200_v59 = vld [vmem:[#allocation4 + $0x170] sm:$0xff]  ;;  %v4395_v46 = vld [vmem:[#allocation4 + $0x788] sm:$0xff] }
 0x524   : > { %4507 = vmatpush.msra.mxu1 %v4191_v41  ;;  %4542 = vmatpush.msra.mxu3 %v4339_v61  ;;  %v3839_v41 = vadd.f32 %v3838_v62, %v3813_v37  ;;  %v4276_v47 = vld [vmem:[#allocation4 + $0x3d0] sm:$0xff]  ;;  %v4391_v61 = vld [vmem:[#allocation4 + $0x768] sm:$0xff]  ;;  %v3815_v62 = vperm.slane %v6762_v55, 2 }
 0x525   : > { %4533 = vmatpush.msra.mxu2 %v4231_v63  ;;  %4483 = vmatpush.msra.mxu0 %v4398_v8  ;;  %v4196_v63 = vld [vmem:[#allocation4 + $0x150] sm:$0xff] }
 0x526   : > { %4508 = vmatpush.msra.mxu1 %v4187_v22  ;;  %4543 = vmatpush.msra.mxu3 %v4335_v26  ;;  %v4272_v8 = vld [vmem:[#allocation4 + $0x3b0] sm:$0xff]  ;;  %v4387_v26 = vld [vmem:[#allocation4 + $0x748] sm:$0xff] }
 0x527   : > { %4534 = vmatpush.msra.mxu2 %v4227_v1  ;;  %4484 = vmatpush.msra.mxu0 %v4394_v21  ;;  %v4192_v1 = vld [vmem:[#allocation4 + $0x130] sm:$0xff] }
 0x528   : > { %4509 = vmatpush.msra.mxu1 %v4183_v23  ;;  %4544 = vmatpush.msra.mxu3 %v4331_v42  ;;  %v3918_v23 = vpop.f32.mrf.mxu1  ;;  %v4268_v21 = vld [vmem:[#allocation4 + $0x390] sm:$0xff]  ;;  %v4383_v42 = vld [vmem:[#allocation4 + $0x728] sm:$0xff] }
 0x529   : > { %4535 = vmatpush.msra.mxu2 %v4223_v10  ;;  %4485 = vmatpush.msra.mxu0 %v4390_v49  ;;  %v3919_v44 = vadd.f32 %v3918_v23, %v3814_v3  ;;  %v4188_v10 = vld [vmem:[#allocation4 + $0x110] sm:$0xff] }
 0x52a   : > { %4510 = vmatpush.msra.mxu1 %v4179_v28  ;;  %4545 = vmatpush.msra.mxu3 %v4327_v53  ;;  %v3858_v39 = vpop.f32.mrf.mxu2  ;;  %v4287_v28 = vld [vmem:[#allocation4 + $0x428] sm:$0xff]  ;;  %v4264_v49 = vld [vmem:[#allocation4 + $0x370] sm:$0xff] }
 0x52b   : > { %4536 = vmatpush.msra.mxu2 %v4219_v20  ;;  %4486 = vmatpush.msra.mxu0 %v4386_v4  ;;  %v3859_v22 = vadd.f32 %v3858_v39, %v3839_v41  ;;  %v4184_v20 = vld [vmem:[#allocation4 + $0xf0] sm:$0xff]  ;;  %v4379_v53 = vld [vmem:[#allocation4 + $0x708] sm:$0xff] }
 0x52c   : > { %4511 = vmatpush.msra.mxu1 %v4175_v31  ;;  %4546 = vmatpush.msra.mxu3 %v4323_v40  ;;  %v4216_v31 = vld [vmem:[#allocation4 + $0x1f0] sm:$0xff]  ;;  %v4359_v41 = vld [vmem:[#allocation4 + $0x668] sm:$0xff] }
 0x52d   : > { %4487 = vmatpush.msra.mxu0 %v4382_v50  ;;  %v4180_v4 = vld [vmem:[#allocation4 + $0xd0] sm:$0xff]  ;;  %v4375_v50 = vld [vmem:[#allocation4 + $0x6e8] sm:$0xff] }
 0x52e   : > { %4512 = vmatpush.msra.mxu1 %v4171_v38  ;;  %4547 = vmatpush.msra.mxu3 %v4319_v0  ;;  %v4283_v38 = vld [vmem:[#allocation4 + $0x408] sm:$0xff]  ;;  %v4260_v40 = vld [vmem:[#allocation4 + $0x350] sm:$0xff] }
 0x52f   : > { %4488 = vmatpush.msra.mxu0 %v4378_v12  ;;  %v4176_v0 = vld [vmem:[#allocation4 + $0xb0] sm:$0xff] }
 0x530   : > { %4513 = vmatpush.msra.mxu1 %v4167_v45  ;;  %4548 = vmatpush.msra.mxu3 %v4315_v33  ;;  %v4407_v45 = vld [vmem:[#allocation4 + $0x7e8] sm:$0xff]  ;;  %v4256_v12 = vld [vmem:[#allocation4 + $0x330] sm:$0xff] }
 0x531   : > { %4489 = vmatpush.msra.mxu0 %v4374_v56  ;;  %v4371_v33 = vld [vmem:[#allocation4 + $0x6c8] sm:$0xff]  ;;  %v4172_v56 = vld [vmem:[#allocation4 + $0x90] sm:$0xff] }
 0x532   : > { %4514 = vmatpush.msra.mxu1 %v4163_v30  ;;  %4549 = vmatpush.msra.mxu3 %v4311_v54  ;;  %v3938_v25 = vpop.f32.mrf.mxu2  ;;  %v4208_v30 = vld [vmem:[#allocation4 + $0x1b0] sm:$0xff] }
 0x533   : > { %4490 = vmatpush.msra.mxu0 %v4370_v24  ;;  %v3939_v29 = vadd.f32 %v3938_v25, %v3919_v44  ;;  %v4252_v54 = vld [vmem:[#allocation4 + $0x310] sm:$0xff]  ;;  %v4213_v44 = vld [vmem:[#allocation4 + $0x1d8] sm:$0xff] }
 0x534   : > { %4515 = vmatpush.msra.mxu1 %v4159_v60  ;;  %4550 = vmatpush.msra.mxu3 %v4307_v58  ;;  %v4204_v60 = vld [vmem:[#allocation4 + $0x190] sm:$0xff]  ;;  %v4367_v58 = vld [vmem:[#allocation4 + $0x6a8] sm:$0xff] }
 0x535   : > { %4491 = vmatpush.msra.mxu0 %v4366_v5  ;;  %v4168_v5 = vld [vmem:[#allocation4 + $0x70] sm:$0xff] }
 0x536   : > { %4516 = vmatpush.msra.mxu1 %v4155_v43  ;;  %4551 = vmatpush.msra.mxu3 %v4303_v2  ;;  %v4248_v2 = vld [vmem:[#allocation4 + $0x2f0] sm:$0xff] }
 0x537   : > { %4492 = vmatpush.msra.mxu0 %v4362_v9  ;;  %v4363_v9 = vld [vmem:[#allocation4 + $0x688] sm:$0xff]  ;;  %v4156_v23 = vld [vmem:[#allocation4 + $0x10] sm:$0xff] }
 0x538   : > { %4552 = vmatpush.msra.mxu3 %v4299_v32  ;;  %v4164_v32 = vld [vmem:[#allocation4 + $0x50] sm:$0xff] }
 0x539   : > { %4493 = vmatpush.msra.mxu0 %v4358_v57  ;;  %v4344_v3 = vld [vmem:[#allocation4 + $0x5f0] sm:$0xff] }
 0x53a   : > { %4553 = vmatpush.msra.mxu3 %v4295_v18  ;;  %v4232_v25 = vld [vmem:[#allocation4 + $0x270] sm:$0xff] }
 0x53b   : > { %4494 = vmatpush.msra.mxu0 %v4354_v15  ;;  %v3998_v24 = vpop.f32.mrf.mxu1  ;;  %v4160_v15 = vld [vmem:[#allocation4 + $0x30] sm:$0xff] }
 0x53c   : > { %4554 = vmatpush.msra.mxu3 %v4291_v19  ;;  %v3999_v37 = vadd.f32 %v3998_v24, %v3815_v62  ;;  %v4355_v19 = vld [vmem:[#allocation4 + $0x648] sm:$0xff]  ;;  %v3816_v24 = vperm.slane %v6762_v55, 3  ;;  %v4161_v55 = vld [vmem:[#allocation4 + $0x38] sm:$0xff] }
 0x53d   : > { %4495 = vmatpush.msra.mxu0 %v4350_v34 }
 0x53e   : > { %4555 = vmatpush.msra.mxu3 %v4287_v28 }
 0x53f   : > { %4496 = vmatpush.msra.mxu0 %v4346_v11  ;;  %v4351_v11 = vld [vmem:[#allocation4 + $0x628] sm:$0xff] }
 0x540   : > { %4556 = vmatpush.msra.mxu3 %v4283_v38  ;;  %v4340_v38 = vld [vmem:[#allocation4 + $0x5d0] sm:$0xff] }
 0x541   : > { %4561 = vmatpush.msrb.mxu0 %v4407_v45  ;;  %v4347_v45 = vld [vmem:[#allocation4 + $0x608] sm:$0xff] }
 0x542   : > { %v3878_v6 = vpop.f32.mrf.mxu3 }
 0x543   : > { %v3879_v51 = vadd.f32 %v3878_v6, %v3859_v22  ;;  %4562 = vmatpush.msrb.mxu0 %v4403_v13  ;;  %v4244_v6 = vld [vmem:[#allocation4 + $0x2d0] sm:$0xff] }
 0x544   : > { %v4240_v22 = vld [vmem:[#allocation4 + $0x2b0] sm:$0xff] }
 0x545   : > { %4563 = vmatpush.msrb.mxu0 %v4399_v36  ;;  %v4332_v13 = vld [vmem:[#allocation4 + $0x590] sm:$0xff] }
 0x546   : > { %v4328_v36 = vld [vmem:[#allocation4 + $0x570] sm:$0xff] }
 0x547   : > { %4564 = vmatpush.msrb.mxu0 %v4395_v46  ;;  %v4197_v46 = vld [vmem:[#allocation4 + $0x158] sm:$0xff] }
 0x549   : > { %4565 = vmatpush.msrb.mxu0 %v4391_v61  ;;  %v4193_v61 = vld [vmem:[#allocation4 + $0x138] sm:$0xff] }
 0x54a   : > { %v3958_v52 = vpop.f32.mrf.mxu3  ;;  %v4018_v39 = vpop.f32.mrf.mxu2 }
 0x54b   : > { %v3959_v48 = vadd.f32 %v3958_v52, %v3939_v29  ;;  %4566 = vmatpush.msrb.mxu0 %v4387_v26  ;;  %v4019_v18 = vadd.f32 %v4018_v39, %v3999_v37  ;;  %v4336_v52 = vld [vmem:[#allocation4 + $0x5b0] sm:$0xff]  ;;  %v4209_v29 = vld [vmem:[#allocation4 + $0x1b8] sm:$0xff] }
 0x54c   : > { %v4189_v26 = vld [vmem:[#allocation4 + $0x118] sm:$0xff] }
 0x54d   : > { %4567 = vmatpush.msrb.mxu0 %v4383_v42  ;;  %v4185_v42 = vld [vmem:[#allocation4 + $0xf8] sm:$0xff] }
 0x54f   : > { %4568 = vmatpush.msrb.mxu0 %v4379_v53  ;;  %v4181_v53 = vld [vmem:[#allocation4 + $0xd8] sm:$0xff] }
 0x551   : > { %4569 = vmatpush.msrb.mxu0 %v4375_v50  ;;  %v4177_v50 = vld [vmem:[#allocation4 + $0xb8] sm:$0xff] }
 0x553   : > { %4570 = vmatpush.msrb.mxu0 %v4371_v33 }
 0x555   : > { %4571 = vmatpush.msrb.mxu0 %v4367_v58  ;;  %v4296_v58 = vld [vmem:[#allocation4 + $0x470] sm:$0xff] }
 0x557   : > { %4572 = vmatpush.msrb.mxu0 %v4363_v9  ;;  %v4292_v9 = vld [vmem:[#allocation4 + $0x450] sm:$0xff] }
 0x559   : > { %4573 = vmatpush.msrb.mxu0 %v4359_v41  ;;  %v4288_v41 = vld [vmem:[#allocation4 + $0x430] sm:$0xff] }
 0x55b   : > { %4574 = vmatpush.msrb.mxu0 %v4355_v19 }
 0x55c   : > { %v3898_v27 = vpop.f32.mrf.mxu0 }
 0x55d   : > { %v6766_v14 = vadd.f32 %v3898_v27, %v3879_v51  ;;  %v4236_v27 = vld [vmem:[#allocation4 + $0x290] sm:$0xff]  ;;  %4575 = vmatpush.msrb.mxu0 %v4351_v11  ;;  %v4345_v11 = vld [vmem:[#allocation4 + $0x5f8] sm:$0xff] }
 0x55e   : > { %v4078_v33 = vpop.f32.mrf.mxu1 }
 0x55f   : > { %4437 = vmatmul.f32.vlgmr.msrb.gmra.mxu1 %v6766_v14  ;;  %4576 = vmatpush.msrb.mxu0 %v4347_v45  ;;  %v4079_v39 = vadd.f32 %v4078_v33, %v3816_v24  ;;  %v4289_v33 = vld [vmem:[#allocation4 + $0x438] sm:$0xff] }
 0x560   : > { %4581 = vmatpush.msrb.mxu1 %v4216_v31  ;;  %v4217_v31 = vld [vmem:[#allocation4 + $0x1f8] sm:$0xff] }
 0x561   : > { %v4409_v24 = vld [vmem:[#allocation4 + $0x7f8] sm:$0xff] }
 0x562   : > { %4582 = vmatpush.msrb.mxu1 %v4212_v35  ;;  %v4228_v35 = vld [vmem:[#allocation4 + $0x250] sm:$0xff] }
 0x563   : > { %v4038_v57 = vpop.f32.mrf.mxu3 }
 0x564   : > { %4583 = vmatpush.msrb.mxu1 %v4208_v30  ;;  %v3978_v7 = vpop.f32.mrf.mxu0  ;;  %v4039_v51 = vadd.f32 %v4038_v57, %v4019_v18  ;;  %v4224_v30 = vld [vmem:[#allocation4 + $0x230] sm:$0xff]  ;;  %v4241_v18 = vld [vmem:[#allocation4 + $0x2b8] sm:$0xff] }
 0x565   : > { %v6769_v43 = vadd.f32 %v3978_v7, %v3959_v48  ;;  %v4205_v48 = vld [vmem:[#allocation4 + $0x198] sm:$0xff] }
 0x566   : > { %4584 = vmatpush.msrb.mxu1 %v4204_v60  ;;  %v4220_v60 = vld [vmem:[#allocation4 + $0x210] sm:$0xff]  ;;  %v4201_v7 = vld [vmem:[#allocation4 + $0x178] sm:$0xff] }
 0x567   : > { %4457 = vmatmul.f32.vlgmr.msrb.gmra.mxu2 %v6769_v43  ;;  %4517 = vmatmul.f32.vlgmr.msra.gmra.mxu1 %v6766_v14 }
 0x568   : > { %4585 = vmatpush.msrb.mxu1 %v4200_v59  ;;  %4601 = vmatpush.msrb.mxu2 %v4280_v17  ;;  %v4281_v59 = vld [vmem:[#allocation4 + $0x3f8] sm:$0xff]  ;;  %v4324_v17 = vld [vmem:[#allocation4 + $0x550] sm:$0xff] }
 0x56a   : > { %4586 = vmatpush.msrb.mxu1 %v4196_v63  ;;  %4602 = vmatpush.msrb.mxu2 %v4276_v47  ;;  %v4277_v63 = vld [vmem:[#allocation4 + $0x3d8] sm:$0xff]  ;;  %v4320_v47 = vld [vmem:[#allocation4 + $0x530] sm:$0xff] }
 0x56c   : > { %4587 = vmatpush.msrb.mxu1 %v4192_v1  ;;  %4603 = vmatpush.msrb.mxu2 %v4272_v8  ;;  %v4273_v1 = vld [vmem:[#allocation4 + $0x3b8] sm:$0xff]  ;;  %v4316_v8 = vld [vmem:[#allocation4 + $0x510] sm:$0xff]  ;;  %v4098_v62 = vpop.f32.mrf.mxu2 }
 0x56d   : > { %v4099_v57 = vadd.f32 %v4098_v62, %v4079_v39  ;;  %v4814_v62 = vld [vmem:[#allocation4 + $0x1e0] sm:$0xff] }
 0x56e   : > { %4588 = vmatpush.msrb.mxu1 %v4188_v10  ;;  %4604 = vmatpush.msrb.mxu2 %v4268_v21  ;;  %v4269_v10 = vld [vmem:[#allocation4 + $0x398] sm:$0xff]  ;;  %v4312_v21 = vld [vmem:[#allocation4 + $0x4f0] sm:$0xff]  ;;  %v4806_v39 = vld [vmem:[#allocation4 + $0x1a0] sm:$0xff] }
 0x56f   : > { %4537 = vmatmul.f32.vlgmr.msra.gmra.mxu2 %v6769_v43 }
 0x570   : > { %4589 = vmatpush.msrb.mxu1 %v4184_v20  ;;  %4605 = vmatpush.msrb.mxu2 %v4264_v49  ;;  %v4265_v20 = vld [vmem:[#allocation4 + $0x378] sm:$0xff]  ;;  %v4308_v49 = vld [vmem:[#allocation4 + $0x4d0] sm:$0xff] }
 0x572   : > { %4590 = vmatpush.msrb.mxu1 %v4180_v4  ;;  %4606 = vmatpush.msrb.mxu2 %v4260_v40  ;;  %v4261_v4 = vld [vmem:[#allocation4 + $0x358] sm:$0xff]  ;;  %v4304_v40 = vld [vmem:[#allocation4 + $0x4b0] sm:$0xff] }
 0x574   : > { %4591 = vmatpush.msrb.mxu1 %v4176_v0  ;;  %4607 = vmatpush.msrb.mxu2 %v4256_v12  ;;  %v4257_v0 = vld [vmem:[#allocation4 + $0x338] sm:$0xff]  ;;  %v4300_v12 = vld [vmem:[#allocation4 + $0x490] sm:$0xff] }
 0x576   : > { %4592 = vmatpush.msrb.mxu1 %v4172_v56  ;;  %4608 = vmatpush.msrb.mxu2 %v4252_v54  ;;  %v4173_v56 = vld [vmem:[#allocation4 + $0x98] sm:$0xff] }
 0x577   : > { %v4253_v54 = vld [vmem:[#allocation4 + $0x318] sm:$0xff] }
 0x578   : > { %4593 = vmatpush.msrb.mxu1 %v4168_v5  ;;  %4609 = vmatpush.msrb.mxu2 %v4248_v2  ;;  %v4169_v5 = vld [vmem:[#allocation4 + $0x78] sm:$0xff] }
 0x579   : > { %v4249_v2 = vld [vmem:[#allocation4 + $0x2f8] sm:$0xff] }
 0x57a   : > { %4594 = vmatpush.msrb.mxu1 %v4164_v32  ;;  %4610 = vmatpush.msrb.mxu2 %v4244_v6  ;;  %v4165_v32 = vld [vmem:[#allocation4 + $0x58] sm:$0xff] }
 0x57b   : > { %v4245_v6 = vld [vmem:[#allocation4 + $0x2d8] sm:$0xff] }
 0x57c   : > { %v4058_v34 = vpop.f32.mrf.mxu0  ;;  %4595 = vmatpush.msrb.mxu1 %v4160_v15  ;;  %4611 = vmatpush.msrb.mxu2 %v4240_v22  ;;  %v4284_v22 = vld [vmem:[#allocation4 + $0x410] sm:$0xff] }
 0x57d   : > { %v6775_v28 = vadd.f32 %v4058_v34, %v4039_v51  ;;  %v4157_v51 = vld [vmem:[#allocation4 + $0x18] sm:$0xff] }
 0x57e   : > { %4596 = vmatpush.msrb.mxu1 %v4156_v23  ;;  %4612 = vmatpush.msrb.mxu2 %v4236_v27  ;;  %v4237_v23 = vld [vmem:[#allocation4 + $0x298] sm:$0xff]  ;;  %v4145_v27 = vrot.slane %v6769_v43, 7 }
 0x57f   : > { %4477 = vmatmul.f32.vlgmr.msrb.gmra.mxu3 %v6775_v28  ;;  %4597 = vmatmul.f32.vlgmr.msrb.gmra.mxu1 %v6766_v14 }
 0x580   : > { %4621 = vmatpush.msrb.mxu3 %v4344_v3  ;;  %4661 = vmatpush.msra.mxu1 %v4217_v31  ;;  %v4408_v3 = vld [vmem:[#allocation4 + $0x7f0] sm:$0xff]  ;;  %v4146_v31 = vrot.slane %v6775_v28, 6 }
 0x581   : > { %4613 = vmatpush.msrb.mxu2 %v4232_v25 }
 0x582   : > { %4622 = vmatpush.msrb.mxu3 %v4340_v38  ;;  %4662 = vmatpush.msra.mxu1 %v4213_v44  ;;  %v4233_v38 = vld [vmem:[#allocation4 + $0x278] sm:$0xff]  ;;  %v4404_v44 = vld [vmem:[#allocation4 + $0x7d0] sm:$0xff] }
 0x583   : > { %4614 = vmatpush.msrb.mxu2 %v4228_v35  ;;  %v4118_v37 = vpop.f32.mrf.mxu3  ;;  %v4148_v35 = vsel %vm1141_vm6, %v6766_v14, %v4145_v27  ;;  %v4862_v27 = vld [vmem:[#allocation4 + $0x360] sm:$0xff] }
 0x584   : > { %4623 = vmatpush.msrb.mxu3 %v4336_v52  ;;  %4663 = vmatpush.msra.mxu1 %v4209_v29  ;;  %v4119_v15 = vadd.f32 %v4118_v37, %v4099_v57  ;;  %v4341_v52 = vld [vmem:[#allocation4 + $0x5d8] sm:$0xff]  ;;  %v4802_v37 = vld [vmem:[#allocation4 + $0x180] sm:$0xff] }
 0x585   : > { %4615 = vmatpush.msrb.mxu2 %v4224_v30  ;;  %v4229_v29 = vld [vmem:[#allocation4 + $0x258] sm:$0xff] }
 0x586   : > { %4624 = vmatpush.msrb.mxu3 %v4332_v13  ;;  %4664 = vmatpush.msra.mxu1 %v4205_v48  ;;  %v4400_v13 = vld [vmem:[#allocation4 + $0x7b0] sm:$0xff]  ;;  %v4337_v48 = vld [vmem:[#allocation4 + $0x5b8] sm:$0xff] }
 0x587   : > { %4616 = vmatpush.msrb.mxu2 %v4220_v60  ;;  %4557 = vmatmul.f32.vlgmr.msra.gmra.mxu3 %v6775_v28  ;;  %v4225_v60 = vld [vmem:[#allocation4 + $0x238] sm:$0xff] }
 0x588   : > { %4617 = vmatmul.f32.vlgmr.msrb.gmra.mxu2 %v6769_v43  ;;  %4625 = vmatpush.msrb.mxu3 %v4328_v36  ;;  %v4396_v36 = vld [vmem:[#allocation4 + $0x790] sm:$0xff]  ;;  %v4393_v57 = vld [vmem:[#allocation4 + $0x778] sm:$0xff] }
 0x589   : > { %4665 = vmatpush.msra.mxu1 %v4201_v7  ;;  %4681 = vmatpush.msra.mxu2 %v4281_v59  ;;  %v4333_v7 = vld [vmem:[#allocation4 + $0x598] sm:$0xff] }
 0x58a   : > { %4626 = vmatpush.msrb.mxu3 %v4324_v17  ;;  %v4221_v59 = vld [vmem:[#allocation4 + $0x218] sm:$0xff] }
 0x58b   : > { %4666 = vmatpush.msra.mxu1 %v4197_v46  ;;  %4682 = vmatpush.msra.mxu2 %v4277_v63  ;;  %v4329_v17 = vld [vmem:[#allocation4 + $0x578] sm:$0xff]  ;;  %v4388_v46 = vld [vmem:[#allocation4 + $0x750] sm:$0xff] }
 0x58c   : > { %4627 = vmatpush.msrb.mxu3 %v4320_v47  ;;  %v4325_v63 = vld [vmem:[#allocation4 + $0x558] sm:$0xff]  ;;  %v4384_v47 = vld [vmem:[#allocation4 + $0x730] sm:$0xff] }
 0x58d   : > { %4667 = vmatpush.msra.mxu1 %v4193_v61  ;;  %4683 = vmatpush.msra.mxu2 %v4273_v1  ;;  %v4321_v61 = vld [vmem:[#allocation4 + $0x538] sm:$0xff]  ;;  %v4380_v1 = vld [vmem:[#allocation4 + $0x710] sm:$0xff] }
 0x58e   : > { %4628 = vmatpush.msrb.mxu3 %v4316_v8  ;;  %v4317_v8 = vld [vmem:[#allocation4 + $0x518] sm:$0xff] }
 0x58f   : > { %4668 = vmatpush.msra.mxu1 %v4189_v26  ;;  %4684 = vmatpush.msra.mxu2 %v4269_v10  ;;  %v4376_v26 = vld [vmem:[#allocation4 + $0x6f0] sm:$0xff]  ;;  %v4313_v10 = vld [vmem:[#allocation4 + $0x4f8] sm:$0xff] }
 0x590   : > { %4629 = vmatpush.msrb.mxu3 %v4312_v21  ;;  %v4372_v21 = vld [vmem:[#allocation4 + $0x6d0] sm:$0xff] }
 0x591   : > { %4669 = vmatpush.msra.mxu1 %v4185_v42  ;;  %4685 = vmatpush.msra.mxu2 %v4265_v20  ;;  %v4309_v42 = vld [vmem:[#allocation4 + $0x4d8] sm:$0xff] }
 0x592   : > { %4630 = vmatpush.msrb.mxu3 %v4308_v49  ;;  %v4305_v20 = vld [vmem:[#allocation4 + $0x4b8] sm:$0xff]  ;;  %v4364_v49 = vld [vmem:[#allocation4 + $0x690] sm:$0xff] }
 0x593   : > { %4670 = vmatpush.msra.mxu1 %v4181_v53  ;;  %4686 = vmatpush.msra.mxu2 %v4261_v4  ;;  %v4301_v53 = vld [vmem:[#allocation4 + $0x498] sm:$0xff]  ;;  %v4360_v4 = vld [vmem:[#allocation4 + $0x670] sm:$0xff] }
 0x594   : > { %4631 = vmatpush.msrb.mxu3 %v4304_v40  ;;  %v4297_v40 = vld [vmem:[#allocation4 + $0x478] sm:$0xff] }
 0x595   : > { %4671 = vmatpush.msra.mxu1 %v4177_v50  ;;  %4687 = vmatpush.msra.mxu2 %v4257_v0  ;;  %v4356_v50 = vld [vmem:[#allocation4 + $0x650] sm:$0xff]  ;;  %v4293_v0 = vld [vmem:[#allocation4 + $0x458] sm:$0xff] }
 0x596   : > { %4632 = vmatpush.msrb.mxu3 %v4300_v12  ;;  %v4352_v12 = vld [vmem:[#allocation4 + $0x630] sm:$0xff] }
 0x597   : > { %4672 = vmatpush.msra.mxu1 %v4173_v56  ;;  %4688 = vmatpush.msra.mxu2 %v4253_v54  ;;  %v4348_v56 = vld [vmem:[#allocation4 + $0x610] sm:$0xff]  ;;  %v4285_v54 = vld [vmem:[#allocation4 + $0x418] sm:$0xff] }
 0x598   : > { %4633 = vmatpush.msrb.mxu3 %v4296_v58  ;;  %v4405_v58 = vld [vmem:[#allocation4 + $0x7d8] sm:$0xff] }
 0x599   : > { %4673 = vmatpush.msra.mxu1 %v4169_v5  ;;  %4689 = vmatpush.msra.mxu2 %v4249_v2  ;;  %v4810_v5 = vld [vmem:[#allocation4 + $0x1c0] sm:$0xff]  ;;  %v4401_v2 = vld [vmem:[#allocation4 + $0x7b8] sm:$0xff] }
 0x59a   : > { %4634 = vmatpush.msrb.mxu3 %v4292_v9  ;;  %v4397_v9 = vld [vmem:[#allocation4 + $0x798] sm:$0xff] }
 0x59b   : > { %4674 = vmatpush.msra.mxu1 %v4165_v32  ;;  %4690 = vmatpush.msra.mxu2 %v4245_v6  ;;  %v4878_v32 = vld [vmem:[#allocation4 + $0x3e0] sm:$0xff] }
 0x59c   : > { %v4138_v19 = vpop.f32.mrf.mxu0  ;;  %4635 = vmatpush.msrb.mxu3 %v4288_v41  ;;  %v4874_v6 = vld [vmem:[#allocation4 + $0x3c0] sm:$0xff] }
 0x59d   : > { %v6783_v34 = vadd.f32 %v4138_v19, %v4119_v15  ;;  %4675 = vmatpush.msra.mxu1 %v4161_v55  ;;  %4691 = vmatpush.msra.mxu2 %v4241_v18  ;;  %v4798_v41 = vld [vmem:[#allocation4 + $0x160] sm:$0xff]  ;;  %v4385_v18 = vld [vmem:[#allocation4 + $0x738] sm:$0xff] }
 0x59e   : > { %4636 = vmatpush.msrb.mxu3 %v4284_v22  ;;  %v4794_v55 = vld [vmem:[#allocation4 + $0x140] sm:$0xff] }
 0x59f   : > { %v4147_v25 = vrot.slane %v6783_v34, 5  ;;  %4676 = vmatpush.msra.mxu1 %v4157_v51  ;;  %4692 = vmatpush.msra.mxu2 %v4237_v23  ;;  %v4790_v15 = vld [vmem:[#allocation4 + $0x120] sm:$0xff]  ;;  %v4381_v51 = vld [vmem:[#allocation4 + $0x718] sm:$0xff] }
 0x5a0   : > { %4497 = vmatmul.f32.vlgmr.msra.gmra.mxu0 %v6783_v34  ;;  %4637 = vmatmul.f32.vlgmr.msrb.gmra.mxu3 %v6775_v28  ;;  %v4870_v22 = vld [vmem:[#allocation4 + $0x3a0] sm:$0xff] }
 0x5a1   : > { %v4149_v45 = vsel %vm1143_vm7, %v4146_v31, %v4147_v25  ;;  %4641 = vmatpush.msra.mxu0 %v4408_v3  ;;  %4677 = vmatmul.f32.vlgmr.msra.gmra.mxu1 %v6766_v14  ;;  %v4392_v14 = vld [vmem:[#allocation4 + $0x770] sm:$0xff]  ;;  %v4866_v19 = vld [vmem:[#allocation4 + $0x380] sm:$0xff]  ;;  %v4377_v3 = vld [vmem:[#allocation4 + $0x6f8] sm:$0xff] }
 0x5a2   : > { %v4150_v30 = vsel %vm1145_vm8, %v4148_v35, %v4149_v45  ;;  %4701 = vmatpush.msra.mxu3 %v4345_v11  ;;  %4693 = vmatpush.msra.mxu2 %v4233_v38  ;;  %v4786_v23 = vld [vmem:[#allocation4 + $0x100] sm:$0xff]  ;;  %v4373_v11 = vld [vmem:[#allocation4 + $0x6d8] sm:$0xff] }
 0x5a3   : > { %4642 = vmatpush.msra.mxu0 %v4404_v44  ;;  %4152 = vst.msk [vmem:[#allocation3 + $0x5] ss:$8 sm:$0xf] %vm6592_vm9, %v4150_v30  ;;  %5021 = vmatpush.msrb.mxu1 %v4814_v62  ;;  %v4782_v31 = vld [vmem:[#allocation4 + $0xe0] sm:$0xff]  ;;  %v4369_v44 = vld [vmem:[#allocation4 + $0x6b8] sm:$0xff] }
 0x5a4   : > { %4702 = vmatpush.msra.mxu3 %v4341_v52  ;;  %4694 = vmatpush.msra.mxu2 %v4229_v29  ;;  %v4858_v25 = vld [vmem:[#allocation4 + $0x340] sm:$0xff]  ;;  %v4365_v29 = vld [vmem:[#allocation4 + $0x698] sm:$0xff] }
 0x5a5   : > { %4643 = vmatpush.msra.mxu0 %v4400_v13  ;;  %5022 = vmatpush.msrb.mxu1 %v4810_v5  ;;  %v4778_v38 = vld [vmem:[#allocation4 + $0xc0] sm:$0xff]  ;;  %v4787_v5 = vld [vmem:[#allocation4 + $0x108] sm:$0xff] }
 0x5a6   : > { %4703 = vmatpush.msra.mxu3 %v4337_v48  ;;  %4695 = vmatpush.msra.mxu2 %v4225_v60  ;;  %v4774_v35 = vld [vmem:[#allocation4 + $0xa0] sm:$0xff]  ;;  %v4361_v48 = vld [vmem:[#allocation4 + $0x678] sm:$0xff] }
 0x5a7   : > { %4644 = vmatpush.msra.mxu0 %v4396_v36  ;;  %5023 = vmatpush.msrb.mxu1 %v4806_v39  ;;  %v4854_v45 = vld [vmem:[#allocation4 + $0x320] sm:$0xff] }
 0x5a8   : > { %4704 = vmatpush.msra.mxu3 %v4333_v7  ;;  %4696 = vmatpush.msra.mxu2 %v4221_v59  ;;  %v4850_v52 = vld [vmem:[#allocation4 + $0x300] sm:$0xff]  ;;  %v4357_v7 = vld [vmem:[#allocation4 + $0x658] sm:$0xff] }
 0x5a9   : > { %4577 = vmatmul.f32.vlgmr.msrb.gmra.mxu0 %v6783_v34  ;;  %4697 = vmatmul.f32.vlgmr.msra.gmra.mxu2 %v6769_v43  ;;  %v4368_v43 = vld [vmem:[#allocation4 + $0x6b0] sm:$0xff]  ;;  %v4770_v30 = vld [vmem:[#allocation4 + $0x80] sm:$0xff] }
 0x5aa   : > { %4645 = vmatpush.msra.mxu0 %v4392_v14  ;;  %4705 = vmatpush.msra.mxu3 %v4329_v17  ;;  %v4846_v13 = vld [vmem:[#allocation4 + $0x2e0] sm:$0xff]  ;;  %v4353_v14 = vld [vmem:[#allocation4 + $0x638] sm:$0xff] }
 0x5ab   : > { %5041 = vmatpush.msrb.mxu2 %v4878_v32  ;;  %5024 = vmatpush.msrb.mxu1 %v4802_v37  ;;  %v4766_v60 = vld [vmem:[#allocation4 + $0x60] sm:$0xff]  ;;  %v4349_v17 = vld [vmem:[#allocation4 + $0x618] sm:$0xff]  ;;  %v4863_v37 = vld [vmem:[#allocation4 + $0x368] sm:$0xff] }
 0x5ac   : > { %4646 = vmatpush.msra.mxu0 %v4388_v46  ;;  %4706 = vmatpush.msra.mxu3 %v4325_v63  ;;  %v4842_v36 = vld [vmem:[#allocation4 + $0x2c0] sm:$0xff] }
 0x5ad   : > { %5042 = vmatpush.msrb.mxu2 %v4874_v6  ;;  %5025 = vmatpush.msrb.mxu1 %v4798_v41  ;;  %v4762_v59 = vld [vmem:[#allocation4 + $0x40] sm:$0xff]  ;;  %v4779_v6 = vld [vmem:[#allocation4 + $0xc8] sm:$0xff] }
 0x5ae   : > { %4647 = vmatpush.msra.mxu0 %v4384_v47  ;;  %4707 = vmatpush.msra.mxu3 %v4321_v61  ;;  %v4758_v46 = vld [vmem:[#allocation4 + $0x20] sm:$0xff] }
 0x5af   : > { %5026 = vmatpush.msrb.mxu1 %v4794_v55  ;;  %5043 = vmatpush.msrb.mxu2 %v4870_v22  ;;  %v4838_v63 = vld [vmem:[#allocation4 + $0x2a0] sm:$0xff]  ;;  %v4855_v55 = vld [vmem:[#allocation4 + $0x328] sm:$0xff] }
 0x5b0   : > { %4648 = vmatpush.msra.mxu0 %v4380_v1  ;;  %4708 = vmatpush.msra.mxu3 %v4317_v8  ;;  %v4754_v47 = vld [vmem:[#allocation4] sm:$0xff]  ;;  %v4815_v8 = vld [vmem:[#allocation4 + $0x1e8] sm:$0xff] }
 0x5b1   : > { %5027 = vmatpush.msrb.mxu1 %v4790_v15  ;;  %5044 = vmatpush.msrb.mxu2 %v4866_v19  ;;  %v4834_v61 = vld [vmem:[#allocation4 + $0x280] sm:$0xff]  ;;  %v4771_v15 = vld [vmem:[#allocation4 + $0x88] sm:$0xff] }
 0x5b2   : > { %4649 = vmatpush.msra.mxu0 %v4376_v26  ;;  %4709 = vmatpush.msra.mxu3 %v4313_v10  ;;  %v4942_v1 = vld [vmem:[#allocation4 + $0x5e0] sm:$0xff]  ;;  %v4851_v22 = vld [vmem:[#allocation4 + $0x308] sm:$0xff] }
 0x5b3   : > { %5028 = vmatpush.msrb.mxu1 %v4786_v23  ;;  %5045 = vmatpush.msrb.mxu2 %v4862_v27  ;;  %v4938_v26 = vld [vmem:[#allocation4 + $0x5c0] sm:$0xff]  ;;  %v4847_v23 = vld [vmem:[#allocation4 + $0x2e8] sm:$0xff] }
 0x5b4   : > { %4650 = vmatpush.msra.mxu0 %v4372_v21  ;;  %4710 = vmatpush.msra.mxu3 %v4309_v42  ;;  %v4830_v10 = vld [vmem:[#allocation4 + $0x260] sm:$0xff]  ;;  %v4811_v21 = vld [vmem:[#allocation4 + $0x1c8] sm:$0xff] }
 0x5b5   : > { %5029 = vmatpush.msrb.mxu1 %v4782_v31  ;;  %5046 = vmatpush.msrb.mxu2 %v4858_v25  ;;  %v4826_v42 = vld [vmem:[#allocation4 + $0x240] sm:$0xff]  ;;  %v4843_v31 = vld [vmem:[#allocation4 + $0x2c8] sm:$0xff] }
 0x5b6   : > { %4651 = vmatpush.msra.mxu0 %v4368_v43  ;;  %4711 = vmatpush.msra.mxu3 %v4305_v20  ;;  %v4934_v43 = vld [vmem:[#allocation4 + $0x5a0] sm:$0xff]  ;;  %v4807_v20 = vld [vmem:[#allocation4 + $0x1a8] sm:$0xff] }
 0x5b7   : > { %5030 = vmatpush.msrb.mxu1 %v4778_v38  ;;  %5047 = vmatpush.msrb.mxu2 %v4854_v45  ;;  %v4914_v62 = vld [vmem:[#allocation4 + $0x500] sm:$0xff]  ;;  %v4839_v38 = vld [vmem:[#allocation4 + $0x2a8] sm:$0xff] }
 0x5b8   : > { %4652 = vmatpush.msra.mxu0 %v4364_v49  ;;  %4712 = vmatpush.msra.mxu3 %v4301_v53  ;;  %v4822_v49 = vld [vmem:[#allocation4 + $0x220] sm:$0xff]  ;;  %v4835_v45 = vld [vmem:[#allocation4 + $0x288] sm:$0xff] }
 0x5b9   : > { %5031 = vmatpush.msrb.mxu1 %v4774_v35  ;;  %5048 = vmatpush.msrb.mxu2 %v4850_v52  ;;  %v4930_v53 = vld [vmem:[#allocation4 + $0x580] sm:$0xff]  ;;  %v4755_v35 = vld [vmem:[#allocation4 + $0x8] sm:$0xff] }
 0x5ba   : > { %4653 = vmatpush.msra.mxu0 %v4360_v4  ;;  %4713 = vmatpush.msra.mxu3 %v4297_v40  ;;  %v4803_v4 = vld [vmem:[#allocation4 + $0x188] sm:$0xff]  ;;  %v4926_v40 = vld [vmem:[#allocation4 + $0x560] sm:$0xff] }
 0x5bb   : > { %5032 = vmatpush.msrb.mxu1 %v4770_v30  ;;  %5049 = vmatpush.msrb.mxu2 %v4846_v13  ;;  %v4910_v39 = vld [vmem:[#allocation4 + $0x4e0] sm:$0xff]  ;;  %v4831_v30 = vld [vmem:[#allocation4 + $0x268] sm:$0xff] }
 0x5bc   : > { %4654 = vmatpush.msra.mxu0 %v4356_v50  ;;  %4714 = vmatpush.msra.mxu3 %v4293_v0  ;;  %v4818_v50 = vld [vmem:[#allocation4 + $0x200] sm:$0xff]  ;;  %v4879_v0 = vld [vmem:[#allocation4 + $0x3e8] sm:$0xff] }
 0x5bd   : > { %5033 = vmatpush.msrb.mxu1 %v4766_v60  ;;  %5050 = vmatpush.msrb.mxu2 %v4842_v36  ;;  %v4906_v32 = vld [vmem:[#allocation4 + $0x4c0] sm:$0xff]  ;;  %v4827_v60 = vld [vmem:[#allocation4 + $0x248] sm:$0xff] }
 0x5be   : > { %4655 = vmatpush.msra.mxu0 %v4352_v12  ;;  %4715 = vmatpush.msra.mxu3 %v4289_v33  ;;  %v4922_v12 = vld [vmem:[#allocation4 + $0x540] sm:$0xff]  ;;  %v4795_v33 = vld [vmem:[#allocation4 + $0x148] sm:$0xff] }
 0x5bf   : > { %5034 = vmatpush.msrb.mxu1 %v4762_v59  ;;  %5051 = vmatpush.msrb.mxu2 %v4838_v63  ;;  %v4902_v41 = vld [vmem:[#allocation4 + $0x4a0] sm:$0xff]  ;;  %v4823_v59 = vld [vmem:[#allocation4 + $0x228] sm:$0xff] }
 0x5c0   : > { %4656 = vmatpush.msra.mxu0 %v4348_v56  ;;  %4716 = vmatpush.msra.mxu3 %v4285_v54  ;;  %v4875_v56 = vld [vmem:[#allocation4 + $0x3c8] sm:$0xff]  ;;  %v4918_v54 = vld [vmem:[#allocation4 + $0x520] sm:$0xff] }
 0x5c1   : > { %4657 = vmatmul.f32.vlgmr.msra.gmra.mxu0 %v6783_v34  ;;  %4717 = vmatmul.f32.vlgmr.msra.gmra.mxu3 %v6775_v28  ;;  %v4389_v28 = vld [vmem:[#allocation4 + $0x758] sm:$0xff]  ;;  %v4894_v19 = vld [vmem:[#allocation4 + $0x460] sm:$0xff] }
 0x5c2   : > { %4721 = vmatpush.msrb.mxu0 %v4409_v24  ;;  %5035 = vmatpush.msrb.mxu1 %v4758_v46  ;;  %v4791_v24 = vld [vmem:[#allocation4 + $0x128] sm:$0xff]  ;;  %v4890_v27 = vld [vmem:[#allocation4 + $0x440] sm:$0xff] }
 0x5c3   : > { %5061 = vmatpush.msrb.mxu3 %v4942_v1  ;;  %5052 = vmatpush.msrb.mxu2 %v4834_v61  ;;  %v4886_v25 = vld [vmem:[#allocation4 + $0x420] sm:$0xff]  ;;  %v4819_v46 = vld [vmem:[#allocation4 + $0x208] sm:$0xff] }
 0x5c4   : > { %4722 = vmatpush.msrb.mxu0 %v4405_v58  ;;  %5036 = vmatpush.msrb.mxu1 %v4754_v47  ;;  %v4871_v58 = vld [vmem:[#allocation4 + $0x3a8] sm:$0xff]  ;;  %v5006_v52 = vld [vmem:[#allocation4 + $0x7e0] sm:$0xff] }
 0x5c5   : > { %5062 = vmatpush.msrb.mxu3 %v4938_v26  ;;  %5053 = vmatpush.msrb.mxu2 %v4830_v10  ;;  %v5002_v13 = vld [vmem:[#allocation4 + $0x7c0] sm:$0xff]  ;;  %v4927_v47 = vld [vmem:[#allocation4 + $0x568] sm:$0xff] }
 0x5c6   : > { %4723 = vmatpush.msrb.mxu0 %v4401_v2  ;;  %5101 = vmatpush.msra.mxu1 %v4815_v8  ;;  %v4867_v2 = vld [vmem:[#allocation4 + $0x388] sm:$0xff]  ;;  %v4998_v36 = vld [vmem:[#allocation4 + $0x7a0] sm:$0xff] }
 0x5c7   : > { %5063 = vmatpush.msrb.mxu3 %v4934_v43  ;;  %5054 = vmatpush.msrb.mxu2 %v4826_v42  ;;  %v4990_v63 = vld [vmem:[#allocation4 + $0x760] sm:$0xff]  ;;  %v4923_v1 = vld [vmem:[#allocation4 + $0x548] sm:$0xff] }
 0x5c8   : > { %4724 = vmatpush.msrb.mxu0 %v4397_v9  ;;  %5102 = vmatpush.msra.mxu1 %v4811_v21  ;;  %v4783_v9 = vld [vmem:[#allocation4 + $0xe8] sm:$0xff]  ;;  %v4986_v61 = vld [vmem:[#allocation4 + $0x740] sm:$0xff] }
 0x5c9   : > { %5064 = vmatpush.msrb.mxu3 %v4930_v53  ;;  %5055 = vmatpush.msrb.mxu2 %v4822_v49  ;;  %v4982_v8 = vld [vmem:[#allocation4 + $0x720] sm:$0xff]  ;;  %v4919_v26 = vld [vmem:[#allocation4 + $0x528] sm:$0xff] }
 0x5ca   : > { %4725 = vmatpush.msrb.mxu0 %v4393_v57  ;;  %5103 = vmatpush.msra.mxu1 %v4807_v20  ;;  %v4859_v57 = vld [vmem:[#allocation4 + $0x348] sm:$0xff]  ;;  %v4978_v10 = vld [vmem:[#allocation4 + $0x700] sm:$0xff] }
 0x5cb   : > { %5065 = vmatpush.msrb.mxu3 %v4926_v40  ;;  %5056 = vmatpush.msrb.mxu2 %v4818_v50  ;;  %v4915_v21 = vld [vmem:[#allocation4 + $0x508] sm:$0xff]  ;;  %v4974_v42 = vld [vmem:[#allocation4 + $0x6e0] sm:$0xff] }
 0x5cc   : > { %4726 = vmatpush.msrb.mxu0 %v4389_v28  ;;  %5104 = vmatpush.msra.mxu1 %v4803_v4  ;;  %v4775_v28 = vld [vmem:[#allocation4 + $0xa8] sm:$0xff]  ;;  %v4970_v20 = vld [vmem:[#allocation4 + $0x6c0] sm:$0xff] }
 0x5cd   : > { %5121 = vmatpush.msra.mxu2 %v4879_v0  ;;  %5066 = vmatpush.msrb.mxu3 %v4922_v12  ;;  %v4911_v43 = vld [vmem:[#allocation4 + $0x4e8] sm:$0xff]  ;;  %v4966_v40 = vld [vmem:[#allocation4 + $0x6a0] sm:$0xff] }
 0x5ce   : > { %4727 = vmatpush.msrb.mxu0 %v4385_v18  ;;  %v4898_v18 = vld [vmem:[#allocation4 + $0x480] sm:$0xff]  ;;  %v4907_v53 = vld [vmem:[#allocation4 + $0x4c8] sm:$0xff] }
 0x5cf   : > { %5122 = vmatpush.msra.mxu2 %v4875_v56  ;;  %5067 = vmatpush.msrb.mxu3 %v4918_v54  ;;  %v6801_v49 = vld [vmem:[#allocation3 + $0x6] ss:$8 sm:$0xf] }
 0x5d0   : > { %4728 = vmatpush.msrb.mxu0 %v4381_v51  ;;  %v4767_v51 = vld [vmem:[#allocation4 + $0x68] sm:$0xff]  ;;  %v4962_v12 = vld [vmem:[#allocation4 + $0x680] sm:$0xff] }
 0x5d1   : > { %5123 = vmatpush.msra.mxu2 %v4871_v58  ;;  %5068 = vmatpush.msrb.mxu3 %v4914_v62  ;;  %v4903_v50 = vld [vmem:[#allocation4 + $0x4a8] sm:$0xff] }
 0x5d2   : > { %4729 = vmatpush.msrb.mxu0 %v4377_v3  ;;  %v4763_v3 = vld [vmem:[#allocation4 + $0x48] sm:$0xff] }
 0x5d3   : > { %5124 = vmatpush.msra.mxu2 %v4867_v2  ;;  %5069 = vmatpush.msrb.mxu3 %v4910_v39  ;;  %v4895_v58 = vld [vmem:[#allocation4 + $0x468] sm:$0xff] }
 0x5d4   : > { %4730 = vmatpush.msrb.mxu0 %v4373_v11  ;;  %v4759_v11 = vld [vmem:[#allocation4 + $0x28] sm:$0xff] }
 0x5d5   : > { %5125 = vmatpush.msra.mxu2 %v4863_v37  ;;  %5070 = vmatpush.msrb.mxu3 %v4906_v32  ;;  %v4891_v2 = vld [vmem:[#allocation4 + $0x448] sm:$0xff] }
 0x5d6   : > { %4731 = vmatpush.msrb.mxu0 %v4369_v44  ;;  %v4882_v44 = vld [vmem:[#allocation4 + $0x400] sm:$0xff] }
 0x5d7   : > { %5126 = vmatpush.msra.mxu2 %v4859_v57  ;;  %5071 = vmatpush.msrb.mxu3 %v4902_v41  ;;  %v4950_v57 = vld [vmem:[#allocation4 + $0x620] sm:$0xff]  ;;  %v4887_v41 = vld [vmem:[#allocation4 + $0x428] sm:$0xff] }
 0x5d8   : > { %4732 = vmatpush.msrb.mxu0 %v4365_v29  ;;  %v4943_v29 = vld [vmem:[#allocation4 + $0x5e8] sm:$0xff] }
 0x5d9   : > { %5127 = vmatpush.msra.mxu2 %v4855_v55  ;;  %5072 = vmatpush.msrb.mxu3 %v4898_v18  ;;  %v4812_v18 = vld [vmem:[#allocation4 + $0x1d0] sm:$0xff] }
 0x5da   : > { %4733 = vmatpush.msrb.mxu0 %v4361_v48  ;;  %v4939_v48 = vld [vmem:[#allocation4 + $0x5c8] sm:$0xff] }
 0x5db   : > { %5128 = vmatpush.msra.mxu2 %v4851_v22  ;;  %5073 = vmatpush.msrb.mxu3 %v4894_v19  ;;  %v4883_v22 = vld [vmem:[#allocation4 + $0x408] sm:$0xff] }
 0x5dc   : > { %4734 = vmatpush.msrb.mxu0 %v4357_v7  ;;  %v4935_v7 = vld [vmem:[#allocation4 + $0x5a8] sm:$0xff]  ;;  %v4438_v4 = vpop.f32.mrf.mxu1 }
 0x5dd   : > { %5129 = vmatpush.msra.mxu2 %v4847_v23  ;;  %5074 = vmatpush.msrb.mxu3 %v4890_v27  ;;  %v4808_v27 = vld [vmem:[#allocation4 + $0x1b0] sm:$0xff] }
 0x5de   : > { %4735 = vmatpush.msrb.mxu0 %v4353_v14  ;;  %v4994_v14 = vld [vmem:[#allocation4 + $0x780] sm:$0xff] }
 0x5df   : > { %5130 = vmatpush.msra.mxu2 %v4843_v31  ;;  %5075 = vmatpush.msrb.mxu3 %v4886_v25  ;;  %v4804_v25 = vld [vmem:[#allocation4 + $0x190] sm:$0xff] }
 0x5e0   : > { %4736 = vmatpush.msrb.mxu0 %v4349_v17  ;;  %v4931_v17 = vld [vmem:[#allocation4 + $0x588] sm:$0xff] }
 0x5e1   : > { %4737 = vmatmul.f32.vlgmr.msrb.gmra.mxu0 %v6783_v34  ;;  %v4799_v34 = vld [vmem:[#allocation4 + $0x168] sm:$0xff]  ;;  %5131 = vmatpush.msra.mxu2 %v4839_v38 }
 0x5e2   : > { %5105 = vmatpush.msra.mxu1 %v4799_v34  ;;  %5076 = vmatpush.msrb.mxu3 %v4882_v44  ;;  %v4413_v34 = vperm.slane %v6801_v49, 0  ;;  %v4999_v38 = vld [vmem:[#allocation4 + $0x7a8] sm:$0xff] }
 0x5e3   : > { %5132 = vmatpush.msra.mxu2 %v4835_v45  ;;  %5081 = vmatpush.msra.mxu0 %v5006_v52  ;;  %v4995_v45 = vld [vmem:[#allocation4 + $0x788] sm:$0xff] }
 0x5e4   : > { %5106 = vmatpush.msra.mxu1 %v4795_v33  ;;  %5141 = vmatpush.msra.mxu3 %v4943_v29  ;;  %v4899_v33 = vld [vmem:[#allocation4 + $0x488] sm:$0xff]  ;;  %v4439_v56 = vadd.f32 %v4438_v4, %v4413_v34  ;;  %v4518_v37 = vpop.f32.mrf.mxu1  ;;  %v4880_v29 = vld [vmem:[#allocation4 + $0x3f0] sm:$0xff] }
 0x5e5   : > { %5133 = vmatpush.msra.mxu2 %v4831_v30  ;;  %5082 = vmatpush.msra.mxu0 %v5002_v13  ;;  %v4796_v30 = vld [vmem:[#allocation4 + $0x150] sm:$0xff]  ;;  %v4963_v34 = vld [vmem:[#allocation4 + $0x688] sm:$0xff] }
 0x5e6   : > { %5107 = vmatpush.msra.mxu1 %v4791_v24  ;;  %5142 = vmatpush.msra.mxu3 %v4939_v48  ;;  %v4958_v24 = vld [vmem:[#allocation4 + $0x660] sm:$0xff]  ;;  %v4876_v13 = vld [vmem:[#allocation4 + $0x3d0] sm:$0xff]  ;;  %v4991_v48 = vld [vmem:[#allocation4 + $0x768] sm:$0xff] }
 0x5e7   : > { %5134 = vmatpush.msra.mxu2 %v4827_v60  ;;  %5083 = vmatpush.msra.mxu0 %v4998_v36  ;;  %v4792_v60 = vld [vmem:[#allocation4 + $0x130] sm:$0xff] }
 0x5e8   : > { %5108 = vmatpush.msra.mxu1 %v4787_v5  ;;  %5143 = vmatpush.msra.mxu3 %v4935_v7  ;;  %v4954_v5 = vld [vmem:[#allocation4 + $0x640] sm:$0xff]  ;;  %v4872_v36 = vld [vmem:[#allocation4 + $0x3b0] sm:$0xff]  ;;  %v4987_v7 = vld [vmem:[#allocation4 + $0x748] sm:$0xff] }
 0x5e9   : > { %5135 = vmatpush.msra.mxu2 %v4823_v59  ;;  %5084 = vmatpush.msra.mxu0 %v4994_v14  ;;  %v4788_v59 = vld [vmem:[#allocation4 + $0x110] sm:$0xff] }
 0x5ea   : > { %5109 = vmatpush.msra.mxu1 %v4783_v9  ;;  %5144 = vmatpush.msra.mxu3 %v4931_v17  ;;  %v4458_v0 = vpop.f32.mrf.mxu2  ;;  %v4868_v14 = vld [vmem:[#allocation4 + $0x390] sm:$0xff]  ;;  %v4983_v17 = vld [vmem:[#allocation4 + $0x728] sm:$0xff] }
 0x5eb   : > { %5136 = vmatpush.msra.mxu2 %v4819_v46  ;;  %5085 = vmatpush.msra.mxu0 %v4990_v63  ;;  %v4459_v62 = vadd.f32 %v4458_v0, %v4439_v56  ;;  %v4784_v46 = vld [vmem:[#allocation4 + $0xf0] sm:$0xff] }
 0x5ec   : > { %5110 = vmatpush.msra.mxu1 %v4779_v6  ;;  %5145 = vmatpush.msra.mxu3 %v4927_v47  ;;  %v4816_v6 = vld [vmem:[#allocation4 + $0x1f0] sm:$0xff]  ;;  %v4979_v47 = vld [vmem:[#allocation4 + $0x708] sm:$0xff] }
 0x5ed   : > { %5086 = vmatpush.msra.mxu0 %v4986_v61  ;;  %v4864_v63 = vld [vmem:[#allocation4 + $0x370] sm:$0xff] }
 0x5ee   : > { %5111 = vmatpush.msra.mxu1 %v4775_v28  ;;  %5146 = vmatpush.msra.mxu3 %v4923_v1  ;;  %v4414_v28 = vperm.slane %v6801_v49, 1  ;;  %v4780_v61 = vld [vmem:[#allocation4 + $0xd0] sm:$0xff] }
 0x5ef   : > { %5087 = vmatpush.msra.mxu0 %v4982_v8  ;;  %v4860_v1 = vld [vmem:[#allocation4 + $0x350] sm:$0xff]  ;;  %v4975_v8 = vld [vmem:[#allocation4 + $0x6e8] sm:$0xff] }
 0x5f0   : > { %5112 = vmatpush.msra.mxu1 %v4771_v15  ;;  %5147 = vmatpush.msra.mxu3 %v4919_v26  ;;  %v4946_v15 = vld [vmem:[#allocation4 + $0x600] sm:$0xff]  ;;  %v4519_v19 = vadd.f32 %v4518_v37, %v4414_v28  ;;  %v4776_v26 = vld [vmem:[#allocation4 + $0xb0] sm:$0xff] }
 0x5f1   : > { %5088 = vmatpush.msra.mxu0 %v4978_v10  ;;  %v4856_v10 = vld [vmem:[#allocation4 + $0x330] sm:$0xff] }
 0x5f2   : > { %5113 = vmatpush.msra.mxu1 %v4767_v51  ;;  %5148 = vmatpush.msra.mxu3 %v4915_v21  ;;  %v4538_v55 = vpop.f32.mrf.mxu2  ;;  %v5007_v51 = vld [vmem:[#allocation4 + $0x7e8] sm:$0xff]  ;;  %v4768_v4 = vld [vmem:[#allocation4 + $0x70] sm:$0xff] }
 0x5f3   : > { %5089 = vmatpush.msra.mxu0 %v4974_v42  ;;  %v4539_v31 = vadd.f32 %v4538_v55, %v4519_v19  ;;  %v4971_v21 = vld [vmem:[#allocation4 + $0x6c8] sm:$0xff]  ;;  %v4772_v42 = vld [vmem:[#allocation4 + $0x90] sm:$0xff] }
 0x5f4   : > { %5114 = vmatpush.msra.mxu1 %v4763_v3  ;;  %5149 = vmatpush.msra.mxu3 %v4911_v43  ;;  %v5003_v3 = vld [vmem:[#allocation4 + $0x7c8] sm:$0xff]  ;;  %v4852_v43 = vld [vmem:[#allocation4 + $0x310] sm:$0xff] }
 0x5f5   : > { %5090 = vmatpush.msra.mxu0 %v4970_v20  ;;  %v4967_v20 = vld [vmem:[#allocation4 + $0x6a8] sm:$0xff]  ;;  %v4844_v56 = vld [vmem:[#allocation4 + $0x2d0] sm:$0xff] }
 0x5f6   : > { %5115 = vmatpush.msra.mxu1 %v4759_v11  ;;  %5150 = vmatpush.msra.mxu3 %v4907_v53  ;;  %v4836_v37 = vld [vmem:[#allocation4 + $0x290] sm:$0xff] }
 0x5f7   : > { %5091 = vmatpush.msra.mxu0 %v4966_v40  ;;  %v4415_v40 = vperm.slane %v6801_v49, 2  ;;  %v4944_v55 = vld [vmem:[#allocation4 + $0x5f0] sm:$0xff] }
 0x5f8   : > { %5116 = vmatpush.msra.mxu1 %v4755_v35  ;;  %5151 = vmatpush.msra.mxu3 %v4903_v50  ;;  %v4800_v35 = vld [vmem:[#allocation4 + $0x170] sm:$0xff] }
 0x5f9   : > { %5092 = vmatpush.msra.mxu0 %v4962_v12  ;;  %v4848_v50 = vld [vmem:[#allocation4 + $0x2f0] sm:$0xff] }
 0x5fa   : > { %5152 = vmatpush.msra.mxu3 %v4899_v33  ;;  %v4764_v12 = vld [vmem:[#allocation4 + $0x50] sm:$0xff] }
 0x5fb   : > { %5093 = vmatpush.msra.mxu0 %v4958_v24  ;;  %v4940_v19 = vld [vmem:[#allocation4 + $0x5d0] sm:$0xff] }
 0x5fc   : > { %5153 = vmatpush.msra.mxu3 %v4895_v58  ;;  %v4598_v53 = vpop.f32.mrf.mxu1  ;;  %v4760_v58 = vld [vmem:[#allocation4 + $0x30] sm:$0xff] }
 0x5fd   : > { %5094 = vmatpush.msra.mxu0 %v4954_v5  ;;  %v4599_v33 = vadd.f32 %v4598_v53, %v4415_v40  ;;  %v4840_v5 = vld [vmem:[#allocation4 + $0x2b0] sm:$0xff] }
 0x5fe   : > { %5154 = vmatpush.msra.mxu3 %v4891_v2  ;;  %v4955_v2 = vld [vmem:[#allocation4 + $0x648] sm:$0xff]  ;;  %v4896_v53 = vld [vmem:[#allocation4 + $0x470] sm:$0xff] }
 0x5ff   : > { %5095 = vmatpush.msra.mxu0 %v4950_v57  ;;  %v4817_v57 = vld [vmem:[#allocation4 + $0x1f8] sm:$0xff] }
 0x600   : > { %5155 = vmatpush.msra.mxu3 %v4887_v41  ;;  %v4951_v41 = vld [vmem:[#allocation4 + $0x628] sm:$0xff] }
 0x601   : > { %5096 = vmatpush.msra.mxu0 %v4946_v15  ;;  %v4813_v15 = vld [vmem:[#allocation4 + $0x1d8] sm:$0xff] }
 0x602   : > { %v4478_v54 = vpop.f32.mrf.mxu3  ;;  %5156 = vmatpush.msra.mxu3 %v4883_v22  ;;  %v4947_v22 = vld [vmem:[#allocation4 + $0x608] sm:$0xff] }
 0x603   : > { %v4479_v39 = vadd.f32 %v4478_v54, %v4459_v62  ;;  %5161 = vmatpush.msrb.mxu0 %v5007_v51  ;;  %v4959_v54 = vld [vmem:[#allocation4 + $0x668] sm:$0xff]  ;;  %v4828_v51 = vld [vmem:[#allocation4 + $0x250] sm:$0xff] }
 0x605   : > { %5162 = vmatpush.msrb.mxu0 %v5003_v3  ;;  %v4824_v3 = vld [vmem:[#allocation4 + $0x230] sm:$0xff] }
 0x607   : > { %5163 = vmatpush.msrb.mxu0 %v4999_v38  ;;  %v4928_v38 = vld [vmem:[#allocation4 + $0x570] sm:$0xff] }
 0x609   : > { %5164 = vmatpush.msrb.mxu0 %v4995_v45  ;;  %v4924_v45 = vld [vmem:[#allocation4 + $0x550] sm:$0xff] }
 0x60a   : > { %v4558_v23 = vpop.f32.mrf.mxu3 }
 0x60b   : > { %v4559_v11 = vadd.f32 %v4558_v23, %v4539_v31  ;;  %5165 = vmatpush.msrb.mxu0 %v4991_v48  ;;  %v4618_v0 = vpop.f32.mrf.mxu2  ;;  %v4809_v23 = vld [vmem:[#allocation4 + $0x1b8] sm:$0xff] }
 0x60c   : > { %v4619_v62 = vadd.f32 %v4618_v0, %v4599_v33  ;;  %v4805_v31 = vld [vmem:[#allocation4 + $0x198] sm:$0xff]  ;;  %v4892_v0 = vld [vmem:[#allocation4 + $0x450] sm:$0xff] }
 0x60d   : > { %5166 = vmatpush.msrb.mxu0 %v4987_v7  ;;  %v4793_v48 = vld [vmem:[#allocation4 + $0x138] sm:$0xff] }
 0x60e   : > { %v4789_v7 = vld [vmem:[#allocation4 + $0x118] sm:$0xff] }
 0x60f   : > { %5167 = vmatpush.msrb.mxu0 %v4983_v17  ;;  %v4785_v17 = vld [vmem:[#allocation4 + $0xf8] sm:$0xff] }
 0x611   : > { %5168 = vmatpush.msrb.mxu0 %v4979_v47  ;;  %v4781_v47 = vld [vmem:[#allocation4 + $0xd8] sm:$0xff] }
 0x613   : > { %5169 = vmatpush.msrb.mxu0 %v4975_v8  ;;  %v4777_v8 = vld [vmem:[#allocation4 + $0xb8] sm:$0xff] }
 0x615   : > { %5170 = vmatpush.msrb.mxu0 %v4971_v21  ;;  %v4773_v21 = vld [vmem:[#allocation4 + $0x98] sm:$0xff] }
 0x617   : > { %5171 = vmatpush.msrb.mxu0 %v4967_v20  ;;  %v4416_v20 = vperm.slane %v6801_v49, 3  ;;  %v4841_v49 = vld [vmem:[#allocation4 + $0x2b8] sm:$0xff] }
 0x619   : > { %5172 = vmatpush.msrb.mxu0 %v4963_v34 }
 0x61b   : > { %5173 = vmatpush.msrb.mxu0 %v4959_v54 }
 0x61d   : > { %v4498_v9 = vpop.f32.mrf.mxu0  ;;  %5174 = vmatpush.msrb.mxu0 %v4955_v2  ;;  %v4757_v2 = vld [vmem:[#allocation4 + $0x18] sm:$0xff] }
 0x61e   : > { %v6804_v32 = vadd.f32 %v4498_v9, %v4479_v39  ;;  %v4756_v39 = vld [vmem:[#allocation4 + $0x10] sm:$0xff] }
 0x61f   : > { %5175 = vmatpush.msrb.mxu0 %v4951_v41  ;;  %v4945_v41 = vld [vmem:[#allocation4 + $0x5f8] sm:$0xff] }
 0x620   : > { %5037 = vmatmul.f32.vlgmr.msrb.gmra.mxu1 %v6804_v32 }
 0x621   : > { %5181 = vmatpush.msrb.mxu1 %v4816_v6  ;;  %5176 = vmatpush.msrb.mxu0 %v4947_v22  ;;  %v5004_v22 = vld [vmem:[#allocation4 + $0x7d0] sm:$0xff] }
 0x623   : > { %5182 = vmatpush.msrb.mxu1 %v4812_v18  ;;  %v4638_v24 = vpop.f32.mrf.mxu3  ;;  %v4832_v18 = vld [vmem:[#allocation4 + $0x270] sm:$0xff] }
 0x624   : > { %v4639_v9 = vadd.f32 %v4638_v24, %v4619_v62  ;;  %v4888_v24 = vld [vmem:[#allocation4 + $0x430] sm:$0xff] }
 0x625   : > { %5183 = vmatpush.msrb.mxu1 %v4808_v27  ;;  %v4936_v27 = vld [vmem:[#allocation4 + $0x5b0] sm:$0xff] }
 0x626   : > { %v4578_v44 = vpop.f32.mrf.mxu0 }
 0x627   : > { %v6808_v52 = vadd.f32 %v4578_v44, %v4559_v11  ;;  %5184 = vmatpush.msrb.mxu1 %v4804_v25  ;;  %v4932_v25 = vld [vmem:[#allocation4 + $0x590] sm:$0xff]  ;;  %v4801_v44 = vld [vmem:[#allocation4 + $0x178] sm:$0xff] }
 0x628   : > { %5117 = vmatmul.f32.vlgmr.msra.gmra.mxu1 %v6804_v32  ;;  %v4820_v11 = vld [vmem:[#allocation4 + $0x210] sm:$0xff] }
 0x629   : > { %5057 = vmatmul.f32.vlgmr.msrb.gmra.mxu2 %v6808_v52  ;;  %5185 = vmatpush.msrb.mxu1 %v4800_v35  ;;  %v4881_v35 = vld [vmem:[#allocation4 + $0x3f8] sm:$0xff] }
 0x62a   : > { %5201 = vmatpush.msrb.mxu2 %v4880_v29  ;;  %v4797_v29 = vld [vmem:[#allocation4 + $0x158] sm:$0xff] }
 0x62b   : > { %5186 = vmatpush.msrb.mxu1 %v4796_v30  ;;  %v4877_v30 = vld [vmem:[#allocation4 + $0x3d8] sm:$0xff] }
 0x62c   : > { %5202 = vmatpush.msrb.mxu2 %v4876_v13  ;;  %v4920_v13 = vld [vmem:[#allocation4 + $0x530] sm:$0xff]  ;;  %v4698_v40 = vpop.f32.mrf.mxu2 }
 0x62d   : > { %5187 = vmatpush.msrb.mxu1 %v4792_v60  ;;  %v4873_v60 = vld [vmem:[#allocation4 + $0x3b8] sm:$0xff] }
 0x62e   : > { %5203 = vmatpush.msrb.mxu2 %v4872_v36  ;;  %v4916_v36 = vld [vmem:[#allocation4 + $0x510] sm:$0xff] }
 0x62f   : > { %5188 = vmatpush.msrb.mxu1 %v4788_v59  ;;  %v4869_v59 = vld [vmem:[#allocation4 + $0x398] sm:$0xff] }
 0x630   : > { %5204 = vmatpush.msrb.mxu2 %v4868_v14  ;;  %v4912_v14 = vld [vmem:[#allocation4 + $0x4f0] sm:$0xff] }
 0x631   : > { %5137 = vmatmul.f32.vlgmr.msra.gmra.mxu2 %v6808_v52  ;;  %5189 = vmatpush.msrb.mxu1 %v4784_v46  ;;  %v4865_v46 = vld [vmem:[#allocation4 + $0x378] sm:$0xff] }
 0x632   : > { %5205 = vmatpush.msrb.mxu2 %v4864_v63  ;;  %v4908_v63 = vld [vmem:[#allocation4 + $0x4d0] sm:$0xff] }
 0x633   : > { %5190 = vmatpush.msrb.mxu1 %v4780_v61  ;;  %v4861_v61 = vld [vmem:[#allocation4 + $0x358] sm:$0xff] }
 0x634   : > { %5206 = vmatpush.msrb.mxu2 %v4860_v1  ;;  %v4904_v1 = vld [vmem:[#allocation4 + $0x4b0] sm:$0xff] }
 0x635   : > { %5191 = vmatpush.msrb.mxu1 %v4776_v26  ;;  %v4857_v26 = vld [vmem:[#allocation4 + $0x338] sm:$0xff] }
 0x636   : > { %5207 = vmatpush.msrb.mxu2 %v4856_v10  ;;  %v4900_v10 = vld [vmem:[#allocation4 + $0x490] sm:$0xff] }
 0x637   : > { %5192 = vmatpush.msrb.mxu1 %v4772_v42  ;;  %v4678_v42 = vpop.f32.mrf.mxu1 }
 0x638   : > { %5208 = vmatpush.msrb.mxu2 %v4852_v43  ;;  %v4853_v43 = vld [vmem:[#allocation4 + $0x318] sm:$0xff]  ;;  %v4679_v34 = vadd.f32 %v4678_v42, %v4416_v20  ;;  %v4948_v42 = vld [vmem:[#allocation4 + $0x610] sm:$0xff] }
 0x639   : > { %5193 = vmatpush.msrb.mxu1 %v4768_v4  ;;  %v4769_v4 = vld [vmem:[#allocation4 + $0x78] sm:$0xff] }
 0x63a   : > { %5209 = vmatpush.msrb.mxu2 %v4848_v50  ;;  %v4849_v50 = vld [vmem:[#allocation4 + $0x2f8] sm:$0xff]  ;;  %v4699_v54 = vadd.f32 %v4698_v40, %v4679_v34 }
 0x63b   : > { %5194 = vmatpush.msrb.mxu1 %v4764_v12  ;;  %v4765_v12 = vld [vmem:[#allocation4 + $0x58] sm:$0xff] }
 0x63c   : > { %5210 = vmatpush.msrb.mxu2 %v4844_v56  ;;  %v4845_v56 = vld [vmem:[#allocation4 + $0x2d8] sm:$0xff] }
 0x63d   : > { %5195 = vmatpush.msrb.mxu1 %v4760_v58  ;;  %v4761_v58 = vld [vmem:[#allocation4 + $0x38] sm:$0xff] }
 0x63e   : > { %v4658_v6 = vpop.f32.mrf.mxu0  ;;  %5211 = vmatpush.msrb.mxu2 %v4840_v5  ;;  %v4884_v5 = vld [vmem:[#allocation4 + $0x410] sm:$0xff]  ;;  %v5009_v20 = vld [vmem:[#allocation4 + $0x7f8] sm:$0xff] }
 0x63f   : > { %v6814_v28 = vadd.f32 %v4658_v6, %v4639_v9  ;;  %5196 = vmatpush.msrb.mxu1 %v4756_v39  ;;  %v4837_v9 = vld [vmem:[#allocation4 + $0x298] sm:$0xff] }
 0x640   : > { %5212 = vmatpush.msrb.mxu2 %v4836_v37  ;;  %5197 = vmatmul.f32.vlgmr.msrb.gmra.mxu1 %v6804_v32  ;;  %v4745_v37 = vrot.slane %v6808_v52, 7  ;;  %v4997_v40 = vld [vmem:[#allocation4 + $0x798] sm:$0xff] }
 0x641   : > { %5077 = vmatmul.f32.vlgmr.msrb.gmra.mxu3 %v6814_v28  ;;  %5261 = vmatpush.msra.mxu1 %v4817_v57  ;;  %v5008_v57 = vld [vmem:[#allocation4 + $0x7f0] sm:$0xff]  ;;  %v4989_v34 = vld [vmem:[#allocation4 + $0x758] sm:$0xff] }
 0x642   : > { %5221 = vmatpush.msrb.mxu3 %v4944_v55  ;;  %5213 = vmatpush.msrb.mxu2 %v4832_v18  ;;  %v4746_v55 = vrot.slane %v6814_v28, 6 }
 0x643   : > { %5262 = vmatpush.msra.mxu1 %v4813_v15  ;;  %v4833_v15 = vld [vmem:[#allocation4 + $0x278] sm:$0xff] }
 0x644   : > { %5222 = vmatpush.msrb.mxu3 %v4940_v19  ;;  %5214 = vmatpush.msrb.mxu2 %v4828_v51  ;;  %v4718_v33 = vpop.f32.mrf.mxu3  ;;  %v4941_v19 = vld [vmem:[#allocation4 + $0x5d8] sm:$0xff]  ;;  %v4748_v51 = vsel %vm1141_vm6, %v6804_v32, %v4745_v37  ;;  %v5373_v37 = vld [vmem:[%s7119_s5 + $0x70] sm:$0xff] }
 0x645   : > { %5263 = vmatpush.msra.mxu1 %v4809_v23  ;;  %v4719_v62 = vadd.f32 %v4718_v33, %v4699_v54  ;;  %v4977_v33 = vld [vmem:[#allocation4 + $0x6f8] sm:$0xff] }
 0x646   : > { %5223 = vmatpush.msrb.mxu3 %v4936_v27  ;;  %5215 = vmatpush.msrb.mxu2 %v4824_v3  ;;  %v4829_v27 = vld [vmem:[#allocation4 + $0x258] sm:$0xff]  ;;  %v5000_v3 = vld [vmem:[#allocation4 + $0x7b0] sm:$0xff] }
 0x647   : > { %5264 = vmatpush.msra.mxu1 %v4805_v31  ;;  %v4969_v54 = vld [vmem:[#allocation4 + $0x6b8] sm:$0xff] }
 0x648   : > { %5224 = vmatpush.msrb.mxu3 %v4932_v25  ;;  %5216 = vmatpush.msrb.mxu2 %v4820_v11  ;;  %v4937_v25 = vld [vmem:[#allocation4 + $0x5b8] sm:$0xff] }
 0x649   : > { %5157 = vmatmul.f32.vlgmr.msra.gmra.mxu3 %v6814_v28  ;;  %5217 = vmatmul.f32.vlgmr.msrb.gmra.mxu2 %v6808_v52  ;;  %v4825_v11 = vld [vmem:[#allocation4 + $0x238] sm:$0xff] }
 0x64a   : > { %5225 = vmatpush.msrb.mxu3 %v4928_v38  ;;  %5265 = vmatpush.msra.mxu1 %v4801_v44  ;;  %v4996_v38 = vld [vmem:[#allocation4 + $0x790] sm:$0xff]  ;;  %v4933_v44 = vld [vmem:[#allocation4 + $0x598] sm:$0xff] }
 0x64b   : > { %5281 = vmatpush.msra.mxu2 %v4881_v35  ;;  %v4821_v35 = vld [vmem:[#allocation4 + $0x218] sm:$0xff] }
 0x64c   : > { %5226 = vmatpush.msrb.mxu3 %v4924_v45  ;;  %5266 = vmatpush.msra.mxu1 %v4797_v29  ;;  %v4929_v45 = vld [vmem:[#allocation4 + $0x578] sm:$0xff]  ;;  %v4988_v29 = vld [vmem:[#allocation4 + $0x750] sm:$0xff] }
 0x64d   : > { %5282 = vmatpush.msra.mxu2 %v4877_v30  ;;  %v4925_v30 = vld [vmem:[#allocation4 + $0x558] sm:$0xff] }
 0x64e   : > { %5227 = vmatpush.msrb.mxu3 %v4920_v13  ;;  %5267 = vmatpush.msra.mxu1 %v4793_v48  ;;  %v4984_v13 = vld [vmem:[#allocation4 + $0x730] sm:$0xff]  ;;  %v4921_v48 = vld [vmem:[#allocation4 + $0x538] sm:$0xff] }
 0x64f   : > { %5283 = vmatpush.msra.mxu2 %v4873_v60  ;;  %v4980_v60 = vld [vmem:[#allocation4 + $0x710] sm:$0xff] }
 0x650   : > { %5228 = vmatpush.msrb.mxu3 %v4916_v36  ;;  %5268 = vmatpush.msra.mxu1 %v4789_v7  ;;  %v4917_v36 = vld [vmem:[#allocation4 + $0x518] sm:$0xff]  ;;  %v4976_v7 = vld [vmem:[#allocation4 + $0x6f0] sm:$0xff] }
 0x651   : > { %5284 = vmatpush.msra.mxu2 %v4869_v59  ;;  %v4913_v59 = vld [vmem:[#allocation4 + $0x4f8] sm:$0xff] }
 0x652   : > { %5229 = vmatpush.msrb.mxu3 %v4912_v14  ;;  %5269 = vmatpush.msra.mxu1 %v4785_v17  ;;  %v4972_v14 = vld [vmem:[#allocation4 + $0x6d0] sm:$0xff]  ;;  %v4909_v17 = vld [vmem:[#allocation4 + $0x4d8] sm:$0xff] }
 0x653   : > { %5285 = vmatpush.msra.mxu2 %v4865_v46  ;;  %v4968_v46 = vld [vmem:[#allocation4 + $0x6b0] sm:$0xff] }
 0x654   : > { %5230 = vmatpush.msrb.mxu3 %v4908_v63  ;;  %5270 = vmatpush.msra.mxu1 %v4781_v47  ;;  %v4964_v63 = vld [vmem:[#allocation4 + $0x690] sm:$0xff]  ;;  %v4901_v47 = vld [vmem:[#allocation4 + $0x498] sm:$0xff] }
 0x655   : > { %5286 = vmatpush.msra.mxu2 %v4861_v61  ;;  %v4960_v61 = vld [vmem:[#allocation4 + $0x670] sm:$0xff] }
 0x656   : > { %5231 = vmatpush.msrb.mxu3 %v4904_v1  ;;  %5271 = vmatpush.msra.mxu1 %v4777_v8  ;;  %v4897_v1 = vld [vmem:[#allocation4 + $0x478] sm:$0xff]  ;;  %v4956_v8 = vld [vmem:[#allocation4 + $0x650] sm:$0xff] }
 0x657   : > { %5287 = vmatpush.msra.mxu2 %v4857_v26  ;;  %v4893_v26 = vld [vmem:[#allocation4 + $0x458] sm:$0xff] }
 0x658   : > { %5232 = vmatpush.msrb.mxu3 %v4900_v10  ;;  %5272 = vmatpush.msra.mxu1 %v4773_v21  ;;  %v4952_v10 = vld [vmem:[#allocation4 + $0x630] sm:$0xff]  ;;  %v4889_v21 = vld [vmem:[#allocation4 + $0x438] sm:$0xff] }
 0x659   : > { %5288 = vmatpush.msra.mxu2 %v4853_v43  ;;  %v4885_v43 = vld [vmem:[#allocation4 + $0x418] sm:$0xff] }
 0x65a   : > { %5233 = vmatpush.msrb.mxu3 %v4896_v53  ;;  %5273 = vmatpush.msra.mxu1 %v4769_v4  ;;  %v5005_v53 = vld [vmem:[#allocation4 + $0x7d8] sm:$0xff] }
 0x65b   : > { %5289 = vmatpush.msra.mxu2 %v4849_v50  ;;  %v5001_v4 = vld [vmem:[#allocation4 + $0x7b8] sm:$0xff] }
 0x65c   : > { %5234 = vmatpush.msrb.mxu3 %v4892_v0  ;;  %5274 = vmatpush.msra.mxu1 %v4765_v12  ;;  %v4993_v50 = vld [vmem:[#allocation4 + $0x778] sm:$0xff] }
 0x65d   : > { %5290 = vmatpush.msra.mxu2 %v4845_v56  ;;  %v4985_v0 = vld [vmem:[#allocation4 + $0x738] sm:$0xff] }
 0x65e   : > { %v4738_v39 = vpop.f32.mrf.mxu0  ;;  %5235 = vmatpush.msrb.mxu3 %v4888_v24  ;;  %5275 = vmatpush.msra.mxu1 %v4761_v58  ;;  %v4981_v12 = vld [vmem:[#allocation4 + $0x718] sm:$0xff] }
 0x65f   : > { %v6822_v6 = vadd.f32 %v4738_v39, %v4719_v62  ;;  %5291 = vmatpush.msra.mxu2 %v4841_v49  ;;  %v4973_v56 = vld [vmem:[#allocation4 + $0x6d8] sm:$0xff] }
 0x660   : > { %5236 = vmatpush.msrb.mxu3 %v4884_v5  ;;  %5276 = vmatpush.msra.mxu1 %v4757_v2  ;;  %v4961_v24 = vld [vmem:[#allocation4 + $0x678] sm:$0xff] }
 0x661   : > { %v4747_v18 = vrot.slane %v6822_v6, 5  ;;  %5292 = vmatpush.msra.mxu2 %v4837_v9  ;;  %5097 = vmatmul.f32.vlgmr.msra.gmra.mxu0 %v6822_v6  ;;  %v4957_v58 = vld [vmem:[#allocation4 + $0x658] sm:$0xff] }
 0x662   : > { %5237 = vmatmul.f32.vlgmr.msrb.gmra.mxu3 %v6814_v28  ;;  %5241 = vmatpush.msra.mxu0 %v5008_v57  ;;  %v4953_v49 = vld [vmem:[#allocation4 + $0x638] sm:$0xff]  ;;  %v5405_v57 = vld [vmem:[%s7119_s5 + $0x170] sm:$0xff] }
 0x663   : > { %v4749_v23 = vsel %vm1143_vm7, %v4746_v55, %v4747_v18  ;;  %5277 = vmatmul.f32.vlgmr.msra.gmra.mxu1 %v6804_v32  ;;  %5301 = vmatpush.msra.mxu3 %v4945_v41  ;;  %v4992_v32 = vld [vmem:[#allocation4 + $0x770] sm:$0xff]  ;;  %v4949_v62 = vld [vmem:[#allocation4 + $0x618] sm:$0xff]  ;;  %v5372_v55 = vld [vmem:[%s7119_s5 + $0x68] sm:$0xff] }
 0x664   : > { %v4750_v31 = vsel %vm1145_vm8, %v4748_v51, %v4749_v23  ;;  %5293 = vmatpush.msra.mxu2 %v4833_v15  ;;  %5242 = vmatpush.msra.mxu0 %v5004_v22  ;;  %v5374_v5 = vld [vmem:[%s7119_s5 + $0x78] sm:$0xff]  ;;  %v5421_v41 = vld [vmem:[%s7119_s5 + $0x1f0] sm:$0xff]  ;;  %v5388_v18 = vld [vmem:[%s7119_s5 + $0xe8] sm:$0xff] }
 0x665   : > { %5302 = vmatpush.msra.mxu3 %v4941_v19  ;;  %4752 = vst.msk [vmem:[#allocation3 + $0x6] ss:$8 sm:$0xf] %vm6592_vm9, %v4750_v31  ;;  %v5390_v2 = vld [vmem:[%s7119_s5 + $0xf8] sm:$0xff]  ;;  %5428 = vmatpush.msrb.mxu1 %v5374_v5  ;;  %v5404_v15 = vld [vmem:[%s7119_s5 + $0x168] sm:$0xff]  ;;  %v5371_v19 = vld [vmem:[%s7119_s5 + $0x60] sm:$0xff] }
 0x666   : > { %5294 = vmatpush.msra.mxu2 %v4829_v27  ;;  %5243 = vmatpush.msra.mxu0 %v5000_v3  ;;  %v5406_v39 = vld [vmem:[%s7119_s5 + $0x178] sm:$0xff]  ;;  %v5420_v22 = vld [vmem:[%s7119_s5 + $0x1e8] sm:$0xff]  ;;  %v5387_v51 = vld [vmem:[%s7119_s5 + $0xe0] sm:$0xff] }
 0x667   : > { %5303 = vmatpush.msra.mxu3 %v4937_v25  ;;  %v5422_v9 = vld [vmem:[%s7119_s5 + $0x1f8] sm:$0xff]  ;;  %5429 = vmatpush.msrb.mxu1 %v5373_v37  ;;  %v5403_v23 = vld [vmem:[%s7119_s5 + $0x160] sm:$0xff]  ;;  %v5376_v5 = vld [vmem:[%s7119_s5 + $0x88] sm:$0xff] }
 0x668   : > { %5295 = vmatpush.msra.mxu2 %v4825_v11  ;;  %5244 = vmatpush.msra.mxu0 %v4996_v38  ;;  %v5419_v27 = vld [vmem:[%s7119_s5 + $0x1e0] sm:$0xff]  ;;  %v5370_v3 = vld [vmem:[%s7119_s5 + $0x58] sm:$0xff]  ;;  %v5369_v38 = vld [vmem:[%s7119_s5 + $0x50] sm:$0xff] }
 0x669   : > { %5304 = vmatpush.msra.mxu3 %v4933_v44  ;;  %5177 = vmatmul.f32.vlgmr.msrb.gmra.mxu0 %v6822_v6  ;;  %v5386_v31 = vld [vmem:[%s7119_s5 + $0xd8] sm:$0xff]  ;;  %v5385_v44 = vld [vmem:[%s7119_s5 + $0xd0] sm:$0xff]  ;;  %v5359_v37 = vld [vmem:[%s7119_s5] sm:$0xff] }
 0x66a   : > { %5296 = vmatpush.msra.mxu2 %v4821_v35  ;;  %5245 = vmatpush.msra.mxu0 %v4992_v32  ;;  %v5402_v25 = vld [vmem:[%s7119_s5 + $0x158] sm:$0xff]  ;;  %v5401_v35 = vld [vmem:[%s7119_s5 + $0x150] sm:$0xff] }
 0x66b   : > { %5297 = vmatmul.f32.vlgmr.msra.gmra.mxu2 %v6808_v52  ;;  %5305 = vmatpush.msra.mxu3 %v4929_v45  ;;  %v4905_v52 = vld [vmem:[#allocation4 + $0x4b8] sm:$0xff]  ;;  %v5417_v32 = vld [vmem:[%s7119_s5 + $0x1d0] sm:$0xff]  ;;  %v5368_v45 = vld [vmem:[%s7119_s5 + $0x48] sm:$0xff] }
 0x66c   : > { %5246 = vmatpush.msra.mxu0 %v4988_v29  ;;  %5448 = vmatpush.msrb.mxu2 %v5390_v2  ;;  %v5418_v11 = vld [vmem:[%s7119_s5 + $0x1d8] sm:$0xff]  ;;  %v5384_v29 = vld [vmem:[%s7119_s5 + $0xc8] sm:$0xff] }
 0x66d   : > { %5306 = vmatpush.msra.mxu3 %v4925_v30  ;;  %5430 = vmatpush.msrb.mxu1 %v5372_v55  ;;  %v5400_v30 = vld [vmem:[%s7119_s5 + $0x148] sm:$0xff] }
 0x66e   : > { %5247 = vmatpush.msra.mxu0 %v4984_v13  ;;  %v5416_v13 = vld [vmem:[%s7119_s5 + $0x1c8] sm:$0xff] }
 0x66f   : > { %5307 = vmatpush.msra.mxu3 %v4921_v48  ;;  %5431 = vmatpush.msrb.mxu1 %v5371_v19  ;;  %v5367_v48 = vld [vmem:[%s7119_s5 + $0x40] sm:$0xff]  ;;  %v5392_v2 = vld [vmem:[%s7119_s5 + $0x108] sm:$0xff] }
 0x670   : > { %5248 = vmatpush.msra.mxu0 %v4980_v60  ;;  %v5383_v60 = vld [vmem:[%s7119_s5 + $0xc0] sm:$0xff] }
 0x671   : > { %5308 = vmatpush.msra.mxu3 %v4917_v36  ;;  %5432 = vmatpush.msrb.mxu1 %v5370_v3  ;;  %v5399_v36 = vld [vmem:[%s7119_s5 + $0x140] sm:$0xff] }
 0x672   : > { %5249 = vmatpush.msra.mxu0 %v4976_v7  ;;  %v5415_v7 = vld [vmem:[%s7119_s5 + $0x1c0] sm:$0xff] }
 0x673   : > { %5309 = vmatpush.msra.mxu3 %v4913_v59  ;;  %5433 = vmatpush.msrb.mxu1 %v5369_v38 }
 0x674   : > { %5250 = vmatpush.msra.mxu0 %v4972_v14 }
 0x675   : > { %5310 = vmatpush.msra.mxu3 %v4909_v17  ;;  %5434 = vmatpush.msrb.mxu1 %v5368_v45  ;;  %v5366_v17 = vld [vmem:[%s7119_s5 + $0x38] sm:$0xff] }
 0x676   : > { %5251 = vmatpush.msra.mxu0 %v4968_v46  ;;  %v5382_v46 = vld [vmem:[%s7119_s5 + $0xb8] sm:$0xff] }
 0x677   : > { %5311 = vmatpush.msra.mxu3 %v4905_v52  ;;  %5435 = vmatpush.msrb.mxu1 %v5367_v48  ;;  %v5398_v52 = vld [vmem:[%s7119_s5 + $0x138] sm:$0xff] }
 0x678   : > { %5252 = vmatpush.msra.mxu0 %v4964_v63  ;;  %v5414_v63 = vld [vmem:[%s7119_s5 + $0x1b8] sm:$0xff] }
 0x679   : > { %5312 = vmatpush.msra.mxu3 %v4901_v47  ;;  %5436 = vmatpush.msrb.mxu1 %v5366_v17 }
 0x67a   : > { %5253 = vmatpush.msra.mxu0 %v4960_v61  ;;  %v5365_v61 = vld [vmem:[%s7119_s5 + $0x30] sm:$0xff] }
 0x67b   : > { %5313 = vmatpush.msra.mxu3 %v4897_v1  ;;  %v5381_v1 = vld [vmem:[%s7119_s5 + $0xb0] sm:$0xff]  ;;  %5437 = vmatpush.msrb.mxu1 %v5365_v61 }
 0x67c   : > { %5254 = vmatpush.msra.mxu0 %v4956_v8  ;;  %v5397_v8 = vld [vmem:[%s7119_s5 + $0x130] sm:$0xff] }
 0x67d   : > { %5314 = vmatpush.msra.mxu3 %v4893_v26  ;;  %v5413_v26 = vld [vmem:[%s7119_s5 + $0x1b0] sm:$0xff] }
 0x67e   : > { %5255 = vmatpush.msra.mxu0 %v4952_v10  ;;  %v5364_v10 = vld [vmem:[%s7119_s5 + $0x28] sm:$0xff] }
 0x67f   : > { %5315 = vmatpush.msra.mxu3 %v4889_v21  ;;  %v5380_v21 = vld [vmem:[%s7119_s5 + $0xa8] sm:$0xff]  ;;  %5438 = vmatpush.msrb.mxu1 %v5364_v10 }
 0x680   : > { %5256 = vmatpush.msra.mxu0 %v4948_v42  ;;  %v5396_v42 = vld [vmem:[%s7119_s5 + $0x128] sm:$0xff] }
 0x681   : > { %5316 = vmatpush.msra.mxu3 %v4885_v43  ;;  %5257 = vmatmul.f32.vlgmr.msra.gmra.mxu0 %v6822_v6  ;;  %v5412_v43 = vld [vmem:[%s7119_s5 + $0x1a8] sm:$0xff] }
 0x682   : > { %5317 = vmatmul.f32.vlgmr.msra.gmra.mxu3 %v6814_v28  ;;  %5321 = vmatpush.msrb.mxu0 %v5009_v20  ;;  %v4965_v28 = vld [vmem:[#allocation4 + $0x698] sm:$0xff] }
 0x683   : > { %5468 = vmatpush.msrb.mxu3 %v5406_v39  ;;  %v5408_v39 = vld [vmem:[%s7119_s5 + $0x188] sm:$0xff] }
 0x684   : > { %5322 = vmatpush.msrb.mxu0 %v5005_v53  ;;  %v5363_v53 = vld [vmem:[%s7119_s5 + $0x20] sm:$0xff] }
 0x685   : > { %5469 = vmatpush.msrb.mxu3 %v5405_v57  ;;  %5439 = vmatpush.msrb.mxu1 %v5363_v53  ;;  %v5391_v57 = vld [vmem:[%s7119_s5 + $0x100] sm:$0xff] }
 0x686   : > { %5323 = vmatpush.msrb.mxu0 %v5001_v4  ;;  %v5379_v4 = vld [vmem:[%s7119_s5 + $0xa0] sm:$0xff] }
 0x687   : > { %5470 = vmatpush.msrb.mxu3 %v5404_v15  ;;  %v5011_v15 = vld [vmem:[#allocation3 + $0x7] ss:$8 sm:$0xf]  ;;  %v5766_v53 = vld [vmem:[%s7120_s6] ss:$0 sm:$0xff] }
 0x688   : > { %5324 = vmatpush.msrb.mxu0 %v4997_v40  ;;  %v5395_v40 = vld [vmem:[%s7119_s5 + $0x120] sm:$0xff]  ;;  %v5016_v38 = vperm.slane %v5011_v15, 3 }
 0x689   : > { %5471 = vmatpush.msrb.mxu3 %v5403_v23 }
 0x68a   : > { %5325 = vmatpush.msrb.mxu0 %v4993_v50  ;;  %v5411_v50 = vld [vmem:[%s7119_s5 + $0x1a0] sm:$0xff] }
 0x68b   : > { %5472 = vmatpush.msrb.mxu3 %v5402_v25 }
 0x68c   : > { %5326 = vmatpush.msrb.mxu0 %v4989_v34 }
 0x68d   : > { %5473 = vmatpush.msrb.mxu3 %v5401_v35  ;;  %v5013_v35 = vperm.slane %v5011_v15, 0 }
 0x68e   : > { %5327 = vmatpush.msrb.mxu0 %v4985_v0  ;;  %v5362_v0 = vld [vmem:[%s7119_s5 + $0x18] sm:$0xff] }
 0x68f   : > { %5474 = vmatpush.msrb.mxu3 %v5400_v30  ;;  %5440 = vmatpush.msrb.mxu1 %v5362_v0 }
 0x690   : > { %5328 = vmatpush.msrb.mxu0 %v4981_v12  ;;  %v5378_v12 = vld [vmem:[%s7119_s5 + $0x98] sm:$0xff] }
 0x691   : > { %5475 = vmatpush.msrb.mxu3 %v5399_v36 }
 0x692   : > { %5329 = vmatpush.msrb.mxu0 %v4977_v33  ;;  %v5394_v33 = vld [vmem:[%s7119_s5 + $0x118] sm:$0xff] }
 0x693   : > { %5476 = vmatpush.msrb.mxu3 %v5398_v52 }
 0x694   : > { %5330 = vmatpush.msrb.mxu0 %v4973_v56  ;;  %v5410_v56 = vld [vmem:[%s7119_s5 + $0x198] sm:$0xff] }
 0x695   : > { %5477 = vmatpush.msrb.mxu3 %v5397_v8 }
 0x696   : > { %5331 = vmatpush.msrb.mxu0 %v4969_v54  ;;  %v5361_v54 = vld [vmem:[%s7119_s5 + $0x10] sm:$0xff] }
 0x697   : > { %5478 = vmatpush.msrb.mxu3 %v5396_v42  ;;  %5441 = vmatpush.msrb.mxu1 %v5361_v54 }
 0x698   : > { %5332 = vmatpush.msrb.mxu0 %v4965_v28  ;;  %v5377_v28 = vld [vmem:[%s7119_s5 + $0x90] sm:$0xff] }
 0x699   : > { %5479 = vmatpush.msrb.mxu3 %v5395_v40  ;;  %v7288_v40 = vld [vmem:[#allocation13_spill] sm:$0xff] }
 0x69a   : > { %5333 = vmatpush.msrb.mxu0 %v4961_v24 }
 0x69b   : > { %5480 = vmatpush.msrb.mxu3 %v5394_v33 }
 0x69c   : > { %5334 = vmatpush.msrb.mxu0 %v4957_v58  ;;  %v5393_v58 = vld [vmem:[%s7119_s5 + $0x110] sm:$0xff] }
 0x69d   : > { %v6936_v59 = vpop.f32.mrf.mxu1  ;;  %5481 = vmatpush.msrb.mxu3 %v5393_v58  ;;  %v5920_v58 = vmov 32.0  }
 0x69e   : > { %5335 = vmatpush.msrb.mxu0 %v4953_v49  ;;  %v5409_v49 = vld [vmem:[%s7119_s5 + $0x190] sm:$0xff]  ;;  %5773 = vrcp.f32 %v5920_v58 }
 0x69f   : > { %5482 = vmatpush.msrb.mxu3 %v5392_v2 }
 0x6a0   : > { %5336 = vmatpush.msrb.mxu0 %v4949_v62  ;;  %v5360_v62 = vld [vmem:[%s7119_s5 + $0x8] sm:$0xff] }
 0x6a1   : > { %5337 = vmatmul.f32.vlgmr.msrb.gmra.mxu0 %v6822_v6  ;;  %v5389_v6 = vld [vmem:[%s7119_s5 + $0xf0] sm:$0xff]  ;;  %5442 = vmatpush.msrb.mxu1 %v5360_v62 }
 0x6a2   : > { %5488 = vmatpush.msra.mxu0 %v5422_v9  ;;  %5449 = vmatpush.msrb.mxu2 %v5389_v6  ;;  %v5375_v6 = vld [vmem:[%s7119_s5 + $0x80] sm:$0xff] }
 0x6a3   : > { %5443 = vmatpush.msrb.mxu1 %v5359_v37  ;;  %5483 = vmatpush.msrb.mxu3 %v5391_v57 }
 0x6a4   : > { %5489 = vmatpush.msra.mxu0 %v5421_v41  ;;  %5450 = vmatpush.msrb.mxu2 %v5388_v18  ;;  %v5407_v41 = vld [vmem:[%s7119_s5 + $0x180] sm:$0xff] }
 0x6a5   : > { %v5118_v34 = vpop.f32.mrf.mxu1 }
 0x6a6   : > { %5490 = vmatpush.msra.mxu0 %v5420_v22  ;;  %5451 = vmatpush.msrb.mxu2 %v5387_v51  ;;  %v5014_v51 = vperm.slane %v5011_v15, 1 }
 0x6a8   : > { %5491 = vmatpush.msra.mxu0 %v5419_v27  ;;  %5452 = vmatpush.msrb.mxu2 %v5386_v31  ;;  %v5119_v23 = vadd.f32 %v5118_v34, %v5014_v51  ;;  %v5015_v27 = vperm.slane %v5011_v15, 2 }
 0x6aa   : > { %5492 = vmatpush.msra.mxu0 %v5418_v11  ;;  %5453 = vmatpush.msrb.mxu2 %v5385_v44 }
 0x6ac   : > { %5493 = vmatpush.msra.mxu0 %v5417_v32  ;;  %5454 = vmatpush.msrb.mxu2 %v5384_v29  ;;  %v6938_v14 = vpop.f32.mrf.mxu2 }
 0x6ae   : > { %5494 = vmatpush.msra.mxu0 %v5416_v13  ;;  %5455 = vmatpush.msrb.mxu2 %v5383_v60  ;;  %v5039_v13 = vadd.f32 %v6936_v59, %v5013_v35 }
 0x6b0   : > { %5495 = vmatpush.msra.mxu0 %v5415_v7  ;;  %5456 = vmatpush.msrb.mxu2 %v5382_v46  ;;  %v5059_v7 = vadd.f32 %v6938_v14, %v5039_v13 }
 0x6b2   : > { %5496 = vmatpush.msra.mxu0 %v5414_v63  ;;  %5457 = vmatpush.msrb.mxu2 %v5381_v1 }
 0x6b4   : > { %5497 = vmatpush.msra.mxu0 %v5413_v26  ;;  %5458 = vmatpush.msrb.mxu2 %v5380_v21  ;;  %v5138_v24 = vpop.f32.mrf.mxu2 }
 0x6b5   : > { %v5139_v25 = vadd.f32 %v5138_v24, %v5119_v23 }
 0x6b6   : > { %5498 = vmatpush.msra.mxu0 %v5412_v43  ;;  %5459 = vmatpush.msrb.mxu2 %v5379_v4 }
 0x6b8   : > { %5499 = vmatpush.msra.mxu0 %v5411_v50  ;;  %5460 = vmatpush.msrb.mxu2 %v5378_v12  ;;  %v5427_v50 = vmul.f32 %v5766_v53, %v7288_v40 }
 0x6ba   : > { %5500 = vmatpush.msra.mxu0 %v5410_v56  ;;  %5461 = vmatpush.msrb.mxu2 %v5377_v28 }
 0x6bc   : > { %5501 = vmatpush.msra.mxu0 %v5409_v49  ;;  %5462 = vmatpush.msrb.mxu2 %v5376_v5  ;;  %v5774_v49 = vpop.eup %5773 }
 0x6bd   : > { %v5198_v55 = vpop.f32.mrf.mxu1  ;;  %v5513_v62 = vmul.f32 32.0, %v5774_v49  ;;  %vm5517_vm10 = vweird.f32 %v5774_v49 }
 0x6be   : > { %5502 = vmatpush.msra.mxu0 %v5408_v39  ;;  %5463 = vmatpush.msrb.mxu2 %v5375_v6  ;;  %v5199_v11 = vadd.f32 %v5198_v55, %v5015_v27 }
 0x6bf   : > { %v5514_v5 = vsub.f32 1.0, %v5513_v62 }
 0x6c0   : > { %5503 = vmatpush.msra.mxu0 %v5407_v41 }
 0x6c1   : > { %v5515_v2 = vmul.f32 %v5774_v49, %v5514_v5 }
 0x6c3   : > { %v5516_v39 = vadd.f32 %v5774_v49, %v5515_v2 }
 0x6c4   : > { %v6952_v47 = vpop.f32.mrf.mxu3 }
 0x6c5   : > { %v5079_v63 = vadd.f32 %v6952_v47, %v5059_v7 }
 0x6cc   : > { %v5158_v9 = vpop.f32.mrf.mxu3  ;;  %v5218_v22 = vpop.f32.mrf.mxu2 }
 0x6cd   : > { %v5159_v32 = vadd.f32 %v5158_v9, %v5139_v25  ;;  %v5219_v45 = vadd.f32 %v5218_v22, %v5199_v11  ;;  %v5518_v9 = vsel %vm5517_vm10, %v5774_v49, %v5516_v39  ;;  %v5767_v25 = vld [vmem:[%s7121_s7] ss:$0 sm:$0xff] }
 0x6de   : > { %v6978_v20 = vpop.f32.mrf.mxu0 }
 0x6df   : > { %v5099_v8 = vadd.f32 %v6978_v20, %v5079_v63 }
 0x6e0   : > { %v5278_v3 = vpop.f32.mrf.mxu1 }
 0x6e1   : > { %v5279_v29 = vadd.f32 %v5278_v3, %v5016_v38 }
 0x6e5   : > { %v5238_v19 = vpop.f32.mrf.mxu3 }
 0x6e6   : > { %v5178_v18 = vpop.f32.mrf.mxu0  ;;  %v5239_v48 = vadd.f32 %v5238_v19, %v5219_v45 }
 0x6e7   : > { %v5179_v60 = vadd.f32 %v5178_v18, %v5159_v32 }
 0x6e9   : > { %v5345_v61 = vrot.slane %v5179_v60, 7 }
 0x6eb   : > { %v5348_v21 = vsel %vm1141_vm6, %v5099_v8, %v5345_v61 }
 0x6ee   : > { %v5298_v44 = vpop.f32.mrf.mxu2 }
 0x6ef   : > { %v5299_v36 = vadd.f32 %v5298_v44, %v5279_v29  ;;  %v5768_v44 = vld [vmem:[%s7122_s8] ss:$0 sm:$0xff] }
 0x6fe   : > { %v5258_v31 = vpop.f32.mrf.mxu0 }
 0x6ff   : > { %v5259_v17 = vadd.f32 %v5258_v31, %v5239_v48 }
 0x701   : > { %v5346_v26 = vrot.slane %v5259_v17, 6 }
 0x705   : > { %v5318_v30 = vpop.f32.mrf.mxu3 }
 0x706   : > { %v5319_v46 = vadd.f32 %v5318_v30, %v5299_v36 }
 0x71e   : > { %v5338_v52 = vpop.f32.mrf.mxu0 }
 0x71f   : > { %v5339_v1 = vadd.f32 %v5338_v52, %v5319_v46 }
 0x721   : > { %v5347_v10 = vrot.slane %v5339_v1, 5 }
 0x723   : > { %v5349_v59 = vsel %vm1143_vm7, %v5346_v26, %v5347_v10 }
 0x724   : > { %v5350_v42 = vsel %vm1145_vm8, %v5348_v21, %v5349_v59 }
 0x725   : > { %5352 = vst.msk [vmem:[#allocation3 + $0x7] ss:$8 sm:$0xf] %vm6592_vm9, %v5350_v42 }
 0x726   : > { %5354 = vst.msk [vmem:[#allocation2] sm:$0xf] %vm6592_vm9, %v5350_v42 }
 0x72c   : > { %v5355_v14 = vld [vmem:[#allocation3] sm:$0xff]  ;;  %v5356_v47 = vld [vmem:[#allocation3 + $0x8] sm:$0xff]  ;;  %v5357_v43 = vld [vmem:[#allocation3 + $0x10] sm:$0xff] }
 0x72d   : > { %5444 = vmatmul.f32.vlgmr.msrb.gmra.mxu1 %v5355_v14  ;;  %5464 = vmatmul.f32.vlgmr.msrb.gmra.mxu2 %v5356_v47  ;;  %v5358_v20 = vld [vmem:[#allocation3 + $0x18] sm:$0xff] }
 0x72e   : > { %5484 = vmatmul.f32.vlgmr.msrb.gmra.mxu3 %v5357_v43  ;;  %5504 = vmatmul.f32.vlgmr.msra.gmra.mxu0 %v5358_v20 }
 0x7aa   : > { %v5445_v4 = vpop.f32.mrf.mxu1 }
 0x7ab   : > { %v5446_v34 = vadd.f32 %v5445_v4, %v5427_v50  ;;  %v5505_v56 = vpop.f32.mrf.mxu0 }
 0x7b0   : > { %v5465_v0 = vpop.f32.mrf.mxu2 }
 0x7b1   : > { %v5466_v12 = vadd.f32 %v5465_v0, %v5446_v34  ;;  %v5485_v16 = vpop.f32.mrf.mxu3 }
 0x7b3   : > { %v5486_v33 = vadd.f32 %v5485_v16, %v5466_v12 }
 0x7b5   : > { %v5506_v54 = vadd.f32 %v5505_v56, %v5486_v33 }
 0x7b7   : > { %v5508_v28 = vadd.f32 %v5506_v54, %v7288_v40 }
 0x7b9   : > { %v5509_v24 = vsel %vm391_vm1, %v5508_v28, 0.0 }
 0x7ba   : > { %5510 = vadd.xlane.f32.xlu0 %v5509_v24 }
 0x82d   : > { %v5511_v37 = vpop.xlane.xlu0 %5510 }
 0x82e   : > { %v5519_v6 = vmul.f32 %v5518_v9, %v5511_v37 }
 0x830   : > { %v5520_v57 = vsub.f32 %v5508_v28, %v5519_v6 }
 0x832   : > { %v5521_v41 = vmul.f32 %v5520_v57, %v5520_v57 }
 0x834   : > { %v5522_v55 = vsel %vm391_vm1, %v5521_v41, 0.0 }
 0x835   : > { %5523 = vadd.xlane.f32.xlu0 %v5522_v55 }
 0x8a8   : > { %v5524_v18 = vpop.xlane.xlu0 %5523 }
 0x8a9   : > { %v5525_v15 = vmul.f32 %v5524_v18, %v5518_v9 }
 0x8ab   : > { %v5526_v22 = vadd.f32 1e-05, %v5525_v15 }
 0x8ad   : > { %5775 = vrsqrt.f32 %v5526_v22  ;;  %vm5533_vm12 = vweird.f32 %v5526_v22 }
 0x8b3   : > { %v5776_v19 = vpop.eup %5775 }
 0x8b4   : > { %v5528_v51 = vmul.f32 %v5776_v19, %v5526_v22  ;;  %vm5534_vm11 = vweird.f32 %v5776_v19 }
 0x8b5   : > { %vm5535_vm13 = vmor %vm5533_vm12, %vm5534_vm11 }
 0x8b6   : > { %v5529_v23 = vmul.f32 %v5776_v19, %v5528_v51 }
 0x8b8   : > { %v5530_v27 = vmul.f32 0.5, %v5529_v23 }
 0x8ba   : > { %v5531_v3 = vsub.f32 1.5, %v5530_v27 }
 0x8bc   : > { %v5532_v31 = vmul.f32 %v5776_v19, %v5531_v3 }
 0x8be   : > { %v5536_v11 = vsel %vm5535_vm13, %v5776_v19, %v5532_v31 }
 0x8bf   : > { %v5537_v38 = vmul.f32 %v5536_v11, %v5520_v57 }
 0x8c1   : > { %v5542_v35 = vmul.f32 %v5767_v25, %v5537_v38 }
 0x8c3   : > { %v5547_v32 = vadd.f32 %v5768_v44, %v5542_v35 }
 0x8c5   : > { %5548 = vst.msk [vmem:[%s7290_s18] sm:$0xff] %vm391_vm1, %v5547_v32 }
 0x8c6   : > { %5843 = shalt.err (!%p5840_p12)
}
 0x8c7   : > { %5683 = dma.vmem_to_hbm [thread:$0]  (%p6023_p3), %s5565_s19, 128, %s5567_s27, %s5550_s3  }
 0x8c8 PF: > { %p5695_p13 = scmp.ge.s32.totalorder %s5914_s16, 2  ;;  %s5578_s29 = sand.u32 1, %s5886_s30  }
 0x8c9   : > { %s5579_s13 = scalar_lea.sflag [#allocation6], %s5578_s29 }
 0x8ca   : > { %p5690_p0 = pnand %p5695_p13, %p6032_p8 }
 0x8cc   : > { %p5691_p1 = pneg %p5690_p0 }
 0x8ce   : > { %5881 = dma.done.wait (%p5691_p1), %s5579_s13, 128  }
 0x8cf   : > { %5883 = vsyncadd (%p5691_p1), %s5579_s13, 4294967168  ;;  %s23_s16 = sadd.s32 1, %s5914_s16   ;;  %s7292_s12 = sld [smem:[#allocation10_spill]] }
 0x8d0   : > { %p20_p2 = scmp.ge.s32.totalorder %s23_s16, 6   ;;  %s7293_s23 = sld [smem:[#allocation11_spill]] }
 0x8d1   : > { %s7294_s17 = sld [smem:[#allocation12_spill]]  ;;  %s7295_s30 = smov %s5890_s10 }
 0x8d2   : > { %s7296_s10 = smov %s5894_s11  ;;  %s7297_s11 = smov %s6053_s14 }
 0x8d3   : > { %s7298_s13 = smov %s5910_s15  ;;  %22 = sbr.rel (!%p20_p2) target bundleno = 9 (0x9), region = 107 }
 0x8d6   : > { %s7299_s14 = smov %s7293_s23 }
 0x8d7   : > { %s7300_s15 = smov %s7294_s17 }
 0x8d8   :  { %5585 = vsyncpa [#allocation5], 1 }
 0x8d9   :  { %5587 = vsyncpa [#allocation5 + $0x1], 1 }
 0x8da   :  { %5588 = vsyncpa [#allocation6], 1 }
 0x8db   :  { %5590 = vsyncpa [#allocation6 + $0x1], 1 }

</bundles_post_ra>
